<compile_context>
chip_gen: v7x
topology: tpu7x:2x2x1
jax: 0.10.0
libtpu: 0.0.40
codegen_flags: <defaults>
</compile_context>

<pallas_src>
import functools

import numpy as np
import jax
import jax.numpy as jnp
from jax.experimental import pallas as pl
from jax.experimental.pallas import tpu as pltpu


# ----------------------------------------------------------------------------
# Hermite basis A (deterministic buffer setup, mirrors HermiteBasisA/steerable_A)
# ----------------------------------------------------------------------------
def _hermite_poly(x, n):
    coeff = [0.0] * n + [1.0]
    return np.polynomial.hermite_e.hermeval(x, coeff)


def _onescale_grid_hermite_gaussian(size, scale, max_order):
    X = np.linspace(-(size // 2), size // 2, size)
    order_y, order_x = np.indices([max_order + 1, max_order + 1])
    G = np.exp(-X ** 2 / (2 * scale ** 2)) / scale
    basis_x = np.stack([G * _hermite_poly(X / scale, n) for n in order_x.ravel()])
    basis_y = np.stack([G * _hermite_poly(X / scale, n) for n in order_y.ravel()])
    return basis_x[:, :, None] * basis_y[:, None, :]


def hermite_basis_a(kernel_size, scales, effective_size):
    """Returns the HermiteBasisA buffer of shape [num_funcs, num_scales, ks, ks]."""
    max_order = effective_size - 1
    max_scale = max(scales)
    per_scale = []
    for scale in scales:
        size_before_pad = int(kernel_size * scale / max_scale) // 2 * 2 + 1
        basis = _onescale_grid_hermite_gaussian(size_before_pad, scale, max_order)
        pad = (kernel_size - size_before_pad) // 2
        basis = np.pad(basis, ((0, 0), (pad, pad), (pad, pad)))
        per_scale.append(basis)
    basis = np.stack(per_scale, axis=1).astype(np.float32)  # [F, S, ks, ks]
    num_funcs = effective_size ** 2
    return jnp.asarray(basis[:num_funcs])


# ----------------------------------------------------------------------------
# helpers
# ----------------------------------------------------------------------------
def _round_up(x, m):
    return (x + m - 1) // m * m


def _pick_row_tile(hout, wout, target_m=128):
    """Largest divisor `th` of hout with th*wout <= target_m and a sublane-friendly
    tile (th*wout % 8 == 0); falls back to the full height (single tile)."""
    best = None
    for th in range(1, hout + 1):
        if hout % th != 0 or th * wout > target_m:
            continue
        if th == hout or (th * wout) % 8 == 0:
            best = th
    return best if best is not None else hout


# ----------------------------------------------------------------------------
# Pallas kernel: one (batch, row-tile) per grid step
# ----------------------------------------------------------------------------
def _ses_conv_kernel(x_ref, w_ref, o_ref, col_ref, *, ks, th, wout, cin):
    # x_ref:   (1, Hp, Wp, Cin)      padded image (resident across row tiles)
    # w_ref:   (ks*ks*Cin, OS_pad)   tap-major expanded weights (resident)
    # o_ref:   (1, th*wout, OS_pad)  output row-tile (lane-dense)
    # col_ref: (th*wout, ks*ks*Cin)  im2col scratch (VMEM)
    row0 = pl.program_id(1) * th

    # Build the im2col tile: each tap is a short load->store into VMEM scratch,
    # so no large carried accumulator / vreg spills.
    for i in range(ks):
        for j in range(ks):
            tap = i * ks + j
            x_win = x_ref[0, pl.ds(row0 + i, th), j:j + wout, :]        # (th, wout, cin)
            col_ref[:, tap * cin:(tap + 1) * cin] = x_win.reshape(th * wout, cin)

    # Single MXU matmul: M = th*wout, K = ks*ks*cin, N = OS_pad (multiple of 128).
    o_ref[0] = jnp.dot(col_ref[...], w_ref[...],
                       preferred_element_type=jnp.float32).astype(o_ref.dtype)


# ----------------------------------------------------------------------------
# wrapper
# ----------------------------------------------------------------------------
def ses_conv_z2_h(x_nchw, weight, basis, *, out_channels, num_scales, kernel_size,
                  stride=1, padding=0, dilation=1, padding_mode='constant',
                  bias=None, compute_dtype=None, row_tile_m=128):
    """Forward pass of SESConv_Z2_H: [B, Cin, H, W] -> [B, Cout, S, H', W']."""
    if stride != 1 or dilation != 1:
        # TODO(synk): non-unit stride/dilation not implemented in the Pallas kernel.
        raise NotImplementedError("only stride=1, dilation=1 supported")

    B, Cin, H, W = x_nchw.shape
    O, I, F = weight.shape
    S, ks = num_scales, kernel_size
    assert O == out_channels and I == Cin
    out_dtype = x_nchw.dtype

    # --- parameter setup (glue): expand the weight through the basis ---------
    # kernel[o, i, s, :, :] = sum_f weight[o, i, f] * basis[f, s, :, :]
    k = (weight.reshape(O * I, F) @ basis.reshape(F, -1)).reshape(O, I, S, ks, ks)
    k = jnp.transpose(k, (0, 2, 1, 3, 4)).reshape(O * S, I, ks, ks)   # conv2d OIHW
    w_taps = jnp.transpose(k, (2, 3, 1, 0))                            # (kh, kw, Cin, OS)
    OS = O * S
    OS_pad = _round_up(OS, 128)            # lane-dense N / unmasked output stores
    K = ks * ks * Cin
    w_flat = w_taps.reshape(K, OS)         # row index = (i*kw + j)*Cin + c
    if OS_pad != OS:
        w_flat = jnp.pad(w_flat, ((0, 0), (0, OS_pad - OS)))

    # --- input padding + NCHW -> NHWC (glue) ---------------------------------
    x = jnp.transpose(x_nchw, (0, 2, 3, 1))
    if padding > 0:
        mode = {'constant': 'constant', 'reflect': 'reflect',
                'replicate': 'edge', 'circular': 'wrap'}[padding_mode]
        x = jnp.pad(x, ((0, 0), (padding, padding), (padding, padding), (0, 0)),
                    mode=mode)
    Hp, Wp = x.shape[1], x.shape[2]
    Hout, Wout = Hp - ks + 1, Wp - ks + 1

    if compute_dtype is not None:          # e.g. bf16 on v6e/v7x; acc stays f32
        x = x.astype(compute_dtype)
        w_flat = w_flat.astype(compute_dtype)

    TH = _pick_row_tile(Hout, Wout, target_m=row_tile_m)
    n_row_tiles = Hout // TH
    TM = TH * Wout

    # --- VMEM budget (double-buffered blocks, (sublane,lane)-padded) ----------
    isz = np.dtype(x.dtype).itemsize
    osz = np.dtype(out_dtype).itemsize
    x_blk = Hp * _round_up(Wp, 8) * _round_up(Cin, 128) * isz
    w_blk = _round_up(K, 8) * OS_pad * isz
    o_blk = _round_up(TM, 8) * OS_pad * osz
    col_blk = _round_up(TM, 8) * _round_up(K, 128) * isz
    vmem_bytes = 2 * (x_blk + w_blk + o_blk) + col_blk
    vmem_limit = int(min(max(2 * vmem_bytes, 16 << 20), 100 << 20))

    cost = pl.CostEstimate(
        flops=int(2 * B * Hout * Wout * K * OS),
        transcendentals=0,
        bytes_accessed=int(x.size * isz + w_flat.size * isz
                           + B * Hout * Wout * OS_pad * osz))

    kernel_fn = functools.partial(_ses_conv_kernel, ks=ks, th=TH, wout=Wout, cin=Cin)
    y = pl.pallas_call(
        kernel_fn,
        out_shape=jax.ShapeDtypeStruct((B, Hout * Wout, OS_pad), out_dtype),
        grid=(B, n_row_tiles),
        in_specs=[
            # Whole padded image per batch element; constant block index along the
            # row-tile axis so it stays resident (DMA'd once per batch element).
            # TODO(synk): switch to halo (overlapping) row blocks for very large images.
            pl.BlockSpec((1, Hp, Wp, Cin), lambda b, r: (b, 0, 0, 0)),
            # Expanded weights, resident across the whole grid.
            pl.BlockSpec((K, OS_pad), lambda b, r: (0, 0)),
        ],
        out_specs=pl.BlockSpec((1, TM, OS_pad), lambda b, r: (b, r, 0)),
        scratch_shapes=[pltpu.VMEM((TM, K), x.dtype)],
        compiler_params=pltpu.CompilerParams(
            dimension_semantics=("parallel", "parallel"),
            vmem_limit_bytes=vmem_limit),
        cost_estimate=cost,
    )(x, w_flat)

    # --- back to PyTorch output layout [B, O, S, H', W'] (glue) --------------
    y = y[:, :, :OS].reshape(B, Hout, Wout, O, S)
    y = jnp.transpose(y, (0, 3, 4, 1, 2))
    if bias is not None:
        y = y + bias.reshape(1, -1, 1, 1, 1)
    return y.astype(out_dtype)


if __name__ == "__main__":
    # Small shapes consistent with the module
    B, Cin, H, W = 2, 4, 16, 16
    Cout, ks, eff = 8, 7, 3
    scales = [1.0, 1.5, 2.0]
    S = len(scales)
    padding = 3

    key = jax.random.PRNGKey(0)
    key_x, key_w = jax.random.split(key)
    x = jax.random.normal(key_x, (B, Cin, H, W), dtype=jnp.float32)

    # weight: [out_channels, in_channels, num_funcs], kaiming_uniform_(a=sqrt(5))
    num_funcs = eff ** 2
    fan_in = Cin * num_funcs
    bound = 1.0 / float(np.sqrt(fan_in))
    weight = jax.random.uniform(key_w, (Cout, Cin, num_funcs), jnp.float32,
                                -bound, bound)

    basis = hermite_basis_a(ks, scales, eff)  # [F, S, ks, ks]

    y = ses_conv_z2_h(x, weight, basis, out_channels=Cout, num_scales=S,
                      kernel_size=ks, stride=1, padding=padding, dilation=1,
                      padding_mode='constant', bias=None)
    y = jax.block_until_ready(y)

    # Pure-JAX reference (same math as the torch F.conv2d path)
    O, I, F = weight.shape
    k_ref = (weight.reshape(O * I, F) @ basis.reshape(F, -1)).reshape(O, I, S, ks, ks)
    k_ref = jnp.transpose(k_ref, (0, 2, 1, 3, 4)).reshape(O * S, I, ks, ks)
    xp = jnp.pad(x, ((0, 0), (0, 0), (padding, padding), (padding, padding)))
    y_ref = jax.lax.conv_general_dilated(
        xp, k_ref, window_strides=(1, 1), padding='VALID',
        dimension_numbers=('NCHW', 'OIHW', 'NCHW'),
        precision=jax.lax.Precision.HIGHEST)
    y_ref = y_ref.reshape(B, O, S, y_ref.shape[-2], y_ref.shape[-1])

    assert y.shape == (B, Cout, S, H, W), y.shape
    err = float(jnp.max(jnp.abs(y - y_ref)))
    ref_mag = float(jnp.max(jnp.abs(y_ref)))
    assert err <= 2e-2 * (1.0 + ref_mag), f"mismatch: max_abs_err={err}"

    print("KERNEL_OK")
</pallas_src>

<mosaic_0001>
module attributes {stable_mosaic.version = 11 : i64} {
  func.func @_ses_conv_kernel(%arg0: i32, %arg1: i32, %arg2: memref<1x22x22x4xf32, #tpu.memory_space<vmem>>, %arg3: memref<196x128xf32, #tpu.memory_space<vmem>>, %arg4: memref<1x128x128xf32, #tpu.memory_space<vmem>>, %arg5: memref<128x196xf32, #tpu.memory_space<vmem>>) attributes {dimension_semantics = [#tpu.dimension_semantics<parallel>, #tpu.dimension_semantics<parallel>], iteration_bounds = array<i64: 2, 2>, scalar_prefetch = 0 : i64, scratch_operands = 1 : i64, tpu.core_type = #tpu.core_type<tc>, window_params = [{transform_indices = @transform_0, window_bounds = array<i64: 1, 22, 22, 4>}, {pipeline_mode = #tpu.pipeline_mode<synchronous>, transform_indices = @transform_1, window_bounds = array<i64: 196, 128>}, {transform_indices = @transform_2, window_bounds = array<i64: 1, 128, 128>}]} {
    %c8_i32 = arith.constant 8 : i32
    %0 = arith.muli %arg1, %c8_i32 : i32
    %c0_i32 = arith.constant 0 : i32
    %1 = arith.addi %0, %c0_i32 : i32
    %c0 = arith.constant 0 : index
    %2 = arith.index_cast %1 : i32 to index
    %c0_0 = arith.constant 0 : index
    %c0_1 = arith.constant 0 : index
    %3 = vector.load %arg2[%c0, %2, %c0_0, %c0_1] : memref<1x22x22x4xf32, #tpu.memory_space<vmem>>, vector<1x8x16x4xf32>
    %4 = vector.shape_cast %3 : vector<1x8x16x4xf32> to vector<8x16x4xf32>
    %5 = vector.shape_cast %4 : vector<8x16x4xf32> to vector<128x4xf32>
    %c0_2 = arith.constant 0 : index
    %c0_3 = arith.constant 0 : index
    %6 = vector.load %arg5[%c0_2, %c0_3] : memref<128x196xf32, #tpu.memory_space<vmem>>, vector<128x4xf32>
    tpu.vector_store %arg5[%c0_2, %c0_3], %5 {strides = array<i32>} : memref<128x196xf32, #tpu.memory_space<vmem>>, vector<128x4xf32>,
    %c0_i32_4 = arith.constant 0 : i32
    %7 = arith.addi %0, %c0_i32_4 : i32
    %c0_5 = arith.constant 0 : index
    %8 = arith.index_cast %7 : i32 to index
    %c1 = arith.constant 1 : index
    %c0_6 = arith.constant 0 : index
    %9 = vector.load %arg2[%c0_5, %8, %c1, %c0_6] : memref<1x22x22x4xf32, #tpu.memory_space<vmem>>, vector<1x8x16x4xf32>
    %10 = vector.shape_cast %9 : vector<1x8x16x4xf32> to vector<8x16x4xf32>
    %11 = vector.shape_cast %10 : vector<8x16x4xf32> to vector<128x4xf32>
    %c0_7 = arith.constant 0 : index
    %c4 = arith.constant 4 : index
    %12 = vector.load %arg5[%c0_7, %c4] : memref<128x196xf32, #tpu.memory_space<vmem>>, vector<128x4xf32>
    tpu.vector_store %arg5[%c0_7, %c4], %11 {strides = array<i32>} : memref<128x196xf32, #tpu.memory_space<vmem>>, vector<128x4xf32>,
    %c0_i32_8 = arith.constant 0 : i32
    %13 = arith.addi %0, %c0_i32_8 : i32
    %c0_9 = arith.constant 0 : index
    %14 = arith.index_cast %13 : i32 to index
    %c2 = arith.constant 2 : index
    %c0_10 = arith.constant 0 : index
    %15 = vector.load %arg2[%c0_9, %14, %c2, %c0_10] : memref<1x22x22x4xf32, #tpu.memory_space<vmem>>, vector<1x8x16x4xf32>
    %16 = vector.shape_cast %15 : vector<1x8x16x4xf32> to vector<8x16x4xf32>
    %17 = vector.shape_cast %16 : vector<8x16x4xf32> to vector<128x4xf32>
    %c0_11 = arith.constant 0 : index
    %c8 = arith.constant 8 : index
    %18 = vector.load %arg5[%c0_11, %c8] : memref<128x196xf32, #tpu.memory_space<vmem>>, vector<128x4xf32>
    tpu.vector_store %arg5[%c0_11, %c8], %17 {strides = array<i32>} : memref<128x196xf32, #tpu.memory_space<vmem>>, vector<128x4xf32>,
    %c0_i32_12 = arith.constant 0 : i32
    %19 = arith.addi %0, %c0_i32_12 : i32
    %c0_13 = arith.constant 0 : index
    %20 = arith.index_cast %19 : i32 to index
    %c3 = arith.constant 3 : index
    %c0_14 = arith.constant 0 : index
    %21 = vector.load %arg2[%c0_13, %20, %c3, %c0_14] : memref<1x22x22x4xf32, #tpu.memory_space<vmem>>, vector<1x8x16x4xf32>
    %22 = vector.shape_cast %21 : vector<1x8x16x4xf32> to vector<8x16x4xf32>
    %23 = vector.shape_cast %22 : vector<8x16x4xf32> to vector<128x4xf32>
    %c0_15 = arith.constant 0 : index
    %c12 = arith.constant 12 : index
    %24 = vector.load %arg5[%c0_15, %c12] : memref<128x196xf32, #tpu.memory_space<vmem>>, vector<128x4xf32>
    tpu.vector_store %arg5[%c0_15, %c12], %23 {strides = array<i32>} : memref<128x196xf32, #tpu.memory_space<vmem>>, vector<128x4xf32>,
    %c0_i32_16 = arith.constant 0 : i32
    %25 = arith.addi %0, %c0_i32_16 : i32
    %c0_17 = arith.constant 0 : index
    %26 = arith.index_cast %25 : i32 to index
    %c4_18 = arith.constant 4 : index
    %c0_19 = arith.constant 0 : index
    %27 = vector.load %arg2[%c0_17, %26, %c4_18, %c0_19] : memref<1x22x22x4xf32, #tpu.memory_space<vmem>>, vector<1x8x16x4xf32>
    %28 = vector.shape_cast %27 : vector<1x8x16x4xf32> to vector<8x16x4xf32>
    %29 = vector.shape_cast %28 : vector<8x16x4xf32> to vector<128x4xf32>
    %c0_20 = arith.constant 0 : index
    %c16 = arith.constant 16 : index
    %30 = vector.load %arg5[%c0_20, %c16] : memref<128x196xf32, #tpu.memory_space<vmem>>, vector<128x4xf32>
    tpu.vector_store %arg5[%c0_20, %c16], %29 {strides = array<i32>} : memref<128x196xf32, #tpu.memory_space<vmem>>, vector<128x4xf32>,
    %c0_i32_21 = arith.constant 0 : i32
    %31 = arith.addi %0, %c0_i32_21 : i32
    %c0_22 = arith.constant 0 : index
    %32 = arith.index_cast %31 : i32 to index
    %c5 = arith.constant 5 : index
    %c0_23 = arith.constant 0 : index
    %33 = vector.load %arg2[%c0_22, %32, %c5, %c0_23] : memref<1x22x22x4xf32, #tpu.memory_space<vmem>>, vector<1x8x16x4xf32>
    %34 = vector.shape_cast %33 : vector<1x8x16x4xf32> to vector<8x16x4xf32>
    %35 = vector.shape_cast %34 : vector<8x16x4xf32> to vector<128x4xf32>
    %c0_24 = arith.constant 0 : index
    %c20 = arith.constant 20 : index
    %36 = vector.load %arg5[%c0_24, %c20] : memref<128x196xf32, #tpu.memory_space<vmem>>, vector<128x4xf32>
    tpu.vector_store %arg5[%c0_24, %c20], %35 {strides = array<i32>} : memref<128x196xf32, #tpu.memory_space<vmem>>, vector<128x4xf32>,
    %c0_i32_25 = arith.constant 0 : i32
    %37 = arith.addi %0, %c0_i32_25 : i32
    %c0_26 = arith.constant 0 : index
    %38 = arith.index_cast %37 : i32 to index
    %c6 = arith.constant 6 : index
    %c0_27 = arith.constant 0 : index
    %39 = vector.load %arg2[%c0_26, %38, %c6, %c0_27] : memref<1x22x22x4xf32, #tpu.memory_space<vmem>>, vector<1x8x16x4xf32>
    %40 = vector.shape_cast %39 : vector<1x8x16x4xf32> to vector<8x16x4xf32>
    %41 = vector.shape_cast %40 : vector<8x16x4xf32> to vector<128x4xf32>
    %c0_28 = arith.constant 0 : index
    %c24 = arith.constant 24 : index
    %42 = vector.load %arg5[%c0_28, %c24] : memref<128x196xf32, #tpu.memory_space<vmem>>, vector<128x4xf32>
    tpu.vector_store %arg5[%c0_28, %c24], %41 {strides = array<i32>} : memref<128x196xf32, #tpu.memory_space<vmem>>, vector<128x4xf32>,
    %c1_i32 = arith.constant 1 : i32
    %43 = arith.addi %0, %c1_i32 : i32
    %c0_29 = arith.constant 0 : index
    %44 = arith.index_cast %43 : i32 to index
    %c0_30 = arith.constant 0 : index
    %c0_31 = arith.constant 0 : index
    %45 = vector.load %arg2[%c0_29, %44, %c0_30, %c0_31] : memref<1x22x22x4xf32, #tpu.memory_space<vmem>>, vector<1x8x16x4xf32>
    %46 = vector.shape_cast %45 : vector<1x8x16x4xf32> to vector<8x16x4xf32>
    %47 = vector.shape_cast %46 : vector<8x16x4xf32> to vector<128x4xf32>
    %c0_32 = arith.constant 0 : index
    %c28 = arith.constant 28 : index
    %48 = vector.load %arg5[%c0_32, %c28] : memref<128x196xf32, #tpu.memory_space<vmem>>, vector<128x4xf32>
    tpu.vector_store %arg5[%c0_32, %c28], %47 {strides = array<i32>} : memref<128x196xf32, #tpu.memory_space<vmem>>, vector<128x4xf32>,
    %c1_i32_33 = arith.constant 1 : i32
    %49 = arith.addi %0, %c1_i32_33 : i32
    %c0_34 = arith.constant 0 : index
    %50 = arith.index_cast %49 : i32 to index
    %c1_35 = arith.constant 1 : index
    %c0_36 = arith.constant 0 : index
    %51 = vector.load %arg2[%c0_34, %50, %c1_35, %c0_36] : memref<1x22x22x4xf32, #tpu.memory_space<vmem>>, vector<1x8x16x4xf32>
    %52 = vector.shape_cast %51 : vector<1x8x16x4xf32> to vector<8x16x4xf32>
    %53 = vector.shape_cast %52 : vector<8x16x4xf32> to vector<128x4xf32>
    %c0_37 = arith.constant 0 : index
    %c32 = arith.constant 32 : index
    %54 = vector.load %arg5[%c0_37, %c32] : memref<128x196xf32, #tpu.memory_space<vmem>>, vector<128x4xf32>
    tpu.vector_store %arg5[%c0_37, %c32], %53 {strides = array<i32>} : memref<128x196xf32, #tpu.memory_space<vmem>>, vector<128x4xf32>,
    %c1_i32_38 = arith.constant 1 : i32
    %55 = arith.addi %0, %c1_i32_38 : i32
    %c0_39 = arith.constant 0 : index
    %56 = arith.index_cast %55 : i32 to index
    %c2_40 = arith.constant 2 : index
    %c0_41 = arith.constant 0 : index
    %57 = vector.load %arg2[%c0_39, %56, %c2_40, %c0_41] : memref<1x22x22x4xf32, #tpu.memory_space<vmem>>, vector<1x8x16x4xf32>
    %58 = vector.shape_cast %57 : vector<1x8x16x4xf32> to vector<8x16x4xf32>
    %59 = vector.shape_cast %58 : vector<8x16x4xf32> to vector<128x4xf32>
    %c0_42 = arith.constant 0 : index
    %c36 = arith.constant 36 : index
    %60 = vector.load %arg5[%c0_42, %c36] : memref<128x196xf32, #tpu.memory_space<vmem>>, vector<128x4xf32>
    tpu.vector_store %arg5[%c0_42, %c36], %59 {strides = array<i32>} : memref<128x196xf32, #tpu.memory_space<vmem>>, vector<128x4xf32>,
    %c1_i32_43 = arith.constant 1 : i32
    %61 = arith.addi %0, %c1_i32_43 : i32
    %c0_44 = arith.constant 0 : index
    %62 = arith.index_cast %61 : i32 to index
    %c3_45 = arith.constant 3 : index
    %c0_46 = arith.constant 0 : index
    %63 = vector.load %arg2[%c0_44, %62, %c3_45, %c0_46] : memref<1x22x22x4xf32, #tpu.memory_space<vmem>>, vector<1x8x16x4xf32>
    %64 = vector.shape_cast %63 : vector<1x8x16x4xf32> to vector<8x16x4xf32>
    %65 = vector.shape_cast %64 : vector<8x16x4xf32> to vector<128x4xf32>
    %c0_47 = arith.constant 0 : index
    %c40 = arith.constant 40 : index
    %66 = vector.load %arg5[%c0_47, %c40] : memref<128x196xf32, #tpu.memory_space<vmem>>, vector<128x4xf32>
    tpu.vector_store %arg5[%c0_47, %c40], %65 {strides = array<i32>} : memref<128x196xf32, #tpu.memory_space<vmem>>, vector<128x4xf32>,
    %c1_i32_48 = arith.constant 1 : i32
    %67 = arith.addi %0, %c1_i32_48 : i32
    %c0_49 = arith.constant 0 : index
    %68 = arith.index_cast %67 : i32 to index
    %c4_50 = arith.constant 4 : index
    %c0_51 = arith.constant 0 : index
    %69 = vector.load %arg2[%c0_49, %68, %c4_50, %c0_51] : memref<1x22x22x4xf32, #tpu.memory_space<vmem>>, vector<1x8x16x4xf32>
    %70 = vector.shape_cast %69 : vector<1x8x16x4xf32> to vector<8x16x4xf32>
    %71 = vector.shape_cast %70 : vector<8x16x4xf32> to vector<128x4xf32>
    %c0_52 = arith.constant 0 : index
    %c44 = arith.constant 44 : index
    %72 = vector.load %arg5[%c0_52, %c44] : memref<128x196xf32, #tpu.memory_space<vmem>>, vector<128x4xf32>
    tpu.vector_store %arg5[%c0_52, %c44], %71 {strides = array<i32>} : memref<128x196xf32, #tpu.memory_space<vmem>>, vector<128x4xf32>,
    %c1_i32_53 = arith.constant 1 : i32
    %73 = arith.addi %0, %c1_i32_53 : i32
    %c0_54 = arith.constant 0 : index
    %74 = arith.index_cast %73 : i32 to index
    %c5_55 = arith.constant 5 : index
    %c0_56 = arith.constant 0 : index
    %75 = vector.load %arg2[%c0_54, %74, %c5_55, %c0_56] : memref<1x22x22x4xf32, #tpu.memory_space<vmem>>, vector<1x8x16x4xf32>
    %76 = vector.shape_cast %75 : vector<1x8x16x4xf32> to vector<8x16x4xf32>
    %77 = vector.shape_cast %76 : vector<8x16x4xf32> to vector<128x4xf32>
    %c0_57 = arith.constant 0 : index
    %c48 = arith.constant 48 : index
    %78 = vector.load %arg5[%c0_57, %c48] : memref<128x196xf32, #tpu.memory_space<vmem>>, vector<128x4xf32>
    tpu.vector_store %arg5[%c0_57, %c48], %77 {strides = array<i32>} : memref<128x196xf32, #tpu.memory_space<vmem>>, vector<128x4xf32>,
    %c1_i32_58 = arith.constant 1 : i32
    %79 = arith.addi %0, %c1_i32_58 : i32
    %c0_59 = arith.constant 0 : index
    %80 = arith.index_cast %79 : i32 to index
    %c6_60 = arith.constant 6 : index
    %c0_61 = arith.constant 0 : index
    %81 = vector.load %arg2[%c0_59, %80, %c6_60, %c0_61] : memref<1x22x22x4xf32, #tpu.memory_space<vmem>>, vector<1x8x16x4xf32>
    %82 = vector.shape_cast %81 : vector<1x8x16x4xf32> to vector<8x16x4xf32>
    %83 = vector.shape_cast %82 : vector<8x16x4xf32> to vector<128x4xf32>
    %c0_62 = arith.constant 0 : index
    %c52 = arith.constant 52 : index
    %84 = vector.load %arg5[%c0_62, %c52] : memref<128x196xf32, #tpu.memory_space<vmem>>, vector<128x4xf32>
    tpu.vector_store %arg5[%c0_62, %c52], %83 {strides = array<i32>} : memref<128x196xf32, #tpu.memory_space<vmem>>, vector<128x4xf32>,
    %c2_i32 = arith.constant 2 : i32
    %85 = arith.addi %0, %c2_i32 : i32
    %c0_63 = arith.constant 0 : index
    %86 = arith.index_cast %85 : i32 to index
    %c0_64 = arith.constant 0 : index
    %c0_65 = arith.constant 0 : index
    %87 = vector.load %arg2[%c0_63, %86, %c0_64, %c0_65] : memref<1x22x22x4xf32, #tpu.memory_space<vmem>>, vector<1x8x16x4xf32>
    %88 = vector.shape_cast %87 : vector<1x8x16x4xf32> to vector<8x16x4xf32>
    %89 = vector.shape_cast %88 : vector<8x16x4xf32> to vector<128x4xf32>
    %c0_66 = arith.constant 0 : index
    %c56 = arith.constant 56 : index
    %90 = vector.load %arg5[%c0_66, %c56] : memref<128x196xf32, #tpu.memory_space<vmem>>, vector<128x4xf32>
    tpu.vector_store %arg5[%c0_66, %c56], %89 {strides = array<i32>} : memref<128x196xf32, #tpu.memory_space<vmem>>, vector<128x4xf32>,
    %c2_i32_67 = arith.constant 2 : i32
    %91 = arith.addi %0, %c2_i32_67 : i32
    %c0_68 = arith.constant 0 : index
    %92 = arith.index_cast %91 : i32 to index
    %c1_69 = arith.constant 1 : index
    %c0_70 = arith.constant 0 : index
    %93 = vector.load %arg2[%c0_68, %92, %c1_69, %c0_70] : memref<1x22x22x4xf32, #tpu.memory_space<vmem>>, vector<1x8x16x4xf32>
    %94 = vector.shape_cast %93 : vector<1x8x16x4xf32> to vector<8x16x4xf32>
    %95 = vector.shape_cast %94 : vector<8x16x4xf32> to vector<128x4xf32>
    %c0_71 = arith.constant 0 : index
    %c60 = arith.constant 60 : index
    %96 = vector.load %arg5[%c0_71, %c60] : memref<128x196xf32, #tpu.memory_space<vmem>>, vector<128x4xf32>
    tpu.vector_store %arg5[%c0_71, %c60], %95 {strides = array<i32>} : memref<128x196xf32, #tpu.memory_space<vmem>>, vector<128x4xf32>,
    %c2_i32_72 = arith.constant 2 : i32
    %97 = arith.addi %0, %c2_i32_72 : i32
    %c0_73 = arith.constant 0 : index
    %98 = arith.index_cast %97 : i32 to index
    %c2_74 = arith.constant 2 : index
    %c0_75 = arith.constant 0 : index
    %99 = vector.load %arg2[%c0_73, %98, %c2_74, %c0_75] : memref<1x22x22x4xf32, #tpu.memory_space<vmem>>, vector<1x8x16x4xf32>
    %100 = vector.shape_cast %99 : vector<1x8x16x4xf32> to vector<8x16x4xf32>
    %101 = vector.shape_cast %100 : vector<8x16x4xf32> to vector<128x4xf32>
    %c0_76 = arith.constant 0 : index
    %c64 = arith.constant 64 : index
    %102 = vector.load %arg5[%c0_76, %c64] : memref<128x196xf32, #tpu.memory_space<vmem>>, vector<128x4xf32>
    tpu.vector_store %arg5[%c0_76, %c64], %101 {strides = array<i32>} : memref<128x196xf32, #tpu.memory_space<vmem>>, vector<128x4xf32>,
    %c2_i32_77 = arith.constant 2 : i32
    %103 = arith.addi %0, %c2_i32_77 : i32
    %c0_78 = arith.constant 0 : index
    %104 = arith.index_cast %103 : i32 to index
    %c3_79 = arith.constant 3 : index
    %c0_80 = arith.constant 0 : index
    %105 = vector.load %arg2[%c0_78, %104, %c3_79, %c0_80] : memref<1x22x22x4xf32, #tpu.memory_space<vmem>>, vector<1x8x16x4xf32>
    %106 = vector.shape_cast %105 : vector<1x8x16x4xf32> to vector<8x16x4xf32>
    %107 = vector.shape_cast %106 : vector<8x16x4xf32> to vector<128x4xf32>
    %c0_81 = arith.constant 0 : index
    %c68 = arith.constant 68 : index
    %108 = vector.load %arg5[%c0_81, %c68] : memref<128x196xf32, #tpu.memory_space<vmem>>, vector<128x4xf32>
    tpu.vector_store %arg5[%c0_81, %c68], %107 {strides = array<i32>} : memref<128x196xf32, #tpu.memory_space<vmem>>, vector<128x4xf32>,
    %c2_i32_82 = arith.constant 2 : i32
    %109 = arith.addi %0, %c2_i32_82 : i32
    %c0_83 = arith.constant 0 : index
    %110 = arith.index_cast %109 : i32 to index
    %c4_84 = arith.constant 4 : index
    %c0_85 = arith.constant 0 : index
    %111 = vector.load %arg2[%c0_83, %110, %c4_84, %c0_85] : memref<1x22x22x4xf32, #tpu.memory_space<vmem>>, vector<1x8x16x4xf32>
    %112 = vector.shape_cast %111 : vector<1x8x16x4xf32> to vector<8x16x4xf32>
    %113 = vector.shape_cast %112 : vector<8x16x4xf32> to vector<128x4xf32>
    %c0_86 = arith.constant 0 : index
    %c72 = arith.constant 72 : index
    %114 = vector.load %arg5[%c0_86, %c72] : memref<128x196xf32, #tpu.memory_space<vmem>>, vector<128x4xf32>
    tpu.vector_store %arg5[%c0_86, %c72], %113 {strides = array<i32>} : memref<128x196xf32, #tpu.memory_space<vmem>>, vector<128x4xf32>,
    %c2_i32_87 = arith.constant 2 : i32
    %115 = arith.addi %0, %c2_i32_87 : i32
    %c0_88 = arith.constant 0 : index
    %116 = arith.index_cast %115 : i32 to index
    %c5_89 = arith.constant 5 : index
    %c0_90 = arith.constant 0 : index
    %117 = vector.load %arg2[%c0_88, %116, %c5_89, %c0_90] : memref<1x22x22x4xf32, #tpu.memory_space<vmem>>, vector<1x8x16x4xf32>
    %118 = vector.shape_cast %117 : vector<1x8x16x4xf32> to vector<8x16x4xf32>
    %119 = vector.shape_cast %118 : vector<8x16x4xf32> to vector<128x4xf32>
    %c0_91 = arith.constant 0 : index
    %c76 = arith.constant 76 : index
    %120 = vector.load %arg5[%c0_91, %c76] : memref<128x196xf32, #tpu.memory_space<vmem>>, vector<128x4xf32>
    tpu.vector_store %arg5[%c0_91, %c76], %119 {strides = array<i32>} : memref<128x196xf32, #tpu.memory_space<vmem>>, vector<128x4xf32>,
    %c2_i32_92 = arith.constant 2 : i32
    %121 = arith.addi %0, %c2_i32_92 : i32
    %c0_93 = arith.constant 0 : index
    %122 = arith.index_cast %121 : i32 to index
    %c6_94 = arith.constant 6 : index
    %c0_95 = arith.constant 0 : index
    %123 = vector.load %arg2[%c0_93, %122, %c6_94, %c0_95] : memref<1x22x22x4xf32, #tpu.memory_space<vmem>>, vector<1x8x16x4xf32>
    %124 = vector.shape_cast %123 : vector<1x8x16x4xf32> to vector<8x16x4xf32>
    %125 = vector.shape_cast %124 : vector<8x16x4xf32> to vector<128x4xf32>
    %c0_96 = arith.constant 0 : index
    %c80 = arith.constant 80 : index
    %126 = vector.load %arg5[%c0_96, %c80] : memref<128x196xf32, #tpu.memory_space<vmem>>, vector<128x4xf32>
    tpu.vector_store %arg5[%c0_96, %c80], %125 {strides = array<i32>} : memref<128x196xf32, #tpu.memory_space<vmem>>, vector<128x4xf32>,
    %c3_i32 = arith.constant 3 : i32
    %127 = arith.addi %0, %c3_i32 : i32
    %c0_97 = arith.constant 0 : index
    %128 = arith.index_cast %127 : i32 to index
    %c0_98 = arith.constant 0 : index
    %c0_99 = arith.constant 0 : index
    %129 = vector.load %arg2[%c0_97, %128, %c0_98, %c0_99] : memref<1x22x22x4xf32, #tpu.memory_space<vmem>>, vector<1x8x16x4xf32>
    %130 = vector.shape_cast %129 : vector<1x8x16x4xf32> to vector<8x16x4xf32>
    %131 = vector.shape_cast %130 : vector<8x16x4xf32> to vector<128x4xf32>
    %c0_100 = arith.constant 0 : index
    %c84 = arith.constant 84 : index
    %132 = vector.load %arg5[%c0_100, %c84] : memref<128x196xf32, #tpu.memory_space<vmem>>, vector<128x4xf32>
    tpu.vector_store %arg5[%c0_100, %c84], %131 {strides = array<i32>} : memref<128x196xf32, #tpu.memory_space<vmem>>, vector<128x4xf32>,
    %c3_i32_101 = arith.constant 3 : i32
    %133 = arith.addi %0, %c3_i32_101 : i32
    %c0_102 = arith.constant 0 : index
    %134 = arith.index_cast %133 : i32 to index
    %c1_103 = arith.constant 1 : index
    %c0_104 = arith.constant 0 : index
    %135 = vector.load %arg2[%c0_102, %134, %c1_103, %c0_104] : memref<1x22x22x4xf32, #tpu.memory_space<vmem>>, vector<1x8x16x4xf32>
    %136 = vector.shape_cast %135 : vector<1x8x16x4xf32> to vector<8x16x4xf32>
    %137 = vector.shape_cast %136 : vector<8x16x4xf32> to vector<128x4xf32>
    %c0_105 = arith.constant 0 : index
    %c88 = arith.constant 88 : index
    %138 = vector.load %arg5[%c0_105, %c88] : memref<128x196xf32, #tpu.memory_space<vmem>>, vector<128x4xf32>
    tpu.vector_store %arg5[%c0_105, %c88], %137 {strides = array<i32>} : memref<128x196xf32, #tpu.memory_space<vmem>>, vector<128x4xf32>,
    %c3_i32_106 = arith.constant 3 : i32
    %139 = arith.addi %0, %c3_i32_106 : i32
    %c0_107 = arith.constant 0 : index
    %140 = arith.index_cast %139 : i32 to index
    %c2_108 = arith.constant 2 : index
    %c0_109 = arith.constant 0 : index
    %141 = vector.load %arg2[%c0_107, %140, %c2_108, %c0_109] : memref<1x22x22x4xf32, #tpu.memory_space<vmem>>, vector<1x8x16x4xf32>
    %142 = vector.shape_cast %141 : vector<1x8x16x4xf32> to vector<8x16x4xf32>
    %143 = vector.shape_cast %142 : vector<8x16x4xf32> to vector<128x4xf32>
    %c0_110 = arith.constant 0 : index
    %c92 = arith.constant 92 : index
    %144 = vector.load %arg5[%c0_110, %c92] : memref<128x196xf32, #tpu.memory_space<vmem>>, vector<128x4xf32>
    tpu.vector_store %arg5[%c0_110, %c92], %143 {strides = array<i32>} : memref<128x196xf32, #tpu.memory_space<vmem>>, vector<128x4xf32>,
    %c3_i32_111 = arith.constant 3 : i32
    %145 = arith.addi %0, %c3_i32_111 : i32
    %c0_112 = arith.constant 0 : index
    %146 = arith.index_cast %145 : i32 to index
    %c3_113 = arith.constant 3 : index
    %c0_114 = arith.constant 0 : index
    %147 = vector.load %arg2[%c0_112, %146, %c3_113, %c0_114] : memref<1x22x22x4xf32, #tpu.memory_space<vmem>>, vector<1x8x16x4xf32>
    %148 = vector.shape_cast %147 : vector<1x8x16x4xf32> to vector<8x16x4xf32>
    %149 = vector.shape_cast %148 : vector<8x16x4xf32> to vector<128x4xf32>
    %c0_115 = arith.constant 0 : index
    %c96 = arith.constant 96 : index
    %150 = vector.load %arg5[%c0_115, %c96] : memref<128x196xf32, #tpu.memory_space<vmem>>, vector<128x4xf32>
    tpu.vector_store %arg5[%c0_115, %c96], %149 {strides = array<i32>} : memref<128x196xf32, #tpu.memory_space<vmem>>, vector<128x4xf32>,
    %c3_i32_116 = arith.constant 3 : i32
    %151 = arith.addi %0, %c3_i32_116 : i32
    %c0_117 = arith.constant 0 : index
    %152 = arith.index_cast %151 : i32 to index
    %c4_118 = arith.constant 4 : index
    %c0_119 = arith.constant 0 : index
    %153 = vector.load %arg2[%c0_117, %152, %c4_118, %c0_119] : memref<1x22x22x4xf32, #tpu.memory_space<vmem>>, vector<1x8x16x4xf32>
    %154 = vector.shape_cast %153 : vector<1x8x16x4xf32> to vector<8x16x4xf32>
    %155 = vector.shape_cast %154 : vector<8x16x4xf32> to vector<128x4xf32>
    %c0_120 = arith.constant 0 : index
    %c100 = arith.constant 100 : index
    %156 = vector.load %arg5[%c0_120, %c100] : memref<128x196xf32, #tpu.memory_space<vmem>>, vector<128x4xf32>
    tpu.vector_store %arg5[%c0_120, %c100], %155 {strides = array<i32>} : memref<128x196xf32, #tpu.memory_space<vmem>>, vector<128x4xf32>,
    %c3_i32_121 = arith.constant 3 : i32
    %157 = arith.addi %0, %c3_i32_121 : i32
    %c0_122 = arith.constant 0 : index
    %158 = arith.index_cast %157 : i32 to index
    %c5_123 = arith.constant 5 : index
    %c0_124 = arith.constant 0 : index
    %159 = vector.load %arg2[%c0_122, %158, %c5_123, %c0_124] : memref<1x22x22x4xf32, #tpu.memory_space<vmem>>, vector<1x8x16x4xf32>
    %160 = vector.shape_cast %159 : vector<1x8x16x4xf32> to vector<8x16x4xf32>
    %161 = vector.shape_cast %160 : vector<8x16x4xf32> to vector<128x4xf32>
    %c0_125 = arith.constant 0 : index
    %c104 = arith.constant 104 : index
    %162 = vector.load %arg5[%c0_125, %c104] : memref<128x196xf32, #tpu.memory_space<vmem>>, vector<128x4xf32>
    tpu.vector_store %arg5[%c0_125, %c104], %161 {strides = array<i32>} : memref<128x196xf32, #tpu.memory_space<vmem>>, vector<128x4xf32>,
    %c3_i32_126 = arith.constant 3 : i32
    %163 = arith.addi %0, %c3_i32_126 : i32
    %c0_127 = arith.constant 0 : index
    %164 = arith.index_cast %163 : i32 to index
    %c6_128 = arith.constant 6 : index
    %c0_129 = arith.constant 0 : index
    %165 = vector.load %arg2[%c0_127, %164, %c6_128, %c0_129] : memref<1x22x22x4xf32, #tpu.memory_space<vmem>>, vector<1x8x16x4xf32>
    %166 = vector.shape_cast %165 : vector<1x8x16x4xf32> to vector<8x16x4xf32>
    %167 = vector.shape_cast %166 : vector<8x16x4xf32> to vector<128x4xf32>
    %c0_130 = arith.constant 0 : index
    %c108 = arith.constant 108 : index
    %168 = vector.load %arg5[%c0_130, %c108] : memref<128x196xf32, #tpu.memory_space<vmem>>, vector<128x4xf32>
    tpu.vector_store %arg5[%c0_130, %c108], %167 {strides = array<i32>} : memref<128x196xf32, #tpu.memory_space<vmem>>, vector<128x4xf32>,
    %c4_i32 = arith.constant 4 : i32
    %169 = arith.addi %0, %c4_i32 : i32
    %c0_131 = arith.constant 0 : index
    %170 = arith.index_cast %169 : i32 to index
    %c0_132 = arith.constant 0 : index
    %c0_133 = arith.constant 0 : index
    %171 = vector.load %arg2[%c0_131, %170, %c0_132, %c0_133] : memref<1x22x22x4xf32, #tpu.memory_space<vmem>>, vector<1x8x16x4xf32>
    %172 = vector.shape_cast %171 : vector<1x8x16x4xf32> to vector<8x16x4xf32>
    %173 = vector.shape_cast %172 : vector<8x16x4xf32> to vector<128x4xf32>
    %c0_134 = arith.constant 0 : index
    %c112 = arith.constant 112 : index
    %174 = vector.load %arg5[%c0_134, %c112] : memref<128x196xf32, #tpu.memory_space<vmem>>, vector<128x4xf32>
    tpu.vector_store %arg5[%c0_134, %c112], %173 {strides = array<i32>} : memref<128x196xf32, #tpu.memory_space<vmem>>, vector<128x4xf32>,
    %c4_i32_135 = arith.constant 4 : i32
    %175 = arith.addi %0, %c4_i32_135 : i32
    %c0_136 = arith.constant 0 : index
    %176 = arith.index_cast %175 : i32 to index
    %c1_137 = arith.constant 1 : index
    %c0_138 = arith.constant 0 : index
    %177 = vector.load %arg2[%c0_136, %176, %c1_137, %c0_138] : memref<1x22x22x4xf32, #tpu.memory_space<vmem>>, vector<1x8x16x4xf32>
    %178 = vector.shape_cast %177 : vector<1x8x16x4xf32> to vector<8x16x4xf32>
    %179 = vector.shape_cast %178 : vector<8x16x4xf32> to vector<128x4xf32>
    %c0_139 = arith.constant 0 : index
    %c116 = arith.constant 116 : index
    %180 = vector.load %arg5[%c0_139, %c116] : memref<128x196xf32, #tpu.memory_space<vmem>>, vector<128x4xf32>
    tpu.vector_store %arg5[%c0_139, %c116], %179 {strides = array<i32>} : memref<128x196xf32, #tpu.memory_space<vmem>>, vector<128x4xf32>,
    %c4_i32_140 = arith.constant 4 : i32
    %181 = arith.addi %0, %c4_i32_140 : i32
    %c0_141 = arith.constant 0 : index
    %182 = arith.index_cast %181 : i32 to index
    %c2_142 = arith.constant 2 : index
    %c0_143 = arith.constant 0 : index
    %183 = vector.load %arg2[%c0_141, %182, %c2_142, %c0_143] : memref<1x22x22x4xf32, #tpu.memory_space<vmem>>, vector<1x8x16x4xf32>
    %184 = vector.shape_cast %183 : vector<1x8x16x4xf32> to vector<8x16x4xf32>
    %185 = vector.shape_cast %184 : vector<8x16x4xf32> to vector<128x4xf32>
    %c0_144 = arith.constant 0 : index
    %c120 = arith.constant 120 : index
    %186 = vector.load %arg5[%c0_144, %c120] : memref<128x196xf32, #tpu.memory_space<vmem>>, vector<128x4xf32>
    tpu.vector_store %arg5[%c0_144, %c120], %185 {strides = array<i32>} : memref<128x196xf32, #tpu.memory_space<vmem>>, vector<128x4xf32>,
    %c4_i32_145 = arith.constant 4 : i32
    %187 = arith.addi %0, %c4_i32_145 : i32
    %c0_146 = arith.constant 0 : index
    %188 = arith.index_cast %187 : i32 to index
    %c3_147 = arith.constant 3 : index
    %c0_148 = arith.constant 0 : index
    %189 = vector.load %arg2[%c0_146, %188, %c3_147, %c0_148] : memref<1x22x22x4xf32, #tpu.memory_space<vmem>>, vector<1x8x16x4xf32>
    %190 = vector.shape_cast %189 : vector<1x8x16x4xf32> to vector<8x16x4xf32>
    %191 = vector.shape_cast %190 : vector<8x16x4xf32> to vector<128x4xf32>
    %c0_149 = arith.constant 0 : index
    %c124 = arith.constant 124 : index
    %192 = vector.load %arg5[%c0_149, %c124] : memref<128x196xf32, #tpu.memory_space<vmem>>, vector<128x4xf32>
    tpu.vector_store %arg5[%c0_149, %c124], %191 {strides = array<i32>} : memref<128x196xf32, #tpu.memory_space<vmem>>, vector<128x4xf32>,
    %c4_i32_150 = arith.constant 4 : i32
    %193 = arith.addi %0, %c4_i32_150 : i32
    %c0_151 = arith.constant 0 : index
    %194 = arith.index_cast %193 : i32 to index
    %c4_152 = arith.constant 4 : index
    %c0_153 = arith.constant 0 : index
    %195 = vector.load %arg2[%c0_151, %194, %c4_152, %c0_153] : memref<1x22x22x4xf32, #tpu.memory_space<vmem>>, vector<1x8x16x4xf32>
    %196 = vector.shape_cast %195 : vector<1x8x16x4xf32> to vector<8x16x4xf32>
    %197 = vector.shape_cast %196 : vector<8x16x4xf32> to vector<128x4xf32>
    %c0_154 = arith.constant 0 : index
    %c128 = arith.constant 128 : index
    %198 = vector.load %arg5[%c0_154, %c128] : memref<128x196xf32, #tpu.memory_space<vmem>>, vector<128x4xf32>
    tpu.vector_store %arg5[%c0_154, %c128], %197 {strides = array<i32>} : memref<128x196xf32, #tpu.memory_space<vmem>>, vector<128x4xf32>,
    %c4_i32_155 = arith.constant 4 : i32
    %199 = arith.addi %0, %c4_i32_155 : i32
    %c0_156 = arith.constant 0 : index
    %200 = arith.index_cast %199 : i32 to index
    %c5_157 = arith.constant 5 : index
    %c0_158 = arith.constant 0 : index
    %201 = vector.load %arg2[%c0_156, %200, %c5_157, %c0_158] : memref<1x22x22x4xf32, #tpu.memory_space<vmem>>, vector<1x8x16x4xf32>
    %202 = vector.shape_cast %201 : vector<1x8x16x4xf32> to vector<8x16x4xf32>
    %203 = vector.shape_cast %202 : vector<8x16x4xf32> to vector<128x4xf32>
    %c0_159 = arith.constant 0 : index
    %c132 = arith.constant 132 : index
    %204 = vector.load %arg5[%c0_159, %c132] : memref<128x196xf32, #tpu.memory_space<vmem>>, vector<128x4xf32>
    tpu.vector_store %arg5[%c0_159, %c132], %203 {strides = array<i32>} : memref<128x196xf32, #tpu.memory_space<vmem>>, vector<128x4xf32>,
    %c4_i32_160 = arith.constant 4 : i32
    %205 = arith.addi %0, %c4_i32_160 : i32
    %c0_161 = arith.constant 0 : index
    %206 = arith.index_cast %205 : i32 to index
    %c6_162 = arith.constant 6 : index
    %c0_163 = arith.constant 0 : index
    %207 = vector.load %arg2[%c0_161, %206, %c6_162, %c0_163] : memref<1x22x22x4xf32, #tpu.memory_space<vmem>>, vector<1x8x16x4xf32>
    %208 = vector.shape_cast %207 : vector<1x8x16x4xf32> to vector<8x16x4xf32>
    %209 = vector.shape_cast %208 : vector<8x16x4xf32> to vector<128x4xf32>
    %c0_164 = arith.constant 0 : index
    %c136 = arith.constant 136 : index
    %210 = vector.load %arg5[%c0_164, %c136] : memref<128x196xf32, #tpu.memory_space<vmem>>, vector<128x4xf32>
    tpu.vector_store %arg5[%c0_164, %c136], %209 {strides = array<i32>} : memref<128x196xf32, #tpu.memory_space<vmem>>, vector<128x4xf32>,
    %c5_i32 = arith.constant 5 : i32
    %211 = arith.addi %0, %c5_i32 : i32
    %c0_165 = arith.constant 0 : index
    %212 = arith.index_cast %211 : i32 to index
    %c0_166 = arith.constant 0 : index
    %c0_167 = arith.constant 0 : index
    %213 = vector.load %arg2[%c0_165, %212, %c0_166, %c0_167] : memref<1x22x22x4xf32, #tpu.memory_space<vmem>>, vector<1x8x16x4xf32>
    %214 = vector.shape_cast %213 : vector<1x8x16x4xf32> to vector<8x16x4xf32>
    %215 = vector.shape_cast %214 : vector<8x16x4xf32> to vector<128x4xf32>
    %c0_168 = arith.constant 0 : index
    %c140 = arith.constant 140 : index
    %216 = vector.load %arg5[%c0_168, %c140] : memref<128x196xf32, #tpu.memory_space<vmem>>, vector<128x4xf32>
    tpu.vector_store %arg5[%c0_168, %c140], %215 {strides = array<i32>} : memref<128x196xf32, #tpu.memory_space<vmem>>, vector<128x4xf32>,
    %c5_i32_169 = arith.constant 5 : i32
    %217 = arith.addi %0, %c5_i32_169 : i32
    %c0_170 = arith.constant 0 : index
    %218 = arith.index_cast %217 : i32 to index
    %c1_171 = arith.constant 1 : index
    %c0_172 = arith.constant 0 : index
    %219 = vector.load %arg2[%c0_170, %218, %c1_171, %c0_172] : memref<1x22x22x4xf32, #tpu.memory_space<vmem>>, vector<1x8x16x4xf32>
    %220 = vector.shape_cast %219 : vector<1x8x16x4xf32> to vector<8x16x4xf32>
    %221 = vector.shape_cast %220 : vector<8x16x4xf32> to vector<128x4xf32>
    %c0_173 = arith.constant 0 : index
    %c144 = arith.constant 144 : index
    %222 = vector.load %arg5[%c0_173, %c144] : memref<128x196xf32, #tpu.memory_space<vmem>>, vector<128x4xf32>
    tpu.vector_store %arg5[%c0_173, %c144], %221 {strides = array<i32>} : memref<128x196xf32, #tpu.memory_space<vmem>>, vector<128x4xf32>,
    %c5_i32_174 = arith.constant 5 : i32
    %223 = arith.addi %0, %c5_i32_174 : i32
    %c0_175 = arith.constant 0 : index
    %224 = arith.index_cast %223 : i32 to index
    %c2_176 = arith.constant 2 : index
    %c0_177 = arith.constant 0 : index
    %225 = vector.load %arg2[%c0_175, %224, %c2_176, %c0_177] : memref<1x22x22x4xf32, #tpu.memory_space<vmem>>, vector<1x8x16x4xf32>
    %226 = vector.shape_cast %225 : vector<1x8x16x4xf32> to vector<8x16x4xf32>
    %227 = vector.shape_cast %226 : vector<8x16x4xf32> to vector<128x4xf32>
    %c0_178 = arith.constant 0 : index
    %c148 = arith.constant 148 : index
    %228 = vector.load %arg5[%c0_178, %c148] : memref<128x196xf32, #tpu.memory_space<vmem>>, vector<128x4xf32>
    tpu.vector_store %arg5[%c0_178, %c148], %227 {strides = array<i32>} : memref<128x196xf32, #tpu.memory_space<vmem>>, vector<128x4xf32>,
    %c5_i32_179 = arith.constant 5 : i32
    %229 = arith.addi %0, %c5_i32_179 : i32
    %c0_180 = arith.constant 0 : index
    %230 = arith.index_cast %229 : i32 to index
    %c3_181 = arith.constant 3 : index
    %c0_182 = arith.constant 0 : index
    %231 = vector.load %arg2[%c0_180, %230, %c3_181, %c0_182] : memref<1x22x22x4xf32, #tpu.memory_space<vmem>>, vector<1x8x16x4xf32>
    %232 = vector.shape_cast %231 : vector<1x8x16x4xf32> to vector<8x16x4xf32>
    %233 = vector.shape_cast %232 : vector<8x16x4xf32> to vector<128x4xf32>
    %c0_183 = arith.constant 0 : index
    %c152 = arith.constant 152 : index
    %234 = vector.load %arg5[%c0_183, %c152] : memref<128x196xf32, #tpu.memory_space<vmem>>, vector<128x4xf32>
    tpu.vector_store %arg5[%c0_183, %c152], %233 {strides = array<i32>} : memref<128x196xf32, #tpu.memory_space<vmem>>, vector<128x4xf32>,
    %c5_i32_184 = arith.constant 5 : i32
    %235 = arith.addi %0, %c5_i32_184 : i32
    %c0_185 = arith.constant 0 : index
    %236 = arith.index_cast %235 : i32 to index
    %c4_186 = arith.constant 4 : index
    %c0_187 = arith.constant 0 : index
    %237 = vector.load %arg2[%c0_185, %236, %c4_186, %c0_187] : memref<1x22x22x4xf32, #tpu.memory_space<vmem>>, vector<1x8x16x4xf32>
    %238 = vector.shape_cast %237 : vector<1x8x16x4xf32> to vector<8x16x4xf32>
    %239 = vector.shape_cast %238 : vector<8x16x4xf32> to vector<128x4xf32>
    %c0_188 = arith.constant 0 : index
    %c156 = arith.constant 156 : index
    %240 = vector.load %arg5[%c0_188, %c156] : memref<128x196xf32, #tpu.memory_space<vmem>>, vector<128x4xf32>
    tpu.vector_store %arg5[%c0_188, %c156], %239 {strides = array<i32>} : memref<128x196xf32, #tpu.memory_space<vmem>>, vector<128x4xf32>,
    %c5_i32_189 = arith.constant 5 : i32
    %241 = arith.addi %0, %c5_i32_189 : i32
    %c0_190 = arith.constant 0 : index
    %242 = arith.index_cast %241 : i32 to index
    %c5_191 = arith.constant 5 : index
    %c0_192 = arith.constant 0 : index
    %243 = vector.load %arg2[%c0_190, %242, %c5_191, %c0_192] : memref<1x22x22x4xf32, #tpu.memory_space<vmem>>, vector<1x8x16x4xf32>
    %244 = vector.shape_cast %243 : vector<1x8x16x4xf32> to vector<8x16x4xf32>
    %245 = vector.shape_cast %244 : vector<8x16x4xf32> to vector<128x4xf32>
    %c0_193 = arith.constant 0 : index
    %c160 = arith.constant 160 : index
    %246 = vector.load %arg5[%c0_193, %c160] : memref<128x196xf32, #tpu.memory_space<vmem>>, vector<128x4xf32>
    tpu.vector_store %arg5[%c0_193, %c160], %245 {strides = array<i32>} : memref<128x196xf32, #tpu.memory_space<vmem>>, vector<128x4xf32>,
    %c5_i32_194 = arith.constant 5 : i32
    %247 = arith.addi %0, %c5_i32_194 : i32
    %c0_195 = arith.constant 0 : index
    %248 = arith.index_cast %247 : i32 to index
    %c6_196 = arith.constant 6 : index
    %c0_197 = arith.constant 0 : index
    %249 = vector.load %arg2[%c0_195, %248, %c6_196, %c0_197] : memref<1x22x22x4xf32, #tpu.memory_space<vmem>>, vector<1x8x16x4xf32>
    %250 = vector.shape_cast %249 : vector<1x8x16x4xf32> to vector<8x16x4xf32>
    %251 = vector.shape_cast %250 : vector<8x16x4xf32> to vector<128x4xf32>
    %c0_198 = arith.constant 0 : index
    %c164 = arith.constant 164 : index
    %252 = vector.load %arg5[%c0_198, %c164] : memref<128x196xf32, #tpu.memory_space<vmem>>, vector<128x4xf32>
    tpu.vector_store %arg5[%c0_198, %c164], %251 {strides = array<i32>} : memref<128x196xf32, #tpu.memory_space<vmem>>, vector<128x4xf32>,
    %c6_i32 = arith.constant 6 : i32
    %253 = arith.addi %0, %c6_i32 : i32
    %c0_199 = arith.constant 0 : index
    %254 = arith.index_cast %253 : i32 to index
    %c0_200 = arith.constant 0 : index
    %c0_201 = arith.constant 0 : index
    %255 = vector.load %arg2[%c0_199, %254, %c0_200, %c0_201] : memref<1x22x22x4xf32, #tpu.memory_space<vmem>>, vector<1x8x16x4xf32>
    %256 = vector.shape_cast %255 : vector<1x8x16x4xf32> to vector<8x16x4xf32>
    %257 = vector.shape_cast %256 : vector<8x16x4xf32> to vector<128x4xf32>
    %c0_202 = arith.constant 0 : index
    %c168 = arith.constant 168 : index
    %258 = vector.load %arg5[%c0_202, %c168] : memref<128x196xf32, #tpu.memory_space<vmem>>, vector<128x4xf32>
    tpu.vector_store %arg5[%c0_202, %c168], %257 {strides = array<i32>} : memref<128x196xf32, #tpu.memory_space<vmem>>, vector<128x4xf32>,
    %c6_i32_203 = arith.constant 6 : i32
    %259 = arith.addi %0, %c6_i32_203 : i32
    %c0_204 = arith.constant 0 : index
    %260 = arith.index_cast %259 : i32 to index
    %c1_205 = arith.constant 1 : index
    %c0_206 = arith.constant 0 : index
    %261 = vector.load %arg2[%c0_204, %260, %c1_205, %c0_206] : memref<1x22x22x4xf32, #tpu.memory_space<vmem>>, vector<1x8x16x4xf32>
    %262 = vector.shape_cast %261 : vector<1x8x16x4xf32> to vector<8x16x4xf32>
    %263 = vector.shape_cast %262 : vector<8x16x4xf32> to vector<128x4xf32>
    %c0_207 = arith.constant 0 : index
    %c172 = arith.constant 172 : index
    %264 = vector.load %arg5[%c0_207, %c172] : memref<128x196xf32, #tpu.memory_space<vmem>>, vector<128x4xf32>
    tpu.vector_store %arg5[%c0_207, %c172], %263 {strides = array<i32>} : memref<128x196xf32, #tpu.memory_space<vmem>>, vector<128x4xf32>,
    %c6_i32_208 = arith.constant 6 : i32
    %265 = arith.addi %0, %c6_i32_208 : i32
    %c0_209 = arith.constant 0 : index
    %266 = arith.index_cast %265 : i32 to index
    %c2_210 = arith.constant 2 : index
    %c0_211 = arith.constant 0 : index
    %267 = vector.load %arg2[%c0_209, %266, %c2_210, %c0_211] : memref<1x22x22x4xf32, #tpu.memory_space<vmem>>, vector<1x8x16x4xf32>
    %268 = vector.shape_cast %267 : vector<1x8x16x4xf32> to vector<8x16x4xf32>
    %269 = vector.shape_cast %268 : vector<8x16x4xf32> to vector<128x4xf32>
    %c0_212 = arith.constant 0 : index
    %c176 = arith.constant 176 : index
    %270 = vector.load %arg5[%c0_212, %c176] : memref<128x196xf32, #tpu.memory_space<vmem>>, vector<128x4xf32>
    tpu.vector_store %arg5[%c0_212, %c176], %269 {strides = array<i32>} : memref<128x196xf32, #tpu.memory_space<vmem>>, vector<128x4xf32>,
    %c6_i32_213 = arith.constant 6 : i32
    %271 = arith.addi %0, %c6_i32_213 : i32
    %c0_214 = arith.constant 0 : index
    %272 = arith.index_cast %271 : i32 to index
    %c3_215 = arith.constant 3 : index
    %c0_216 = arith.constant 0 : index
    %273 = vector.load %arg2[%c0_214, %272, %c3_215, %c0_216] : memref<1x22x22x4xf32, #tpu.memory_space<vmem>>, vector<1x8x16x4xf32>
    %274 = vector.shape_cast %273 : vector<1x8x16x4xf32> to vector<8x16x4xf32>
    %275 = vector.shape_cast %274 : vector<8x16x4xf32> to vector<128x4xf32>
    %c0_217 = arith.constant 0 : index
    %c180 = arith.constant 180 : index
    %276 = vector.load %arg5[%c0_217, %c180] : memref<128x196xf32, #tpu.memory_space<vmem>>, vector<128x4xf32>
    tpu.vector_store %arg5[%c0_217, %c180], %275 {strides = array<i32>} : memref<128x196xf32, #tpu.memory_space<vmem>>, vector<128x4xf32>,
    %c6_i32_218 = arith.constant 6 : i32
    %277 = arith.addi %0, %c6_i32_218 : i32
    %c0_219 = arith.constant 0 : index
    %278 = arith.index_cast %277 : i32 to index
    %c4_220 = arith.constant 4 : index
    %c0_221 = arith.constant 0 : index
    %279 = vector.load %arg2[%c0_219, %278, %c4_220, %c0_221] : memref<1x22x22x4xf32, #tpu.memory_space<vmem>>, vector<1x8x16x4xf32>
    %280 = vector.shape_cast %279 : vector<1x8x16x4xf32> to vector<8x16x4xf32>
    %281 = vector.shape_cast %280 : vector<8x16x4xf32> to vector<128x4xf32>
    %c0_222 = arith.constant 0 : index
    %c184 = arith.constant 184 : index
    %282 = vector.load %arg5[%c0_222, %c184] : memref<128x196xf32, #tpu.memory_space<vmem>>, vector<128x4xf32>
    tpu.vector_store %arg5[%c0_222, %c184], %281 {strides = array<i32>} : memref<128x196xf32, #tpu.memory_space<vmem>>, vector<128x4xf32>,
    %c6_i32_223 = arith.constant 6 : i32
    %283 = arith.addi %0, %c6_i32_223 : i32
    %c0_224 = arith.constant 0 : index
    %284 = arith.index_cast %283 : i32 to index
    %c5_225 = arith.constant 5 : index
    %c0_226 = arith.constant 0 : index
    %285 = vector.load %arg2[%c0_224, %284, %c5_225, %c0_226] : memref<1x22x22x4xf32, #tpu.memory_space<vmem>>, vector<1x8x16x4xf32>
    %286 = vector.shape_cast %285 : vector<1x8x16x4xf32> to vector<8x16x4xf32>
    %287 = vector.shape_cast %286 : vector<8x16x4xf32> to vector<128x4xf32>
    %c0_227 = arith.constant 0 : index
    %c188 = arith.constant 188 : index
    %288 = vector.load %arg5[%c0_227, %c188] : memref<128x196xf32, #tpu.memory_space<vmem>>, vector<128x4xf32>
    tpu.vector_store %arg5[%c0_227, %c188], %287 {strides = array<i32>} : memref<128x196xf32, #tpu.memory_space<vmem>>, vector<128x4xf32>,
    %c6_i32_228 = arith.constant 6 : i32
    %289 = arith.addi %0, %c6_i32_228 : i32
    %c0_229 = arith.constant 0 : index
    %290 = arith.index_cast %289 : i32 to index
    %c6_230 = arith.constant 6 : index
    %c0_231 = arith.constant 0 : index
    %291 = vector.load %arg2[%c0_229, %290, %c6_230, %c0_231] : memref<1x22x22x4xf32, #tpu.memory_space<vmem>>, vector<1x8x16x4xf32>
    %292 = vector.shape_cast %291 : vector<1x8x16x4xf32> to vector<8x16x4xf32>
    %293 = vector.shape_cast %292 : vector<8x16x4xf32> to vector<128x4xf32>
    %c0_232 = arith.constant 0 : index
    %c192 = arith.constant 192 : index
    %294 = vector.load %arg5[%c0_232, %c192] : memref<128x196xf32, #tpu.memory_space<vmem>>, vector<128x4xf32>
    tpu.vector_store %arg5[%c0_232, %c192], %293 {strides = array<i32>} : memref<128x196xf32, #tpu.memory_space<vmem>>, vector<128x4xf32>,
    %c0_233 = arith.constant 0 : index
    %c0_234 = arith.constant 0 : index
    %295 = vector.load %arg5[%c0_233, %c0_234] : memref<128x196xf32, #tpu.memory_space<vmem>>, vector<128x196xf32>
    %c0_235 = arith.constant 0 : index
    %c0_236 = arith.constant 0 : index
    %296 = vector.load %arg3[%c0_235, %c0_236] : memref<196x128xf32, #tpu.memory_space<vmem>>, vector<196x128xf32>
    %cst = arith.constant dense<0.000000e+00> : vector<128x128xf32>
    %297 = tpu.matmul %295, %296, %cst {dimension_numbers = #tpu.dot_dimension_numbers<[1], [0], [0], [1], [0, 0, 1, 1], [], []>} : vector<128x196xf32>, vector<196x128xf32>, vector<128x128xf32> -> vector<128x128xf32>
    %c0_237 = arith.constant 0 : index
    %c0_238 = arith.constant 0 : index
    %c0_239 = arith.constant 0 : index
    %298 = vector.load %arg4[%c0_237, %c0_238, %c0_239] : memref<1x128x128xf32, #tpu.memory_space<vmem>>, vector<1x128x128xf32>
    %299 = vector.shape_cast %298 : vector<1x128x128xf32> to vector<128x128xf32>
    %300 = vector.shape_cast %297 : vector<128x128xf32> to vector<1x128x128xf32>
    tpu.vector_store %arg4[%c0_237, %c0_238, %c0_239], %300 {strides = array<i32>} : memref<1x128x128xf32, #tpu.memory_space<vmem>>, vector<1x128x128xf32>,
    return
  }
  func.func @transform_0(%arg0: i32, %arg1: i32) -> (i32, i32, i32, i32) {
    %c0_i32 = arith.constant 0 : i32
    %c0_i32_0 = arith.constant 0 : i32
    %c0_i32_1 = arith.constant 0 : i32
    %c0_i32_2 = arith.constant 0 : i32
    return %arg0, %c0_i32, %c0_i32_0, %c0_i32_1 : i32, i32, i32, i32
  }
  func.func @transform_1(%arg0: i32, %arg1: i32) -> (i32, i32) {
    %c0_i32 = arith.constant 0 : i32
    %c0_i32_0 = arith.constant 0 : i32
    %c0_i32_1 = arith.constant 0 : i32
    return %c0_i32, %c0_i32_0 : i32, i32
  }
  func.func @transform_2(%arg0: i32, %arg1: i32) -> (i32, i32, i32) {
    %c0_i32 = arith.constant 0 : i32
    %c0_i32_0 = arith.constant 0 : i32
    return %arg0, %arg1, %c0_i32 : i32, i32, i32
  }
}

</mosaic_0001>

<bundles_post_ra>
// kernel: tpu_custom_call.1
= control target key start
LH: loop header
LB: loop body
LE: loop exit
PB: predicated region body
PF: predicated region fallthrough
CT: control target
= control target key end

     0   :  { %7 = vsyncpa [#allocation4], 0  ;;  %s9644_s0 = inlined_call_operand.vmem [shape: f32[2,22,22,4], index: 0, kind: input, shape index: {}]   ;;  %s9645_s1 = inlined_call_operand.vmem [shape: f32[196,128], index: 1, kind: input, shape index: {}]   ;;  %s9646_s2 = inlined_call_operand.hbm [shape: f32[2,256,128], index: 2, kind: output, shape index: {}]  }
   0x1   :  { %9 = vsyncpa [#allocation4 + $0x1], 0  ;;  %s6205_s9 = smov 0   ;;  %s6207_s10 = smov 0  }
   0x2   :  { %s6209_s11 = smov 0   ;;  %s6211_s12 = smov 0  }
   0x3   :  { %s6213_s13 = smov 0   ;;  %s6215_s14 = smov 0  }
   0x4   :  { %s6217_s15 = smov 0   ;;  %s6219_s16 = smov 0  }
   0x5 LB: > { %s5175_s17 = sadd.s32 4294967295, %s6153_s16   ;;  %s5176_s18 = sadd.s32 4294967294, %s6153_s16   ;;  %s6153_s16 = sphi %s6219_s16, %s15_s16   ;;  %s6149_s15 = sphi %s6217_s15, %s9930_s15   ;;  %s6145_s14 = sphi %s6215_s14, %s9929_s14   ;;  %s6141_s13 = sphi %s6213_s13, %s9928_s13   ;;  %s6137_s12 = sphi %s6211_s12, %s9927_s12   ;;  %s6133_s11 = sphi %s6209_s11, %s9926_s11   ;;  %s6129_s10 = sphi %s6207_s10, %s9925_s10   ;;  %s6125_s9 = sphi %s6205_s9, %s9924_s9  }
   0x6   : > { %s24_s19 = sadd.s32 1, %s6145_s14  ;;  %s27_s20 = sadd.s32 1, %s6149_s15 }
   0x7   : > { %p25_p0 = scmp.ge.s32.totalorder %s24_s19, 2  ;;  %p93_p1 = scmp.ne.s32.totalorder %s6133_s11, %s6129_s10 }
   0x8   : > { %p94_p2 = scmp.eq.s32.totalorder %s5175_s17, 3  ;;  %p99_p5 = scmp.ne.s32.totalorder %s6129_s10, %s6125_s9 }
   0x9   : > { %s9932_s19 = smov (%p25_p0, %s24_s19), 0  ;;  %s9934_s20 = smov (!%p25_p0, %s27_s20), %s6149_s15 }
   0xa   : > { %s79_s21 = ssub.s32 %s6145_s14, %s9932_s19  ;;  %p6256_p3 = por %p94_p2, %p93_p1 }
   0xb   : > { %p29_p4 = scmp.ge.s32.totalorder %s9934_s20, 2  ;;  %p100_p6 = scmp.eq.s32.totalorder %s5176_s18, 3 }
   0xc   : > { %p5179_p7 = scmp.ge.s32.totalorder %s6153_s16, 1  ;;  %p129_p9 = scmp.lt.s32.totalorder %s6153_s16, 5 }
   0xd   : > { %s9936_s20 = smov (%p29_p4, %s9934_s20), 0  ;;  %p6265_p8 = por %p100_p6, %p99_p5 }
   0xe   : > { %s78_s24 = ssub.s32 %s6149_s15, %s9936_s20  ;;  %s83_s25 = sadd.s32 1, %s6133_s11 }
   0xf   : > { %s80_s26 = sor.u32 %s79_s21, %s78_s24  ;;  %p130_p10 = pnand %p5179_p7, %p129_p9 }
  0x10   : > { %p81_p11 = scmp.eq.s32.totalorder %s80_s26, 0 }
  0x11   : > { %133 = sbr.rel (%p130_p10) target bundleno = 1885 (0x75d), region = 28 }
  0x12   : > { %s6274_s27 = scalar_select %p81_p11, %s6133_s11, %s83_s25  }
  0x18   : > { %p151_p12 = scmp.lt.s32.totalorder %s6141_s13, 1  ;;  %s5183_s29 = smul.u32 192, %s6137_s12  ;;  %vm176_vm0 = vcmask 31744   ;;  %vm273_vm1 = vcmask 64544   ;;  %vm370_vm2 = vcmask 97344   ;;  %vm467_vm3 = vcmask 130144  }
  0x19   : > { %s6155_s7 = smov 4   ;;  %s6156_s8 = smov 8   ;;  %vm564_vm4 = vcmask 162944   ;;  %vm661_vm5 = vcmask 195744   ;;  %vm758_vm6 = vcmask 228544   ;;  %vm858_vm7 = vcmask 261344  }
  0x1a   : > { %s152_s28 = scalar_select %p151_p12, %s6141_s13, 1  ;;  %vm955_vm8 = vcmask 294144   ;;  %vm1052_vm9 = vcmask 326944   ;;  %vm1149_vm10 = vcmask 359744   ;;  %vm1246_vm11 = vcmask 392544  }
  0x1b   : > { %s6157_s17 = smov 12   ;;  %s6158_s18 = smov 16   ;;  %vm1343_vm12 = vcmask 425344   ;;  %vm1440_vm13 = vcmask 458144   ;;  %vm9705_vm14 = vcmask 490944   ;;  %vm9716_vm15 = vcmask 523744  }
  0x1c   : > { %s5953_s30 = smul.u32 528, %s152_s28  ;;  %s6159_s21 = smov 20  }
  0x1d   : > { %s6160_s24 = smov 24   ;;  %s6161_s25 = smov 28  }
  0x1e   : > { %s155_s5 = scalar_lea.vmem %s9644_s0, %s5953_s30  ;;  %s6162_s26 = smov 32  }
  0x1f   : > { %s6282_s6 = scalar_lea.vmem %s155_s5, %s5183_s29  ;;  %s6163_s28 = smov 36  }
  0x20   : > { %v6285_v0 = vld [vmem:[%s6282_s6 + $0x19] sm:$0xff]  ;;  %v193_v1 = vld [vmem:[%s6282_s6 + $0x1] sm:$0xff]  ;;  %v194_v3 = vld [vmem:[%s6282_s6 + $0x9] sm:$0xff]  ;;  %s6164_s29 = smov 40   ;;  %s6165_s30 = smov 44  }
  0x21   : > { %229 = vrot.lane.b32.xlu1 %v6285_v0, %s6155_s7  ;;  %225 = vrot.lane.b32.xlu0 %v193_v1, %s6155_s7  ;;  %v6292_v2 = vld [vmem:[%s6282_s6 + $0x21] sm:$0xff]  ;;  %v6299_v4 = vld [vmem:[%s6282_s6 + $0x39] sm:$0xff]  ;;  %s6166_s3 = smov 48   ;;  %s9685_s4 = smov 52  }
  0x22   : > { %v6302_v5 = vld [vmem:[%s6282_s6 + $0x31] sm:$0xff]  ;;  %v6312_v7 = vld [vmem:[%s6282_s6 + $0x49] sm:$0xff]  ;;  %v6322_v9 = vld [vmem:[%s6282_s6 + $0x61] sm:$0xff]  ;;  %s9687_s5 = smov 56  }
  0x23   : > { %v6309_v6 = vld [vmem:[%s6282_s6 + $0x51] sm:$0xff]  ;;  %v6319_v8 = vld [vmem:[%s6282_s6 + $0x69] sm:$0xff]  ;;  %v6329_v10 = vld [vmem:[%s6282_s6 + $0x81] sm:$0xff] }
  0x24   : > { %v6332_v11 = vld [vmem:[%s6282_s6 + $0x79] sm:$0xff]  ;;  %v6346_v15 = vld [vmem:[%s6282_s6 + $0x91] sm:$0xff]  ;;  %v161_v17 = vld [vmem:[%s6282_s6 + $0x8] sm:$0xff] }
  0x25   : > { %231 = vrot.lane.b32.xlu1 %v6292_v2, %s6155_s7  ;;  %227 = vrot.lane.b32.xlu0 %v194_v3, %s6155_s7  ;;  %v6339_v12 = vld [vmem:[%s6282_s6 + $0x18] sm:$0xff]  ;;  %v160_v13 = vld [vmem:[%s6282_s6] sm:$0xff]  ;;  %178 = vst.msk [vmem:[#allocation2 + $0x10] sm:$0xff] %vm176_vm0, %v161_v17 }
  0x26   : > { %v6343_v14 = vld [vmem:[%s6282_s6 + $0x99] sm:$0xff]  ;;  %179 = vst.msk [vmem:[#allocation2 + $0x20] sm:$0xff] %vm176_vm0, %v6339_v12  ;;  %177 = vst.msk [vmem:[#allocation2] sm:$0xff] %vm176_vm0, %v160_v13  ;;  %v6362_v19 = vld [vmem:[%s6282_s6 + $0x30] sm:$0xff] }
  0x27   : > { %v6352_v16 = vld [vmem:[%s6282_s6 + $0x20] sm:$0xff]  ;;  %v6359_v18 = vld [vmem:[%s6282_s6 + $0x38] sm:$0xff]  ;;  %181 = vst.msk [vmem:[#allocation2 + $0x40] sm:$0xff] %vm176_vm0, %v6362_v19  ;;  %v6373_v20 = vld [vmem:[%s6282_s6 + $0x50] sm:$0xff] }
  0x28   : > { %180 = vst.msk [vmem:[#allocation2 + $0x30] sm:$0xff] %vm176_vm0, %v6352_v16  ;;  %182 = vst.msk [vmem:[#allocation2 + $0x50] sm:$0xff] %vm176_vm0, %v6359_v18  ;;  %v6376_v21 = vld [vmem:[%s6282_s6 + $0xb1] sm:$0xff]  ;;  %v6379_v22 = vld [vmem:[%s6282_s6 + $0xa9] sm:$0xff] }
  0x29   : > { %235 = vrot.lane.b32.xlu1 %v6299_v4, %s6155_s7  ;;  %233 = vrot.lane.b32.xlu0 %v6302_v5, %s6155_s7  ;;  %184 = vst.msk [vmem:[#allocation2 + $0x70] sm:$0xff] %vm176_vm0, %v6373_v20  ;;  %v6384_v23 = vld [vmem:[%s6282_s6 + $0x48] sm:$0xff]  ;;  %v6392_v25 = vld [vmem:[%s6282_s6 + $0x60] sm:$0xff] }
  0x2a   : > { %183 = vst.msk [vmem:[#allocation2 + $0x60] sm:$0xff] %vm176_vm0, %v6384_v23  ;;  %v6389_v24 = vld [vmem:[%s6282_s6 + $0x68] sm:$0xff]  ;;  %185 = vst.msk [vmem:[#allocation2 + $0x80] sm:$0xff] %vm176_vm0, %v6392_v25  ;;  %v6399_v26 = vld [vmem:[%s6282_s6 + $0x80] sm:$0xff] }
  0x2b   : > { %186 = vst.msk [vmem:[#allocation2 + $0x90] sm:$0xff] %vm176_vm0, %v6389_v24  ;;  %v6402_v27 = vld [vmem:[%s6282_s6 + $0x78] sm:$0xff]  ;;  %v291_v28 = vld [vmem:[%s6282_s6 + $0xa] sm:$0xff]  ;;  %188 = vst.msk [vmem:[#allocation2 + $0xb0] sm:$0xff] %vm176_vm0, %v6399_v26 }
  0x2c   : > { %187 = vst.msk [vmem:[#allocation2 + $0xa0] sm:$0xff] %vm176_vm0, %v6402_v27  ;;  %v290_v29 = vld [vmem:[%s6282_s6 + $0x2] sm:$0xff]  ;;  %v6415_v30 = vld [vmem:[%s6282_s6 + $0x98] sm:$0xff]  ;;  %v6418_v31 = vld [vmem:[%s6282_s6 + $0x90] sm:$0xff] }
  0x2d   : > { %239 = vrot.lane.b32.xlu1 %v6309_v6, %s6155_s7  ;;  %237 = vrot.lane.b32.xlu0 %v6312_v7, %s6155_s7  ;;  %190 = vst.msk [vmem:[#allocation2 + $0xd0] sm:$0xff] %vm176_vm0, %v6415_v30  ;;  %189 = vst.msk [vmem:[#allocation2 + $0xc0] sm:$0xff] %vm176_vm0, %v6418_v31  ;;  %v6425_v32 = vld [vmem:[%s6282_s6 + $0xb0] sm:$0xff]  ;;  %v6428_v33 = vld [vmem:[%s6282_s6 + $0xa8] sm:$0xff] }
  0x2e   : > { %192 = vst.msk [vmem:[#allocation2 + $0xf0] sm:$0xff] %vm176_vm0, %v6425_v32  ;;  %191 = vst.msk [vmem:[#allocation2 + $0xe0] sm:$0xff] %vm176_vm0, %v6428_v33  ;;  %v6437_v34 = vld [vmem:[%s6282_s6 + $0x22] sm:$0xff]  ;;  %v6440_v35 = vld [vmem:[%s6282_s6 + $0x1a] sm:$0xff] }
  0x2f   : > { %v6447_v36 = vld [vmem:[%s6282_s6 + $0x3a] sm:$0xff]  ;;  %v6450_v37 = vld [vmem:[%s6282_s6 + $0x32] sm:$0xff]  ;;  %v6460_v39 = vld [vmem:[%s6282_s6 + $0x4a] sm:$0xff] }
  0x30   : > { %v6457_v38 = vld [vmem:[%s6282_s6 + $0x52] sm:$0xff]  ;;  %v6467_v40 = vld [vmem:[%s6282_s6 + $0x6a] sm:$0xff]  ;;  %v6470_v41 = vld [vmem:[%s6282_s6 + $0x62] sm:$0xff] }
  0x31   : > { %243 = vrot.lane.b32.xlu1 %v6319_v8, %s6155_s7  ;;  %241 = vrot.lane.b32.xlu0 %v6322_v9, %s6155_s7  ;;  %v6477_v42 = vld [vmem:[%s6282_s6 + $0x82] sm:$0xff]  ;;  %v6480_v43 = vld [vmem:[%s6282_s6 + $0x7a] sm:$0xff] }
  0x32   : > { %v6487_v44 = vld [vmem:[%s6282_s6 + $0x9a] sm:$0xff]  ;;  %v6490_v45 = vld [vmem:[%s6282_s6 + $0x92] sm:$0xff]  ;;  %v6500_v47 = vld [vmem:[%s6282_s6 + $0xaa] sm:$0xff] }
  0x33   : > { %v6497_v46 = vld [vmem:[%s6282_s6 + $0xb2] sm:$0xff]  ;;  %v387_v49 = vld [vmem:[%s6282_s6 + $0x3] sm:$0xff]  ;;  %v6514_v51 = vld [vmem:[%s6282_s6 + $0x1b] sm:$0xff] }
  0x34   : > { %v388_v48 = vld [vmem:[%s6282_s6 + $0xb] sm:$0xff]  ;;  %v6511_v50 = vld [vmem:[%s6282_s6 + $0x23] sm:$0xff]  ;;  %v6521_v52 = vld [vmem:[%s6282_s6 + $0x3b] sm:$0xff] }
  0x35   : > { %247 = vrot.lane.b32.xlu1 %v6329_v10, %s6155_s7  ;;  %245 = vrot.lane.b32.xlu0 %v6332_v11, %s6155_s7  ;;  %v6524_v53 = vld [vmem:[%s6282_s6 + $0x33] sm:$0xff]  ;;  %v6534_v55 = vld [vmem:[%s6282_s6 + $0x4b] sm:$0xff] }
  0x36   : > { %v6531_v54 = vld [vmem:[%s6282_s6 + $0x53] sm:$0xff]  ;;  %v6541_v56 = vld [vmem:[%s6282_s6 + $0x6b] sm:$0xff]  ;;  %v6544_v57 = vld [vmem:[%s6282_s6 + $0x63] sm:$0xff] }
  0x37   : > { %v6551_v58 = vld [vmem:[%s6282_s6 + $0x83] sm:$0xff]  ;;  %v6554_v59 = vld [vmem:[%s6282_s6 + $0x7b] sm:$0xff]  ;;  %v6564_v61 = vld [vmem:[%s6282_s6 + $0x93] sm:$0xff] }
  0x38   : > { %v6561_v60 = vld [vmem:[%s6282_s6 + $0x9b] sm:$0xff]  ;;  %v6571_v62 = vld [vmem:[%s6282_s6 + $0xb3] sm:$0xff]  ;;  %v6574_v63 = vld [vmem:[%s6282_s6 + $0xab] sm:$0xff] }
  0x39   : > { %251 = vrot.lane.b32.xlu1 %v6343_v14, %s6155_s7  ;;  %249 = vrot.lane.b32.xlu0 %v6346_v15, %s6155_s7  ;;  %v485_v1 = vld [vmem:[%s6282_s6 + $0xc] sm:$0xff]  ;;  %v484_v3 = vld [vmem:[%s6282_s6 + $0x4] sm:$0xff] }
  0x3a   : > { %v6585_v13 = vld [vmem:[%s6282_s6 + $0x24] sm:$0xff]  ;;  %v6588_v17 = vld [vmem:[%s6282_s6 + $0x1c] sm:$0xff] }
  0x3b   : > { %9734 = vst [vmem:[#allocation6_spill] sm:$0xff] %v6585_v13  ;;  %9735 = vst [vmem:[#allocation7_spill] sm:$0xff] %v6588_v17 }
  0x3d   : > { %255 = vrot.lane.b32.xlu1 %v6376_v21, %s6155_s7  ;;  %253 = vrot.lane.b32.xlu0 %v6379_v22, %s6155_s7 }
  0x41   : > { %324 = vrot.lane.b32.xlu1 %v291_v28, %s6156_s8  ;;  %322 = vrot.lane.b32.xlu0 %v290_v29, %s6156_s8  ;;  %v6595_v28 = vld [vmem:[%s6282_s6 + $0x3c] sm:$0xff]  ;;  %v6598_v29 = vld [vmem:[%s6282_s6 + $0x34] sm:$0xff] }
  0x42   : > { %9736 = vst [vmem:[#allocation8_spill] sm:$0xff] %v6595_v28  ;;  %9737 = vst [vmem:[#allocation9_spill] sm:$0xff] %v6598_v29 }
  0x45   : > { %328 = vrot.lane.b32.xlu1 %v6437_v34, %s6156_s8  ;;  %326 = vrot.lane.b32.xlu0 %v6440_v35, %s6156_s8 }
  0x49   : > { %332 = vrot.lane.b32.xlu1 %v6447_v36, %s6156_s8  ;;  %330 = vrot.lane.b32.xlu0 %v6450_v37, %s6156_s8 }
  0x4d   : > { %336 = vrot.lane.b32.xlu1 %v6457_v38, %s6156_s8  ;;  %334 = vrot.lane.b32.xlu0 %v6460_v39, %s6156_s8 }
  0x51   : > { %340 = vrot.lane.b32.xlu1 %v6467_v40, %s6156_s8  ;;  %338 = vrot.lane.b32.xlu0 %v6470_v41, %s6156_s8 }
  0x55   : > { %344 = vrot.lane.b32.xlu1 %v6477_v42, %s6156_s8  ;;  %342 = vrot.lane.b32.xlu0 %v6480_v43, %s6156_s8 }
  0x59   : > { %348 = vrot.lane.b32.xlu1 %v6487_v44, %s6156_s8  ;;  %346 = vrot.lane.b32.xlu0 %v6490_v45, %s6156_s8 }
  0x5d   : > { %352 = vrot.lane.b32.xlu1 %v6497_v46, %s6156_s8  ;;  %350 = vrot.lane.b32.xlu0 %v6500_v47, %s6156_s8 }
  0x61   : > { %421 = vrot.lane.b32.xlu1 %v388_v48, %s6157_s17  ;;  %419 = vrot.lane.b32.xlu0 %v387_v49, %s6157_s17  ;;  %v6605_v48 = vld [vmem:[%s6282_s6 + $0x54] sm:$0xff]  ;;  %v6608_v49 = vld [vmem:[%s6282_s6 + $0x4c] sm:$0xff] }
  0x62   : > { %9738 = vst [vmem:[#allocation10_spill] sm:$0xff] %v6605_v48  ;;  %9739 = vst [vmem:[#allocation11_spill] sm:$0xff] %v6608_v49 }
  0x65   : > { %425 = vrot.lane.b32.xlu1 %v6511_v50, %s6157_s17  ;;  %423 = vrot.lane.b32.xlu0 %v6514_v51, %s6157_s17 }
  0x69   : > { %429 = vrot.lane.b32.xlu1 %v6521_v52, %s6157_s17  ;;  %427 = vrot.lane.b32.xlu0 %v6524_v53, %s6157_s17 }
  0x6d   : > { %433 = vrot.lane.b32.xlu1 %v6531_v54, %s6157_s17  ;;  %431 = vrot.lane.b32.xlu0 %v6534_v55, %s6157_s17 }
  0x71   : > { %437 = vrot.lane.b32.xlu1 %v6541_v56, %s6157_s17  ;;  %435 = vrot.lane.b32.xlu0 %v6544_v57, %s6157_s17 }
  0x75   : > { %441 = vrot.lane.b32.xlu1 %v6551_v58, %s6157_s17  ;;  %439 = vrot.lane.b32.xlu0 %v6554_v59, %s6157_s17 }
  0x79   : > { %445 = vrot.lane.b32.xlu1 %v6561_v60, %s6157_s17  ;;  %443 = vrot.lane.b32.xlu0 %v6564_v61, %s6157_s17 }
  0x7d   : > { %449 = vrot.lane.b32.xlu1 %v6571_v62, %s6157_s17  ;;  %447 = vrot.lane.b32.xlu0 %v6574_v63, %s6157_s17 }
  0x81   : > { %518 = vrot.lane.b32.xlu1 %v485_v1, %s6158_s18  ;;  %516 = vrot.lane.b32.xlu0 %v484_v3, %s6158_s18  ;;  %v6615_v1 = vld [vmem:[%s6282_s6 + $0x6c] sm:$0xff]  ;;  %v6618_v3 = vld [vmem:[%s6282_s6 + $0x64] sm:$0xff] }
  0x82   : > { %9740 = vst [vmem:[#allocation12_spill] sm:$0xff] %v6615_v1  ;;  %9741 = vst [vmem:[#allocation13_spill] sm:$0xff] %v6618_v3 }
  0x85   : > { %522 = vrot.lane.b32.xlu1 %v6585_v13, %s6158_s18  ;;  %520 = vrot.lane.b32.xlu0 %v6588_v17, %s6158_s18 }
  0x89   : > { %526 = vrot.lane.b32.xlu1 %v6595_v28, %s6158_s18  ;;  %524 = vrot.lane.b32.xlu0 %v6598_v29, %s6158_s18  ;;  %v6625_v29 = vld [vmem:[%s6282_s6 + $0x84] sm:$0xff]  ;;  %v6628_v28 = vld [vmem:[%s6282_s6 + $0x7c] sm:$0xff] }
  0x8a   : > { %9742 = vst [vmem:[#allocation14_spill] sm:$0xff] %v6625_v29  ;;  %9743 = vst [vmem:[#allocation15_spill] sm:$0xff] %v6628_v28 }
  0x8d   : > { %530 = vrot.lane.b32.xlu1 %v6605_v48, %s6158_s18  ;;  %528 = vrot.lane.b32.xlu0 %v6608_v49, %s6158_s18 }
  0x91   : > { %534 = vrot.lane.b32.xlu1 %v6615_v1, %s6158_s18  ;;  %532 = vrot.lane.b32.xlu0 %v6618_v3, %s6158_s18  ;;  %v6637_v3 = vld [vmem:[%s6282_s6 + $0x9c] sm:$0xff]  ;;  %v6640_v1 = vld [vmem:[%s6282_s6 + $0x94] sm:$0xff] }
  0x92   : > { %9744 = vst [vmem:[#allocation16_spill] sm:$0xff] %v6637_v3  ;;  %9745 = vst [vmem:[#allocation17_spill] sm:$0xff] %v6640_v1 }
  0x93   : > { %v230_v48 = vpop.permute.xlu1 %229  ;;  %v226_v17 = vpop.permute.xlu0 %225 }
  0x94   : > { %276 = vst.msk [vmem:[#allocation2 + $0x20] sm:$0xff] %vm273_vm1, %v230_v48  ;;  %274 = vst.msk [vmem:[#allocation2] sm:$0xff] %vm273_vm1, %v226_v17  ;;  %v6649_v17 = vld [vmem:[%s6282_s6 + $0xb4] sm:$0xff]  ;;  %v6652_v48 = vld [vmem:[%s6282_s6 + $0xac] sm:$0xff] }
  0x95   : > { %538 = vrot.lane.b32.xlu1 %v6625_v29, %s6158_s18  ;;  %536 = vrot.lane.b32.xlu0 %v6628_v28, %s6158_s18  ;;  %9746 = vst [vmem:[#allocation18_spill] sm:$0xff] %v6649_v17  ;;  %9747 = vst [vmem:[#allocation19_spill] sm:$0xff] %v6652_v48 }
  0x97   : > { %v232_v49 = vpop.permute.xlu1 %231  ;;  %v228_v13 = vpop.permute.xlu0 %227 }
  0x98   : > { %277 = vst.msk [vmem:[#allocation2 + $0x30] sm:$0xff] %vm273_vm1, %v232_v49  ;;  %275 = vst.msk [vmem:[#allocation2 + $0x10] sm:$0xff] %vm273_vm1, %v228_v13  ;;  %v582_v13 = vld [vmem:[%s6282_s6 + $0xd] sm:$0xff]  ;;  %v581_v49 = vld [vmem:[%s6282_s6 + $0x5] sm:$0xff] }
  0x99   : > { %542 = vrot.lane.b32.xlu1 %v6637_v3, %s6158_s18  ;;  %540 = vrot.lane.b32.xlu0 %v6640_v1, %s6158_s18 }
  0x9b   : > { %v236_v28 = vpop.permute.xlu1 %235  ;;  %v234_v29 = vpop.permute.xlu0 %233 }
  0x9c   : > { %279 = vst.msk [vmem:[#allocation2 + $0x50] sm:$0xff] %vm273_vm1, %v236_v28  ;;  %278 = vst.msk [vmem:[#allocation2 + $0x40] sm:$0xff] %vm273_vm1, %v234_v29  ;;  %v6667_v28 = vld [vmem:[%s6282_s6 + $0x25] sm:$0xff]  ;;  %v6670_v29 = vld [vmem:[%s6282_s6 + $0x1d] sm:$0xff] }
  0x9d   : > { %546 = vrot.lane.b32.xlu1 %v6649_v17, %s6158_s18  ;;  %544 = vrot.lane.b32.xlu0 %v6652_v48, %s6158_s18  ;;  %9748 = vst [vmem:[#allocation20_spill] sm:$0xff] %v6667_v28  ;;  %9749 = vst [vmem:[#allocation21_spill] sm:$0xff] %v6670_v29 }
  0x9f   : > { %v240_v1 = vpop.permute.xlu1 %239  ;;  %v238_v3 = vpop.permute.xlu0 %237 }
  0xa0   : > { %281 = vst.msk [vmem:[#allocation2 + $0x70] sm:$0xff] %vm273_vm1, %v240_v1  ;;  %280 = vst.msk [vmem:[#allocation2 + $0x60] sm:$0xff] %vm273_vm1, %v238_v3  ;;  %v6679_v1 = vld [vmem:[%s6282_s6 + $0x3d] sm:$0xff]  ;;  %v6682_v3 = vld [vmem:[%s6282_s6 + $0x35] sm:$0xff] }
  0xa1   : > { %615 = vrot.lane.b32.xlu1 %v582_v13, %s6159_s21  ;;  %613 = vrot.lane.b32.xlu0 %v581_v49, %s6159_s21  ;;  %9750 = vst [vmem:[#allocation22_spill] sm:$0xff] %v6679_v1  ;;  %9751 = vst [vmem:[#allocation23_spill] sm:$0xff] %v6682_v3 }
  0xa3   : > { %v244_v48 = vpop.permute.xlu1 %243  ;;  %v242_v17 = vpop.permute.xlu0 %241 }
  0xa4   : > { %283 = vst.msk [vmem:[#allocation2 + $0x90] sm:$0xff] %vm273_vm1, %v244_v48  ;;  %282 = vst.msk [vmem:[#allocation2 + $0x80] sm:$0xff] %vm273_vm1, %v242_v17  ;;  %v6691_v17 = vld [vmem:[%s6282_s6 + $0x55] sm:$0xff]  ;;  %v6694_v48 = vld [vmem:[%s6282_s6 + $0x4d] sm:$0xff] }
  0xa5   : > { %619 = vrot.lane.b32.xlu1 %v6667_v28, %s6159_s21  ;;  %617 = vrot.lane.b32.xlu0 %v6670_v29, %s6159_s21  ;;  %9752 = vst [vmem:[#allocation24_spill] sm:$0xff] %v6691_v17  ;;  %9753 = vst [vmem:[#allocation25_spill] sm:$0xff] %v6694_v48 }
  0xa7   : > { %v248_v13 = vpop.permute.xlu1 %247  ;;  %v246_v49 = vpop.permute.xlu0 %245 }
  0xa8   : > { %285 = vst.msk [vmem:[#allocation2 + $0xb0] sm:$0xff] %vm273_vm1, %v248_v13  ;;  %284 = vst.msk [vmem:[#allocation2 + $0xa0] sm:$0xff] %vm273_vm1, %v246_v49  ;;  %v6703_v13 = vld [vmem:[%s6282_s6 + $0x6d] sm:$0xff]  ;;  %v6706_v49 = vld [vmem:[%s6282_s6 + $0x65] sm:$0xff] }
  0xa9   : > { %623 = vrot.lane.b32.xlu1 %v6679_v1, %s6159_s21  ;;  %621 = vrot.lane.b32.xlu0 %v6682_v3, %s6159_s21  ;;  %9754 = vst [vmem:[#allocation26_spill] sm:$0xff] %v6703_v13  ;;  %9755 = vst [vmem:[#allocation27_spill] sm:$0xff] %v6706_v49 }
  0xab   : > { %v252_v29 = vpop.permute.xlu1 %251  ;;  %v250_v28 = vpop.permute.xlu0 %249 }
  0xac   : > { %287 = vst.msk [vmem:[#allocation2 + $0xd0] sm:$0xff] %vm273_vm1, %v252_v29  ;;  %286 = vst.msk [vmem:[#allocation2 + $0xc0] sm:$0xff] %vm273_vm1, %v250_v28  ;;  %v6715_v28 = vld [vmem:[%s6282_s6 + $0x85] sm:$0xff]  ;;  %v6718_v29 = vld [vmem:[%s6282_s6 + $0x7d] sm:$0xff] }
  0xad   : > { %627 = vrot.lane.b32.xlu1 %v6691_v17, %s6159_s21  ;;  %625 = vrot.lane.b32.xlu0 %v6694_v48, %s6159_s21  ;;  %9756 = vst [vmem:[#allocation28_spill] sm:$0xff] %v6715_v28  ;;  %9757 = vst [vmem:[#allocation29_spill] sm:$0xff] %v6718_v29 }
  0xaf   : > { %v256_v3 = vpop.permute.xlu1 %255  ;;  %v254_v1 = vpop.permute.xlu0 %253 }
  0xb0   : > { %289 = vst.msk [vmem:[#allocation2 + $0xf0] sm:$0xff] %vm273_vm1, %v256_v3  ;;  %288 = vst.msk [vmem:[#allocation2 + $0xe0] sm:$0xff] %vm273_vm1, %v254_v1  ;;  %v6727_v1 = vld [vmem:[%s6282_s6 + $0x9d] sm:$0xff]  ;;  %v6730_v3 = vld [vmem:[%s6282_s6 + $0x95] sm:$0xff] }
  0xb1   : > { %631 = vrot.lane.b32.xlu1 %v6703_v13, %s6159_s21  ;;  %629 = vrot.lane.b32.xlu0 %v6706_v49, %s6159_s21  ;;  %9758 = vst [vmem:[#allocation30_spill] sm:$0xff] %v6727_v1  ;;  %9759 = vst [vmem:[#allocation31_spill] sm:$0xff] %v6730_v3 }
  0xb3   : > { %v325_v48 = vpop.permute.xlu1 %324  ;;  %v323_v17 = vpop.permute.xlu0 %322 }
  0xb4   : > { %372 = vst.msk [vmem:[#allocation2 + $0x10] sm:$0xff] %vm370_vm2, %v325_v48  ;;  %371 = vst.msk [vmem:[#allocation2] sm:$0xff] %vm370_vm2, %v323_v17  ;;  %v6739_v17 = vld [vmem:[%s6282_s6 + $0xb5] sm:$0xff]  ;;  %v6742_v48 = vld [vmem:[%s6282_s6 + $0xad] sm:$0xff] }
  0xb5   : > { %635 = vrot.lane.b32.xlu1 %v6715_v28, %s6159_s21  ;;  %633 = vrot.lane.b32.xlu0 %v6718_v29, %s6159_s21  ;;  %9760 = vst [vmem:[#allocation32_spill] sm:$0xff] %v6739_v17  ;;  %9761 = vst [vmem:[#allocation33_spill] sm:$0xff] %v6742_v48 }
  0xb7   : > { %v329_v49 = vpop.permute.xlu1 %328  ;;  %v327_v13 = vpop.permute.xlu0 %326 }
  0xb8   : > { %374 = vst.msk [vmem:[#allocation2 + $0x30] sm:$0xff] %vm370_vm2, %v329_v49  ;;  %373 = vst.msk [vmem:[#allocation2 + $0x20] sm:$0xff] %vm370_vm2, %v327_v13  ;;  %v679_v13 = vld [vmem:[%s6282_s6 + $0xe] sm:$0xff]  ;;  %v678_v49 = vld [vmem:[%s6282_s6 + $0x6] sm:$0xff] }
  0xb9   : > { %639 = vrot.lane.b32.xlu1 %v6727_v1, %s6159_s21  ;;  %637 = vrot.lane.b32.xlu0 %v6730_v3, %s6159_s21 }
  0xbb   : > { %v333_v29 = vpop.permute.xlu1 %332  ;;  %v331_v28 = vpop.permute.xlu0 %330 }
  0xbc   : > { %376 = vst.msk [vmem:[#allocation2 + $0x50] sm:$0xff] %vm370_vm2, %v333_v29  ;;  %375 = vst.msk [vmem:[#allocation2 + $0x40] sm:$0xff] %vm370_vm2, %v331_v28  ;;  %v6757_v28 = vld [vmem:[%s6282_s6 + $0x26] sm:$0xff]  ;;  %v6760_v29 = vld [vmem:[%s6282_s6 + $0x1e] sm:$0xff] }
  0xbd   : > { %643 = vrot.lane.b32.xlu1 %v6739_v17, %s6159_s21  ;;  %641 = vrot.lane.b32.xlu0 %v6742_v48, %s6159_s21  ;;  %9762 = vst [vmem:[#allocation34_spill] sm:$0xff] %v6757_v28  ;;  %9763 = vst [vmem:[#allocation35_spill] sm:$0xff] %v6760_v29 }
  0xbf   : > { %v337_v3 = vpop.permute.xlu1 %336  ;;  %v335_v1 = vpop.permute.xlu0 %334 }
  0xc0   : > { %378 = vst.msk [vmem:[#allocation2 + $0x70] sm:$0xff] %vm370_vm2, %v337_v3  ;;  %377 = vst.msk [vmem:[#allocation2 + $0x60] sm:$0xff] %vm370_vm2, %v335_v1  ;;  %v6769_v1 = vld [vmem:[%s6282_s6 + $0x3e] sm:$0xff]  ;;  %v6772_v3 = vld [vmem:[%s6282_s6 + $0x36] sm:$0xff] }
  0xc1   : > { %712 = vrot.lane.b32.xlu1 %v679_v13, %s6160_s24  ;;  %710 = vrot.lane.b32.xlu0 %v678_v49, %s6160_s24  ;;  %9764 = vst [vmem:[#allocation36_spill] sm:$0xff] %v6769_v1  ;;  %9765 = vst [vmem:[#allocation37_spill] sm:$0xff] %v6772_v3 }
  0xc3   : > { %v341_v48 = vpop.permute.xlu1 %340  ;;  %v339_v17 = vpop.permute.xlu0 %338 }
  0xc4   : > { %380 = vst.msk [vmem:[#allocation2 + $0x90] sm:$0xff] %vm370_vm2, %v341_v48  ;;  %379 = vst.msk [vmem:[#allocation2 + $0x80] sm:$0xff] %vm370_vm2, %v339_v17  ;;  %v6781_v17 = vld [vmem:[%s6282_s6 + $0x56] sm:$0xff]  ;;  %v6784_v48 = vld [vmem:[%s6282_s6 + $0x4e] sm:$0xff] }
  0xc5   : > { %716 = vrot.lane.b32.xlu1 %v6757_v28, %s6160_s24  ;;  %714 = vrot.lane.b32.xlu0 %v6760_v29, %s6160_s24  ;;  %9766 = vst [vmem:[#allocation38_spill] sm:$0xff] %v6781_v17  ;;  %9767 = vst [vmem:[#allocation39_spill] sm:$0xff] %v6784_v48 }
  0xc7   : > { %v345_v13 = vpop.permute.xlu1 %344  ;;  %v343_v49 = vpop.permute.xlu0 %342 }
  0xc8   : > { %382 = vst.msk [vmem:[#allocation2 + $0xb0] sm:$0xff] %vm370_vm2, %v345_v13  ;;  %381 = vst.msk [vmem:[#allocation2 + $0xa0] sm:$0xff] %vm370_vm2, %v343_v49  ;;  %v6793_v13 = vld [vmem:[%s6282_s6 + $0x6e] sm:$0xff]  ;;  %v6796_v49 = vld [vmem:[%s6282_s6 + $0x66] sm:$0xff] }
  0xc9   : > { %720 = vrot.lane.b32.xlu1 %v6769_v1, %s6160_s24  ;;  %718 = vrot.lane.b32.xlu0 %v6772_v3, %s6160_s24  ;;  %9768 = vst [vmem:[#allocation40_spill] sm:$0xff] %v6793_v13  ;;  %9769 = vst [vmem:[#allocation41_spill] sm:$0xff] %v6796_v49 }
  0xcb   : > { %v349_v29 = vpop.permute.xlu1 %348  ;;  %v347_v28 = vpop.permute.xlu0 %346 }
  0xcc   : > { %384 = vst.msk [vmem:[#allocation2 + $0xd0] sm:$0xff] %vm370_vm2, %v349_v29  ;;  %383 = vst.msk [vmem:[#allocation2 + $0xc0] sm:$0xff] %vm370_vm2, %v347_v28  ;;  %v6805_v28 = vld [vmem:[%s6282_s6 + $0x86] sm:$0xff]  ;;  %v6808_v29 = vld [vmem:[%s6282_s6 + $0x7e] sm:$0xff] }
  0xcd   : > { %724 = vrot.lane.b32.xlu1 %v6781_v17, %s6160_s24  ;;  %722 = vrot.lane.b32.xlu0 %v6784_v48, %s6160_s24  ;;  %9770 = vst [vmem:[#allocation42_spill] sm:$0xff] %v6805_v28  ;;  %9771 = vst [vmem:[#allocation43_spill] sm:$0xff] %v6808_v29 }
  0xcf   : > { %v353_v3 = vpop.permute.xlu1 %352  ;;  %v351_v1 = vpop.permute.xlu0 %350 }
  0xd0   : > { %386 = vst.msk [vmem:[#allocation2 + $0xf0] sm:$0xff] %vm370_vm2, %v353_v3  ;;  %385 = vst.msk [vmem:[#allocation2 + $0xe0] sm:$0xff] %vm370_vm2, %v351_v1  ;;  %v6817_v1 = vld [vmem:[%s6282_s6 + $0x9e] sm:$0xff]  ;;  %v6820_v3 = vld [vmem:[%s6282_s6 + $0x96] sm:$0xff] }
  0xd1   : > { %728 = vrot.lane.b32.xlu1 %v6793_v13, %s6160_s24  ;;  %726 = vrot.lane.b32.xlu0 %v6796_v49, %s6160_s24 }
  0xd3   : > { %v422_v48 = vpop.permute.xlu1 %421  ;;  %v420_v17 = vpop.permute.xlu0 %419 }
  0xd4   : > { %469 = vst.msk [vmem:[#allocation2 + $0x10] sm:$0xff] %vm467_vm3, %v422_v48  ;;  %468 = vst.msk [vmem:[#allocation2] sm:$0xff] %vm467_vm3, %v420_v17  ;;  %v6829_v17 = vld [vmem:[%s6282_s6 + $0xb6] sm:$0xff]  ;;  %v6832_v48 = vld [vmem:[%s6282_s6 + $0xae] sm:$0xff] }
  0xd5   : > { %732 = vrot.lane.b32.xlu1 %v6805_v28, %s6160_s24  ;;  %730 = vrot.lane.b32.xlu0 %v6808_v29, %s6160_s24 }
  0xd7   : > { %v426_v49 = vpop.permute.xlu1 %425  ;;  %v424_v13 = vpop.permute.xlu0 %423 }
  0xd8   : > { %471 = vst.msk [vmem:[#allocation2 + $0x30] sm:$0xff] %vm467_vm3, %v426_v49  ;;  %470 = vst.msk [vmem:[#allocation2 + $0x20] sm:$0xff] %vm467_vm3, %v424_v13 }
  0xd9   : > { %736 = vrot.lane.b32.xlu1 %v6817_v1, %s6160_s24  ;;  %734 = vrot.lane.b32.xlu0 %v6820_v3, %s6160_s24 }
  0xdb   : > { %v430_v29 = vpop.permute.xlu1 %429  ;;  %v428_v28 = vpop.permute.xlu0 %427 }
  0xdc   : > { %473 = vst.msk [vmem:[#allocation2 + $0x50] sm:$0xff] %vm467_vm3, %v430_v29  ;;  %472 = vst.msk [vmem:[#allocation2 + $0x40] sm:$0xff] %vm467_vm3, %v428_v28 }
  0xdd   : > { %740 = vrot.lane.b32.xlu1 %v6829_v17, %s6160_s24  ;;  %738 = vrot.lane.b32.xlu0 %v6832_v48, %s6160_s24 }
  0xdf   : > { %v434_v13 = vpop.permute.xlu1 %433  ;;  %v432_v49 = vpop.permute.xlu0 %431 }
  0xe0   : > { %475 = vst.msk [vmem:[#allocation2 + $0x70] sm:$0xff] %vm467_vm3, %v434_v13  ;;  %474 = vst.msk [vmem:[#allocation2 + $0x60] sm:$0xff] %vm467_vm3, %v432_v49 }
  0xe1   : > { %812 = vrot.lane.b32.xlu1 %v6352_v16, %s6161_s25  ;;  %810 = vrot.lane.b32.xlu0 %v6339_v12, %s6161_s25 }
  0xe3   : > { %v438_v28 = vpop.permute.xlu1 %437  ;;  %v436_v29 = vpop.permute.xlu0 %435 }
  0xe4   : > { %477 = vst.msk [vmem:[#allocation2 + $0x90] sm:$0xff] %vm467_vm3, %v438_v28  ;;  %476 = vst.msk [vmem:[#allocation2 + $0x80] sm:$0xff] %vm467_vm3, %v436_v29 }
  0xe5   : > { %816 = vrot.lane.b32.xlu1 %v6359_v18, %s6161_s25  ;;  %814 = vrot.lane.b32.xlu0 %v6362_v19, %s6161_s25 }
  0xe7   : > { %v442_v13 = vpop.permute.xlu1 %441  ;;  %v440_v49 = vpop.permute.xlu0 %439 }
  0xe8   : > { %479 = vst.msk [vmem:[#allocation2 + $0xb0] sm:$0xff] %vm467_vm3, %v442_v13  ;;  %478 = vst.msk [vmem:[#allocation2 + $0xa0] sm:$0xff] %vm467_vm3, %v440_v49 }
  0xe9   : > { %820 = vrot.lane.b32.xlu1 %v6373_v20, %s6161_s25  ;;  %818 = vrot.lane.b32.xlu0 %v6384_v23, %s6161_s25 }
  0xeb   : > { %v446_v12 = vpop.permute.xlu1 %445  ;;  %v444_v16 = vpop.permute.xlu0 %443 }
  0xec   : > { %481 = vst.msk [vmem:[#allocation2 + $0xd0] sm:$0xff] %vm467_vm3, %v446_v12  ;;  %480 = vst.msk [vmem:[#allocation2 + $0xc0] sm:$0xff] %vm467_vm3, %v444_v16 }
  0xed   : > { %824 = vrot.lane.b32.xlu1 %v6389_v24, %s6161_s25  ;;  %822 = vrot.lane.b32.xlu0 %v6392_v25, %s6161_s25 }
  0xef   : > { %v450_v18 = vpop.permute.xlu1 %449  ;;  %v448_v19 = vpop.permute.xlu0 %447 }
  0xf0   : > { %483 = vst.msk [vmem:[#allocation2 + $0xf0] sm:$0xff] %vm467_vm3, %v450_v18  ;;  %482 = vst.msk [vmem:[#allocation2 + $0xe0] sm:$0xff] %vm467_vm3, %v448_v19 }
  0xf1   : > { %828 = vrot.lane.b32.xlu1 %v6399_v26, %s6161_s25  ;;  %826 = vrot.lane.b32.xlu0 %v6402_v27, %s6161_s25  ;;  %v6883_v26 = vld [vmem:[%s6282_s6 + $0xc8] sm:$0xff]  ;;  %v6886_v27 = vld [vmem:[%s6282_s6 + $0xc0] sm:$0xff] }
  0xf3   : > { %v519_v20 = vpop.permute.xlu1 %518  ;;  %v517_v23 = vpop.permute.xlu0 %516 }
  0xf4   : > { %566 = vst.msk [vmem:[#allocation2 + $0x10] sm:$0xff] %vm564_vm4, %v519_v20  ;;  %565 = vst.msk [vmem:[#allocation2] sm:$0xff] %vm564_vm4, %v517_v23 }
  0xf5   : > { %832 = vrot.lane.b32.xlu1 %v6415_v30, %s6161_s25  ;;  %830 = vrot.lane.b32.xlu0 %v6418_v31, %s6161_s25 }
  0xf7   : > { %v523_v24 = vpop.permute.xlu1 %522  ;;  %v521_v25 = vpop.permute.xlu0 %520 }
  0xf8   : > { %568 = vst.msk [vmem:[#allocation2 + $0x30] sm:$0xff] %vm564_vm4, %v523_v24  ;;  %567 = vst.msk [vmem:[#allocation2 + $0x20] sm:$0xff] %vm564_vm4, %v521_v25 }
  0xf9   : > { %836 = vrot.lane.b32.xlu1 %v6425_v32, %s6161_s25  ;;  %834 = vrot.lane.b32.xlu0 %v6428_v33, %s6161_s25 }
  0xfb   : > { %v527_v30 = vpop.permute.xlu1 %526  ;;  %v525_v28 = vpop.permute.xlu0 %524 }
  0xfc   : > { %570 = vst.msk [vmem:[#allocation2 + $0x50] sm:$0xff] %vm564_vm4, %v527_v30  ;;  %569 = vst.msk [vmem:[#allocation2 + $0x40] sm:$0xff] %vm564_vm4, %v525_v28  ;;  %v9773_v28 = vld [vmem:[#allocation7_spill] sm:$0xff] }
  0xfd   : > { %840 = vrot.lane.b32.xlu1 %v6883_v26, %s6161_s25  ;;  %838 = vrot.lane.b32.xlu0 %v6886_v27, %s6161_s25 }
  0xff   : > { %v531_v31 = vpop.permute.xlu1 %530  ;;  %v529_v32 = vpop.permute.xlu0 %528 }
 0x100   : > { %572 = vst.msk [vmem:[#allocation2 + $0x70] sm:$0xff] %vm564_vm4, %v531_v31  ;;  %571 = vst.msk [vmem:[#allocation2 + $0x60] sm:$0xff] %vm564_vm4, %v529_v32 }
 0x101   : > { %909 = vrot.lane.b32.xlu1 %v6292_v2, %s6162_s26  ;;  %907 = vrot.lane.b32.xlu0 %v6285_v0, %s6162_s26 }
 0x103   : > { %v535_v33 = vpop.permute.xlu1 %534  ;;  %v533_v29 = vpop.permute.xlu0 %532 }
 0x104   : > { %574 = vst.msk [vmem:[#allocation2 + $0x90] sm:$0xff] %vm564_vm4, %v535_v33  ;;  %573 = vst.msk [vmem:[#allocation2 + $0x80] sm:$0xff] %vm564_vm4, %v533_v29  ;;  %v9774_v33 = vld [vmem:[#allocation8_spill] sm:$0xff]  ;;  %v9775_v29 = vld [vmem:[#allocation9_spill] sm:$0xff] }
 0x105   : > { %913 = vrot.lane.b32.xlu1 %v6299_v4, %s6162_s26  ;;  %911 = vrot.lane.b32.xlu0 %v6302_v5, %s6162_s26 }
 0x107   : > { %v539_v13 = vpop.permute.xlu1 %538  ;;  %v537_v49 = vpop.permute.xlu0 %536 }
 0x108   : > { %576 = vst.msk [vmem:[#allocation2 + $0xb0] sm:$0xff] %vm564_vm4, %v539_v13  ;;  %575 = vst.msk [vmem:[#allocation2 + $0xa0] sm:$0xff] %vm564_vm4, %v537_v49 }
 0x109   : > { %917 = vrot.lane.b32.xlu1 %v6309_v6, %s6162_s26  ;;  %915 = vrot.lane.b32.xlu0 %v6312_v7, %s6162_s26 }
 0x10b   : > { %v543_v0 = vpop.permute.xlu1 %542  ;;  %v541_v2 = vpop.permute.xlu0 %540 }
 0x10c   : > { %578 = vst.msk [vmem:[#allocation2 + $0xd0] sm:$0xff] %vm564_vm4, %v543_v0  ;;  %577 = vst.msk [vmem:[#allocation2 + $0xc0] sm:$0xff] %vm564_vm4, %v541_v2  ;;  %v9776_v0 = vld [vmem:[#allocation10_spill] sm:$0xff]  ;;  %v9777_v2 = vld [vmem:[#allocation11_spill] sm:$0xff] }
 0x10d   : > { %921 = vrot.lane.b32.xlu1 %v6319_v8, %s6162_s26  ;;  %919 = vrot.lane.b32.xlu0 %v6322_v9, %s6162_s26 }
 0x10f   : > { %v547_v4 = vpop.permute.xlu1 %546  ;;  %v545_v5 = vpop.permute.xlu0 %544 }
 0x110   : > { %580 = vst.msk [vmem:[#allocation2 + $0xf0] sm:$0xff] %vm564_vm4, %v547_v4  ;;  %579 = vst.msk [vmem:[#allocation2 + $0xe0] sm:$0xff] %vm564_vm4, %v545_v5 }
 0x111   : > { %925 = vrot.lane.b32.xlu1 %v6329_v10, %s6162_s26  ;;  %923 = vrot.lane.b32.xlu0 %v6332_v11, %s6162_s26  ;;  %v6937_v10 = vld [vmem:[%s6282_s6 + $0xc9] sm:$0xff]  ;;  %v6940_v11 = vld [vmem:[%s6282_s6 + $0xc1] sm:$0xff] }
 0x113   : > { %v616_v6 = vpop.permute.xlu1 %615  ;;  %v614_v7 = vpop.permute.xlu0 %613 }
 0x114   : > { %663 = vst.msk [vmem:[#allocation2 + $0x10] sm:$0xff] %vm661_vm5, %v616_v6  ;;  %662 = vst.msk [vmem:[#allocation2] sm:$0xff] %vm661_vm5, %v614_v7  ;;  %v9778_v6 = vld [vmem:[#allocation12_spill] sm:$0xff]  ;;  %v9779_v7 = vld [vmem:[#allocation13_spill] sm:$0xff] }
 0x115   : > { %929 = vrot.lane.b32.xlu1 %v6343_v14, %s6162_s26  ;;  %927 = vrot.lane.b32.xlu0 %v6346_v15, %s6162_s26 }
 0x117   : > { %v620_v8 = vpop.permute.xlu1 %619  ;;  %v618_v9 = vpop.permute.xlu0 %617 }
 0x118   : > { %665 = vst.msk [vmem:[#allocation2 + $0x30] sm:$0xff] %vm661_vm5, %v620_v8  ;;  %664 = vst.msk [vmem:[#allocation2 + $0x20] sm:$0xff] %vm661_vm5, %v618_v9 }
 0x119   : > { %933 = vrot.lane.b32.xlu1 %v6376_v21, %s6162_s26  ;;  %931 = vrot.lane.b32.xlu0 %v6379_v22, %s6162_s26 }
 0x11b   : > { %v624_v14 = vpop.permute.xlu1 %623  ;;  %v622_v12 = vpop.permute.xlu0 %621 }
 0x11c   : > { %667 = vst.msk [vmem:[#allocation2 + $0x50] sm:$0xff] %vm661_vm5, %v624_v14  ;;  %666 = vst.msk [vmem:[#allocation2 + $0x40] sm:$0xff] %vm661_vm5, %v622_v12  ;;  %v9780_v14 = vld [vmem:[#allocation14_spill] sm:$0xff]  ;;  %v9781_v12 = vld [vmem:[#allocation15_spill] sm:$0xff] }
 0x11d   : > { %937 = vrot.lane.b32.xlu1 %v6937_v10, %s6162_s26  ;;  %935 = vrot.lane.b32.xlu0 %v6940_v11, %s6162_s26 }
 0x11f   : > { %v628_v15 = vpop.permute.xlu1 %627  ;;  %v626_v21 = vpop.permute.xlu0 %625 }
 0x120   : > { %669 = vst.msk [vmem:[#allocation2 + $0x70] sm:$0xff] %vm661_vm5, %v628_v15  ;;  %668 = vst.msk [vmem:[#allocation2 + $0x60] sm:$0xff] %vm661_vm5, %v626_v21 }
 0x121   : > { %1006 = vrot.lane.b32.xlu1 %v6437_v34, %s6163_s28  ;;  %1004 = vrot.lane.b32.xlu0 %v6440_v35, %s6163_s28 }
 0x123   : > { %v632_v22 = vpop.permute.xlu1 %631  ;;  %v630_v16 = vpop.permute.xlu0 %629 }
 0x124   : > { %671 = vst.msk [vmem:[#allocation2 + $0x90] sm:$0xff] %vm661_vm5, %v632_v22  ;;  %670 = vst.msk [vmem:[#allocation2 + $0x80] sm:$0xff] %vm661_vm5, %v630_v16  ;;  %v9782_v22 = vld [vmem:[#allocation16_spill] sm:$0xff]  ;;  %v9783_v16 = vld [vmem:[#allocation17_spill] sm:$0xff] }
 0x125   : > { %1010 = vrot.lane.b32.xlu1 %v6447_v36, %s6163_s28  ;;  %1008 = vrot.lane.b32.xlu0 %v6450_v37, %s6163_s28 }
 0x127   : > { %v636_v18 = vpop.permute.xlu1 %635  ;;  %v634_v19 = vpop.permute.xlu0 %633 }
 0x128   : > { %673 = vst.msk [vmem:[#allocation2 + $0xb0] sm:$0xff] %vm661_vm5, %v636_v18  ;;  %672 = vst.msk [vmem:[#allocation2 + $0xa0] sm:$0xff] %vm661_vm5, %v634_v19 }
 0x129   : > { %1014 = vrot.lane.b32.xlu1 %v6457_v38, %s6163_s28  ;;  %1012 = vrot.lane.b32.xlu0 %v6460_v39, %s6163_s28 }
 0x12b   : > { %v640_v34 = vpop.permute.xlu1 %639  ;;  %v638_v35 = vpop.permute.xlu0 %637 }
 0x12c   : > { %675 = vst.msk [vmem:[#allocation2 + $0xd0] sm:$0xff] %vm661_vm5, %v640_v34  ;;  %674 = vst.msk [vmem:[#allocation2 + $0xc0] sm:$0xff] %vm661_vm5, %v638_v35  ;;  %v9784_v34 = vld [vmem:[#allocation18_spill] sm:$0xff]  ;;  %v9785_v35 = vld [vmem:[#allocation19_spill] sm:$0xff] }
 0x12d   : > { %1018 = vrot.lane.b32.xlu1 %v6467_v40, %s6163_s28  ;;  %1016 = vrot.lane.b32.xlu0 %v6470_v41, %s6163_s28 }
 0x12f   : > { %v644_v36 = vpop.permute.xlu1 %643  ;;  %v642_v37 = vpop.permute.xlu0 %641 }
 0x130   : > { %677 = vst.msk [vmem:[#allocation2 + $0xf0] sm:$0xff] %vm661_vm5, %v644_v36  ;;  %676 = vst.msk [vmem:[#allocation2 + $0xe0] sm:$0xff] %vm661_vm5, %v642_v37  ;;  %v7099_v36 = vld [vmem:[%s6282_s6 + $0xcc] sm:$0xff]  ;;  %v7102_v37 = vld [vmem:[%s6282_s6 + $0xc4] sm:$0xff] }
 0x131   : > { %1022 = vrot.lane.b32.xlu1 %v6477_v42, %s6163_s28  ;;  %1020 = vrot.lane.b32.xlu0 %v6480_v43, %s6163_s28  ;;  %v6991_v42 = vld [vmem:[%s6282_s6 + $0xca] sm:$0xff]  ;;  %v6994_v43 = vld [vmem:[%s6282_s6 + $0xc2] sm:$0xff] }
 0x133   : > { %v713_v38 = vpop.permute.xlu1 %712  ;;  %v711_v39 = vpop.permute.xlu0 %710 }
 0x134   : > { %760 = vst.msk [vmem:[#allocation2 + $0x10] sm:$0xff] %vm758_vm6, %v713_v38  ;;  %759 = vst.msk [vmem:[#allocation2] sm:$0xff] %vm758_vm6, %v711_v39 }
 0x135   : > { %1026 = vrot.lane.b32.xlu1 %v6487_v44, %s6163_s28  ;;  %1024 = vrot.lane.b32.xlu0 %v6490_v45, %s6163_s28 }
 0x137   : > { %v717_v40 = vpop.permute.xlu1 %716  ;;  %v715_v41 = vpop.permute.xlu0 %714 }
 0x138   : > { %762 = vst.msk [vmem:[#allocation2 + $0x30] sm:$0xff] %vm758_vm6, %v717_v40  ;;  %761 = vst.msk [vmem:[#allocation2 + $0x20] sm:$0xff] %vm758_vm6, %v715_v41 }
 0x139   : > { %1030 = vrot.lane.b32.xlu1 %v6497_v46, %s6163_s28  ;;  %1028 = vrot.lane.b32.xlu0 %v6500_v47, %s6163_s28 }
 0x13b   : > { %v721_v44 = vpop.permute.xlu1 %720  ;;  %v719_v20 = vpop.permute.xlu0 %718 }
 0x13c   : > { %764 = vst.msk [vmem:[#allocation2 + $0x50] sm:$0xff] %vm758_vm6, %v721_v44  ;;  %763 = vst.msk [vmem:[#allocation2 + $0x40] sm:$0xff] %vm758_vm6, %v719_v20  ;;  %v9786_v44 = vld [vmem:[#allocation20_spill] sm:$0xff]  ;;  %v9787_v20 = vld [vmem:[#allocation21_spill] sm:$0xff] }
 0x13d   : > { %1034 = vrot.lane.b32.xlu1 %v6991_v42, %s6163_s28  ;;  %1032 = vrot.lane.b32.xlu0 %v6994_v43, %s6163_s28 }
 0x13f   : > { %v725_v45 = vpop.permute.xlu1 %724  ;;  %v723_v46 = vpop.permute.xlu0 %722 }
 0x140   : > { %766 = vst.msk [vmem:[#allocation2 + $0x70] sm:$0xff] %vm758_vm6, %v725_v45  ;;  %765 = vst.msk [vmem:[#allocation2 + $0x60] sm:$0xff] %vm758_vm6, %v723_v46 }
 0x141   : > { %1103 = vrot.lane.b32.xlu1 %v6511_v50, %s6164_s29  ;;  %1101 = vrot.lane.b32.xlu0 %v6514_v51, %s6164_s29 }
 0x143   : > { %v729_v47 = vpop.permute.xlu1 %728  ;;  %v727_v23 = vpop.permute.xlu0 %726 }
 0x144   : > { %768 = vst.msk [vmem:[#allocation2 + $0x90] sm:$0xff] %vm758_vm6, %v729_v47  ;;  %767 = vst.msk [vmem:[#allocation2 + $0x80] sm:$0xff] %vm758_vm6, %v727_v23  ;;  %v9788_v47 = vld [vmem:[#allocation22_spill] sm:$0xff]  ;;  %v9789_v23 = vld [vmem:[#allocation23_spill] sm:$0xff] }
 0x145   : > { %1107 = vrot.lane.b32.xlu1 %v6521_v52, %s6164_s29  ;;  %1105 = vrot.lane.b32.xlu0 %v6524_v53, %s6164_s29 }
 0x147   : > { %v733_v24 = vpop.permute.xlu1 %732  ;;  %v731_v25 = vpop.permute.xlu0 %730 }
 0x148   : > { %770 = vst.msk [vmem:[#allocation2 + $0xb0] sm:$0xff] %vm758_vm6, %v733_v24  ;;  %769 = vst.msk [vmem:[#allocation2 + $0xa0] sm:$0xff] %vm758_vm6, %v731_v25 }
 0x149   : > { %1111 = vrot.lane.b32.xlu1 %v6531_v54, %s6164_s29  ;;  %1109 = vrot.lane.b32.xlu0 %v6534_v55, %s6164_s29 }
 0x14b   : > { %v737_v50 = vpop.permute.xlu1 %736  ;;  %v735_v51 = vpop.permute.xlu0 %734 }
 0x14c   : > { %772 = vst.msk [vmem:[#allocation2 + $0xd0] sm:$0xff] %vm758_vm6, %v737_v50  ;;  %771 = vst.msk [vmem:[#allocation2 + $0xc0] sm:$0xff] %vm758_vm6, %v735_v51  ;;  %v9790_v50 = vld [vmem:[#allocation24_spill] sm:$0xff]  ;;  %v9791_v51 = vld [vmem:[#allocation25_spill] sm:$0xff] }
 0x14d   : > { %1115 = vrot.lane.b32.xlu1 %v6541_v56, %s6164_s29  ;;  %1113 = vrot.lane.b32.xlu0 %v6544_v57, %s6164_s29 }
 0x14f   : > { %v741_v52 = vpop.permute.xlu1 %740  ;;  %v739_v53 = vpop.permute.xlu0 %738 }
 0x150   : > { %774 = vst.msk [vmem:[#allocation2 + $0xf0] sm:$0xff] %vm758_vm6, %v741_v52  ;;  %773 = vst.msk [vmem:[#allocation2 + $0xe0] sm:$0xff] %vm758_vm6, %v739_v53 }
 0x151   : > { %1119 = vrot.lane.b32.xlu1 %v6551_v58, %s6164_s29  ;;  %1117 = vrot.lane.b32.xlu0 %v6554_v59, %s6164_s29  ;;  %v7045_v58 = vld [vmem:[%s6282_s6 + $0xcb] sm:$0xff]  ;;  %v7048_v59 = vld [vmem:[%s6282_s6 + $0xc3] sm:$0xff] }
 0x153   : > { %v813_v54 = vpop.permute.xlu1 %812  ;;  %v811_v55 = vpop.permute.xlu0 %810 }
 0x154   : > { %860 = vst.msk [vmem:[#allocation2 + $0x10] sm:$0xff] %vm858_vm7, %v813_v54  ;;  %859 = vst.msk [vmem:[#allocation2] sm:$0xff] %vm858_vm7, %v811_v55  ;;  %v9792_v54 = vld [vmem:[#allocation26_spill] sm:$0xff]  ;;  %v9793_v55 = vld [vmem:[#allocation27_spill] sm:$0xff] }
 0x155   : > { %1123 = vrot.lane.b32.xlu1 %v6561_v60, %s6164_s29  ;;  %1121 = vrot.lane.b32.xlu0 %v6564_v61, %s6164_s29 }
 0x157   : > { %v817_v56 = vpop.permute.xlu1 %816  ;;  %v815_v57 = vpop.permute.xlu0 %814 }
 0x158   : > { %862 = vst.msk [vmem:[#allocation2 + $0x30] sm:$0xff] %vm858_vm7, %v817_v56  ;;  %861 = vst.msk [vmem:[#allocation2 + $0x20] sm:$0xff] %vm858_vm7, %v815_v57 }
 0x159   : > { %1127 = vrot.lane.b32.xlu1 %v6571_v62, %s6164_s29  ;;  %1125 = vrot.lane.b32.xlu0 %v6574_v63, %s6164_s29  ;;  %v9772_v63 = vld [vmem:[#allocation6_spill] sm:$0xff] }
 0x15b   : > { %v821_v60 = vpop.permute.xlu1 %820  ;;  %v819_v30 = vpop.permute.xlu0 %818 }
 0x15c   : > { %864 = vst.msk [vmem:[#allocation2 + $0x50] sm:$0xff] %vm858_vm7, %v821_v60  ;;  %863 = vst.msk [vmem:[#allocation2 + $0x40] sm:$0xff] %vm858_vm7, %v819_v30  ;;  %v9794_v60 = vld [vmem:[#allocation28_spill] sm:$0xff]  ;;  %v9795_v30 = vld [vmem:[#allocation29_spill] sm:$0xff] }
 0x15d   : > { %1131 = vrot.lane.b32.xlu1 %v7045_v58, %s6164_s29  ;;  %1129 = vrot.lane.b32.xlu0 %v7048_v59, %s6164_s29 }
 0x15f   : > { %v825_v61 = vpop.permute.xlu1 %824  ;;  %v823_v62 = vpop.permute.xlu0 %822 }
 0x160   : > { %866 = vst.msk [vmem:[#allocation2 + $0x70] sm:$0xff] %vm858_vm7, %v825_v61  ;;  %865 = vst.msk [vmem:[#allocation2 + $0x60] sm:$0xff] %vm858_vm7, %v823_v62 }
 0x161   : > { %1200 = vrot.lane.b32.xlu1 %v9772_v63, %s6165_s30  ;;  %1198 = vrot.lane.b32.xlu0 %v9773_v28, %s6165_s30  ;;  %v9796_v63 = vld [vmem:[#allocation30_spill] sm:$0xff]  ;;  %v9797_v28 = vld [vmem:[#allocation31_spill] sm:$0xff] }
 0x163   : > { %v829_v31 = vpop.permute.xlu1 %828  ;;  %v827_v32 = vpop.permute.xlu0 %826 }
 0x164   : > { %868 = vst.msk [vmem:[#allocation2 + $0x90] sm:$0xff] %vm858_vm7, %v829_v31  ;;  %867 = vst.msk [vmem:[#allocation2 + $0x80] sm:$0xff] %vm858_vm7, %v827_v32 }
 0x165   : > { %1204 = vrot.lane.b32.xlu1 %v9774_v33, %s6165_s30  ;;  %1202 = vrot.lane.b32.xlu0 %v9775_v29, %s6165_s30  ;;  %v9798_v33 = vld [vmem:[#allocation32_spill] sm:$0xff]  ;;  %v9799_v29 = vld [vmem:[#allocation33_spill] sm:$0xff] }
 0x167   : > { %v833_v13 = vpop.permute.xlu1 %832  ;;  %v831_v49 = vpop.permute.xlu0 %830 }
 0x168   : > { %870 = vst.msk [vmem:[#allocation2 + $0xb0] sm:$0xff] %vm858_vm7, %v833_v13  ;;  %869 = vst.msk [vmem:[#allocation2 + $0xa0] sm:$0xff] %vm858_vm7, %v831_v49  ;;  %v7153_v13 = vld [vmem:[%s6282_s6 + $0xcd] sm:$0xff]  ;;  %v7156_v49 = vld [vmem:[%s6282_s6 + $0xc5] sm:$0xff] }
 0x169   : > { %1208 = vrot.lane.b32.xlu1 %v9776_v0, %s6165_s30  ;;  %1206 = vrot.lane.b32.xlu0 %v9777_v2, %s6165_s30 }
 0x16b   : > { %v837_v4 = vpop.permute.xlu1 %836  ;;  %v835_v5 = vpop.permute.xlu0 %834 }
 0x16c   : > { %872 = vst.msk [vmem:[#allocation2 + $0xd0] sm:$0xff] %vm858_vm7, %v837_v4  ;;  %871 = vst.msk [vmem:[#allocation2 + $0xc0] sm:$0xff] %vm858_vm7, %v835_v5 }
 0x16d   : > { %1212 = vrot.lane.b32.xlu1 %v9778_v6, %s6165_s30  ;;  %1210 = vrot.lane.b32.xlu0 %v9779_v7, %s6165_s30  ;;  %v9800_v6 = vld [vmem:[#allocation34_spill] sm:$0xff]  ;;  %v9801_v7 = vld [vmem:[#allocation35_spill] sm:$0xff] }
 0x16f   : > { %v841_v8 = vpop.permute.xlu1 %840  ;;  %v839_v9 = vpop.permute.xlu0 %838 }
 0x170   : > { %874 = vst.msk [vmem:[#allocation2 + $0xf0] sm:$0xff] %vm858_vm7, %v841_v8  ;;  %873 = vst.msk [vmem:[#allocation2 + $0xe0] sm:$0xff] %vm858_vm7, %v839_v9 }
 0x171   : > { %1216 = vrot.lane.b32.xlu1 %v9780_v14, %s6165_s30  ;;  %1214 = vrot.lane.b32.xlu0 %v9781_v12, %s6165_s30  ;;  %v9802_v14 = vld [vmem:[#allocation36_spill] sm:$0xff]  ;;  %v9803_v12 = vld [vmem:[#allocation37_spill] sm:$0xff] }
 0x173   : > { %v910_v15 = vpop.permute.xlu1 %909  ;;  %v908_v21 = vpop.permute.xlu0 %907 }
 0x174   : > { %957 = vst.msk [vmem:[#allocation2 + $0x10] sm:$0xff] %vm955_vm8, %v910_v15  ;;  %956 = vst.msk [vmem:[#allocation2] sm:$0xff] %vm955_vm8, %v908_v21 }
 0x175   : > { %1220 = vrot.lane.b32.xlu1 %v9782_v22, %s6165_s30  ;;  %1218 = vrot.lane.b32.xlu0 %v9783_v16, %s6165_s30  ;;  %v9804_v22 = vld [vmem:[#allocation38_spill] sm:$0xff]  ;;  %v9805_v16 = vld [vmem:[#allocation39_spill] sm:$0xff] }
 0x177   : > { %v914_v18 = vpop.permute.xlu1 %913  ;;  %v912_v19 = vpop.permute.xlu0 %911 }
 0x178   : > { %959 = vst.msk [vmem:[#allocation2 + $0x30] sm:$0xff] %vm955_vm8, %v914_v18  ;;  %958 = vst.msk [vmem:[#allocation2 + $0x20] sm:$0xff] %vm955_vm8, %v912_v19 }
 0x179   : > { %1224 = vrot.lane.b32.xlu1 %v9784_v34, %s6165_s30  ;;  %1222 = vrot.lane.b32.xlu0 %v9785_v35, %s6165_s30  ;;  %v9806_v34 = vld [vmem:[#allocation40_spill] sm:$0xff]  ;;  %v9807_v35 = vld [vmem:[#allocation41_spill] sm:$0xff] }
 0x17b   : > { %v918_v38 = vpop.permute.xlu1 %917  ;;  %v916_v39 = vpop.permute.xlu0 %915 }
 0x17c   : > { %961 = vst.msk [vmem:[#allocation2 + $0x50] sm:$0xff] %vm955_vm8, %v918_v38  ;;  %960 = vst.msk [vmem:[#allocation2 + $0x40] sm:$0xff] %vm955_vm8, %v916_v39 }
 0x17d   : > { %1228 = vrot.lane.b32.xlu1 %v7099_v36, %s6165_s30  ;;  %1226 = vrot.lane.b32.xlu0 %v7102_v37, %s6165_s30 }
 0x17f   : > { %v922_v40 = vpop.permute.xlu1 %921  ;;  %v920_v41 = vpop.permute.xlu0 %919 }
 0x180   : > { %963 = vst.msk [vmem:[#allocation2 + $0x70] sm:$0xff] %vm955_vm8, %v922_v40  ;;  %962 = vst.msk [vmem:[#allocation2 + $0x60] sm:$0xff] %vm955_vm8, %v920_v41  ;;  %v9808_v40 = vld [vmem:[#allocation42_spill] sm:$0xff]  ;;  %v9809_v41 = vld [vmem:[#allocation43_spill] sm:$0xff] }
 0x181   : > { %1297 = vrot.lane.b32.xlu1 %v9786_v44, %s6166_s3  ;;  %1295 = vrot.lane.b32.xlu0 %v9787_v20, %s6166_s3 }
 0x183   : > { %v926_v45 = vpop.permute.xlu1 %925  ;;  %v924_v46 = vpop.permute.xlu0 %923 }
 0x184   : > { %965 = vst.msk [vmem:[#allocation2 + $0x90] sm:$0xff] %vm955_vm8, %v926_v45  ;;  %964 = vst.msk [vmem:[#allocation2 + $0x80] sm:$0xff] %vm955_vm8, %v924_v46 }
 0x185   : > { %1301 = vrot.lane.b32.xlu1 %v9788_v47, %s6166_s3  ;;  %1299 = vrot.lane.b32.xlu0 %v9789_v23, %s6166_s3  ;;  %v7207_v47 = vld [vmem:[%s6282_s6 + $0xce] sm:$0xff] }
 0x187   : > { %v930_v24 = vpop.permute.xlu1 %929  ;;  %v928_v25 = vpop.permute.xlu0 %927 }
 0x188   : > { %967 = vst.msk [vmem:[#allocation2 + $0xb0] sm:$0xff] %vm955_vm8, %v930_v24  ;;  %966 = vst.msk [vmem:[#allocation2 + $0xa0] sm:$0xff] %vm955_vm8, %v928_v25 }
 0x189   : > { %1305 = vrot.lane.b32.xlu1 %v9790_v50, %s6166_s3  ;;  %1303 = vrot.lane.b32.xlu0 %v9791_v51, %s6166_s3  ;;  %v7225_v50 = vld [vmem:[%s6282_s6 + $0x50] sm:$0xff]  ;;  %v7228_v51 = vld [vmem:[%s6282_s6 + $0x48] sm:$0xff] }
 0x18b   : > { %v934_v52 = vpop.permute.xlu1 %933  ;;  %v932_v53 = vpop.permute.xlu0 %931 }
 0x18c   : > { %969 = vst.msk [vmem:[#allocation2 + $0xd0] sm:$0xff] %vm955_vm8, %v934_v52  ;;  %968 = vst.msk [vmem:[#allocation2 + $0xc0] sm:$0xff] %vm955_vm8, %v932_v53 }
 0x18d   : > { %1309 = vrot.lane.b32.xlu1 %v9792_v54, %s6166_s3  ;;  %1307 = vrot.lane.b32.xlu0 %v9793_v55, %s6166_s3  ;;  %v7237_v54 = vld [vmem:[%s6282_s6 + $0x68] sm:$0xff]  ;;  %v7240_v55 = vld [vmem:[%s6282_s6 + $0x60] sm:$0xff] }
 0x18f   : > { %v938_v56 = vpop.permute.xlu1 %937  ;;  %v936_v57 = vpop.permute.xlu0 %935 }
 0x190   : > { %971 = vst.msk [vmem:[#allocation2 + $0xf0] sm:$0xff] %vm955_vm8, %v938_v56  ;;  %970 = vst.msk [vmem:[#allocation2 + $0xe0] sm:$0xff] %vm955_vm8, %v936_v57 }
 0x191   : > { %1313 = vrot.lane.b32.xlu1 %v9794_v60, %s6166_s3  ;;  %1311 = vrot.lane.b32.xlu0 %v9795_v30, %s6166_s3  ;;  %v7249_v60 = vld [vmem:[%s6282_s6 + $0x80] sm:$0xff]  ;;  %v7252_v30 = vld [vmem:[%s6282_s6 + $0x78] sm:$0xff] }
 0x193   : > { %v1007_v61 = vpop.permute.xlu1 %1006  ;;  %v1005_v62 = vpop.permute.xlu0 %1004 }
 0x194   : > { %1054 = vst.msk [vmem:[#allocation2 + $0x10] sm:$0xff] %vm1052_vm9, %v1007_v61  ;;  %1053 = vst.msk [vmem:[#allocation2] sm:$0xff] %vm1052_vm9, %v1005_v62 }
 0x195   : > { %1317 = vrot.lane.b32.xlu1 %v9796_v63, %s6166_s3  ;;  %1315 = vrot.lane.b32.xlu0 %v9797_v28, %s6166_s3  ;;  %v7261_v63 = vld [vmem:[%s6282_s6 + $0x98] sm:$0xff]  ;;  %v7264_v28 = vld [vmem:[%s6282_s6 + $0x90] sm:$0xff] }
 0x197   : > { %v1011_v31 = vpop.permute.xlu1 %1010  ;;  %v1009_v32 = vpop.permute.xlu0 %1008 }
 0x198   : > { %1056 = vst.msk [vmem:[#allocation2 + $0x30] sm:$0xff] %vm1052_vm9, %v1011_v31  ;;  %1055 = vst.msk [vmem:[#allocation2 + $0x20] sm:$0xff] %vm1052_vm9, %v1009_v32 }
 0x199   : > { %1321 = vrot.lane.b32.xlu1 %v9798_v33, %s6166_s3  ;;  %1319 = vrot.lane.b32.xlu0 %v9799_v29, %s6166_s3  ;;  %v7273_v33 = vld [vmem:[%s6282_s6 + $0xb0] sm:$0xff]  ;;  %v7276_v29 = vld [vmem:[%s6282_s6 + $0xa8] sm:$0xff] }
 0x19b   : > { %v1015_v0 = vpop.permute.xlu1 %1014  ;;  %v1013_v2 = vpop.permute.xlu0 %1012 }
 0x19c   : > { %1058 = vst.msk [vmem:[#allocation2 + $0x50] sm:$0xff] %vm1052_vm9, %v1015_v0  ;;  %1057 = vst.msk [vmem:[#allocation2 + $0x40] sm:$0xff] %vm1052_vm9, %v1013_v2 }
 0x19d   : > { %1325 = vrot.lane.b32.xlu1 %v7153_v13, %s6166_s3  ;;  %1323 = vrot.lane.b32.xlu0 %v7156_v49, %s6166_s3 }
 0x19f   : > { %v1019_v4 = vpop.permute.xlu1 %1018  ;;  %v1017_v5 = vpop.permute.xlu0 %1016 }
 0x1a0   : > { %1060 = vst.msk [vmem:[#allocation2 + $0x70] sm:$0xff] %vm1052_vm9, %v1019_v4  ;;  %1059 = vst.msk [vmem:[#allocation2 + $0x60] sm:$0xff] %vm1052_vm9, %v1017_v5 }
 0x1a1   : > { %1394 = vrot.lane.b32.xlu1 %v9800_v6, %s9685_s4  ;;  %1392 = vrot.lane.b32.xlu0 %v9801_v7, %s9685_s4  ;;  %v7291_v6 = vld [vmem:[%s6282_s6 + $0xe0] sm:$0xff]  ;;  %v7294_v7 = vld [vmem:[%s6282_s6 + $0xd8] sm:$0xff] }
 0x1a3   : > { %v1023_v8 = vpop.permute.xlu1 %1022  ;;  %v1021_v9 = vpop.permute.xlu0 %1020 }
 0x1a4   : > { %1062 = vst.msk [vmem:[#allocation2 + $0x90] sm:$0xff] %vm1052_vm9, %v1023_v8  ;;  %1061 = vst.msk [vmem:[#allocation2 + $0x80] sm:$0xff] %vm1052_vm9, %v1021_v9 }
 0x1a5   : > { %1398 = vrot.lane.b32.xlu1 %v9802_v14, %s9685_s4  ;;  %1396 = vrot.lane.b32.xlu0 %v9803_v12, %s9685_s4 }
 0x1a7   : > { %v1027_v15 = vpop.permute.xlu1 %1026  ;;  %v1025_v21 = vpop.permute.xlu0 %1024 }
 0x1a8   : > { %1064 = vst.msk [vmem:[#allocation2 + $0xb0] sm:$0xff] %vm1052_vm9, %v1027_v15  ;;  %1063 = vst.msk [vmem:[#allocation2 + $0xa0] sm:$0xff] %vm1052_vm9, %v1025_v21  ;;  %v7309_v15 = vld [vmem:[%s6282_s6 + $0x51] sm:$0xff]  ;;  %v7312_v21 = vld [vmem:[%s6282_s6 + $0x49] sm:$0xff] }
 0x1a9   : > { %1402 = vrot.lane.b32.xlu1 %v9804_v22, %s9685_s4  ;;  %1400 = vrot.lane.b32.xlu0 %v9805_v16, %s9685_s4 }
 0x1ab   : > { %v1031_v18 = vpop.permute.xlu1 %1030  ;;  %v1029_v19 = vpop.permute.xlu0 %1028 }
 0x1ac   : > { %1066 = vst.msk [vmem:[#allocation2 + $0xd0] sm:$0xff] %vm1052_vm9, %v1031_v18  ;;  %1065 = vst.msk [vmem:[#allocation2 + $0xc0] sm:$0xff] %vm1052_vm9, %v1029_v19  ;;  %v7321_v18 = vld [vmem:[%s6282_s6 + $0x69] sm:$0xff]  ;;  %v7324_v19 = vld [vmem:[%s6282_s6 + $0x61] sm:$0xff] }
 0x1ad   : > { %1406 = vrot.lane.b32.xlu1 %v9806_v34, %s9685_s4  ;;  %1404 = vrot.lane.b32.xlu0 %v9807_v35, %s9685_s4 }
 0x1af   : > { %v1035_v38 = vpop.permute.xlu1 %1034  ;;  %v1033_v39 = vpop.permute.xlu0 %1032 }
 0x1b0   : > { %1068 = vst.msk [vmem:[#allocation2 + $0xf0] sm:$0xff] %vm1052_vm9, %v1035_v38  ;;  %1067 = vst.msk [vmem:[#allocation2 + $0xe0] sm:$0xff] %vm1052_vm9, %v1033_v39  ;;  %v7333_v38 = vld [vmem:[%s6282_s6 + $0x81] sm:$0xff]  ;;  %v7336_v39 = vld [vmem:[%s6282_s6 + $0x79] sm:$0xff] }
 0x1b1   : > { %1410 = vrot.lane.b32.xlu1 %v9808_v40, %s9685_s4  ;;  %1408 = vrot.lane.b32.xlu0 %v9809_v41, %s9685_s4 }
 0x1b3   : > { %v1104_v44 = vpop.permute.xlu1 %1103  ;;  %v1102_v20 = vpop.permute.xlu0 %1101 }
 0x1b4   : > { %1151 = vst.msk [vmem:[#allocation2 + $0x10] sm:$0xff] %vm1149_vm10, %v1104_v44  ;;  %1150 = vst.msk [vmem:[#allocation2] sm:$0xff] %vm1149_vm10, %v1102_v20  ;;  %v7345_v44 = vld [vmem:[%s6282_s6 + $0x99] sm:$0xff]  ;;  %v7348_v20 = vld [vmem:[%s6282_s6 + $0x91] sm:$0xff] }
 0x1b5   : > { %1414 = vrot.lane.b32.xlu1 %v6817_v1, %s9685_s4  ;;  %1412 = vrot.lane.b32.xlu0 %v6820_v3, %s9685_s4  ;;  %v7210_v1 = vld [vmem:[%s6282_s6 + $0xc6] sm:$0xff] }
 0x1b7   : > { %v1108_v45 = vpop.permute.xlu1 %1107  ;;  %v1106_v46 = vpop.permute.xlu0 %1105 }
 0x1b8   : > { %1153 = vst.msk [vmem:[#allocation2 + $0x30] sm:$0xff] %vm1149_vm10, %v1108_v45  ;;  %1152 = vst.msk [vmem:[#allocation2 + $0x20] sm:$0xff] %vm1149_vm10, %v1106_v46 }
 0x1b9   : > { %1418 = vrot.lane.b32.xlu1 %v6829_v17, %s9685_s4  ;;  %1416 = vrot.lane.b32.xlu0 %v6832_v48, %s9685_s4  ;;  %v5301_v17 = vld [vmem:[%s6282_s6 + $0x38] sm:$0xff]  ;;  %v5300_v48 = vld [vmem:[%s6282_s6 + $0x30] sm:$0xff] }
 0x1bb   : > { %v1112_v23 = vpop.permute.xlu1 %1111  ;;  %v1110_v3 = vpop.permute.xlu0 %1109 }
 0x1bc   : > { %1155 = vst.msk [vmem:[#allocation2 + $0x50] sm:$0xff] %vm1149_vm10, %v1112_v23  ;;  %1154 = vst.msk [vmem:[#allocation2 + $0x40] sm:$0xff] %vm1149_vm10, %v1110_v3  ;;  %v7357_v23 = vld [vmem:[%s6282_s6 + $0xb1] sm:$0xff]  ;;  %v7360_v3 = vld [vmem:[%s6282_s6 + $0xa9] sm:$0xff] }
 0x1bd   : > { %1422 = vrot.lane.b32.xlu1 %v7207_v47, %s9685_s4  ;;  %1420 = vrot.lane.b32.xlu0 %v7210_v1, %s9685_s4  ;;  %s9689_s4 = smov 60  }
 0x1bf   : > { %v1116_v24 = vpop.permute.xlu1 %1115  ;;  %v1114_v25 = vpop.permute.xlu0 %1113 }
 0x1c0   : > { %1157 = vst.msk [vmem:[#allocation2 + $0x70] sm:$0xff] %vm1149_vm10, %v1116_v24  ;;  %1156 = vst.msk [vmem:[#allocation2 + $0x60] sm:$0xff] %vm1149_vm10, %v1114_v25 }
 0x1c1   : > { %1494 = vrot.lane.b32.xlu1 %v5301_v17, %s9687_s5  ;;  %1492 = vrot.lane.b32.xlu0 %v5300_v48, %s9687_s5 }
 0x1c3   : > { %v1120_v52 = vpop.permute.xlu1 %1119  ;;  %v1118_v53 = vpop.permute.xlu0 %1117 }
 0x1c4   : > { %1159 = vst.msk [vmem:[#allocation2 + $0x90] sm:$0xff] %vm1149_vm10, %v1120_v52  ;;  %1158 = vst.msk [vmem:[#allocation2 + $0x80] sm:$0xff] %vm1149_vm10, %v1118_v53  ;;  %v7375_v52 = vld [vmem:[%s6282_s6 + $0xe1] sm:$0xff]  ;;  %v7378_v53 = vld [vmem:[%s6282_s6 + $0xd9] sm:$0xff] }
 0x1c5   : > { %1498 = vrot.lane.b32.xlu1 %v7225_v50, %s9687_s5  ;;  %1496 = vrot.lane.b32.xlu0 %v7228_v51, %s9687_s5 }
 0x1c7   : > { %v1124_v56 = vpop.permute.xlu1 %1123  ;;  %v1122_v57 = vpop.permute.xlu0 %1121 }
 0x1c8   : > { %1161 = vst.msk [vmem:[#allocation2 + $0xb0] sm:$0xff] %vm1149_vm10, %v1124_v56  ;;  %1160 = vst.msk [vmem:[#allocation2 + $0xa0] sm:$0xff] %vm1149_vm10, %v1122_v57 }
 0x1c9   : > { %1502 = vrot.lane.b32.xlu1 %v7237_v54, %s9687_s5  ;;  %1500 = vrot.lane.b32.xlu0 %v7240_v55, %s9687_s5 }
 0x1cb   : > { %v1128_v61 = vpop.permute.xlu1 %1127  ;;  %v1126_v62 = vpop.permute.xlu0 %1125 }
 0x1cc   : > { %1163 = vst.msk [vmem:[#allocation2 + $0xd0] sm:$0xff] %vm1149_vm10, %v1128_v61  ;;  %1162 = vst.msk [vmem:[#allocation2 + $0xc0] sm:$0xff] %vm1149_vm10, %v1126_v62 }
 0x1cd   : > { %1506 = vrot.lane.b32.xlu1 %v7249_v60, %s9687_s5  ;;  %1504 = vrot.lane.b32.xlu0 %v7252_v30, %s9687_s5 }
 0x1cf   : > { %v1132_v31 = vpop.permute.xlu1 %1131  ;;  %v1130_v32 = vpop.permute.xlu0 %1129 }
 0x1d0   : > { %1165 = vst.msk [vmem:[#allocation2 + $0xf0] sm:$0xff] %vm1149_vm10, %v1132_v31  ;;  %1164 = vst.msk [vmem:[#allocation2 + $0xe0] sm:$0xff] %vm1149_vm10, %v1130_v32  ;;  %v7393_v31 = vld [vmem:[%s6282_s6 + $0x52] sm:$0xff]  ;;  %v7396_v32 = vld [vmem:[%s6282_s6 + $0x4a] sm:$0xff] }
 0x1d1   : > { %1510 = vrot.lane.b32.xlu1 %v7261_v63, %s9687_s5  ;;  %1508 = vrot.lane.b32.xlu0 %v7264_v28, %s9687_s5 }
 0x1d3   : > { %v1201_v0 = vpop.permute.xlu1 %1200  ;;  %v1199_v2 = vpop.permute.xlu0 %1198 }
 0x1d4   : > { %1248 = vst.msk [vmem:[#allocation2 + $0x10] sm:$0xff] %vm1246_vm11, %v1201_v0  ;;  %1247 = vst.msk [vmem:[#allocation2] sm:$0xff] %vm1246_vm11, %v1199_v2 }
 0x1d5   : > { %1514 = vrot.lane.b32.xlu1 %v7273_v33, %s9687_s5  ;;  %1512 = vrot.lane.b32.xlu0 %v7276_v29, %s9687_s5 }
 0x1d7   : > { %v1205_v4 = vpop.permute.xlu1 %1204  ;;  %v1203_v5 = vpop.permute.xlu0 %1202 }
 0x1d8   : > { %1250 = vst.msk [vmem:[#allocation2 + $0x30] sm:$0xff] %vm1246_vm11, %v1205_v4  ;;  %1249 = vst.msk [vmem:[#allocation2 + $0x20] sm:$0xff] %vm1246_vm11, %v1203_v5  ;;  %v7405_v4 = vld [vmem:[%s6282_s6 + $0x6a] sm:$0xff]  ;;  %v7408_v5 = vld [vmem:[%s6282_s6 + $0x62] sm:$0xff] }
 0x1d9   : > { %1518 = vrot.lane.b32.xlu1 %v6883_v26, %s9687_s5  ;;  %1516 = vrot.lane.b32.xlu0 %v6886_v27, %s9687_s5  ;;  %v5317_v26 = vld [vmem:[%s6282_s6 + $0x39] sm:$0xff]  ;;  %v5316_v27 = vld [vmem:[%s6282_s6 + $0x31] sm:$0xff] }
 0x1db   : > { %v1209_v8 = vpop.permute.xlu1 %1208  ;;  %v1207_v9 = vpop.permute.xlu0 %1206 }
 0x1dc   : > { %1252 = vst.msk [vmem:[#allocation2 + $0x50] sm:$0xff] %vm1246_vm11, %v1209_v8  ;;  %1251 = vst.msk [vmem:[#allocation2 + $0x40] sm:$0xff] %vm1246_vm11, %v1207_v9 }
 0x1dd   : > { %1522 = vrot.lane.b32.xlu1 %v7291_v6, %s9687_s5  ;;  %1520 = vrot.lane.b32.xlu0 %v7294_v7, %s9687_s5  ;;  %s9691_s5 = smov 64  }
 0x1df   : > { %v1213_v14 = vpop.permute.xlu1 %1212  ;;  %v1211_v12 = vpop.permute.xlu0 %1210 }
 0x1e0   : > { %1254 = vst.msk [vmem:[#allocation2 + $0x70] sm:$0xff] %vm1246_vm11, %v1213_v14  ;;  %1253 = vst.msk [vmem:[#allocation2 + $0x60] sm:$0xff] %vm1246_vm11, %v1211_v12 }
 0x1e1   : > { %1591 = vrot.lane.b32.xlu1 %v5317_v26, %s9689_s4  ;;  %1589 = vrot.lane.b32.xlu0 %v5316_v27, %s9689_s4  ;;  %v7417_v26 = vld [vmem:[%s6282_s6 + $0x82] sm:$0xff]  ;;  %v7420_v27 = vld [vmem:[%s6282_s6 + $0x7a] sm:$0xff] }
 0x1e3   : > { %v1217_v22 = vpop.permute.xlu1 %1216  ;;  %v1215_v16 = vpop.permute.xlu0 %1214 }
 0x1e4   : > { %1256 = vst.msk [vmem:[#allocation2 + $0x90] sm:$0xff] %vm1246_vm11, %v1217_v22  ;;  %1255 = vst.msk [vmem:[#allocation2 + $0x80] sm:$0xff] %vm1246_vm11, %v1215_v16  ;;  %v7429_v22 = vld [vmem:[%s6282_s6 + $0x9a] sm:$0xff]  ;;  %v7432_v16 = vld [vmem:[%s6282_s6 + $0x92] sm:$0xff] }
 0x1e5   : > { %1595 = vrot.lane.b32.xlu1 %v7309_v15, %s9689_s4  ;;  %1593 = vrot.lane.b32.xlu0 %v7312_v21, %s9689_s4 }
 0x1e7   : > { %v1221_v34 = vpop.permute.xlu1 %1220  ;;  %v1219_v35 = vpop.permute.xlu0 %1218 }
 0x1e8   : > { %1258 = vst.msk [vmem:[#allocation2 + $0xb0] sm:$0xff] %vm1246_vm11, %v1221_v34  ;;  %1257 = vst.msk [vmem:[#allocation2 + $0xa0] sm:$0xff] %vm1246_vm11, %v1219_v35 }
 0x1e9   : > { %1599 = vrot.lane.b32.xlu1 %v7321_v18, %s9689_s4  ;;  %1597 = vrot.lane.b32.xlu0 %v7324_v19, %s9689_s4 }
 0x1eb   : > { %v1225_v40 = vpop.permute.xlu1 %1224  ;;  %v1223_v41 = vpop.permute.xlu0 %1222 }
 0x1ec   : > { %1260 = vst.msk [vmem:[#allocation2 + $0xd0] sm:$0xff] %vm1246_vm11, %v1225_v40  ;;  %1259 = vst.msk [vmem:[#allocation2 + $0xc0] sm:$0xff] %vm1246_vm11, %v1223_v41  ;;  %v7441_v40 = vld [vmem:[%s6282_s6 + $0xb2] sm:$0xff]  ;;  %v7444_v41 = vld [vmem:[%s6282_s6 + $0xaa] sm:$0xff] }
 0x1ed   : > { %1603 = vrot.lane.b32.xlu1 %v7333_v38, %s9689_s4  ;;  %1601 = vrot.lane.b32.xlu0 %v7336_v39, %s9689_s4 }
 0x1ef   : > { %v1229_v45 = vpop.permute.xlu1 %1228  ;;  %v1227_v46 = vpop.permute.xlu0 %1226 }
 0x1f0   : > { %1262 = vst.msk [vmem:[#allocation2 + $0xf0] sm:$0xff] %vm1246_vm11, %v1229_v45  ;;  %1261 = vst.msk [vmem:[#allocation2 + $0xe0] sm:$0xff] %vm1246_vm11, %v1227_v46 }
 0x1f1   : > { %1607 = vrot.lane.b32.xlu1 %v7345_v44, %s9689_s4  ;;  %1605 = vrot.lane.b32.xlu0 %v7348_v20, %s9689_s4 }
 0x1f3   : > { %v1298_v17 = vpop.permute.xlu1 %1297  ;;  %v1296_v48 = vpop.permute.xlu0 %1295 }
 0x1f4   : > { %1345 = vst.msk [vmem:[#allocation2 + $0x10] sm:$0xff] %vm1343_vm12, %v1298_v17  ;;  %1344 = vst.msk [vmem:[#allocation2] sm:$0xff] %vm1343_vm12, %v1296_v48 }
 0x1f5   : > { %1611 = vrot.lane.b32.xlu1 %v7357_v23, %s9689_s4  ;;  %1609 = vrot.lane.b32.xlu0 %v7360_v3, %s9689_s4 }
 0x1f7   : > { %v1302_v24 = vpop.permute.xlu1 %1301  ;;  %v1300_v25 = vpop.permute.xlu0 %1299 }
 0x1f8   : > { %1347 = vst.msk [vmem:[#allocation2 + $0x30] sm:$0xff] %vm1343_vm12, %v1302_v24  ;;  %1346 = vst.msk [vmem:[#allocation2 + $0x20] sm:$0xff] %vm1343_vm12, %v1300_v25  ;;  %v7459_v24 = vld [vmem:[%s6282_s6 + $0xe2] sm:$0xff]  ;;  %v7462_v25 = vld [vmem:[%s6282_s6 + $0xda] sm:$0xff] }
 0x1f9   : > { %1615 = vrot.lane.b32.xlu1 %v6937_v10, %s9689_s4  ;;  %1613 = vrot.lane.b32.xlu0 %v6940_v11, %s9689_s4  ;;  %v5333_v10 = vld [vmem:[%s6282_s6 + $0x3a] sm:$0xff]  ;;  %v5332_v11 = vld [vmem:[%s6282_s6 + $0x32] sm:$0xff] }
 0x1fb   : > { %v1306_v56 = vpop.permute.xlu1 %1305  ;;  %v1304_v57 = vpop.permute.xlu0 %1303 }
 0x1fc   : > { %1349 = vst.msk [vmem:[#allocation2 + $0x50] sm:$0xff] %vm1343_vm12, %v1306_v56  ;;  %1348 = vst.msk [vmem:[#allocation2 + $0x40] sm:$0xff] %vm1343_vm12, %v1304_v57 }
 0x1fd   : > { %1619 = vrot.lane.b32.xlu1 %v7375_v52, %s9689_s4  ;;  %1617 = vrot.lane.b32.xlu0 %v7378_v53, %s9689_s4  ;;  %s6171_s4 = smov 68  }
 0x1ff   : > { %v1310_v61 = vpop.permute.xlu1 %1309  ;;  %v1308_v62 = vpop.permute.xlu0 %1307 }
 0x200   : > { %1351 = vst.msk [vmem:[#allocation2 + $0x70] sm:$0xff] %vm1343_vm12, %v1310_v61  ;;  %1350 = vst.msk [vmem:[#allocation2 + $0x60] sm:$0xff] %vm1343_vm12, %v1308_v62  ;;  %v7477_v61 = vld [vmem:[%s6282_s6 + $0x53] sm:$0xff]  ;;  %v7480_v62 = vld [vmem:[%s6282_s6 + $0x4b] sm:$0xff] }
 0x201   : > { %1688 = vrot.lane.b32.xlu1 %v5333_v10, %s9691_s5  ;;  %1686 = vrot.lane.b32.xlu0 %v5332_v11, %s9691_s5 }
 0x203   : > { %v1314_v0 = vpop.permute.xlu1 %1313  ;;  %v1312_v2 = vpop.permute.xlu0 %1311 }
 0x204   : > { %1353 = vst.msk [vmem:[#allocation2 + $0x90] sm:$0xff] %vm1343_vm12, %v1314_v0  ;;  %1352 = vst.msk [vmem:[#allocation2 + $0x80] sm:$0xff] %vm1343_vm12, %v1312_v2 }
 0x205   : > { %1692 = vrot.lane.b32.xlu1 %v7393_v31, %s9691_s5  ;;  %1690 = vrot.lane.b32.xlu0 %v7396_v32, %s9691_s5 }
 0x207   : > { %v1318_v8 = vpop.permute.xlu1 %1317  ;;  %v1316_v9 = vpop.permute.xlu0 %1315 }
 0x208   : > { %1355 = vst.msk [vmem:[#allocation2 + $0xb0] sm:$0xff] %vm1343_vm12, %v1318_v8  ;;  %1354 = vst.msk [vmem:[#allocation2 + $0xa0] sm:$0xff] %vm1343_vm12, %v1316_v9  ;;  %v7489_v8 = vld [vmem:[%s6282_s6 + $0x6b] sm:$0xff]  ;;  %v7492_v9 = vld [vmem:[%s6282_s6 + $0x63] sm:$0xff] }
 0x209   : > { %1696 = vrot.lane.b32.xlu1 %v7405_v4, %s9691_s5  ;;  %1694 = vrot.lane.b32.xlu0 %v7408_v5, %s9691_s5 }
 0x20b   : > { %v1322_v14 = vpop.permute.xlu1 %1321  ;;  %v1320_v12 = vpop.permute.xlu0 %1319 }
 0x20c   : > { %1357 = vst.msk [vmem:[#allocation2 + $0xd0] sm:$0xff] %vm1343_vm12, %v1322_v14  ;;  %1356 = vst.msk [vmem:[#allocation2 + $0xc0] sm:$0xff] %vm1343_vm12, %v1320_v12 }
 0x20d   : > { %1700 = vrot.lane.b32.xlu1 %v7417_v26, %s9691_s5  ;;  %1698 = vrot.lane.b32.xlu0 %v7420_v27, %s9691_s5 }
 0x20f   : > { %v1326_v34 = vpop.permute.xlu1 %1325  ;;  %v1324_v35 = vpop.permute.xlu0 %1323 }
 0x210   : > { %1359 = vst.msk [vmem:[#allocation2 + $0xf0] sm:$0xff] %vm1343_vm12, %v1326_v34  ;;  %1358 = vst.msk [vmem:[#allocation2 + $0xe0] sm:$0xff] %vm1343_vm12, %v1324_v35  ;;  %v7501_v34 = vld [vmem:[%s6282_s6 + $0x83] sm:$0xff]  ;;  %v7504_v35 = vld [vmem:[%s6282_s6 + $0x7b] sm:$0xff] }
 0x211   : > { %1704 = vrot.lane.b32.xlu1 %v7429_v22, %s9691_s5  ;;  %1702 = vrot.lane.b32.xlu0 %v7432_v16, %s9691_s5 }
 0x213   : > { %v1395_v45 = vpop.permute.xlu1 %1394  ;;  %v1393_v46 = vpop.permute.xlu0 %1392 }
 0x214   : > { %1442 = vst.msk [vmem:[#allocation2 + $0x10] sm:$0xff] %vm1440_vm13, %v1395_v45  ;;  %1441 = vst.msk [vmem:[#allocation2] sm:$0xff] %vm1440_vm13, %v1393_v46 }
 0x215   : > { %1708 = vrot.lane.b32.xlu1 %v7441_v40, %s9691_s5  ;;  %1706 = vrot.lane.b32.xlu0 %v7444_v41, %s9691_s5 }
 0x217   : > { %v1399_v17 = vpop.permute.xlu1 %1398  ;;  %v1397_v48 = vpop.permute.xlu0 %1396 }
 0x218   : > { %1444 = vst.msk [vmem:[#allocation2 + $0x30] sm:$0xff] %vm1440_vm13, %v1399_v17  ;;  %1443 = vst.msk [vmem:[#allocation2 + $0x20] sm:$0xff] %vm1440_vm13, %v1397_v48  ;;  %v7513_v17 = vld [vmem:[%s6282_s6 + $0x9b] sm:$0xff]  ;;  %v7516_v48 = vld [vmem:[%s6282_s6 + $0x93] sm:$0xff] }
 0x219   : > { %1712 = vrot.lane.b32.xlu1 %v6991_v42, %s9691_s5  ;;  %1710 = vrot.lane.b32.xlu0 %v6994_v43, %s9691_s5  ;;  %v5349_v42 = vld [vmem:[%s6282_s6 + $0x3b] sm:$0xff]  ;;  %v5348_v43 = vld [vmem:[%s6282_s6 + $0x33] sm:$0xff] }
 0x21b   : > { %v1403_v56 = vpop.permute.xlu1 %1402  ;;  %v1401_v57 = vpop.permute.xlu0 %1400 }
 0x21c   : > { %1446 = vst.msk [vmem:[#allocation2 + $0x50] sm:$0xff] %vm1440_vm13, %v1403_v56  ;;  %1445 = vst.msk [vmem:[#allocation2 + $0x40] sm:$0xff] %vm1440_vm13, %v1401_v57 }
 0x21d   : > { %1716 = vrot.lane.b32.xlu1 %v7459_v24, %s9691_s5  ;;  %1714 = vrot.lane.b32.xlu0 %v7462_v25, %s9691_s5  ;;  %s6172_s5 = smov 72  }
 0x21f   : > { %v1407_v10 = vpop.permute.xlu1 %1406  ;;  %v1405_v11 = vpop.permute.xlu0 %1404 }
 0x220   : > { %1448 = vst.msk [vmem:[#allocation2 + $0x70] sm:$0xff] %vm1440_vm13, %v1407_v10  ;;  %1447 = vst.msk [vmem:[#allocation2 + $0x60] sm:$0xff] %vm1440_vm13, %v1405_v11 }
 0x221   : > { %1785 = vrot.lane.b32.xlu1 %v5349_v42, %s6171_s4  ;;  %1783 = vrot.lane.b32.xlu0 %v5348_v43, %s6171_s4  ;;  %v7525_v42 = vld [vmem:[%s6282_s6 + $0xb3] sm:$0xff]  ;;  %v7528_v43 = vld [vmem:[%s6282_s6 + $0xab] sm:$0xff] }
 0x223   : > { %v1411_v0 = vpop.permute.xlu1 %1410  ;;  %v1409_v2 = vpop.permute.xlu0 %1408 }
 0x224   : > { %1450 = vst.msk [vmem:[#allocation2 + $0x90] sm:$0xff] %vm1440_vm13, %v1411_v0  ;;  %1449 = vst.msk [vmem:[#allocation2 + $0x80] sm:$0xff] %vm1440_vm13, %v1409_v2 }
 0x225   : > { %1789 = vrot.lane.b32.xlu1 %v7477_v61, %s6171_s4  ;;  %1787 = vrot.lane.b32.xlu0 %v7480_v62, %s6171_s4 }
 0x227   : > { %v1415_v14 = vpop.permute.xlu1 %1414  ;;  %v1413_v12 = vpop.permute.xlu0 %1412 }
 0x228   : > { %1452 = vst.msk [vmem:[#allocation2 + $0xb0] sm:$0xff] %vm1440_vm13, %v1415_v14  ;;  %1451 = vst.msk [vmem:[#allocation2 + $0xa0] sm:$0xff] %vm1440_vm13, %v1413_v12  ;;  %v7543_v14 = vld [vmem:[%s6282_s6 + $0xe3] sm:$0xff]  ;;  %v7546_v12 = vld [vmem:[%s6282_s6 + $0xdb] sm:$0xff] }
 0x229   : > { %1793 = vrot.lane.b32.xlu1 %v7489_v8, %s6171_s4  ;;  %1791 = vrot.lane.b32.xlu0 %v7492_v9, %s6171_s4 }
 0x22b   : > { %v1419_v45 = vpop.permute.xlu1 %1418  ;;  %v1417_v46 = vpop.permute.xlu0 %1416 }
 0x22c   : > { %1454 = vst.msk [vmem:[#allocation2 + $0xd0] sm:$0xff] %vm1440_vm13, %v1419_v45  ;;  %1453 = vst.msk [vmem:[#allocation2 + $0xc0] sm:$0xff] %vm1440_vm13, %v1417_v46 }
 0x22d   : > { %1797 = vrot.lane.b32.xlu1 %v7501_v34, %s6171_s4  ;;  %1795 = vrot.lane.b32.xlu0 %v7504_v35, %s6171_s4 }
 0x22f   : > { %v1423_v56 = vpop.permute.xlu1 %1422  ;;  %v1421_v57 = vpop.permute.xlu0 %1420 }
 0x230   : > { %1456 = vst.msk [vmem:[#allocation2 + $0xf0] sm:$0xff] %vm1440_vm13, %v1423_v56  ;;  %1455 = vst.msk [vmem:[#allocation2 + $0xe0] sm:$0xff] %vm1440_vm13, %v1421_v57 }
 0x231   : > { %1801 = vrot.lane.b32.xlu1 %v7513_v17, %s6171_s4  ;;  %1799 = vrot.lane.b32.xlu0 %v7516_v48, %s6171_s4 }
 0x233   : > { %v1495_v10 = vpop.permute.xlu1 %1494  ;;  %v1493_v11 = vpop.permute.xlu0 %1492 }
 0x234   : > { %1542 = vst.msk [vmem:[#allocation2 + $0x10] sm:$0xff] %vm9705_vm14, %v1495_v10  ;;  %1541 = vst.msk [vmem:[#allocation2] sm:$0xff] %vm9705_vm14, %v1493_v11  ;;  %v7561_v10 = vld [vmem:[%s6282_s6 + $0x54] sm:$0xff]  ;;  %v7564_v11 = vld [vmem:[%s6282_s6 + $0x4c] sm:$0xff] }
 0x235   : > { %1805 = vrot.lane.b32.xlu1 %v7525_v42, %s6171_s4  ;;  %1803 = vrot.lane.b32.xlu0 %v7528_v43, %s6171_s4 }
 0x237   : > { %v1499_v0 = vpop.permute.xlu1 %1498  ;;  %v1497_v2 = vpop.permute.xlu0 %1496 }
 0x238   : > { %1544 = vst.msk [vmem:[#allocation2 + $0x30] sm:$0xff] %vm9705_vm14, %v1499_v0  ;;  %1543 = vst.msk [vmem:[#allocation2 + $0x20] sm:$0xff] %vm9705_vm14, %v1497_v2 }
 0x239   : > { %1809 = vrot.lane.b32.xlu1 %v7045_v58, %s6171_s4  ;;  %1807 = vrot.lane.b32.xlu0 %v7048_v59, %s6171_s4  ;;  %v5365_v58 = vld [vmem:[%s6282_s6 + $0x3c] sm:$0xff]  ;;  %v5364_v59 = vld [vmem:[%s6282_s6 + $0x34] sm:$0xff] }
 0x23b   : > { %v1503_v45 = vpop.permute.xlu1 %1502  ;;  %v1501_v46 = vpop.permute.xlu0 %1500 }
 0x23c   : > { %1546 = vst.msk [vmem:[#allocation2 + $0x50] sm:$0xff] %vm9705_vm14, %v1503_v45  ;;  %1545 = vst.msk [vmem:[#allocation2 + $0x40] sm:$0xff] %vm9705_vm14, %v1501_v46  ;;  %v7573_v45 = vld [vmem:[%s6282_s6 + $0x6c] sm:$0xff]  ;;  %v7576_v46 = vld [vmem:[%s6282_s6 + $0x64] sm:$0xff] }
 0x23d   : > { %1813 = vrot.lane.b32.xlu1 %v7543_v14, %s6171_s4  ;;  %1811 = vrot.lane.b32.xlu0 %v7546_v12, %s6171_s4  ;;  %9810 = vst [vmem:[#allocation6_spill] sm:$0xff] %v7573_v45  ;;  %9811 = vst [vmem:[#allocation7_spill] sm:$0xff] %v7576_v46  ;;  %s6173_s4 = smov 76  }
 0x23f   : > { %v1507_v56 = vpop.permute.xlu1 %1506  ;;  %v1505_v57 = vpop.permute.xlu0 %1504 }
 0x240   : > { %1548 = vst.msk [vmem:[#allocation2 + $0x70] sm:$0xff] %vm9705_vm14, %v1507_v56  ;;  %1547 = vst.msk [vmem:[#allocation2 + $0x60] sm:$0xff] %vm9705_vm14, %v1505_v57  ;;  %v7585_v56 = vld [vmem:[%s6282_s6 + $0x84] sm:$0xff]  ;;  %v7588_v57 = vld [vmem:[%s6282_s6 + $0x7c] sm:$0xff] }
 0x241   : > { %1882 = vrot.lane.b32.xlu1 %v5365_v58, %s6172_s5  ;;  %1880 = vrot.lane.b32.xlu0 %v5364_v59, %s6172_s5  ;;  %9812 = vst [vmem:[#allocation8_spill] sm:$0xff] %v7585_v56  ;;  %9813 = vst [vmem:[#allocation9_spill] sm:$0xff] %v7588_v57 }
 0x243   : > { %v1511_v0 = vpop.permute.xlu1 %1510  ;;  %v1509_v2 = vpop.permute.xlu0 %1508 }
 0x244   : > { %1550 = vst.msk [vmem:[#allocation2 + $0x90] sm:$0xff] %vm9705_vm14, %v1511_v0  ;;  %1549 = vst.msk [vmem:[#allocation2 + $0x80] sm:$0xff] %vm9705_vm14, %v1509_v2 }
 0x245   : > { %1886 = vrot.lane.b32.xlu1 %v7561_v10, %s6172_s5  ;;  %1884 = vrot.lane.b32.xlu0 %v7564_v11, %s6172_s5 }
 0x247   : > { %v1515_v58 = vpop.permute.xlu1 %1514  ;;  %v1513_v59 = vpop.permute.xlu0 %1512 }
 0x248   : > { %1552 = vst.msk [vmem:[#allocation2 + $0xb0] sm:$0xff] %vm9705_vm14, %v1515_v58  ;;  %1551 = vst.msk [vmem:[#allocation2 + $0xa0] sm:$0xff] %vm9705_vm14, %v1513_v59  ;;  %v7597_v58 = vld [vmem:[%s6282_s6 + $0x9c] sm:$0xff]  ;;  %v7600_v59 = vld [vmem:[%s6282_s6 + $0x94] sm:$0xff] }
 0x249   : > { %1890 = vrot.lane.b32.xlu1 %v7573_v45, %s6172_s5  ;;  %1888 = vrot.lane.b32.xlu0 %v7576_v46, %s6172_s5 }
 0x24b   : > { %v1519_v0 = vpop.permute.xlu1 %1518  ;;  %v1517_v2 = vpop.permute.xlu0 %1516 }
 0x24c   : > { %1554 = vst.msk [vmem:[#allocation2 + $0xd0] sm:$0xff] %vm9705_vm14, %v1519_v0  ;;  %1553 = vst.msk [vmem:[#allocation2 + $0xc0] sm:$0xff] %vm9705_vm14, %v1517_v2  ;;  %v7609_v0 = vld [vmem:[%s6282_s6 + $0xb4] sm:$0xff]  ;;  %v7612_v2 = vld [vmem:[%s6282_s6 + $0xac] sm:$0xff] }
 0x24d   : > { %1894 = vrot.lane.b32.xlu1 %v7585_v56, %s6172_s5  ;;  %1892 = vrot.lane.b32.xlu0 %v7588_v57, %s6172_s5  ;;  %9814 = vst [vmem:[#allocation10_spill] sm:$0xff] %v7609_v0  ;;  %9815 = vst [vmem:[#allocation11_spill] sm:$0xff] %v7612_v2 }
 0x24f   : > { %v1523_v46 = vpop.permute.xlu1 %1522  ;;  %v1521_v45 = vpop.permute.xlu0 %1520 }
 0x250   : > { %1556 = vst.msk [vmem:[#allocation2 + $0xf0] sm:$0xff] %vm9705_vm14, %v1523_v46  ;;  %1555 = vst.msk [vmem:[#allocation2 + $0xe0] sm:$0xff] %vm9705_vm14, %v1521_v45  ;;  %vm9721_vm14 = vcmask 556544  }
 0x251   : > { %1898 = vrot.lane.b32.xlu1 %v7597_v58, %s6172_s5  ;;  %1896 = vrot.lane.b32.xlu0 %v7600_v59, %s6172_s5 }
 0x253   : > { %v1592_v57 = vpop.permute.xlu1 %1591  ;;  %v1590_v56 = vpop.permute.xlu0 %1589 }
 0x254   : > { %1639 = vst.msk [vmem:[#allocation2 + $0x10] sm:$0xff] %vm9716_vm15, %v1592_v57  ;;  %1638 = vst.msk [vmem:[#allocation2] sm:$0xff] %vm9716_vm15, %v1590_v56  ;;  %v7627_v56 = vld [vmem:[%s6282_s6 + $0xe4] sm:$0xff]  ;;  %v7630_v57 = vld [vmem:[%s6282_s6 + $0xdc] sm:$0xff] }
 0x255   : > { %1902 = vrot.lane.b32.xlu1 %v7609_v0, %s6172_s5  ;;  %1900 = vrot.lane.b32.xlu0 %v7612_v2, %s6172_s5  ;;  %9816 = vst [vmem:[#allocation12_spill] sm:$0xff] %v7627_v56  ;;  %9817 = vst [vmem:[#allocation13_spill] sm:$0xff] %v7630_v57 }
 0x257   : > { %v1596_v45 = vpop.permute.xlu1 %1595  ;;  %v1594_v46 = vpop.permute.xlu0 %1593 }
 0x258   : > { %1641 = vst.msk [vmem:[#allocation2 + $0x30] sm:$0xff] %vm9716_vm15, %v1596_v45  ;;  %1640 = vst.msk [vmem:[#allocation2 + $0x20] sm:$0xff] %vm9716_vm15, %v1594_v46 }
 0x259   : > { %1906 = vrot.lane.b32.xlu1 %v7099_v36, %s6172_s5  ;;  %1904 = vrot.lane.b32.xlu0 %v7102_v37, %s6172_s5  ;;  %v5381_v36 = vld [vmem:[%s6282_s6 + $0x3d] sm:$0xff]  ;;  %v5380_v37 = vld [vmem:[%s6282_s6 + $0x35] sm:$0xff] }
 0x25b   : > { %v1600_v0 = vpop.permute.xlu1 %1599  ;;  %v1598_v2 = vpop.permute.xlu0 %1597 }
 0x25c   : > { %1643 = vst.msk [vmem:[#allocation2 + $0x50] sm:$0xff] %vm9716_vm15, %v1600_v0  ;;  %1642 = vst.msk [vmem:[#allocation2 + $0x40] sm:$0xff] %vm9716_vm15, %v1598_v2  ;;  %v7645_v0 = vld [vmem:[%s6282_s6 + $0x55] sm:$0xff]  ;;  %v7648_v2 = vld [vmem:[%s6282_s6 + $0x4d] sm:$0xff] }
 0x25d   : > { %1910 = vrot.lane.b32.xlu1 %v7627_v56, %s6172_s5  ;;  %1908 = vrot.lane.b32.xlu0 %v7630_v57, %s6172_s5  ;;  %9818 = vst [vmem:[#allocation14_spill] sm:$0xff] %v7645_v0  ;;  %9819 = vst [vmem:[#allocation15_spill] sm:$0xff] %v7648_v2  ;;  %s6174_s5 = smov 80  }
 0x25f   : > { %v1604_v45 = vpop.permute.xlu1 %1603  ;;  %v1602_v46 = vpop.permute.xlu0 %1601 }
 0x260   : > { %1645 = vst.msk [vmem:[#allocation2 + $0x70] sm:$0xff] %vm9716_vm15, %v1604_v45  ;;  %1644 = vst.msk [vmem:[#allocation2 + $0x60] sm:$0xff] %vm9716_vm15, %v1602_v46 }
 0x261   : > { %1979 = vrot.lane.b32.xlu1 %v5381_v36, %s6173_s4  ;;  %1977 = vrot.lane.b32.xlu0 %v5380_v37, %s6173_s4  ;;  %v7657_v36 = vld [vmem:[%s6282_s6 + $0x6d] sm:$0xff]  ;;  %v7660_v37 = vld [vmem:[%s6282_s6 + $0x65] sm:$0xff] }
 0x262   : > { %9820 = vst [vmem:[#allocation16_spill] sm:$0xff] %v7657_v36  ;;  %9821 = vst [vmem:[#allocation17_spill] sm:$0xff] %v7660_v37 }
 0x263   : > { %v1608_v57 = vpop.permute.xlu1 %1607  ;;  %v1606_v56 = vpop.permute.xlu0 %1605 }
 0x264   : > { %1647 = vst.msk [vmem:[#allocation2 + $0x90] sm:$0xff] %vm9716_vm15, %v1608_v57  ;;  %1646 = vst.msk [vmem:[#allocation2 + $0x80] sm:$0xff] %vm9716_vm15, %v1606_v56  ;;  %v7669_v56 = vld [vmem:[%s6282_s6 + $0x85] sm:$0xff]  ;;  %v7672_v57 = vld [vmem:[%s6282_s6 + $0x7d] sm:$0xff] }
 0x265   : > { %1983 = vrot.lane.b32.xlu1 %v7645_v0, %s6173_s4  ;;  %1981 = vrot.lane.b32.xlu0 %v7648_v2, %s6173_s4  ;;  %9822 = vst [vmem:[#allocation18_spill] sm:$0xff] %v7669_v56  ;;  %9823 = vst [vmem:[#allocation19_spill] sm:$0xff] %v7672_v57 }
 0x267   : > { %v1612_v45 = vpop.permute.xlu1 %1611  ;;  %v1610_v46 = vpop.permute.xlu0 %1609 }
 0x268   : > { %1649 = vst.msk [vmem:[#allocation2 + $0xb0] sm:$0xff] %vm9716_vm15, %v1612_v45  ;;  %1648 = vst.msk [vmem:[#allocation2 + $0xa0] sm:$0xff] %vm9716_vm15, %v1610_v46  ;;  %v7681_v45 = vld [vmem:[%s6282_s6 + $0x9d] sm:$0xff]  ;;  %v7684_v46 = vld [vmem:[%s6282_s6 + $0x95] sm:$0xff] }
 0x269   : > { %1987 = vrot.lane.b32.xlu1 %v7657_v36, %s6173_s4  ;;  %1985 = vrot.lane.b32.xlu0 %v7660_v37, %s6173_s4 }
 0x26b   : > { %v1616_v2 = vpop.permute.xlu1 %1615  ;;  %v1614_v0 = vpop.permute.xlu0 %1613 }
 0x26c   : > { %1651 = vst.msk [vmem:[#allocation2 + $0xd0] sm:$0xff] %vm9716_vm15, %v1616_v2  ;;  %1650 = vst.msk [vmem:[#allocation2 + $0xc0] sm:$0xff] %vm9716_vm15, %v1614_v0  ;;  %v7693_v0 = vld [vmem:[%s6282_s6 + $0xb5] sm:$0xff]  ;;  %v7696_v2 = vld [vmem:[%s6282_s6 + $0xad] sm:$0xff] }
 0x26d   : > { %1991 = vrot.lane.b32.xlu1 %v7669_v56, %s6173_s4  ;;  %1989 = vrot.lane.b32.xlu0 %v7672_v57, %s6173_s4  ;;  %9824 = vst [vmem:[#allocation20_spill] sm:$0xff] %v7693_v0  ;;  %9825 = vst [vmem:[#allocation21_spill] sm:$0xff] %v7696_v2 }
 0x26f   : > { %v1620_v37 = vpop.permute.xlu1 %1619  ;;  %v1618_v36 = vpop.permute.xlu0 %1617 }
 0x270   : > { %1653 = vst.msk [vmem:[#allocation2 + $0xf0] sm:$0xff] %vm9716_vm15, %v1620_v37  ;;  %1652 = vst.msk [vmem:[#allocation2 + $0xe0] sm:$0xff] %vm9716_vm15, %v1618_v36  ;;  %vm1831_vm15 = vcmask 589344  }
 0x271   : > { %1995 = vrot.lane.b32.xlu1 %v7681_v45, %s6173_s4  ;;  %1993 = vrot.lane.b32.xlu0 %v7684_v46, %s6173_s4 }
 0x273   : > { %v1689_v57 = vpop.permute.xlu1 %1688  ;;  %v1687_v56 = vpop.permute.xlu0 %1686 }
 0x274   : > { %1736 = vst.msk [vmem:[#allocation2 + $0x10] sm:$0xff] %vm9721_vm14, %v1689_v57  ;;  %1735 = vst.msk [vmem:[#allocation2] sm:$0xff] %vm9721_vm14, %v1687_v56  ;;  %v7711_v56 = vld [vmem:[%s6282_s6 + $0xe5] sm:$0xff]  ;;  %v7714_v57 = vld [vmem:[%s6282_s6 + $0xdd] sm:$0xff] }
 0x275   : > { %1999 = vrot.lane.b32.xlu1 %v7693_v0, %s6173_s4  ;;  %1997 = vrot.lane.b32.xlu0 %v7696_v2, %s6173_s4  ;;  %9826 = vst [vmem:[#allocation22_spill] sm:$0xff] %v7711_v56  ;;  %9827 = vst [vmem:[#allocation23_spill] sm:$0xff] %v7714_v57 }
 0x277   : > { %v1693_v36 = vpop.permute.xlu1 %1692  ;;  %v1691_v37 = vpop.permute.xlu0 %1690 }
 0x278   : > { %1738 = vst.msk [vmem:[#allocation2 + $0x30] sm:$0xff] %vm9721_vm14, %v1693_v36  ;;  %1737 = vst.msk [vmem:[#allocation2 + $0x20] sm:$0xff] %vm9721_vm14, %v1691_v37 }
 0x279   : > { %2003 = vrot.lane.b32.xlu1 %v7153_v13, %s6173_s4  ;;  %2001 = vrot.lane.b32.xlu0 %v7156_v49, %s6173_s4  ;;  %v5397_v13 = vld [vmem:[%s6282_s6 + $0x3e] sm:$0xff]  ;;  %v5396_v49 = vld [vmem:[%s6282_s6 + $0x36] sm:$0xff] }
 0x27b   : > { %v1697_v0 = vpop.permute.xlu1 %1696  ;;  %v1695_v2 = vpop.permute.xlu0 %1694 }
 0x27c   : > { %1740 = vst.msk [vmem:[#allocation2 + $0x50] sm:$0xff] %vm9721_vm14, %v1697_v0  ;;  %1739 = vst.msk [vmem:[#allocation2 + $0x40] sm:$0xff] %vm9721_vm14, %v1695_v2  ;;  %v7729_v0 = vld [vmem:[%s6282_s6 + $0x56] sm:$0xff]  ;;  %v7732_v2 = vld [vmem:[%s6282_s6 + $0x4e] sm:$0xff] }
 0x27d   : > { %2007 = vrot.lane.b32.xlu1 %v7711_v56, %s6173_s4  ;;  %2005 = vrot.lane.b32.xlu0 %v7714_v57, %s6173_s4  ;;  %9828 = vst [vmem:[#allocation24_spill] sm:$0xff] %v7729_v0  ;;  %9829 = vst [vmem:[#allocation25_spill] sm:$0xff] %v7732_v2  ;;  %s6175_s4 = smov 84  }
 0x27f   : > { %v1701_v36 = vpop.permute.xlu1 %1700  ;;  %v1699_v37 = vpop.permute.xlu0 %1698 }
 0x280   : > { %1742 = vst.msk [vmem:[#allocation2 + $0x70] sm:$0xff] %vm9721_vm14, %v1701_v36  ;;  %1741 = vst.msk [vmem:[#allocation2 + $0x60] sm:$0xff] %vm9721_vm14, %v1699_v37 }
 0x281   : > { %2076 = vrot.lane.b32.xlu1 %v5397_v13, %s6174_s5  ;;  %2074 = vrot.lane.b32.xlu0 %v5396_v49, %s6174_s5  ;;  %v7741_v13 = vld [vmem:[%s6282_s6 + $0x6e] sm:$0xff]  ;;  %v7744_v49 = vld [vmem:[%s6282_s6 + $0x66] sm:$0xff] }
 0x282   : > { %9830 = vst [vmem:[#allocation26_spill] sm:$0xff] %v7741_v13  ;;  %9831 = vst [vmem:[#allocation27_spill] sm:$0xff] %v7744_v49 }
 0x283   : > { %v1705_v57 = vpop.permute.xlu1 %1704  ;;  %v1703_v56 = vpop.permute.xlu0 %1702 }
 0x284   : > { %1744 = vst.msk [vmem:[#allocation2 + $0x90] sm:$0xff] %vm9721_vm14, %v1705_v57  ;;  %1743 = vst.msk [vmem:[#allocation2 + $0x80] sm:$0xff] %vm9721_vm14, %v1703_v56  ;;  %v7753_v56 = vld [vmem:[%s6282_s6 + $0x86] sm:$0xff]  ;;  %v7756_v57 = vld [vmem:[%s6282_s6 + $0x7e] sm:$0xff] }
 0x285   : > { %2080 = vrot.lane.b32.xlu1 %v7729_v0, %s6174_s5  ;;  %2078 = vrot.lane.b32.xlu0 %v7732_v2, %s6174_s5  ;;  %9832 = vst [vmem:[#allocation28_spill] sm:$0xff] %v7753_v56  ;;  %9833 = vst [vmem:[#allocation29_spill] sm:$0xff] %v7756_v57 }
 0x287   : > { %v1709_v36 = vpop.permute.xlu1 %1708  ;;  %v1707_v37 = vpop.permute.xlu0 %1706 }
 0x288   : > { %1746 = vst.msk [vmem:[#allocation2 + $0xb0] sm:$0xff] %vm9721_vm14, %v1709_v36  ;;  %1745 = vst.msk [vmem:[#allocation2 + $0xa0] sm:$0xff] %vm9721_vm14, %v1707_v37  ;;  %v7765_v36 = vld [vmem:[%s6282_s6 + $0x9e] sm:$0xff]  ;;  %v7768_v37 = vld [vmem:[%s6282_s6 + $0x96] sm:$0xff] }
 0x289   : > { %2084 = vrot.lane.b32.xlu1 %v7741_v13, %s6174_s5  ;;  %2082 = vrot.lane.b32.xlu0 %v7744_v49, %s6174_s5  ;;  %9834 = vst [vmem:[#allocation30_spill] sm:$0xff] %v7768_v37 }
 0x28b   : > { %v1713_v2 = vpop.permute.xlu1 %1712  ;;  %v1711_v0 = vpop.permute.xlu0 %1710 }
 0x28c   : > { %1748 = vst.msk [vmem:[#allocation2 + $0xd0] sm:$0xff] %vm9721_vm14, %v1713_v2  ;;  %1747 = vst.msk [vmem:[#allocation2 + $0xc0] sm:$0xff] %vm9721_vm14, %v1711_v0  ;;  %v7777_v0 = vld [vmem:[%s6282_s6 + $0xb6] sm:$0xff]  ;;  %v7780_v2 = vld [vmem:[%s6282_s6 + $0xae] sm:$0xff] }
 0x28d   : > { %2088 = vrot.lane.b32.xlu1 %v7753_v56, %s6174_s5  ;;  %2086 = vrot.lane.b32.xlu0 %v7756_v57, %s6174_s5  ;;  %9835 = vst [vmem:[#allocation31_spill] sm:$0xff] %v7777_v0 }
 0x28f   : > { %v1717_v49 = vpop.permute.xlu1 %1716  ;;  %v1715_v13 = vpop.permute.xlu0 %1714 }
 0x290   : > { %1750 = vst.msk [vmem:[#allocation2 + $0xf0] sm:$0xff] %vm9721_vm14, %v1717_v49  ;;  %1749 = vst.msk [vmem:[#allocation2 + $0xe0] sm:$0xff] %vm9721_vm14, %v1715_v13  ;;  %vm1928_vm14 = vcmask 622144  }
 0x291   : > { %2092 = vrot.lane.b32.xlu1 %v7765_v36, %s6174_s5  ;;  %2090 = vrot.lane.b32.xlu0 %v7768_v37, %s6174_s5 }
 0x293   : > { %v1786_v57 = vpop.permute.xlu1 %1785  ;;  %v1784_v56 = vpop.permute.xlu0 %1783 }
 0x294   : > { %1833 = vst.msk [vmem:[#allocation2 + $0x10] sm:$0xff] %vm1831_vm15, %v1786_v57  ;;  %1832 = vst.msk [vmem:[#allocation2] sm:$0xff] %vm1831_vm15, %v1784_v56  ;;  %v7795_v57 = vld [vmem:[%s6282_s6 + $0xe6] sm:$0xff]  ;;  %v7798_v56 = vld [vmem:[%s6282_s6 + $0xde] sm:$0xff] }
 0x295   : > { %2096 = vrot.lane.b32.xlu1 %v7777_v0, %s6174_s5  ;;  %2094 = vrot.lane.b32.xlu0 %v7780_v2, %s6174_s5 }
 0x297   : > { %v1790_v13 = vpop.permute.xlu1 %1789  ;;  %v1788_v49 = vpop.permute.xlu0 %1787 }
 0x298   : > { %1835 = vst.msk [vmem:[#allocation2 + $0x30] sm:$0xff] %vm1831_vm15, %v1790_v13  ;;  %1834 = vst.msk [vmem:[#allocation2 + $0x20] sm:$0xff] %vm1831_vm15, %v1788_v49 }
 0x299   : > { %2100 = vrot.lane.b32.xlu1 %v7207_v47, %s6174_s5  ;;  %2098 = vrot.lane.b32.xlu0 %v7210_v1, %s6174_s5 }
 0x29b   : > { %v1794_v0 = vpop.permute.xlu1 %1793  ;;  %v1792_v37 = vpop.permute.xlu0 %1791 }
 0x29c   : > { %1837 = vst.msk [vmem:[#allocation2 + $0x50] sm:$0xff] %vm1831_vm15, %v1794_v0  ;;  %1836 = vst.msk [vmem:[#allocation2 + $0x40] sm:$0xff] %vm1831_vm15, %v1792_v37 }
 0x29d   : > { %2104 = vrot.lane.b32.xlu1 %v7795_v57, %s6174_s5  ;;  %2102 = vrot.lane.b32.xlu0 %v7798_v56, %s6174_s5  ;;  %s6176_s5 = smov 88  }
 0x29f   : > { %v1798_v47 = vpop.permute.xlu1 %1797  ;;  %v1796_v13 = vpop.permute.xlu0 %1795 }
 0x2a0   : > { %1839 = vst.msk [vmem:[#allocation2 + $0x70] sm:$0xff] %vm1831_vm15, %v1798_v47  ;;  %1838 = vst.msk [vmem:[#allocation2 + $0x60] sm:$0xff] %vm1831_vm15, %v1796_v13  ;;  %v7855_v47 = vld [vmem:[%s6282_s6 + $0xf8] sm:$0xff]  ;;  %v7858_v13 = vld [vmem:[%s6282_s6 + $0xf0] sm:$0xff] }
 0x2a1   : > { %2176 = vrot.lane.b32.xlu1 %v7225_v50, %s6175_s4  ;;  %2174 = vrot.lane.b32.xlu0 %v7228_v51, %s6175_s4 }
 0x2a3   : > { %v1802_v1 = vpop.permute.xlu1 %1801  ;;  %v1800_v37 = vpop.permute.xlu0 %1799 }
 0x2a4   : > { %1841 = vst.msk [vmem:[#allocation2 + $0x90] sm:$0xff] %vm1831_vm15, %v1802_v1  ;;  %1840 = vst.msk [vmem:[#allocation2 + $0x80] sm:$0xff] %vm1831_vm15, %v1800_v37 }
 0x2a5   : > { %2180 = vrot.lane.b32.xlu1 %v7237_v54, %s6175_s4  ;;  %2178 = vrot.lane.b32.xlu0 %v7240_v55, %s6175_s4 }
 0x2a7   : > { %v1806_v0 = vpop.permute.xlu1 %1805  ;;  %v1804_v49 = vpop.permute.xlu0 %1803 }
 0x2a8   : > { %1843 = vst.msk [vmem:[#allocation2 + $0xb0] sm:$0xff] %vm1831_vm15, %v1806_v0  ;;  %1842 = vst.msk [vmem:[#allocation2 + $0xa0] sm:$0xff] %vm1831_vm15, %v1804_v49 }
 0x2a9   : > { %2184 = vrot.lane.b32.xlu1 %v7249_v60, %s6175_s4  ;;  %2182 = vrot.lane.b32.xlu0 %v7252_v30, %s6175_s4  ;;  %v7837_v60 = vld [vmem:[%s6282_s6 + $0xc8] sm:$0xff]  ;;  %v7840_v30 = vld [vmem:[%s6282_s6 + $0xc0] sm:$0xff] }
 0x2ab   : > { %v1810_v50 = vpop.permute.xlu1 %1809  ;;  %v1808_v51 = vpop.permute.xlu0 %1807 }
 0x2ac   : > { %1845 = vst.msk [vmem:[#allocation2 + $0xd0] sm:$0xff] %vm1831_vm15, %v1810_v50  ;;  %1844 = vst.msk [vmem:[#allocation2 + $0xc0] sm:$0xff] %vm1831_vm15, %v1808_v51 }
 0x2ad   : > { %2188 = vrot.lane.b32.xlu1 %v7261_v63, %s6175_s4  ;;  %2186 = vrot.lane.b32.xlu0 %v7264_v28, %s6175_s4 }
 0x2af   : > { %v1814_v54 = vpop.permute.xlu1 %1813  ;;  %v1812_v55 = vpop.permute.xlu0 %1811 }
 0x2b0   : > { %1847 = vst.msk [vmem:[#allocation2 + $0xf0] sm:$0xff] %vm1831_vm15, %v1814_v54  ;;  %1846 = vst.msk [vmem:[#allocation2 + $0xe0] sm:$0xff] %vm1831_vm15, %v1812_v55  ;;  %vm2025_vm15 = vcmask 654944   ;;  %v7915_v54 = vld [vmem:[%s6282_s6 + $0xf9] sm:$0xff]  ;;  %v7918_v55 = vld [vmem:[%s6282_s6 + $0xf1] sm:$0xff] }
 0x2b1   : > { %2192 = vrot.lane.b32.xlu1 %v7273_v33, %s6175_s4  ;;  %2190 = vrot.lane.b32.xlu0 %v7276_v29, %s6175_s4 }
 0x2b3   : > { %v1883_v63 = vpop.permute.xlu1 %1882  ;;  %v1881_v28 = vpop.permute.xlu0 %1880 }
 0x2b4   : > { %1930 = vst.msk [vmem:[#allocation2 + $0x10] sm:$0xff] %vm1928_vm14, %v1883_v63  ;;  %1929 = vst.msk [vmem:[#allocation2] sm:$0xff] %vm1928_vm14, %v1881_v28 }
 0x2b5   : > { %2196 = vrot.lane.b32.xlu1 %v7837_v60, %s6175_s4  ;;  %2194 = vrot.lane.b32.xlu0 %v7840_v30, %s6175_s4 }
 0x2b7   : > { %v1887_v33 = vpop.permute.xlu1 %1886  ;;  %v1885_v29 = vpop.permute.xlu0 %1884 }
 0x2b8   : > { %1932 = vst.msk [vmem:[#allocation2 + $0x30] sm:$0xff] %vm1928_vm14, %v1887_v33  ;;  %1931 = vst.msk [vmem:[#allocation2 + $0x20] sm:$0xff] %vm1928_vm14, %v1885_v29 }
 0x2b9   : > { %2200 = vrot.lane.b32.xlu1 %v7291_v6, %s6175_s4  ;;  %2198 = vrot.lane.b32.xlu0 %v7294_v7, %s6175_s4 }
 0x2bb   : > { %v1891_v1 = vpop.permute.xlu1 %1890  ;;  %v1889_v37 = vpop.permute.xlu0 %1888 }
 0x2bc   : > { %1934 = vst.msk [vmem:[#allocation2 + $0x50] sm:$0xff] %vm1928_vm14, %v1891_v1  ;;  %1933 = vst.msk [vmem:[#allocation2 + $0x40] sm:$0xff] %vm1928_vm14, %v1889_v37 }
 0x2bd   : > { %2204 = vrot.lane.b32.xlu1 %v7855_v47, %s6175_s4  ;;  %2202 = vrot.lane.b32.xlu0 %v7858_v13, %s6175_s4  ;;  %s6177_s4 = smov 92  }
 0x2bf   : > { %v1895_v6 = vpop.permute.xlu1 %1894  ;;  %v1893_v0 = vpop.permute.xlu0 %1892 }
 0x2c0   : > { %1936 = vst.msk [vmem:[#allocation2 + $0x70] sm:$0xff] %vm1928_vm14, %v1895_v6  ;;  %1935 = vst.msk [vmem:[#allocation2 + $0x60] sm:$0xff] %vm1928_vm14, %v1893_v0  ;;  %v7975_v6 = vld [vmem:[%s6282_s6 + $0xfa] sm:$0xff]  ;;  %v7978_v0 = vld [vmem:[%s6282_s6 + $0xf2] sm:$0xff] }
 0x2c1   : > { %2273 = vrot.lane.b32.xlu1 %v7309_v15, %s6176_s5  ;;  %2271 = vrot.lane.b32.xlu0 %v7312_v21, %s6176_s5 }
 0x2c3   : > { %v1899_v7 = vpop.permute.xlu1 %1898  ;;  %v1897_v49 = vpop.permute.xlu0 %1896 }
 0x2c4   : > { %1938 = vst.msk [vmem:[#allocation2 + $0x90] sm:$0xff] %vm1928_vm14, %v1899_v7  ;;  %1937 = vst.msk [vmem:[#allocation2 + $0x80] sm:$0xff] %vm1928_vm14, %v1897_v49 }
 0x2c5   : > { %2277 = vrot.lane.b32.xlu1 %v7321_v18, %s6176_s5  ;;  %2275 = vrot.lane.b32.xlu0 %v7324_v19, %s6176_s5 }
 0x2c7   : > { %v1903_v50 = vpop.permute.xlu1 %1902  ;;  %v1901_v51 = vpop.permute.xlu0 %1900 }
 0x2c8   : > { %1940 = vst.msk [vmem:[#allocation2 + $0xb0] sm:$0xff] %vm1928_vm14, %v1903_v50  ;;  %1939 = vst.msk [vmem:[#allocation2 + $0xa0] sm:$0xff] %vm1928_vm14, %v1901_v51 }
 0x2c9   : > { %2281 = vrot.lane.b32.xlu1 %v7333_v38, %s6176_s5  ;;  %2279 = vrot.lane.b32.xlu0 %v7336_v39, %s6176_s5  ;;  %v7897_v38 = vld [vmem:[%s6282_s6 + $0xc9] sm:$0xff]  ;;  %v7900_v39 = vld [vmem:[%s6282_s6 + $0xc1] sm:$0xff] }
 0x2cb   : > { %v1907_v15 = vpop.permute.xlu1 %1906  ;;  %v1905_v21 = vpop.permute.xlu0 %1904 }
 0x2cc   : > { %1942 = vst.msk [vmem:[#allocation2 + $0xd0] sm:$0xff] %vm1928_vm14, %v1907_v15  ;;  %1941 = vst.msk [vmem:[#allocation2 + $0xc0] sm:$0xff] %vm1928_vm14, %v1905_v21 }
 0x2cd   : > { %2285 = vrot.lane.b32.xlu1 %v7345_v44, %s6176_s5  ;;  %2283 = vrot.lane.b32.xlu0 %v7348_v20, %s6176_s5 }
 0x2cf   : > { %v1911_v18 = vpop.permute.xlu1 %1910  ;;  %v1909_v19 = vpop.permute.xlu0 %1908 }
 0x2d0   : > { %1944 = vst.msk [vmem:[#allocation2 + $0xf0] sm:$0xff] %vm1928_vm14, %v1911_v18  ;;  %1943 = vst.msk [vmem:[#allocation2 + $0xe0] sm:$0xff] %vm1928_vm14, %v1909_v19  ;;  %vm2122_vm14 = vcmask 687744   ;;  %v8035_v18 = vld [vmem:[%s6282_s6 + $0xfb] sm:$0xff]  ;;  %v8038_v19 = vld [vmem:[%s6282_s6 + $0xf3] sm:$0xff] }
 0x2d1   : > { %2289 = vrot.lane.b32.xlu1 %v7357_v23, %s6176_s5  ;;  %2287 = vrot.lane.b32.xlu0 %v7360_v3, %s6176_s5 }
 0x2d3   : > { %v1980_v44 = vpop.permute.xlu1 %1979  ;;  %v1978_v20 = vpop.permute.xlu0 %1977 }
 0x2d4   : > { %2027 = vst.msk [vmem:[#allocation2 + $0x10] sm:$0xff] %vm2025_vm15, %v1980_v44  ;;  %2026 = vst.msk [vmem:[#allocation2] sm:$0xff] %vm2025_vm15, %v1978_v20 }
 0x2d5   : > { %2293 = vrot.lane.b32.xlu1 %v7897_v38, %s6176_s5  ;;  %2291 = vrot.lane.b32.xlu0 %v7900_v39, %s6176_s5 }
 0x2d7   : > { %v1984_v23 = vpop.permute.xlu1 %1983  ;;  %v1982_v3 = vpop.permute.xlu0 %1981 }
 0x2d8   : > { %2029 = vst.msk [vmem:[#allocation2 + $0x30] sm:$0xff] %vm2025_vm15, %v1984_v23  ;;  %2028 = vst.msk [vmem:[#allocation2 + $0x20] sm:$0xff] %vm2025_vm15, %v1982_v3 }
 0x2d9   : > { %2297 = vrot.lane.b32.xlu1 %v7375_v52, %s6176_s5  ;;  %2295 = vrot.lane.b32.xlu0 %v7378_v53, %s6176_s5 }
 0x2db   : > { %v1988_v63 = vpop.permute.xlu1 %1987  ;;  %v1986_v28 = vpop.permute.xlu0 %1985 }
 0x2dc   : > { %2031 = vst.msk [vmem:[#allocation2 + $0x50] sm:$0xff] %vm2025_vm15, %v1988_v63  ;;  %2030 = vst.msk [vmem:[#allocation2 + $0x40] sm:$0xff] %vm2025_vm15, %v1986_v28  ;;  %v9836_v63 = vld [vmem:[#allocation6_spill] sm:$0xff]  ;;  %v9837_v28 = vld [vmem:[#allocation7_spill] sm:$0xff] }
 0x2dd   : > { %2301 = vrot.lane.b32.xlu1 %v7915_v54, %s6176_s5  ;;  %2299 = vrot.lane.b32.xlu0 %v7918_v55, %s6176_s5  ;;  %s6178_s5 = smov 96  }
 0x2df   : > { %v1992_v52 = vpop.permute.xlu1 %1991  ;;  %v1990_v33 = vpop.permute.xlu0 %1989 }
 0x2e0   : > { %2033 = vst.msk [vmem:[#allocation2 + $0x70] sm:$0xff] %vm2025_vm15, %v1992_v52  ;;  %2032 = vst.msk [vmem:[#allocation2 + $0x60] sm:$0xff] %vm2025_vm15, %v1990_v33 }
 0x2e1   : > { %2370 = vrot.lane.b32.xlu1 %v7393_v31, %s6177_s4  ;;  %2368 = vrot.lane.b32.xlu0 %v7396_v32, %s6177_s4 }
 0x2e3   : > { %v1996_v53 = vpop.permute.xlu1 %1995  ;;  %v1994_v29 = vpop.permute.xlu0 %1993 }
 0x2e4   : > { %2035 = vst.msk [vmem:[#allocation2 + $0x90] sm:$0xff] %vm2025_vm15, %v1996_v53  ;;  %2034 = vst.msk [vmem:[#allocation2 + $0x80] sm:$0xff] %vm2025_vm15, %v1994_v29 }
 0x2e5   : > { %2374 = vrot.lane.b32.xlu1 %v7405_v4, %s6177_s4  ;;  %2372 = vrot.lane.b32.xlu0 %v7408_v5, %s6177_s4 }
 0x2e7   : > { %v2000_v1 = vpop.permute.xlu1 %1999  ;;  %v1998_v37 = vpop.permute.xlu0 %1997 }
 0x2e8   : > { %2037 = vst.msk [vmem:[#allocation2 + $0xb0] sm:$0xff] %vm2025_vm15, %v2000_v1  ;;  %2036 = vst.msk [vmem:[#allocation2 + $0xa0] sm:$0xff] %vm2025_vm15, %v1998_v37 }
 0x2e9   : > { %2378 = vrot.lane.b32.xlu1 %v7417_v26, %s6177_s4  ;;  %2376 = vrot.lane.b32.xlu0 %v7420_v27, %s6177_s4  ;;  %v7957_v26 = vld [vmem:[%s6282_s6 + $0xca] sm:$0xff]  ;;  %v7960_v27 = vld [vmem:[%s6282_s6 + $0xc2] sm:$0xff] }
 0x2eb   : > { %v2004_v31 = vpop.permute.xlu1 %2003  ;;  %v2002_v32 = vpop.permute.xlu0 %2001 }
 0x2ec   : > { %2039 = vst.msk [vmem:[#allocation2 + $0xd0] sm:$0xff] %vm2025_vm15, %v2004_v31  ;;  %2038 = vst.msk [vmem:[#allocation2 + $0xc0] sm:$0xff] %vm2025_vm15, %v2002_v32  ;;  %v9840_v31 = vld [vmem:[#allocation10_spill] sm:$0xff]  ;;  %v9841_v32 = vld [vmem:[#allocation11_spill] sm:$0xff] }
 0x2ed   : > { %2382 = vrot.lane.b32.xlu1 %v7429_v22, %s6177_s4  ;;  %2380 = vrot.lane.b32.xlu0 %v7432_v16, %s6177_s4 }
 0x2ef   : > { %v2008_v4 = vpop.permute.xlu1 %2007  ;;  %v2006_v5 = vpop.permute.xlu0 %2005 }
 0x2f0   : > { %2041 = vst.msk [vmem:[#allocation2 + $0xf0] sm:$0xff] %vm2025_vm15, %v2008_v4  ;;  %2040 = vst.msk [vmem:[#allocation2 + $0xe0] sm:$0xff] %vm2025_vm15, %v2006_v5  ;;  %vm2222_vm15 = vcmask 720544   ;;  %v5489_v4 = vld [vmem:[%s6282_s6 + $0xcc] sm:$0xff] }
 0x2f1   : > { %2386 = vrot.lane.b32.xlu1 %v7441_v40, %s6177_s4  ;;  %2384 = vrot.lane.b32.xlu0 %v7444_v41, %s6177_s4 }
 0x2f3   : > { %v2077_v22 = vpop.permute.xlu1 %2076  ;;  %v2075_v16 = vpop.permute.xlu0 %2074 }
 0x2f4   : > { %2124 = vst.msk [vmem:[#allocation2 + $0x10] sm:$0xff] %vm2122_vm14, %v2077_v22  ;;  %2123 = vst.msk [vmem:[#allocation2] sm:$0xff] %vm2122_vm14, %v2075_v16 }
 0x2f5   : > { %2390 = vrot.lane.b32.xlu1 %v7957_v26, %s6177_s4  ;;  %2388 = vrot.lane.b32.xlu0 %v7960_v27, %s6177_s4 }
 0x2f7   : > { %v2081_v40 = vpop.permute.xlu1 %2080  ;;  %v2079_v41 = vpop.permute.xlu0 %2078 }
 0x2f8   : > { %2126 = vst.msk [vmem:[#allocation2 + $0x30] sm:$0xff] %vm2122_vm14, %v2081_v40  ;;  %2125 = vst.msk [vmem:[#allocation2 + $0x20] sm:$0xff] %vm2122_vm14, %v2079_v41  ;;  %v9842_v40 = vld [vmem:[#allocation12_spill] sm:$0xff]  ;;  %v9843_v41 = vld [vmem:[#allocation13_spill] sm:$0xff] }
 0x2f9   : > { %2394 = vrot.lane.b32.xlu1 %v7459_v24, %s6177_s4  ;;  %2392 = vrot.lane.b32.xlu0 %v7462_v25, %s6177_s4 }
 0x2fb   : > { %v2085_v7 = vpop.permute.xlu1 %2084  ;;  %v2083_v49 = vpop.permute.xlu0 %2082 }
 0x2fc   : > { %2128 = vst.msk [vmem:[#allocation2 + $0x50] sm:$0xff] %vm2122_vm14, %v2085_v7  ;;  %2127 = vst.msk [vmem:[#allocation2 + $0x40] sm:$0xff] %vm2122_vm14, %v2083_v49  ;;  %v5493_v7 = vld [vmem:[%s6282_s6 + $0xfc] sm:$0xff]  ;;  %v5492_v49 = vld [vmem:[%s6282_s6 + $0xf4] sm:$0xff] }
 0x2fd   : > { %2398 = vrot.lane.b32.xlu1 %v7975_v6, %s6177_s4  ;;  %2396 = vrot.lane.b32.xlu0 %v7978_v0, %s6177_s4  ;;  %s6179_s4 = smov 100  }
 0x2ff   : > { %v2089_v24 = vpop.permute.xlu1 %2088  ;;  %v2087_v50 = vpop.permute.xlu0 %2086 }
 0x300   : > { %2130 = vst.msk [vmem:[#allocation2 + $0x70] sm:$0xff] %vm2122_vm14, %v2089_v24  ;;  %2129 = vst.msk [vmem:[#allocation2 + $0x60] sm:$0xff] %vm2122_vm14, %v2087_v50 }
 0x301   : > { %2467 = vrot.lane.b32.xlu1 %v7477_v61, %s6178_s5  ;;  %2465 = vrot.lane.b32.xlu0 %v7480_v62, %s6178_s5 }
 0x303   : > { %v2093_v25 = vpop.permute.xlu1 %2092  ;;  %v2091_v51 = vpop.permute.xlu0 %2090 }
 0x304   : > { %2132 = vst.msk [vmem:[#allocation2 + $0x90] sm:$0xff] %vm2122_vm14, %v2093_v25  ;;  %2131 = vst.msk [vmem:[#allocation2 + $0x80] sm:$0xff] %vm2122_vm14, %v2091_v51 }
 0x305   : > { %2471 = vrot.lane.b32.xlu1 %v7489_v8, %s6178_s5  ;;  %2469 = vrot.lane.b32.xlu0 %v7492_v9, %s6178_s5 }
 0x307   : > { %v2097_v15 = vpop.permute.xlu1 %2096  ;;  %v2095_v21 = vpop.permute.xlu0 %2094 }
 0x308   : > { %2134 = vst.msk [vmem:[#allocation2 + $0xb0] sm:$0xff] %vm2122_vm14, %v2097_v15  ;;  %2133 = vst.msk [vmem:[#allocation2 + $0xa0] sm:$0xff] %vm2122_vm14, %v2095_v21  ;;  %v9844_v15 = vld [vmem:[#allocation14_spill] sm:$0xff]  ;;  %v9845_v21 = vld [vmem:[#allocation15_spill] sm:$0xff] }
 0x309   : > { %2475 = vrot.lane.b32.xlu1 %v7501_v34, %s6178_s5  ;;  %2473 = vrot.lane.b32.xlu0 %v7504_v35, %s6178_s5  ;;  %v8017_v34 = vld [vmem:[%s6282_s6 + $0xcb] sm:$0xff]  ;;  %v8020_v35 = vld [vmem:[%s6282_s6 + $0xc3] sm:$0xff] }
 0x30b   : > { %v2101_v61 = vpop.permute.xlu1 %2100  ;;  %v2099_v62 = vpop.permute.xlu0 %2098 }
 0x30c   : > { %2136 = vst.msk [vmem:[#allocation2 + $0xd0] sm:$0xff] %vm2122_vm14, %v2101_v61  ;;  %2135 = vst.msk [vmem:[#allocation2 + $0xc0] sm:$0xff] %vm2122_vm14, %v2099_v62 }
 0x30d   : > { %2479 = vrot.lane.b32.xlu1 %v7513_v17, %s6178_s5  ;;  %2477 = vrot.lane.b32.xlu0 %v7516_v48, %s6178_s5 }
 0x30f   : > { %v2105_v8 = vpop.permute.xlu1 %2104  ;;  %v2103_v9 = vpop.permute.xlu0 %2102 }
 0x310   : > { %2138 = vst.msk [vmem:[#allocation2 + $0xf0] sm:$0xff] %vm2122_vm14, %v2105_v8  ;;  %2137 = vst.msk [vmem:[#allocation2 + $0xe0] sm:$0xff] %vm2122_vm14, %v2103_v9  ;;  %vm2319_vm14 = vcmask 753344   ;;  %v9846_v8 = vld [vmem:[#allocation16_spill] sm:$0xff]  ;;  %v9847_v9 = vld [vmem:[#allocation17_spill] sm:$0xff] }
 0x311   : > { %2483 = vrot.lane.b32.xlu1 %v7525_v42, %s6178_s5  ;;  %2481 = vrot.lane.b32.xlu0 %v7528_v43, %s6178_s5 }
 0x313   : > { %v2177_v17 = vpop.permute.xlu1 %2176  ;;  %v2175_v48 = vpop.permute.xlu0 %2174 }
 0x314   : > { %2224 = vst.msk [vmem:[#allocation2 + $0x10] sm:$0xff] %vm2222_vm15, %v2177_v17  ;;  %2223 = vst.msk [vmem:[#allocation2] sm:$0xff] %vm2222_vm15, %v2175_v48 }
 0x315   : > { %2487 = vrot.lane.b32.xlu1 %v8017_v34, %s6178_s5  ;;  %2485 = vrot.lane.b32.xlu0 %v8020_v35, %s6178_s5 }
 0x317   : > { %v2181_v42 = vpop.permute.xlu1 %2180  ;;  %v2179_v43 = vpop.permute.xlu0 %2178 }
 0x318   : > { %2226 = vst.msk [vmem:[#allocation2 + $0x30] sm:$0xff] %vm2222_vm15, %v2181_v42  ;;  %2225 = vst.msk [vmem:[#allocation2 + $0x20] sm:$0xff] %vm2222_vm15, %v2179_v43  ;;  %v9848_v42 = vld [vmem:[#allocation18_spill] sm:$0xff]  ;;  %v9849_v43 = vld [vmem:[#allocation19_spill] sm:$0xff] }
 0x319   : > { %2491 = vrot.lane.b32.xlu1 %v7543_v14, %s6178_s5  ;;  %2489 = vrot.lane.b32.xlu0 %v7546_v12, %s6178_s5 }
 0x31b   : > { %v2185_v44 = vpop.permute.xlu1 %2184  ;;  %v2183_v20 = vpop.permute.xlu0 %2182 }
 0x31c   : > { %2228 = vst.msk [vmem:[#allocation2 + $0x50] sm:$0xff] %vm2222_vm15, %v2185_v44  ;;  %2227 = vst.msk [vmem:[#allocation2 + $0x40] sm:$0xff] %vm2222_vm15, %v2183_v20 }
 0x31d   : > { %2495 = vrot.lane.b32.xlu1 %v8035_v18, %s6178_s5  ;;  %2493 = vrot.lane.b32.xlu0 %v8038_v19, %s6178_s5  ;;  %s6180_s5 = smov 104  }
 0x31f   : > { %v2189_v14 = vpop.permute.xlu1 %2188  ;;  %v2187_v23 = vpop.permute.xlu0 %2186 }
 0x320   : > { %2230 = vst.msk [vmem:[#allocation2 + $0x70] sm:$0xff] %vm2222_vm15, %v2189_v14  ;;  %2229 = vst.msk [vmem:[#allocation2 + $0x60] sm:$0xff] %vm2222_vm15, %v2187_v23 }
 0x321   : > { %2564 = vrot.lane.b32.xlu1 %v7561_v10, %s6179_s4  ;;  %2562 = vrot.lane.b32.xlu0 %v7564_v11, %s6179_s4  ;;  %v9838_v10 = vld [vmem:[#allocation8_spill] sm:$0xff]  ;;  %v9839_v11 = vld [vmem:[#allocation9_spill] sm:$0xff] }
 0x323   : > { %v2193_v12 = vpop.permute.xlu1 %2192  ;;  %v2191_v3 = vpop.permute.xlu0 %2190 }
 0x324   : > { %2232 = vst.msk [vmem:[#allocation2 + $0x90] sm:$0xff] %vm2222_vm15, %v2193_v12  ;;  %2231 = vst.msk [vmem:[#allocation2 + $0x80] sm:$0xff] %vm2222_vm15, %v2191_v3  ;;  %v9850_v12 = vld [vmem:[#allocation20_spill] sm:$0xff]  ;;  %v9851_v3 = vld [vmem:[#allocation21_spill] sm:$0xff] }
 0x325   : > { %2568 = vrot.lane.b32.xlu1 %v9836_v63, %s6179_s4  ;;  %2566 = vrot.lane.b32.xlu0 %v9837_v28, %s6179_s4  ;;  %v8125_v63 = vld [vmem:[%s6282_s6 + $0xcd] sm:$0xff] }
 0x327   : > { %v2197_v52 = vpop.permute.xlu1 %2196  ;;  %v2195_v33 = vpop.permute.xlu0 %2194 }
 0x328   : > { %2234 = vst.msk [vmem:[#allocation2 + $0xb0] sm:$0xff] %vm2222_vm15, %v2197_v52  ;;  %2233 = vst.msk [vmem:[#allocation2 + $0xa0] sm:$0xff] %vm2222_vm15, %v2195_v33 }
 0x329   : > { %2572 = vrot.lane.b32.xlu1 %v9838_v10, %s6179_s4  ;;  %2570 = vrot.lane.b32.xlu0 %v9839_v11, %s6179_s4  ;;  %v9852_v10 = vld [vmem:[#allocation22_spill] sm:$0xff]  ;;  %v9853_v11 = vld [vmem:[#allocation23_spill] sm:$0xff] }
 0x32b   : > { %v2201_v53 = vpop.permute.xlu1 %2200  ;;  %v2199_v29 = vpop.permute.xlu0 %2198 }
 0x32c   : > { %2236 = vst.msk [vmem:[#allocation2 + $0xd0] sm:$0xff] %vm2222_vm15, %v2201_v53  ;;  %2235 = vst.msk [vmem:[#allocation2 + $0xc0] sm:$0xff] %vm2222_vm15, %v2199_v29  ;;  %v8143_v53 = vld [vmem:[%s6282_s6 + $0xfd] sm:$0xff]  ;;  %v8146_v29 = vld [vmem:[%s6282_s6 + $0xf5] sm:$0xff] }
 0x32d   : > { %2576 = vrot.lane.b32.xlu1 %v7597_v58, %s6179_s4  ;;  %2574 = vrot.lane.b32.xlu0 %v7600_v59, %s6179_s4  ;;  %v5488_v58 = vld [vmem:[%s6282_s6 + $0xc4] sm:$0xff] }
 0x32f   : > { %v2205_v1 = vpop.permute.xlu1 %2204  ;;  %v2203_v37 = vpop.permute.xlu0 %2202 }
 0x330   : > { %2238 = vst.msk [vmem:[#allocation2 + $0xf0] sm:$0xff] %vm2222_vm15, %v2205_v1  ;;  %2237 = vst.msk [vmem:[#allocation2 + $0xe0] sm:$0xff] %vm2222_vm15, %v2203_v37  ;;  %vm2416_vm15 = vcmask 786144  }
 0x331   : > { %2580 = vrot.lane.b32.xlu1 %v9840_v31, %s6179_s4  ;;  %2578 = vrot.lane.b32.xlu0 %v9841_v32, %s6179_s4 }
 0x333   : > { %v2274_v5 = vpop.permute.xlu1 %2273  ;;  %v2272_v22 = vpop.permute.xlu0 %2271 }
 0x334   : > { %2321 = vst.msk [vmem:[#allocation2 + $0x10] sm:$0xff] %vm2319_vm14, %v2274_v5  ;;  %2320 = vst.msk [vmem:[#allocation2] sm:$0xff] %vm2319_vm14, %v2272_v22 }
 0x335   : > { %2584 = vrot.lane.b32.xlu1 %v5489_v4, %s6179_s4  ;;  %2582 = vrot.lane.b32.xlu0 %v5488_v58, %s6179_s4  ;;  %v9854_v4 = vld [vmem:[#allocation24_spill] sm:$0xff]  ;;  %v9855_v58 = vld [vmem:[#allocation25_spill] sm:$0xff] }
 0x337   : > { %v2278_v59 = vpop.permute.xlu1 %2277  ;;  %v2276_v16 = vpop.permute.xlu0 %2275 }
 0x338   : > { %2323 = vst.msk [vmem:[#allocation2 + $0x30] sm:$0xff] %vm2319_vm14, %v2278_v59  ;;  %2322 = vst.msk [vmem:[#allocation2 + $0x20] sm:$0xff] %vm2319_vm14, %v2276_v16  ;;  %v9856_v59 = vld [vmem:[#allocation26_spill] sm:$0xff]  ;;  %v9857_v16 = vld [vmem:[#allocation27_spill] sm:$0xff] }
 0x339   : > { %2588 = vrot.lane.b32.xlu1 %v9842_v40, %s6179_s4  ;;  %2586 = vrot.lane.b32.xlu0 %v9843_v41, %s6179_s4 }
 0x33b   : > { %v2282_v24 = vpop.permute.xlu1 %2281  ;;  %v2280_v50 = vpop.permute.xlu0 %2279 }
 0x33c   : > { %2325 = vst.msk [vmem:[#allocation2 + $0x50] sm:$0xff] %vm2319_vm14, %v2282_v24  ;;  %2324 = vst.msk [vmem:[#allocation2 + $0x40] sm:$0xff] %vm2319_vm14, %v2280_v50 }
 0x33d   : > { %2592 = vrot.lane.b32.xlu1 %v5493_v7, %s6179_s4  ;;  %2590 = vrot.lane.b32.xlu0 %v5492_v49, %s6179_s4  ;;  %s6181_s4 = smov 108   ;;  %v9858_v7 = vld [vmem:[#allocation28_spill] sm:$0xff]  ;;  %v9859_v49 = vld [vmem:[#allocation29_spill] sm:$0xff] }
 0x33f   : > { %v2286_v25 = vpop.permute.xlu1 %2285  ;;  %v2284_v51 = vpop.permute.xlu0 %2283 }
 0x340   : > { %2327 = vst.msk [vmem:[#allocation2 + $0x70] sm:$0xff] %vm2319_vm14, %v2286_v25  ;;  %2326 = vst.msk [vmem:[#allocation2 + $0x60] sm:$0xff] %vm2319_vm14, %v2284_v51  ;;  %v9860_v25 = vld [vmem:[#allocation30_spill] sm:$0xff] }
 0x341   : > { %2661 = vrot.lane.b32.xlu1 %v9844_v15, %s6180_s5  ;;  %2659 = vrot.lane.b32.xlu0 %v9845_v21, %s6180_s5  ;;  %v9861_v21 = vld [vmem:[#allocation31_spill] sm:$0xff] }
 0x343   : > { %v2290_v61 = vpop.permute.xlu1 %2289  ;;  %v2288_v62 = vpop.permute.xlu0 %2287 }
 0x344   : > { %2329 = vst.msk [vmem:[#allocation2 + $0x90] sm:$0xff] %vm2319_vm14, %v2290_v61  ;;  %2328 = vst.msk [vmem:[#allocation2 + $0x80] sm:$0xff] %vm2319_vm14, %v2288_v62  ;;  %v8185_v61 = vld [vmem:[%s6282_s6 + $0xce] sm:$0xff] }
 0x345   : > { %2665 = vrot.lane.b32.xlu1 %v9846_v8, %s6180_s5  ;;  %2663 = vrot.lane.b32.xlu0 %v9847_v9, %s6180_s5 }
 0x347   : > { %v2294_v17 = vpop.permute.xlu1 %2293  ;;  %v2292_v48 = vpop.permute.xlu0 %2291 }
 0x348   : > { %2331 = vst.msk [vmem:[#allocation2 + $0xb0] sm:$0xff] %vm2319_vm14, %v2294_v17  ;;  %2330 = vst.msk [vmem:[#allocation2 + $0xa0] sm:$0xff] %vm2319_vm14, %v2292_v48  ;;  %v8203_v17 = vld [vmem:[%s6282_s6 + $0xfe] sm:$0xff]  ;;  %v8206_v48 = vld [vmem:[%s6282_s6 + $0xf6] sm:$0xff] }
 0x349   : > { %2669 = vrot.lane.b32.xlu1 %v9848_v42, %s6180_s5  ;;  %2667 = vrot.lane.b32.xlu0 %v9849_v43, %s6180_s5 }
 0x34b   : > { %v2298_v44 = vpop.permute.xlu1 %2297  ;;  %v2296_v20 = vpop.permute.xlu0 %2295 }
 0x34c   : > { %2333 = vst.msk [vmem:[#allocation2 + $0xd0] sm:$0xff] %vm2319_vm14, %v2298_v44  ;;  %2332 = vst.msk [vmem:[#allocation2 + $0xc0] sm:$0xff] %vm2319_vm14, %v2296_v20 }
 0x34d   : > { %2673 = vrot.lane.b32.xlu1 %v7681_v45, %s6180_s5  ;;  %2671 = vrot.lane.b32.xlu0 %v7684_v46, %s6180_s5  ;;  %v8128_v45 = vld [vmem:[%s6282_s6 + $0xc5] sm:$0xff] }
 0x34f   : > { %v2302_v14 = vpop.permute.xlu1 %2301  ;;  %v2300_v23 = vpop.permute.xlu0 %2299 }
 0x350   : > { %2335 = vst.msk [vmem:[#allocation2 + $0xf0] sm:$0xff] %vm2319_vm14, %v2302_v14  ;;  %2334 = vst.msk [vmem:[#allocation2 + $0xe0] sm:$0xff] %vm2319_vm14, %v2300_v23  ;;  %vm2513_vm14 = vcmask 818944   ;;  %v8221_v14 = vld [vmem:[%s6282_s6 + $0x80] sm:$0xff]  ;;  %v8224_v23 = vld [vmem:[%s6282_s6 + $0x78] sm:$0xff] }
 0x351   : > { %2677 = vrot.lane.b32.xlu1 %v9850_v12, %s6180_s5  ;;  %2675 = vrot.lane.b32.xlu0 %v9851_v3, %s6180_s5 }
 0x353   : > { %v2371_v46 = vpop.permute.xlu1 %2370  ;;  %v2369_v28 = vpop.permute.xlu0 %2368 }
 0x354   : > { %2418 = vst.msk [vmem:[#allocation2 + $0x10] sm:$0xff] %vm2416_vm15, %v2371_v46  ;;  %2417 = vst.msk [vmem:[#allocation2] sm:$0xff] %vm2416_vm15, %v2369_v28  ;;  %v8233_v46 = vld [vmem:[%s6282_s6 + $0x98] sm:$0xff]  ;;  %v8236_v28 = vld [vmem:[%s6282_s6 + $0x90] sm:$0xff] }
 0x355   : > { %2681 = vrot.lane.b32.xlu1 %v8125_v63, %s6180_s5  ;;  %2679 = vrot.lane.b32.xlu0 %v8128_v45, %s6180_s5 }
 0x357   : > { %v2375_v52 = vpop.permute.xlu1 %2374  ;;  %v2373_v33 = vpop.permute.xlu0 %2372 }
 0x358   : > { %2420 = vst.msk [vmem:[#allocation2 + $0x30] sm:$0xff] %vm2416_vm15, %v2375_v52  ;;  %2419 = vst.msk [vmem:[#allocation2 + $0x20] sm:$0xff] %vm2416_vm15, %v2373_v33 }
 0x359   : > { %2685 = vrot.lane.b32.xlu1 %v9852_v10, %s6180_s5  ;;  %2683 = vrot.lane.b32.xlu0 %v9853_v11, %s6180_s5  ;;  %v8245_v10 = vld [vmem:[%s6282_s6 + $0xb0] sm:$0xff]  ;;  %v8248_v11 = vld [vmem:[%s6282_s6 + $0xa8] sm:$0xff] }
 0x35b   : > { %v2379_v1 = vpop.permute.xlu1 %2378  ;;  %v2377_v37 = vpop.permute.xlu0 %2376 }
 0x35c   : > { %2422 = vst.msk [vmem:[#allocation2 + $0x50] sm:$0xff] %vm2416_vm15, %v2379_v1  ;;  %2421 = vst.msk [vmem:[#allocation2 + $0x40] sm:$0xff] %vm2416_vm15, %v2377_v37 }
 0x35d   : > { %2689 = vrot.lane.b32.xlu1 %v8143_v53, %s6180_s5  ;;  %2687 = vrot.lane.b32.xlu0 %v8146_v29, %s6180_s5  ;;  %s6182_s5 = smov 112  }
 0x35f   : > { %v2383_v31 = vpop.permute.xlu1 %2382  ;;  %v2381_v32 = vpop.permute.xlu0 %2380 }
 0x360   : > { %2424 = vst.msk [vmem:[#allocation2 + $0x70] sm:$0xff] %vm2416_vm15, %v2383_v31  ;;  %2423 = vst.msk [vmem:[#allocation2 + $0x60] sm:$0xff] %vm2416_vm15, %v2381_v32 }
 0x361   : > { %2758 = vrot.lane.b32.xlu1 %v9854_v4, %s6181_s4  ;;  %2756 = vrot.lane.b32.xlu0 %v9855_v58, %s6181_s4  ;;  %v8263_v4 = vld [vmem:[%s6282_s6 + $0xe0] sm:$0xff]  ;;  %v8266_v58 = vld [vmem:[%s6282_s6 + $0xd8] sm:$0xff] }
 0x363   : > { %v2387_v5 = vpop.permute.xlu1 %2386  ;;  %v2385_v22 = vpop.permute.xlu0 %2384 }
 0x364   : > { %2426 = vst.msk [vmem:[#allocation2 + $0x90] sm:$0xff] %vm2416_vm15, %v2387_v5  ;;  %2425 = vst.msk [vmem:[#allocation2 + $0x80] sm:$0xff] %vm2416_vm15, %v2385_v22 }
 0x365   : > { %2762 = vrot.lane.b32.xlu1 %v9856_v59, %s6181_s4  ;;  %2760 = vrot.lane.b32.xlu0 %v9857_v16, %s6181_s4  ;;  %v8281_v59 = vld [vmem:[%s6282_s6 + $0x110] sm:$0xff]  ;;  %v8284_v16 = vld [vmem:[%s6282_s6 + $0x108] sm:$0xff] }
 0x367   : > { %v2391_v40 = vpop.permute.xlu1 %2390  ;;  %v2389_v41 = vpop.permute.xlu0 %2388 }
 0x368   : > { %2428 = vst.msk [vmem:[#allocation2 + $0xb0] sm:$0xff] %vm2416_vm15, %v2391_v40  ;;  %2427 = vst.msk [vmem:[#allocation2 + $0xa0] sm:$0xff] %vm2416_vm15, %v2389_v41 }
 0x369   : > { %2766 = vrot.lane.b32.xlu1 %v9858_v7, %s6181_s4  ;;  %2764 = vrot.lane.b32.xlu0 %v9859_v49, %s6181_s4 }
 0x36b   : > { %v2395_v24 = vpop.permute.xlu1 %2394  ;;  %v2393_v50 = vpop.permute.xlu0 %2392 }
 0x36c   : > { %2430 = vst.msk [vmem:[#allocation2 + $0xd0] sm:$0xff] %vm2416_vm15, %v2395_v24  ;;  %2429 = vst.msk [vmem:[#allocation2 + $0xc0] sm:$0xff] %vm2416_vm15, %v2393_v50  ;;  %v8299_v24 = vld [vmem:[%s6282_s6 + $0x81] sm:$0xff]  ;;  %v8302_v50 = vld [vmem:[%s6282_s6 + $0x79] sm:$0xff] }
 0x36d   : > { %2770 = vrot.lane.b32.xlu1 %v7765_v36, %s6181_s4  ;;  %2768 = vrot.lane.b32.xlu0 %v9860_v25, %s6181_s4  ;;  %v8188_v36 = vld [vmem:[%s6282_s6 + $0xc6] sm:$0xff] }
 0x36f   : > { %v2399_v51 = vpop.permute.xlu1 %2398  ;;  %v2397_v15 = vpop.permute.xlu0 %2396 }
 0x370   : > { %2432 = vst.msk [vmem:[#allocation2 + $0xf0] sm:$0xff] %vm2416_vm15, %v2399_v51  ;;  %2431 = vst.msk [vmem:[#allocation2 + $0xe0] sm:$0xff] %vm2416_vm15, %v2397_v15  ;;  %vm2610_vm15 = vcmask 851744   ;;  %v8311_v15 = vld [vmem:[%s6282_s6 + $0x99] sm:$0xff] }
 0x371   : > { %2774 = vrot.lane.b32.xlu1 %v9861_v21, %s6181_s4  ;;  %2772 = vrot.lane.b32.xlu0 %v7780_v2, %s6181_s4  ;;  %v8314_v21 = vld [vmem:[%s6282_s6 + $0x91] sm:$0xff] }
 0x373   : > { %v2468_v62 = vpop.permute.xlu1 %2467  ;;  %v2466_v8 = vpop.permute.xlu0 %2465 }
 0x374   : > { %2515 = vst.msk [vmem:[#allocation2 + $0x10] sm:$0xff] %vm2513_vm14, %v2468_v62  ;;  %2514 = vst.msk [vmem:[#allocation2] sm:$0xff] %vm2513_vm14, %v2466_v8 }
 0x375   : > { %2778 = vrot.lane.b32.xlu1 %v8185_v61, %s6181_s4  ;;  %2776 = vrot.lane.b32.xlu0 %v8188_v36, %s6181_s4 }
 0x377   : > { %v2472_v2 = vpop.permute.xlu1 %2471  ;;  %v2470_v9 = vpop.permute.xlu0 %2469 }
 0x378   : > { %2517 = vst.msk [vmem:[#allocation2 + $0x30] sm:$0xff] %vm2513_vm14, %v2472_v2  ;;  %2516 = vst.msk [vmem:[#allocation2 + $0x20] sm:$0xff] %vm2513_vm14, %v2470_v9  ;;  %v8323_v2 = vld [vmem:[%s6282_s6 + $0xb1] sm:$0xff]  ;;  %v8326_v9 = vld [vmem:[%s6282_s6 + $0xa9] sm:$0xff] }
 0x379   : > { %2782 = vrot.lane.b32.xlu1 %v7795_v57, %s6181_s4  ;;  %2780 = vrot.lane.b32.xlu0 %v7798_v56, %s6181_s4  ;;  %v5529_v57 = vld [vmem:[%s6282_s6 + $0x68] sm:$0xff]  ;;  %v5528_v56 = vld [vmem:[%s6282_s6 + $0x60] sm:$0xff] }
 0x37b   : > { %v2476_v42 = vpop.permute.xlu1 %2475  ;;  %v2474_v43 = vpop.permute.xlu0 %2473 }
 0x37c   : > { %2519 = vst.msk [vmem:[#allocation2 + $0x50] sm:$0xff] %vm2513_vm14, %v2476_v42  ;;  %2518 = vst.msk [vmem:[#allocation2 + $0x40] sm:$0xff] %vm2513_vm14, %v2474_v43 }
 0x37d   : > { %2786 = vrot.lane.b32.xlu1 %v8203_v17, %s6181_s4  ;;  %2784 = vrot.lane.b32.xlu0 %v8206_v48, %s6181_s4  ;;  %s6183_s4 = smov 116  }
 0x37f   : > { %v2480_v44 = vpop.permute.xlu1 %2479  ;;  %v2478_v20 = vpop.permute.xlu0 %2477 }
 0x380   : > { %2521 = vst.msk [vmem:[#allocation2 + $0x70] sm:$0xff] %vm2513_vm14, %v2480_v44  ;;  %2520 = vst.msk [vmem:[#allocation2 + $0x60] sm:$0xff] %vm2513_vm14, %v2478_v20  ;;  %v8341_v44 = vld [vmem:[%s6282_s6 + $0xe1] sm:$0xff]  ;;  %v8344_v20 = vld [vmem:[%s6282_s6 + $0xd9] sm:$0xff] }
 0x381   : > { %2858 = vrot.lane.b32.xlu1 %v5529_v57, %s6182_s5  ;;  %2856 = vrot.lane.b32.xlu0 %v5528_v56, %s6182_s5 }
 0x383   : > { %v2484_v12 = vpop.permute.xlu1 %2483  ;;  %v2482_v3 = vpop.permute.xlu0 %2481 }
 0x384   : > { %2523 = vst.msk [vmem:[#allocation2 + $0x90] sm:$0xff] %vm2513_vm14, %v2484_v12  ;;  %2522 = vst.msk [vmem:[#allocation2 + $0x80] sm:$0xff] %vm2513_vm14, %v2482_v3 }
 0x385   : > { %2862 = vrot.lane.b32.xlu1 %v8221_v14, %s6182_s5  ;;  %2860 = vrot.lane.b32.xlu0 %v8224_v23, %s6182_s5 }
 0x387   : > { %v2488_v52 = vpop.permute.xlu1 %2487  ;;  %v2486_v33 = vpop.permute.xlu0 %2485 }
 0x388   : > { %2525 = vst.msk [vmem:[#allocation2 + $0xb0] sm:$0xff] %vm2513_vm14, %v2488_v52  ;;  %2524 = vst.msk [vmem:[#allocation2 + $0xa0] sm:$0xff] %vm2513_vm14, %v2486_v33  ;;  %v8359_v52 = vld [vmem:[%s6282_s6 + $0x111] sm:$0xff]  ;;  %v8362_v33 = vld [vmem:[%s6282_s6 + $0x109] sm:$0xff] }
 0x389   : > { %2866 = vrot.lane.b32.xlu1 %v8233_v46, %s6182_s5  ;;  %2864 = vrot.lane.b32.xlu0 %v8236_v28, %s6182_s5 }
 0x38b   : > { %v2492_v1 = vpop.permute.xlu1 %2491  ;;  %v2490_v37 = vpop.permute.xlu0 %2489 }
 0x38c   : > { %2527 = vst.msk [vmem:[#allocation2 + $0xd0] sm:$0xff] %vm2513_vm14, %v2492_v1  ;;  %2526 = vst.msk [vmem:[#allocation2 + $0xc0] sm:$0xff] %vm2513_vm14, %v2490_v37 }
 0x38d   : > { %2870 = vrot.lane.b32.xlu1 %v8245_v10, %s6182_s5  ;;  %2868 = vrot.lane.b32.xlu0 %v8248_v11, %s6182_s5 }
 0x38f   : > { %v2496_v31 = vpop.permute.xlu1 %2495  ;;  %v2494_v32 = vpop.permute.xlu0 %2493 }
 0x390   : > { %2529 = vst.msk [vmem:[#allocation2 + $0xf0] sm:$0xff] %vm2513_vm14, %v2496_v31  ;;  %2528 = vst.msk [vmem:[#allocation2 + $0xe0] sm:$0xff] %vm2513_vm14, %v2494_v32  ;;  %vm2707_vm14 = vcmask 884544  }
 0x391   : > { %2874 = vrot.lane.b32.xlu1 %v7837_v60, %s6182_s5  ;;  %2872 = vrot.lane.b32.xlu0 %v7840_v30, %s6182_s5 }
 0x393   : > { %v2565_v5 = vpop.permute.xlu1 %2564  ;;  %v2563_v22 = vpop.permute.xlu0 %2562 }
 0x394   : > { %2612 = vst.msk [vmem:[#allocation2 + $0x10] sm:$0xff] %vm2610_vm15, %v2565_v5  ;;  %2611 = vst.msk [vmem:[#allocation2] sm:$0xff] %vm2610_vm15, %v2563_v22  ;;  %v8377_v5 = vld [vmem:[%s6282_s6 + $0x82] sm:$0xff]  ;;  %v8380_v22 = vld [vmem:[%s6282_s6 + $0x7a] sm:$0xff] }
 0x395   : > { %2878 = vrot.lane.b32.xlu1 %v8263_v4, %s6182_s5  ;;  %2876 = vrot.lane.b32.xlu0 %v8266_v58, %s6182_s5 }
 0x397   : > { %v2569_v60 = vpop.permute.xlu1 %2568  ;;  %v2567_v30 = vpop.permute.xlu0 %2566 }
 0x398   : > { %2614 = vst.msk [vmem:[#allocation2 + $0x30] sm:$0xff] %vm2610_vm15, %v2569_v60  ;;  %2613 = vst.msk [vmem:[#allocation2 + $0x20] sm:$0xff] %vm2610_vm15, %v2567_v30 }
 0x399   : > { %2882 = vrot.lane.b32.xlu1 %v7855_v47, %s6182_s5  ;;  %2880 = vrot.lane.b32.xlu0 %v7858_v13, %s6182_s5  ;;  %v5545_v47 = vld [vmem:[%s6282_s6 + $0x69] sm:$0xff]  ;;  %v5544_v13 = vld [vmem:[%s6282_s6 + $0x61] sm:$0xff] }
 0x39b   : > { %v2573_v40 = vpop.permute.xlu1 %2572  ;;  %v2571_v41 = vpop.permute.xlu0 %2570 }
 0x39c   : > { %2616 = vst.msk [vmem:[#allocation2 + $0x50] sm:$0xff] %vm2610_vm15, %v2573_v40  ;;  %2615 = vst.msk [vmem:[#allocation2 + $0x40] sm:$0xff] %vm2610_vm15, %v2571_v41  ;;  %v8389_v40 = vld [vmem:[%s6282_s6 + $0x9a] sm:$0xff]  ;;  %v8392_v41 = vld [vmem:[%s6282_s6 + $0x92] sm:$0xff] }
 0x39d   : > { %2886 = vrot.lane.b32.xlu1 %v8281_v59, %s6182_s5  ;;  %2884 = vrot.lane.b32.xlu0 %v8284_v16, %s6182_s5  ;;  %s6184_s5 = smov 120  }
 0x39f   : > { %v2577_v7 = vpop.permute.xlu1 %2576  ;;  %v2575_v49 = vpop.permute.xlu0 %2574 }
 0x3a0   : > { %2618 = vst.msk [vmem:[#allocation2 + $0x70] sm:$0xff] %vm2610_vm15, %v2577_v7  ;;  %2617 = vst.msk [vmem:[#allocation2 + $0x60] sm:$0xff] %vm2610_vm15, %v2575_v49  ;;  %v8401_v7 = vld [vmem:[%s6282_s6 + $0xb2] sm:$0xff]  ;;  %v8404_v49 = vld [vmem:[%s6282_s6 + $0xaa] sm:$0xff] }
 0x3a1   : > { %2955 = vrot.lane.b32.xlu1 %v5545_v47, %s6183_s4  ;;  %2953 = vrot.lane.b32.xlu0 %v5544_v13, %s6183_s4 }
 0x3a3   : > { %v2581_v25 = vpop.permute.xlu1 %2580  ;;  %v2579_v51 = vpop.permute.xlu0 %2578 }
 0x3a4   : > { %2620 = vst.msk [vmem:[#allocation2 + $0x90] sm:$0xff] %vm2610_vm15, %v2581_v25  ;;  %2619 = vst.msk [vmem:[#allocation2 + $0x80] sm:$0xff] %vm2610_vm15, %v2579_v51 }
 0x3a5   : > { %2959 = vrot.lane.b32.xlu1 %v8299_v24, %s6183_s4  ;;  %2957 = vrot.lane.b32.xlu0 %v8302_v50, %s6183_s4 }
 0x3a7   : > { %v2585_v62 = vpop.permute.xlu1 %2584  ;;  %v2583_v8 = vpop.permute.xlu0 %2582 }
 0x3a8   : > { %2622 = vst.msk [vmem:[#allocation2 + $0xb0] sm:$0xff] %vm2610_vm15, %v2585_v62  ;;  %2621 = vst.msk [vmem:[#allocation2 + $0xa0] sm:$0xff] %vm2610_vm15, %v2583_v8 }
 0x3a9   : > { %2963 = vrot.lane.b32.xlu1 %v8311_v15, %s6183_s4  ;;  %2961 = vrot.lane.b32.xlu0 %v8314_v21, %s6183_s4 }
 0x3ab   : > { %v2589_v42 = vpop.permute.xlu1 %2588  ;;  %v2587_v43 = vpop.permute.xlu0 %2586 }
 0x3ac   : > { %2624 = vst.msk [vmem:[#allocation2 + $0xd0] sm:$0xff] %vm2610_vm15, %v2589_v42  ;;  %2623 = vst.msk [vmem:[#allocation2 + $0xc0] sm:$0xff] %vm2610_vm15, %v2587_v43  ;;  %v8419_v42 = vld [vmem:[%s6282_s6 + $0xe2] sm:$0xff]  ;;  %v8422_v43 = vld [vmem:[%s6282_s6 + $0xda] sm:$0xff] }
 0x3ad   : > { %2967 = vrot.lane.b32.xlu1 %v8323_v2, %s6183_s4  ;;  %2965 = vrot.lane.b32.xlu0 %v8326_v9, %s6183_s4 }
 0x3af   : > { %v2593_v57 = vpop.permute.xlu1 %2592  ;;  %v2591_v56 = vpop.permute.xlu0 %2590 }
 0x3b0   : > { %2626 = vst.msk [vmem:[#allocation2 + $0xf0] sm:$0xff] %vm2610_vm15, %v2593_v57  ;;  %2625 = vst.msk [vmem:[#allocation2 + $0xe0] sm:$0xff] %vm2610_vm15, %v2591_v56  ;;  %vm2804_vm15 = vcmask 917344  }
 0x3b1   : > { %2971 = vrot.lane.b32.xlu1 %v7897_v38, %s6183_s4  ;;  %2969 = vrot.lane.b32.xlu0 %v7900_v39, %s6183_s4 }
 0x3b3   : > { %v2662_v12 = vpop.permute.xlu1 %2661  ;;  %v2660_v3 = vpop.permute.xlu0 %2659 }
 0x3b4   : > { %2709 = vst.msk [vmem:[#allocation2 + $0x10] sm:$0xff] %vm2707_vm14, %v2662_v12  ;;  %2708 = vst.msk [vmem:[#allocation2] sm:$0xff] %vm2707_vm14, %v2660_v3  ;;  %v8437_v12 = vld [vmem:[%s6282_s6 + $0x112] sm:$0xff]  ;;  %v8440_v3 = vld [vmem:[%s6282_s6 + $0x10a] sm:$0xff] }
 0x3b5   : > { %2975 = vrot.lane.b32.xlu1 %v8341_v44, %s6183_s4  ;;  %2973 = vrot.lane.b32.xlu0 %v8344_v20, %s6183_s4 }
 0x3b7   : > { %v2666_v38 = vpop.permute.xlu1 %2665  ;;  %v2664_v39 = vpop.permute.xlu0 %2663 }
 0x3b8   : > { %2711 = vst.msk [vmem:[#allocation2 + $0x30] sm:$0xff] %vm2707_vm14, %v2666_v38  ;;  %2710 = vst.msk [vmem:[#allocation2 + $0x20] sm:$0xff] %vm2707_vm14, %v2664_v39 }
 0x3b9   : > { %2979 = vrot.lane.b32.xlu1 %v7915_v54, %s6183_s4  ;;  %2977 = vrot.lane.b32.xlu0 %v7918_v55, %s6183_s4  ;;  %v5561_v54 = vld [vmem:[%s6282_s6 + $0x6a] sm:$0xff]  ;;  %v5560_v55 = vld [vmem:[%s6282_s6 + $0x62] sm:$0xff] }
 0x3bb   : > { %v2670_v1 = vpop.permute.xlu1 %2669  ;;  %v2668_v37 = vpop.permute.xlu0 %2667 }
 0x3bc   : > { %2713 = vst.msk [vmem:[#allocation2 + $0x50] sm:$0xff] %vm2707_vm14, %v2670_v1  ;;  %2712 = vst.msk [vmem:[#allocation2 + $0x40] sm:$0xff] %vm2707_vm14, %v2668_v37 }
 0x3bd   : > { %2983 = vrot.lane.b32.xlu1 %v8359_v52, %s6183_s4  ;;  %2981 = vrot.lane.b32.xlu0 %v8362_v33, %s6183_s4  ;;  %s6185_s4 = smov 124  }
 0x3bf   : > { %v2674_v31 = vpop.permute.xlu1 %2673  ;;  %v2672_v32 = vpop.permute.xlu0 %2671 }
 0x3c0   : > { %2715 = vst.msk [vmem:[#allocation2 + $0x70] sm:$0xff] %vm2707_vm14, %v2674_v31  ;;  %2714 = vst.msk [vmem:[#allocation2 + $0x60] sm:$0xff] %vm2707_vm14, %v2672_v32 }
 0x3c1   : > { %3052 = vrot.lane.b32.xlu1 %v5561_v54, %s6184_s5  ;;  %3050 = vrot.lane.b32.xlu0 %v5560_v55, %s6184_s5  ;;  %v8455_v54 = vld [vmem:[%s6282_s6 + $0x83] sm:$0xff]  ;;  %v8458_v55 = vld [vmem:[%s6282_s6 + $0x7b] sm:$0xff] }
 0x3c3   : > { %v2678_v60 = vpop.permute.xlu1 %2677  ;;  %v2676_v30 = vpop.permute.xlu0 %2675 }
 0x3c4   : > { %2717 = vst.msk [vmem:[#allocation2 + $0x90] sm:$0xff] %vm2707_vm14, %v2678_v60  ;;  %2716 = vst.msk [vmem:[#allocation2 + $0x80] sm:$0xff] %vm2707_vm14, %v2676_v30  ;;  %v8467_v60 = vld [vmem:[%s6282_s6 + $0x9b] sm:$0xff]  ;;  %v8470_v30 = vld [vmem:[%s6282_s6 + $0x93] sm:$0xff] }
 0x3c5   : > { %3056 = vrot.lane.b32.xlu1 %v8377_v5, %s6184_s5  ;;  %3054 = vrot.lane.b32.xlu0 %v8380_v22, %s6184_s5 }
 0x3c7   : > { %v2682_v47 = vpop.permute.xlu1 %2681  ;;  %v2680_v13 = vpop.permute.xlu0 %2679 }
 0x3c8   : > { %2719 = vst.msk [vmem:[#allocation2 + $0xb0] sm:$0xff] %vm2707_vm14, %v2682_v47  ;;  %2718 = vst.msk [vmem:[#allocation2 + $0xa0] sm:$0xff] %vm2707_vm14, %v2680_v13 }
 0x3c9   : > { %3060 = vrot.lane.b32.xlu1 %v8389_v40, %s6184_s5  ;;  %3058 = vrot.lane.b32.xlu0 %v8392_v41, %s6184_s5 }
 0x3cb   : > { %v2686_v25 = vpop.permute.xlu1 %2685  ;;  %v2684_v51 = vpop.permute.xlu0 %2683 }
 0x3cc   : > { %2721 = vst.msk [vmem:[#allocation2 + $0xd0] sm:$0xff] %vm2707_vm14, %v2686_v25  ;;  %2720 = vst.msk [vmem:[#allocation2 + $0xc0] sm:$0xff] %vm2707_vm14, %v2684_v51  ;;  %v8479_v25 = vld [vmem:[%s6282_s6 + $0xb3] sm:$0xff]  ;;  %v8482_v51 = vld [vmem:[%s6282_s6 + $0xab] sm:$0xff] }
 0x3cd   : > { %3064 = vrot.lane.b32.xlu1 %v8401_v7, %s6184_s5  ;;  %3062 = vrot.lane.b32.xlu0 %v8404_v49, %s6184_s5 }
 0x3cf   : > { %v2690_v62 = vpop.permute.xlu1 %2689  ;;  %v2688_v8 = vpop.permute.xlu0 %2687 }
 0x3d0   : > { %2723 = vst.msk [vmem:[#allocation2 + $0xf0] sm:$0xff] %vm2707_vm14, %v2690_v62  ;;  %2722 = vst.msk [vmem:[#allocation2 + $0xe0] sm:$0xff] %vm2707_vm14, %v2688_v8  ;;  %vm2904_vm14 = vcmask 950144  }
 0x3d1   : > { %3068 = vrot.lane.b32.xlu1 %v7957_v26, %s6184_s5  ;;  %3066 = vrot.lane.b32.xlu0 %v7960_v27, %s6184_s5 }
 0x3d3   : > { %v2759_v57 = vpop.permute.xlu1 %2758  ;;  %v2757_v56 = vpop.permute.xlu0 %2756 }
 0x3d4   : > { %2806 = vst.msk [vmem:[#allocation2 + $0x10] sm:$0xff] %vm2804_vm15, %v2759_v57  ;;  %2805 = vst.msk [vmem:[#allocation2] sm:$0xff] %vm2804_vm15, %v2757_v56 }
 0x3d5   : > { %3072 = vrot.lane.b32.xlu1 %v8419_v42, %s6184_s5  ;;  %3070 = vrot.lane.b32.xlu0 %v8422_v43, %s6184_s5 }
 0x3d7   : > { %v2763_v26 = vpop.permute.xlu1 %2762  ;;  %v2761_v27 = vpop.permute.xlu0 %2760 }
 0x3d8   : > { %2808 = vst.msk [vmem:[#allocation2 + $0x30] sm:$0xff] %vm2804_vm15, %v2763_v26  ;;  %2807 = vst.msk [vmem:[#allocation2 + $0x20] sm:$0xff] %vm2804_vm15, %v2761_v27  ;;  %v5593_v26 = vld [vmem:[%s6282_s6 + $0x6c] sm:$0xff]  ;;  %v8498_v27 = vld [vmem:[%s6282_s6 + $0xe3] sm:$0xff] }
 0x3d9   : > { %3076 = vrot.lane.b32.xlu1 %v7975_v6, %s6184_s5  ;;  %3074 = vrot.lane.b32.xlu0 %v7978_v0, %s6184_s5  ;;  %v5577_v6 = vld [vmem:[%s6282_s6 + $0x6b] sm:$0xff]  ;;  %v5576_v0 = vld [vmem:[%s6282_s6 + $0x63] sm:$0xff]  ;;  %3229 = vst.msk [vmem:[#allocation2 + $0x18] sm:$0xff] %vm176_vm0, %v5593_v26 }
 0x3db   : > { %v2767_v38 = vpop.permute.xlu1 %2766  ;;  %v2765_v39 = vpop.permute.xlu0 %2764 }
 0x3dc   : > { %2810 = vst.msk [vmem:[#allocation2 + $0x50] sm:$0xff] %vm2804_vm15, %v2767_v38  ;;  %2809 = vst.msk [vmem:[#allocation2 + $0x40] sm:$0xff] %vm2804_vm15, %v2765_v39  ;;  %v8501_v38 = vld [vmem:[%s6282_s6 + $0xdb] sm:$0xff]  ;;  %v5592_v39 = vld [vmem:[%s6282_s6 + $0x64] sm:$0xff] }
 0x3dd   : > { %3080 = vrot.lane.b32.xlu1 %v8437_v12, %s6184_s5  ;;  %3078 = vrot.lane.b32.xlu0 %v8440_v3, %s6184_s5  ;;  %3228 = vst.msk [vmem:[#allocation2 + $0x8] sm:$0xff] %vm176_vm0, %v5592_v39 }
 0x3df   : > { %v2771_v1 = vpop.permute.xlu1 %2770  ;;  %v2769_v37 = vpop.permute.xlu0 %2768 }
 0x3e0   : > { %2812 = vst.msk [vmem:[#allocation2 + $0x70] sm:$0xff] %vm2804_vm15, %v2771_v1  ;;  %2811 = vst.msk [vmem:[#allocation2 + $0x60] sm:$0xff] %vm2804_vm15, %v2769_v37 }
 0x3e1   : > { %3149 = vrot.lane.b32.xlu1 %v5577_v6, %s6185_s4  ;;  %3147 = vrot.lane.b32.xlu0 %v5576_v0, %s6185_s4 }
 0x3e3   : > { %v2775_v31 = vpop.permute.xlu1 %2774  ;;  %v2773_v32 = vpop.permute.xlu0 %2772 }
 0x3e4   : > { %2814 = vst.msk [vmem:[#allocation2 + $0x90] sm:$0xff] %vm2804_vm15, %v2775_v31  ;;  %2813 = vst.msk [vmem:[#allocation2 + $0x80] sm:$0xff] %vm2804_vm15, %v2773_v32  ;;  %v8529_v31 = vld [vmem:[%s6282_s6 + $0x9c] sm:$0xff]  ;;  %v8532_v32 = vld [vmem:[%s6282_s6 + $0x113] sm:$0xff] }
 0x3e5   : > { %3153 = vrot.lane.b32.xlu1 %v8455_v54, %s6185_s4  ;;  %3151 = vrot.lane.b32.xlu0 %v8458_v55, %s6185_s4  ;;  %9862 = vst [vmem:[#allocation32_spill] sm:$0xff] %v8529_v31  ;;  %3233 = vst.msk [vmem:[#allocation2 + $0x58] sm:$0xff] %vm176_vm0, %v8529_v31 }
 0x3e7   : > { %v2779_v47 = vpop.permute.xlu1 %2778  ;;  %v2777_v13 = vpop.permute.xlu0 %2776 }
 0x3e8   : > { %2816 = vst.msk [vmem:[#allocation2 + $0xb0] sm:$0xff] %vm2804_vm15, %v2779_v47  ;;  %2815 = vst.msk [vmem:[#allocation2 + $0xa0] sm:$0xff] %vm2804_vm15, %v2777_v13  ;;  %v8535_v47 = vld [vmem:[%s6282_s6 + $0x10b] sm:$0xff]  ;;  %v8540_v13 = vld [vmem:[%s6282_s6 + $0x94] sm:$0xff] }
 0x3e9   : > { %3157 = vrot.lane.b32.xlu1 %v8467_v60, %s6185_s4  ;;  %3155 = vrot.lane.b32.xlu0 %v8470_v30, %s6185_s4  ;;  %9863 = vst [vmem:[#allocation33_spill] sm:$0xff] %v8540_v13  ;;  %3232 = vst.msk [vmem:[#allocation2 + $0x48] sm:$0xff] %vm176_vm0, %v8540_v13 }
 0x3eb   : > { %v2783_v62 = vpop.permute.xlu1 %2782  ;;  %v2781_v8 = vpop.permute.xlu0 %2780 }
 0x3ec   : > { %2818 = vst.msk [vmem:[#allocation2 + $0xd0] sm:$0xff] %vm2804_vm15, %v2783_v62  ;;  %2817 = vst.msk [vmem:[#allocation2 + $0xc0] sm:$0xff] %vm2804_vm15, %v2781_v8 }
 0x3ed   : > { %3161 = vrot.lane.b32.xlu1 %v8479_v25, %s6185_s4  ;;  %3159 = vrot.lane.b32.xlu0 %v8482_v51, %s6185_s4 }
 0x3ef   : > { %v2787_v57 = vpop.permute.xlu1 %2786  ;;  %v2785_v56 = vpop.permute.xlu0 %2784 }
 0x3f0   : > { %2820 = vst.msk [vmem:[#allocation2 + $0xf0] sm:$0xff] %vm2804_vm15, %v2787_v57  ;;  %2819 = vst.msk [vmem:[#allocation2 + $0xe0] sm:$0xff] %vm2804_vm15, %v2785_v56  ;;  %v5608_v57 = vld [vmem:[%s6282_s6 + $0x65] sm:$0xff]  ;;  %vm3001_vm15 = vcmask 982944  }
 0x3f1   : > { %3165 = vrot.lane.b32.xlu1 %v8017_v34, %s6185_s4  ;;  %3163 = vrot.lane.b32.xlu0 %v8020_v35, %s6185_s4  ;;  %v8513_v34 = vld [vmem:[%s6282_s6 + $0x84] sm:$0xff]  ;;  %v8518_v35 = vld [vmem:[%s6282_s6 + $0x7c] sm:$0xff] }
 0x3f2   : > { %3231 = vst.msk [vmem:[#allocation2 + $0x38] sm:$0xff] %vm176_vm0, %v8513_v34  ;;  %3230 = vst.msk [vmem:[#allocation2 + $0x28] sm:$0xff] %vm176_vm0, %v8518_v35  ;;  %v8555_v56 = vld [vmem:[%s6282_s6 + $0xac] sm:$0xff] }
 0x3f3   : > { %v2859_v6 = vpop.permute.xlu1 %2858  ;;  %v2857_v0 = vpop.permute.xlu0 %2856  ;;  %9864 = vst [vmem:[#allocation34_spill] sm:$0xff] %v8555_v56  ;;  %3234 = vst.msk [vmem:[#allocation2 + $0x68] sm:$0xff] %vm176_vm0, %v8555_v56  ;;  %v8603_v56 = vld [vmem:[%s6282_s6 + $0xf4] sm:$0xff] }
 0x3f4   : > { %2906 = vst.msk [vmem:[#allocation2 + $0x10] sm:$0xff] %vm2904_vm14, %v2859_v6  ;;  %2905 = vst.msk [vmem:[#allocation2] sm:$0xff] %vm2904_vm14, %v2857_v0  ;;  %v5601_v6 = vld [vmem:[%s6282_s6 + $0xcc] sm:$0xff] }
 0x3f5   : > { %3169 = vrot.lane.b32.xlu1 %v8498_v27, %s6185_s4  ;;  %3167 = vrot.lane.b32.xlu0 %v8501_v38, %s6185_s4  ;;  %v8565_v0 = vld [vmem:[%s6282_s6 + $0x85] sm:$0xff]  ;;  %3237 = vst.msk [vmem:[#allocation2 + $0x98] sm:$0xff] %vm176_vm0, %v5601_v6  ;;  %3240 = vst.msk [vmem:[#allocation2 + $0xc8] sm:$0xff] %vm176_vm0, %v8603_v56 }
 0x3f7   : > { %v2863_v1 = vpop.permute.xlu1 %2862  ;;  %v2861_v37 = vpop.permute.xlu0 %2860 }
 0x3f8   : > { %2908 = vst.msk [vmem:[#allocation2 + $0x30] sm:$0xff] %vm2904_vm14, %v2863_v1  ;;  %2907 = vst.msk [vmem:[#allocation2 + $0x20] sm:$0xff] %vm2904_vm14, %v2861_v37  ;;  %v8568_v1 = vld [vmem:[%s6282_s6 + $0x7d] sm:$0xff] }
 0x3f9   : > { %3173 = vrot.lane.b32.xlu1 %v8035_v18, %s6185_s4  ;;  %3171 = vrot.lane.b32.xlu0 %v8038_v19, %s6185_s4  ;;  %v5599_v18 = vld [vmem:[%s6282_s6 + $0xb4] sm:$0xff]  ;;  %v5600_v37 = vld [vmem:[%s6282_s6 + $0xc4] sm:$0xff] }
 0x3fa   : > { %v5609_v19 = vld [vmem:[%s6282_s6 + $0x6d] sm:$0xff]  ;;  %3235 = vst.msk [vmem:[#allocation2 + $0x78] sm:$0xff] %vm176_vm0, %v5599_v18  ;;  %3236 = vst.msk [vmem:[#allocation2 + $0x88] sm:$0xff] %vm176_vm0, %v5600_v37  ;;  %v8580_v18 = vld [vmem:[%s6282_s6 + $0xe4] sm:$0xff] }
 0x3fb   : > { %v2867_v62 = vpop.permute.xlu1 %2866  ;;  %v2865_v8 = vpop.permute.xlu0 %2864  ;;  %3239 = vst.msk [vmem:[#allocation2 + $0xb8] sm:$0xff] %vm176_vm0, %v8580_v18  ;;  %v8596_v37 = vld [vmem:[%s6282_s6 + $0xfc] sm:$0xff] }
 0x3fc   : > { %2910 = vst.msk [vmem:[#allocation2 + $0x50] sm:$0xff] %vm2904_vm14, %v2867_v62  ;;  %2909 = vst.msk [vmem:[#allocation2 + $0x40] sm:$0xff] %vm2904_vm14, %v2865_v8 }
 0x3fd   : > { %3177 = vrot.lane.b32.xlu1 %v8532_v32, %s6185_s4  ;;  %3175 = vrot.lane.b32.xlu0 %v8535_v47, %s6185_s4  ;;  %3241 = vst.msk [vmem:[#allocation2 + $0xd8] sm:$0xff] %vm176_vm0, %v8596_v37  ;;  %s9868_s4 = smov 56  }
 0x3ff   : > { %v2871_v26 = vpop.permute.xlu1 %2870  ;;  %v2869_v39 = vpop.permute.xlu0 %2868 }
 0x400   : > { %2912 = vst.msk [vmem:[#allocation2 + $0x70] sm:$0xff] %vm2904_vm14, %v2871_v26  ;;  %2911 = vst.msk [vmem:[#allocation2 + $0x60] sm:$0xff] %vm2904_vm14, %v2869_v39  ;;  %v8587_v26 = vld [vmem:[%s6282_s6 + $0xdc] sm:$0xff] }
 0x401   : > { %3278 = vrot.lane.b32.xlu1 %v5609_v19, %s6155_s7  ;;  %3276 = vrot.lane.b32.xlu0 %v5608_v57, %s6155_s7  ;;  %v5613_v19 = vld [vmem:[%s6282_s6 + $0x9d] sm:$0xff]  ;;  %v5612_v57 = vld [vmem:[%s6282_s6 + $0x95] sm:$0xff]  ;;  %3238 = vst.msk [vmem:[#allocation2 + $0xa8] sm:$0xff] %vm176_vm0, %v8587_v26 }
 0x403   : > { %v2875_v62 = vpop.permute.xlu1 %2874  ;;  %v2873_v8 = vpop.permute.xlu0 %2872 }
 0x404   : > { %2914 = vst.msk [vmem:[#allocation2 + $0x90] sm:$0xff] %vm2904_vm14, %v2875_v62  ;;  %2913 = vst.msk [vmem:[#allocation2 + $0x80] sm:$0xff] %vm2904_vm14, %v2873_v8  ;;  %v5615_v62 = vld [vmem:[%s6282_s6 + $0xb5] sm:$0xff]  ;;  %v5614_v8 = vld [vmem:[%s6282_s6 + $0xad] sm:$0xff] }
 0x405   : > { %3282 = vrot.lane.b32.xlu1 %v8565_v0, %s6155_s7  ;;  %3280 = vrot.lane.b32.xlu0 %v8568_v1, %s6155_s7 }
 0x407   : > { %v2879_v39 = vpop.permute.xlu1 %2878  ;;  %v2877_v6 = vpop.permute.xlu0 %2876 }
 0x408   : > { %2916 = vst.msk [vmem:[#allocation2 + $0xb0] sm:$0xff] %vm2904_vm14, %v2879_v39  ;;  %2915 = vst.msk [vmem:[#allocation2 + $0xa0] sm:$0xff] %vm2904_vm14, %v2877_v6 }
 0x409   : > { %3286 = vrot.lane.b32.xlu1 %v5613_v19, %s6155_s7  ;;  %3284 = vrot.lane.b32.xlu0 %v5612_v57, %s6155_s7  ;;  %v8612_v19 = vld [vmem:[%s6282_s6 + $0x114] sm:$0xff]  ;;  %v8617_v57 = vld [vmem:[%s6282_s6 + $0x10c] sm:$0xff] }
 0x40a   : > { %9865 = vst [vmem:[#allocation35_spill] sm:$0xff] %v8612_v19  ;;  %3243 = vst.msk [vmem:[#allocation2 + $0xf8] sm:$0xff] %vm176_vm0, %v8612_v19 }
 0x40b   : > { %v2883_v31 = vpop.permute.xlu1 %2882  ;;  %v2881_v13 = vpop.permute.xlu0 %2880  ;;  %9866 = vst [vmem:[#allocation36_spill] sm:$0xff] %v8617_v57  ;;  %3242 = vst.msk [vmem:[#allocation2 + $0xe8] sm:$0xff] %vm176_vm0, %v8617_v57  ;;  %vm3098_vm0 = vcmask 1015744  }
 0x40c   : > { %2918 = vst.msk [vmem:[#allocation2 + $0xd0] sm:$0xff] %vm2904_vm14, %v2883_v31  ;;  %2917 = vst.msk [vmem:[#allocation2 + $0xc0] sm:$0xff] %vm2904_vm14, %v2881_v13  ;;  %v8628_v31 = vld [vmem:[%s6282_s6 + $0xe5] sm:$0xff]  ;;  %v8631_v13 = vld [vmem:[%s6282_s6 + $0xdd] sm:$0xff] }
 0x40d   : > { %3290 = vrot.lane.b32.xlu1 %v5615_v62, %s6155_s7  ;;  %3288 = vrot.lane.b32.xlu0 %v5614_v8, %s6155_s7 }
 0x40f   : > { %v2887_v39 = vpop.permute.xlu1 %2886  ;;  %v2885_v6 = vpop.permute.xlu0 %2884 }
 0x410   : > { %2920 = vst.msk [vmem:[#allocation2 + $0xf0] sm:$0xff] %vm2904_vm14, %v2887_v39  ;;  %2919 = vst.msk [vmem:[#allocation2 + $0xe0] sm:$0xff] %vm2904_vm14, %v2885_v6  ;;  %v5623_v39 = vld [vmem:[%s6282_s6 + $0x115] sm:$0xff]  ;;  %v5622_v6 = vld [vmem:[%s6282_s6 + $0x10d] sm:$0xff]  ;;  %vm3195_vm14 = vcmask 1048544  }
 0x411   : > { %3294 = vrot.lane.b32.xlu1 %v8125_v63, %s6155_s7  ;;  %3292 = vrot.lane.b32.xlu0 %v8128_v45, %s6155_s7 }
 0x413   : > { %v2956_v62 = vpop.permute.xlu1 %2955  ;;  %v2954_v8 = vpop.permute.xlu0 %2953 }
 0x414   : > { %3003 = vst.msk [vmem:[#allocation2 + $0x10] sm:$0xff] %vm3001_vm15, %v2956_v62  ;;  %3002 = vst.msk [vmem:[#allocation2] sm:$0xff] %vm3001_vm15, %v2954_v8 }
 0x415   : > { %3298 = vrot.lane.b32.xlu1 %v8628_v31, %s6155_s7  ;;  %3296 = vrot.lane.b32.xlu0 %v8631_v13, %s6155_s7 }
 0x417   : > { %v2960_v63 = vpop.permute.xlu1 %2959  ;;  %v2958_v45 = vpop.permute.xlu0 %2957 }
 0x418   : > { %3005 = vst.msk [vmem:[#allocation2 + $0x30] sm:$0xff] %vm3001_vm15, %v2960_v63  ;;  %3004 = vst.msk [vmem:[#allocation2 + $0x20] sm:$0xff] %vm3001_vm15, %v2958_v45  ;;  %v5625_v63 = vld [vmem:[%s6282_s6 + $0x6e] sm:$0xff] }
 0x419   : > { %3302 = vrot.lane.b32.xlu1 %v8143_v53, %s6155_s7  ;;  %3300 = vrot.lane.b32.xlu0 %v8146_v29, %s6155_s7  ;;  %v5624_v53 = vld [vmem:[%s6282_s6 + $0x66] sm:$0xff] }
 0x41b   : > { %v2964_v62 = vpop.permute.xlu1 %2963  ;;  %v2962_v8 = vpop.permute.xlu0 %2961 }
 0x41c   : > { %3007 = vst.msk [vmem:[#allocation2 + $0x50] sm:$0xff] %vm3001_vm15, %v2964_v62  ;;  %3006 = vst.msk [vmem:[#allocation2 + $0x40] sm:$0xff] %vm3001_vm15, %v2962_v8  ;;  %v8658_v62 = vld [vmem:[%s6282_s6 + $0x86] sm:$0xff] }
 0x41d   : > { %3306 = vrot.lane.b32.xlu1 %v5623_v39, %s6155_s7  ;;  %3304 = vrot.lane.b32.xlu0 %v5622_v6, %s6155_s7  ;;  %v8661_v39 = vld [vmem:[%s6282_s6 + $0x7e] sm:$0xff]  ;;  %s9871_s7 = smov 64  }
 0x41f   : > { %v2968_v45 = vpop.permute.xlu1 %2967  ;;  %v2966_v29 = vpop.permute.xlu0 %2965 }
 0x420   : > { %3009 = vst.msk [vmem:[#allocation2 + $0x70] sm:$0xff] %vm3001_vm15, %v2968_v45  ;;  %3008 = vst.msk [vmem:[#allocation2 + $0x60] sm:$0xff] %vm3001_vm15, %v2966_v29 }
 0x421   : > { %3374 = vrot.lane.b32.xlu1 %v5625_v63, %s6156_s8  ;;  %3372 = vrot.lane.b32.xlu0 %v5624_v53, %s6156_s8  ;;  %v5629_v63 = vld [vmem:[%s6282_s6 + $0x9e] sm:$0xff]  ;;  %v8671_v53 = vld [vmem:[%s6282_s6 + $0x96] sm:$0xff] }
 0x423   : > { %v2972_v6 = vpop.permute.xlu1 %2971  ;;  %v2970_v8 = vpop.permute.xlu0 %2969 }
 0x424   : > { %3011 = vst.msk [vmem:[#allocation2 + $0x90] sm:$0xff] %vm3001_vm15, %v2972_v6  ;;  %3010 = vst.msk [vmem:[#allocation2 + $0x80] sm:$0xff] %vm3001_vm15, %v2970_v8  ;;  %v5631_v6 = vld [vmem:[%s6282_s6 + $0xb6] sm:$0xff]  ;;  %v5630_v8 = vld [vmem:[%s6282_s6 + $0xae] sm:$0xff] }
 0x425   : > { %3378 = vrot.lane.b32.xlu1 %v8658_v62, %s6156_s8  ;;  %3376 = vrot.lane.b32.xlu0 %v8661_v39, %s6156_s8 }
 0x427   : > { %v2976_v45 = vpop.permute.xlu1 %2975  ;;  %v2974_v29 = vpop.permute.xlu0 %2973 }
 0x428   : > { %3013 = vst.msk [vmem:[#allocation2 + $0xb0] sm:$0xff] %vm3001_vm15, %v2976_v45  ;;  %3012 = vst.msk [vmem:[#allocation2 + $0xa0] sm:$0xff] %vm3001_vm15, %v2974_v29 }
 0x429   : > { %3382 = vrot.lane.b32.xlu1 %v5629_v63, %s6156_s8  ;;  %3380 = vrot.lane.b32.xlu0 %v8671_v53, %s6156_s8 }
 0x42b   : > { %v2980_v19 = vpop.permute.xlu1 %2979  ;;  %v2978_v57 = vpop.permute.xlu0 %2977 }
 0x42c   : > { %3015 = vst.msk [vmem:[#allocation2 + $0xd0] sm:$0xff] %vm3001_vm15, %v2980_v19  ;;  %3014 = vst.msk [vmem:[#allocation2 + $0xc0] sm:$0xff] %vm3001_vm15, %v2978_v57  ;;  %v8691_v19 = vld [vmem:[%s6282_s6 + $0xe6] sm:$0xff]  ;;  %v8694_v57 = vld [vmem:[%s6282_s6 + $0xde] sm:$0xff] }
 0x42d   : > { %3386 = vrot.lane.b32.xlu1 %v5631_v6, %s6156_s8  ;;  %3384 = vrot.lane.b32.xlu0 %v5630_v8, %s6156_s8  ;;  %v5639_v8 = vld [vmem:[%s6282_s6 + $0x116] sm:$0xff] }
 0x42f   : > { %v2984_v45 = vpop.permute.xlu1 %2983  ;;  %v2982_v29 = vpop.permute.xlu0 %2981 }
 0x430   : > { %3017 = vst.msk [vmem:[#allocation2 + $0xf0] sm:$0xff] %vm3001_vm15, %v2984_v45  ;;  %3016 = vst.msk [vmem:[#allocation2 + $0xe0] sm:$0xff] %vm3001_vm15, %v2982_v29  ;;  %v5638_v45 = vld [vmem:[%s6282_s6 + $0x10e] sm:$0xff] }
 0x431   : > { %3390 = vrot.lane.b32.xlu1 %v8185_v61, %s6156_s8  ;;  %3388 = vrot.lane.b32.xlu0 %v8188_v36, %s6156_s8 }
 0x433   : > { %v3053_v63 = vpop.permute.xlu1 %3052  ;;  %v3051_v6 = vpop.permute.xlu0 %3050 }
 0x434   : > { %3100 = vst.msk [vmem:[#allocation2 + $0x10] sm:$0xff] %vm3098_vm0, %v3053_v63  ;;  %3099 = vst.msk [vmem:[#allocation2] sm:$0xff] %vm3098_vm0, %v3051_v6 }
 0x435   : > { %3394 = vrot.lane.b32.xlu1 %v8691_v19, %s6156_s8  ;;  %3392 = vrot.lane.b32.xlu0 %v8694_v57, %s6156_s8 }
 0x437   : > { %v3057_v61 = vpop.permute.xlu1 %3056  ;;  %v3055_v36 = vpop.permute.xlu0 %3054 }
 0x438   : > { %3102 = vst.msk [vmem:[#allocation2 + $0x30] sm:$0xff] %vm3098_vm0, %v3057_v61  ;;  %3101 = vst.msk [vmem:[#allocation2 + $0x20] sm:$0xff] %vm3098_vm0, %v3055_v36 }
 0x439   : > { %3398 = vrot.lane.b32.xlu1 %v8203_v17, %s6156_s8  ;;  %3396 = vrot.lane.b32.xlu0 %v8206_v48, %s6156_s8 }
 0x43b   : > { %v3061_v29 = vpop.permute.xlu1 %3060  ;;  %v3059_v63 = vpop.permute.xlu0 %3058 }
 0x43c   : > { %3104 = vst.msk [vmem:[#allocation2 + $0x50] sm:$0xff] %vm3098_vm0, %v3061_v29  ;;  %3103 = vst.msk [vmem:[#allocation2 + $0x40] sm:$0xff] %vm3098_vm0, %v3059_v63 }
 0x43d   : > { %3402 = vrot.lane.b32.xlu1 %v5639_v8, %s6156_s8  ;;  %3400 = vrot.lane.b32.xlu0 %v5638_v45, %s6156_s8 }
 0x43f   : > { %v3065_v6 = vpop.permute.xlu1 %3064  ;;  %v3063_v61 = vpop.permute.xlu0 %3062 }
 0x440   : > { %3106 = vst.msk [vmem:[#allocation2 + $0x70] sm:$0xff] %vm3098_vm0, %v3065_v6  ;;  %3105 = vst.msk [vmem:[#allocation2 + $0x60] sm:$0xff] %vm3098_vm0, %v3063_v61  ;;  %v5657_v61 = vld [vmem:[%s6282_s6 + $0x128] sm:$0xff] }
 0x441   : > { %3473 = vrot.lane.b32.xlu1 %v8221_v14, %s6157_s17  ;;  %3471 = vrot.lane.b32.xlu0 %v8224_v23, %s6157_s17  ;;  %v5649_v14 = vld [vmem:[%s6282_s6 + $0xc8] sm:$0xff]  ;;  %v5648_v23 = vld [vmem:[%s6282_s6 + $0xc0] sm:$0xff] }
 0x443   : > { %v3069_v17 = vpop.permute.xlu1 %3068  ;;  %v3067_v48 = vpop.permute.xlu0 %3066 }
 0x444   : > { %3108 = vst.msk [vmem:[#allocation2 + $0x90] sm:$0xff] %vm3098_vm0, %v3069_v17  ;;  %3107 = vst.msk [vmem:[#allocation2 + $0x80] sm:$0xff] %vm3098_vm0, %v3067_v48  ;;  %v5656_v17 = vld [vmem:[%s6282_s6 + $0x120] sm:$0xff] }
 0x445   : > { %3477 = vrot.lane.b32.xlu1 %v8233_v46, %s6157_s17  ;;  %3475 = vrot.lane.b32.xlu0 %v8236_v28, %s6157_s17 }
 0x447   : > { %v3073_v36 = vpop.permute.xlu1 %3072  ;;  %v3071_v8 = vpop.permute.xlu0 %3070 }
 0x448   : > { %3110 = vst.msk [vmem:[#allocation2 + $0xb0] sm:$0xff] %vm3098_vm0, %v3073_v36  ;;  %3109 = vst.msk [vmem:[#allocation2 + $0xa0] sm:$0xff] %vm3098_vm0, %v3071_v8 }
 0x449   : > { %3481 = vrot.lane.b32.xlu1 %v8245_v10, %s6157_s17  ;;  %3479 = vrot.lane.b32.xlu0 %v8248_v11, %s6157_s17  ;;  %v8745_v10 = vld [vmem:[%s6282_s6 + $0xf8] sm:$0xff]  ;;  %v8748_v11 = vld [vmem:[%s6282_s6 + $0xf0] sm:$0xff] }
 0x44b   : > { %v3077_v46 = vpop.permute.xlu1 %3076  ;;  %v3075_v45 = vpop.permute.xlu0 %3074 }
 0x44c   : > { %3112 = vst.msk [vmem:[#allocation2 + $0xd0] sm:$0xff] %vm3098_vm0, %v3077_v46  ;;  %3111 = vst.msk [vmem:[#allocation2 + $0xc0] sm:$0xff] %vm3098_vm0, %v3075_v45 }
 0x44d   : > { %3485 = vrot.lane.b32.xlu1 %v5649_v14, %s6157_s17  ;;  %3483 = vrot.lane.b32.xlu0 %v5648_v23, %s6157_s17 }
 0x44f   : > { %v3081_v28 = vpop.permute.xlu1 %3080  ;;  %v3079_v29 = vpop.permute.xlu0 %3078 }
 0x450   : > { %3114 = vst.msk [vmem:[#allocation2 + $0xf0] sm:$0xff] %vm3098_vm0, %v3081_v28  ;;  %3113 = vst.msk [vmem:[#allocation2 + $0xe0] sm:$0xff] %vm3098_vm0, %v3079_v29  ;;  %vm4843_vm0 = vcmask 556032  }
 0x451   : > { %3489 = vrot.lane.b32.xlu1 %v8263_v4, %s6157_s17  ;;  %3487 = vrot.lane.b32.xlu0 %v8266_v58, %s6157_s17 }
 0x453   : > { %v3150_v63 = vpop.permute.xlu1 %3149  ;;  %v3148_v6 = vpop.permute.xlu0 %3147 }
 0x454   : > { %3197 = vst.msk [vmem:[#allocation2 + $0x10] sm:$0xff] %vm3195_vm14, %v3150_v63  ;;  %3196 = vst.msk [vmem:[#allocation2] sm:$0xff] %vm3195_vm14, %v3148_v6 }
 0x455   : > { %3493 = vrot.lane.b32.xlu1 %v8745_v10, %s6157_s17  ;;  %3491 = vrot.lane.b32.xlu0 %v8748_v11, %s6157_s17 }
 0x457   : > { %v3154_v4 = vpop.permute.xlu1 %3153  ;;  %v3152_v58 = vpop.permute.xlu0 %3151 }
 0x458   : > { %3199 = vst.msk [vmem:[#allocation2 + $0x30] sm:$0xff] %vm3195_vm14, %v3154_v4  ;;  %3198 = vst.msk [vmem:[#allocation2 + $0x20] sm:$0xff] %vm3195_vm14, %v3152_v58  ;;  %v5672_v4 = vld [vmem:[%s6282_s6 + $0x121] sm:$0xff] }
 0x459   : > { %3497 = vrot.lane.b32.xlu1 %v8281_v59, %s6157_s17  ;;  %3495 = vrot.lane.b32.xlu0 %v8284_v16, %s6157_s17 }
 0x45b   : > { %v3158_v48 = vpop.permute.xlu1 %3157  ;;  %v3156_v36 = vpop.permute.xlu0 %3155 }
 0x45c   : > { %3201 = vst.msk [vmem:[#allocation2 + $0x50] sm:$0xff] %vm3195_vm14, %v3158_v48  ;;  %3200 = vst.msk [vmem:[#allocation2 + $0x40] sm:$0xff] %vm3195_vm14, %v3156_v36 }
 0x45d   : > { %3501 = vrot.lane.b32.xlu1 %v5657_v61, %s6157_s17  ;;  %3499 = vrot.lane.b32.xlu0 %v5656_v17, %s6157_s17 }
 0x45f   : > { %v3162_v8 = vpop.permute.xlu1 %3161  ;;  %v3160_v14 = vpop.permute.xlu0 %3159 }
 0x460   : > { %3203 = vst.msk [vmem:[#allocation2 + $0x70] sm:$0xff] %vm3195_vm14, %v3162_v8  ;;  %3202 = vst.msk [vmem:[#allocation2 + $0x60] sm:$0xff] %vm3195_vm14, %v3160_v14 }
 0x461   : > { %3569 = vrot.lane.b32.xlu1 %v8299_v24, %s6158_s18  ;;  %3567 = vrot.lane.b32.xlu0 %v8302_v50, %s6158_s18  ;;  %v5665_v24 = vld [vmem:[%s6282_s6 + $0xc9] sm:$0xff]  ;;  %v5664_v50 = vld [vmem:[%s6282_s6 + $0xc1] sm:$0xff] }
 0x463   : > { %v3166_v59 = vpop.permute.xlu1 %3165  ;;  %v3164_v16 = vpop.permute.xlu0 %3163 }
 0x464   : > { %3205 = vst.msk [vmem:[#allocation2 + $0x90] sm:$0xff] %vm3195_vm14, %v3166_v59  ;;  %3204 = vst.msk [vmem:[#allocation2 + $0x80] sm:$0xff] %vm3195_vm14, %v3164_v16 }
 0x465   : > { %3573 = vrot.lane.b32.xlu1 %v8311_v15, %s6158_s18  ;;  %3571 = vrot.lane.b32.xlu0 %v8314_v21, %s6158_s18 }
 0x467   : > { %v3170_v23 = vpop.permute.xlu1 %3169  ;;  %v3168_v46 = vpop.permute.xlu0 %3167 }
 0x468   : > { %3207 = vst.msk [vmem:[#allocation2 + $0xb0] sm:$0xff] %vm3195_vm14, %v3170_v23  ;;  %3206 = vst.msk [vmem:[#allocation2 + $0xa0] sm:$0xff] %vm3195_vm14, %v3168_v46 }
 0x469   : > { %3577 = vrot.lane.b32.xlu1 %v8323_v2, %s6158_s18  ;;  %3575 = vrot.lane.b32.xlu0 %v8326_v9, %s6158_s18  ;;  %v8799_v2 = vld [vmem:[%s6282_s6 + $0xf9] sm:$0xff]  ;;  %v8802_v9 = vld [vmem:[%s6282_s6 + $0xf1] sm:$0xff] }
 0x46b   : > { %v3174_v15 = vpop.permute.xlu1 %3173  ;;  %v3172_v45 = vpop.permute.xlu0 %3171 }
 0x46c   : > { %3209 = vst.msk [vmem:[#allocation2 + $0xd0] sm:$0xff] %vm3195_vm14, %v3174_v15  ;;  %3208 = vst.msk [vmem:[#allocation2 + $0xc0] sm:$0xff] %vm3195_vm14, %v3172_v45 }
 0x46d   : > { %3581 = vrot.lane.b32.xlu1 %v5665_v24, %s6158_s18  ;;  %3579 = vrot.lane.b32.xlu0 %v5664_v50, %s6158_s18  ;;  %v5688_v24 = vld [vmem:[%s6282_s6 + $0x122] sm:$0xff] }
 0x46f   : > { %v3178_v21 = vpop.permute.xlu1 %3177  ;;  %v3176_v28 = vpop.permute.xlu0 %3175 }
 0x470   : > { %3211 = vst.msk [vmem:[#allocation2 + $0xf0] sm:$0xff] %vm3195_vm14, %v3178_v21  ;;  %3210 = vst.msk [vmem:[#allocation2 + $0xe0] sm:$0xff] %vm3195_vm14, %v3176_v28 }
 0x471   : > { %3585 = vrot.lane.b32.xlu1 %v8341_v44, %s6158_s18  ;;  %3583 = vrot.lane.b32.xlu0 %v8344_v20, %s6158_s18  ;;  %v5673_v20 = vld [vmem:[%s6282_s6 + $0x129] sm:$0xff] }
 0x473   : > { %v3279_v29 = vpop.permute.xlu1 %3278  ;;  %v3277_v63 = vpop.permute.xlu0 %3276 }
 0x474   : > { %3325 = vst.msk [vmem:[#allocation2 + $0x18] sm:$0xff] %vm273_vm1, %v3279_v29  ;;  %3324 = vst.msk [vmem:[#allocation2 + $0x8] sm:$0xff] %vm273_vm1, %v3277_v63 }
 0x475   : > { %3589 = vrot.lane.b32.xlu1 %v8799_v2, %s6158_s18  ;;  %3587 = vrot.lane.b32.xlu0 %v8802_v9, %s6158_s18 }
 0x477   : > { %v3283_v44 = vpop.permute.xlu1 %3282  ;;  %v3281_v6 = vpop.permute.xlu0 %3280 }
 0x478   : > { %3327 = vst.msk [vmem:[#allocation2 + $0x38] sm:$0xff] %vm273_vm1, %v3283_v44  ;;  %3326 = vst.msk [vmem:[#allocation2 + $0x28] sm:$0xff] %vm273_vm1, %v3281_v6 }
 0x479   : > { %3593 = vrot.lane.b32.xlu1 %v8359_v52, %s6158_s18  ;;  %3591 = vrot.lane.b32.xlu0 %v8362_v33, %s6158_s18 }
 0x47b   : > { %v3287_v58 = vpop.permute.xlu1 %3286  ;;  %v3285_v61 = vpop.permute.xlu0 %3284 }
 0x47c   : > { %3329 = vst.msk [vmem:[#allocation2 + $0x58] sm:$0xff] %vm273_vm1, %v3287_v58  ;;  %3328 = vst.msk [vmem:[#allocation2 + $0x48] sm:$0xff] %vm273_vm1, %v3285_v61  ;;  %v8926_v58 = vld [vmem:[%s6282_s6 + $0x123] sm:$0xff] }
 0x47d   : > { %3597 = vrot.lane.b32.xlu1 %v5673_v20, %s6158_s18  ;;  %3595 = vrot.lane.b32.xlu0 %v5672_v4, %s6158_s18  ;;  %s9870_s18 = smov 60  }
 0x47f   : > { %v3291_v17 = vpop.permute.xlu1 %3290  ;;  %v3289_v48 = vpop.permute.xlu0 %3288 }
 0x480   : > { %3331 = vst.msk [vmem:[#allocation2 + $0x78] sm:$0xff] %vm273_vm1, %v3291_v17  ;;  %3330 = vst.msk [vmem:[#allocation2 + $0x68] sm:$0xff] %vm273_vm1, %v3289_v48 }
 0x481   : > { %3665 = vrot.lane.b32.xlu1 %v8377_v5, %s6159_s21  ;;  %3663 = vrot.lane.b32.xlu0 %v8380_v22, %s6159_s21  ;;  %v5681_v5 = vld [vmem:[%s6282_s6 + $0xca] sm:$0xff]  ;;  %v5680_v22 = vld [vmem:[%s6282_s6 + $0xc2] sm:$0xff] }
 0x483   : > { %v3295_v52 = vpop.permute.xlu1 %3294  ;;  %v3293_v33 = vpop.permute.xlu0 %3292 }
 0x484   : > { %3333 = vst.msk [vmem:[#allocation2 + $0x98] sm:$0xff] %vm273_vm1, %v3295_v52  ;;  %3332 = vst.msk [vmem:[#allocation2 + $0x88] sm:$0xff] %vm273_vm1, %v3293_v33 }
 0x485   : > { %3669 = vrot.lane.b32.xlu1 %v8389_v40, %s6159_s21  ;;  %3667 = vrot.lane.b32.xlu0 %v8392_v41, %s6159_s21 }
 0x487   : > { %v3299_v36 = vpop.permute.xlu1 %3298  ;;  %v3297_v8 = vpop.permute.xlu0 %3296 }
 0x488   : > { %3335 = vst.msk [vmem:[#allocation2 + $0xb8] sm:$0xff] %vm273_vm1, %v3299_v36  ;;  %3334 = vst.msk [vmem:[#allocation2 + $0xa8] sm:$0xff] %vm273_vm1, %v3297_v8 }
 0x489   : > { %3673 = vrot.lane.b32.xlu1 %v8401_v7, %s6159_s21  ;;  %3671 = vrot.lane.b32.xlu0 %v8404_v49, %s6159_s21  ;;  %v8853_v7 = vld [vmem:[%s6282_s6 + $0xfa] sm:$0xff]  ;;  %v8856_v49 = vld [vmem:[%s6282_s6 + $0xf2] sm:$0xff] }
 0x48b   : > { %v3303_v40 = vpop.permute.xlu1 %3302  ;;  %v3301_v14 = vpop.permute.xlu0 %3300 }
 0x48c   : > { %3337 = vst.msk [vmem:[#allocation2 + $0xd8] sm:$0xff] %vm273_vm1, %v3303_v40  ;;  %3336 = vst.msk [vmem:[#allocation2 + $0xc8] sm:$0xff] %vm273_vm1, %v3301_v14  ;;  %v4821_v40 = vld [vmem:[%s9645_s1 + $0x18] sm:$0xff] }
 0x48d   : > { %3677 = vrot.lane.b32.xlu1 %v5681_v5, %s6159_s21  ;;  %3675 = vrot.lane.b32.xlu0 %v5680_v22, %s6159_s21  ;;  %v5772_v14 = vld [vmem:[%s6282_s6 + $0x91] sm:$0xff] }
 0x48f   : > { %v3307_v41 = vpop.permute.xlu1 %3306  ;;  %v3305_v59 = vpop.permute.xlu0 %3304 }
 0x490   : > { %3339 = vst.msk [vmem:[#allocation2 + $0xf8] sm:$0xff] %vm273_vm1, %v3307_v41  ;;  %3338 = vst.msk [vmem:[#allocation2 + $0xe8] sm:$0xff] %vm273_vm1, %v3305_v59  ;;  %vm4892_vm1 = vcmask 1043456  }
 0x491   : > { %3681 = vrot.lane.b32.xlu1 %v8419_v42, %s6159_s21  ;;  %3679 = vrot.lane.b32.xlu0 %v8422_v43, %s6159_s21  ;;  %v5689_v43 = vld [vmem:[%s6282_s6 + $0x12a] sm:$0xff] }
 0x493   : > { %v3375_v16 = vpop.permute.xlu1 %3374  ;;  %v3373_v23 = vpop.permute.xlu0 %3372 }
 0x494   : > { %3421 = vst.msk [vmem:[#allocation2 + $0x18] sm:$0xff] %vm370_vm2, %v3375_v16  ;;  %3420 = vst.msk [vmem:[#allocation2 + $0x8] sm:$0xff] %vm370_vm2, %v3373_v23 }
 0x495   : > { %3685 = vrot.lane.b32.xlu1 %v8853_v7, %s6159_s21  ;;  %3683 = vrot.lane.b32.xlu0 %v8856_v49, %s6159_s21 }
 0x497   : > { %v3379_v42 = vpop.permute.xlu1 %3378  ;;  %v3377_v46 = vpop.permute.xlu0 %3376 }
 0x498   : > { %3423 = vst.msk [vmem:[#allocation2 + $0x38] sm:$0xff] %vm370_vm2, %v3379_v42  ;;  %3422 = vst.msk [vmem:[#allocation2 + $0x28] sm:$0xff] %vm370_vm2, %v3377_v46 }
 0x499   : > { %3689 = vrot.lane.b32.xlu1 %v8437_v12, %s6159_s21  ;;  %3687 = vrot.lane.b32.xlu0 %v8440_v3, %s6159_s21 }
 0x49b   : > { %v3383_v50 = vpop.permute.xlu1 %3382  ;;  %v3381_v15 = vpop.permute.xlu0 %3380 }
 0x49c   : > { %3425 = vst.msk [vmem:[#allocation2 + $0x58] sm:$0xff] %vm370_vm2, %v3383_v50  ;;  %3424 = vst.msk [vmem:[#allocation2 + $0x48] sm:$0xff] %vm370_vm2, %v3381_v15 }
 0x49d   : > { %3693 = vrot.lane.b32.xlu1 %v5689_v43, %s6159_s21  ;;  %3691 = vrot.lane.b32.xlu0 %v5688_v24, %s6159_s21  ;;  %v4825_v43 = vld [vmem:[%s9645_s1 + $0x38] sm:$0xff]  ;;  %s9867_s21 = smov 52  }
 0x49e   : > { %v5788_v24 = vld [vmem:[%s6282_s6 + $0x92] sm:$0xff] }
 0x49f   : > { %v3387_v45 = vpop.permute.xlu1 %3386  ;;  %v3385_v21 = vpop.permute.xlu0 %3384 }
 0x4a0   : > { %3427 = vst.msk [vmem:[#allocation2 + $0x78] sm:$0xff] %vm370_vm2, %v3387_v45  ;;  %3426 = vst.msk [vmem:[#allocation2 + $0x68] sm:$0xff] %vm370_vm2, %v3385_v21 }
 0x4a1   : > { %3761 = vrot.lane.b32.xlu1 %v8455_v54, %s6160_s24  ;;  %3759 = vrot.lane.b32.xlu0 %v8458_v55, %s6160_s24  ;;  %v5697_v54 = vld [vmem:[%s6282_s6 + $0xcb] sm:$0xff]  ;;  %v5696_v55 = vld [vmem:[%s6282_s6 + $0xc3] sm:$0xff] }
 0x4a3   : > { %v3391_v12 = vpop.permute.xlu1 %3390  ;;  %v3389_v3 = vpop.permute.xlu0 %3388 }
 0x4a4   : > { %3429 = vst.msk [vmem:[#allocation2 + $0x98] sm:$0xff] %vm370_vm2, %v3391_v12  ;;  %3428 = vst.msk [vmem:[#allocation2 + $0x88] sm:$0xff] %vm370_vm2, %v3389_v3 }
 0x4a5   : > { %3765 = vrot.lane.b32.xlu1 %v8467_v60, %s6160_s24  ;;  %3763 = vrot.lane.b32.xlu0 %v8470_v30, %s6160_s24 }
 0x4a7   : > { %v3395_v28 = vpop.permute.xlu1 %3394  ;;  %v3393_v29 = vpop.permute.xlu0 %3392 }
 0x4a8   : > { %3431 = vst.msk [vmem:[#allocation2 + $0xb8] sm:$0xff] %vm370_vm2, %v3395_v28  ;;  %3430 = vst.msk [vmem:[#allocation2 + $0xa8] sm:$0xff] %vm370_vm2, %v3393_v29  ;;  %v4829_v28 = vld [vmem:[%s9645_s1 + $0x58] sm:$0xff] }
 0x4a9   : > { %3769 = vrot.lane.b32.xlu1 %v8479_v25, %s6160_s24  ;;  %3767 = vrot.lane.b32.xlu0 %v8482_v51, %s6160_s24  ;;  %v8907_v25 = vld [vmem:[%s6282_s6 + $0xfb] sm:$0xff]  ;;  %v8910_v51 = vld [vmem:[%s6282_s6 + $0xf3] sm:$0xff] }
 0x4aa   : > { %v5804_v29 = vld [vmem:[%s6282_s6 + $0x93] sm:$0xff] }
 0x4ab   : > { %v3399_v60 = vpop.permute.xlu1 %3398  ;;  %v3397_v63 = vpop.permute.xlu0 %3396 }
 0x4ac   : > { %3433 = vst.msk [vmem:[#allocation2 + $0xd8] sm:$0xff] %vm370_vm2, %v3399_v60  ;;  %3432 = vst.msk [vmem:[#allocation2 + $0xc8] sm:$0xff] %vm370_vm2, %v3397_v63  ;;  %v4831_v60 = vld [vmem:[%s9645_s1 + $0x68] sm:$0xff]  ;;  %v5757_v63 = vld [vmem:[%s6282_s6 + $0x98] sm:$0xff] }
 0x4ad   : > { %3773 = vrot.lane.b32.xlu1 %v5697_v54, %s6160_s24  ;;  %3771 = vrot.lane.b32.xlu0 %v5696_v55, %s6160_s24 }
 0x4af   : > { %v3403_v30 = vpop.permute.xlu1 %3402  ;;  %v3401_v44 = vpop.permute.xlu0 %3400 }
 0x4b0   : > { %3435 = vst.msk [vmem:[#allocation2 + $0xf8] sm:$0xff] %vm370_vm2, %v3403_v30  ;;  %3434 = vst.msk [vmem:[#allocation2 + $0xe8] sm:$0xff] %vm370_vm2, %v3401_v44  ;;  %vm9875_vm2 = vcmask 490944  }
 0x4b1   : > { %3777 = vrot.lane.b32.xlu1 %v8498_v27, %s6160_s24  ;;  %3775 = vrot.lane.b32.xlu0 %v8501_v38, %s6160_s24  ;;  %v5705_v38 = vld [vmem:[%s6282_s6 + $0x12b] sm:$0xff]  ;;  %vm9882_vm14 = vmmov %vm9875_vm2 }
 0x4b3   : > { %v3474_v6 = vpop.permute.xlu1 %3473  ;;  %v3472_v20 = vpop.permute.xlu0 %3471 }
 0x4b4   : > { %3520 = vst.msk [vmem:[#allocation2 + $0x18] sm:$0xff] %vm467_vm3, %v3474_v6  ;;  %3519 = vst.msk [vmem:[#allocation2 + $0x8] sm:$0xff] %vm467_vm3, %v3472_v20  ;;  %v4833_v20 = vld [vmem:[%s9645_s1 + $0x78] sm:$0xff] }
 0x4b5   : > { %3781 = vrot.lane.b32.xlu1 %v8907_v25, %s6160_s24  ;;  %3779 = vrot.lane.b32.xlu0 %v8910_v51, %s6160_s24 }
 0x4b7   : > { %v3478_v27 = vpop.permute.xlu1 %3477  ;;  %v3476_v4 = vpop.permute.xlu0 %3475 }
 0x4b8   : > { %3522 = vst.msk [vmem:[#allocation2 + $0x38] sm:$0xff] %vm467_vm3, %v3478_v27  ;;  %3521 = vst.msk [vmem:[#allocation2 + $0x28] sm:$0xff] %vm467_vm3, %v3476_v4 }
 0x4b9   : > { %3785 = vrot.lane.b32.xlu1 %v8532_v32, %s6160_s24  ;;  %3783 = vrot.lane.b32.xlu0 %v8535_v47, %s6160_s24 }
 0x4bb   : > { %v3482_v61 = vpop.permute.xlu1 %3481  ;;  %v3480_v17 = vpop.permute.xlu0 %3479 }
 0x4bc   : > { %3524 = vst.msk [vmem:[#allocation2 + $0x58] sm:$0xff] %vm467_vm3, %v3482_v61  ;;  %3523 = vst.msk [vmem:[#allocation2 + $0x48] sm:$0xff] %vm467_vm3, %v3480_v17  ;;  %v4834_v61 = vld [vmem:[%s9645_s1 + $0x80] sm:$0xff]  ;;  %v4835_v17 = vld [vmem:[%s9645_s1 + $0x88] sm:$0xff] }
 0x4bd   : > { %3789 = vrot.lane.b32.xlu1 %v5705_v38, %s6160_s24  ;;  %3787 = vrot.lane.b32.xlu0 %v8926_v58, %s6160_s24  ;;  %s6188_s24 = smov [#allocation3]  }
 0x4be   : > { %s6063_s5 = sshll.u32 %s6188_s24, 4  ;;  %s6064_s5 = int_to_ptr.vmem [resolvable:$false] %s6063_s5 }
 0x4bf   : > { %v3486_v48 = vpop.permute.xlu1 %3485  ;;  %v3484_v52 = vpop.permute.xlu0 %3483 }
 0x4c0   : > { %3526 = vst.msk [vmem:[#allocation2 + $0x78] sm:$0xff] %vm467_vm3, %v3486_v48  ;;  %3525 = vst.msk [vmem:[#allocation2 + $0x68] sm:$0xff] %vm467_vm3, %v3484_v52  ;;  %v5916_v48 = vpack.c.bf16 %v4835_v17, %v4834_v61 }
 0x4c1   : > { %3857 = vrot.lane.b32.xlu1 %v8513_v34, %s6161_s25  ;;  %3855 = vrot.lane.b32.xlu0 %v8518_v35, %s6161_s25  ;;  %v5756_v34 = vld [vmem:[%s6282_s6 + $0x90] sm:$0xff] }
 0x4c3   : > { %v3490_v32 = vpop.permute.xlu1 %3489  ;;  %v3488_v47 = vpop.permute.xlu0 %3487 }
 0x4c4   : > { %3528 = vst.msk [vmem:[#allocation2 + $0x98] sm:$0xff] %vm467_vm3, %v3490_v32  ;;  %3527 = vst.msk [vmem:[#allocation2 + $0x88] sm:$0xff] %vm467_vm3, %v3488_v47  ;;  %v4836_v47 = vld [vmem:[%s9645_s1 + $0x90] sm:$0xff] }
 0x4c5   : > { %3951 = vrot.lane.b32.xlu1 %v8568_v1, %s6162_s26  ;;  %3871 = vrot.lane.b32.xlu0 %v8587_v26, %s6161_s25  ;;  %v4818_v1 = vld [vmem:[%s9645_s1] sm:$0xff]  ;;  %v4819_v26 = vld [vmem:[%s9645_s1 + $0x8] sm:$0xff] }
 0x4c7   : > { %v3494_v33 = vpop.permute.xlu1 %3493  ;;  %v3492_v36 = vpop.permute.xlu0 %3491 }
 0x4c8   : > { %3530 = vst.msk [vmem:[#allocation2 + $0xb8] sm:$0xff] %vm467_vm3, %v3494_v33  ;;  %3529 = vst.msk [vmem:[#allocation2 + $0xa8] sm:$0xff] %vm467_vm3, %v3492_v36  ;;  %v4837_v33 = vld [vmem:[%s9645_s1 + $0x98] sm:$0xff] }
 0x4c9   : > { %4047 = vrot.lane.b32.xlu1 %v8661_v39, %s6163_s28  ;;  %3967 = vrot.lane.b32.xlu0 %v8631_v13, %s6162_s26  ;;  %v6186_v13 = vmov 0.0|0.0   ;;  %v5892_v39 = vpack.c.bf16 %v4819_v26, %v4818_v1  ;;  %v5773_v36 = vld [vmem:[%s6282_s6 + $0x99] sm:$0xff]  ;;  %v4839_v1 = vld [vmem:[%s9645_s1 + $0xa8] sm:$0xff] }
 0x4ca   : > { %5891 = vmatprep.subr.bf16.mxu0 %v6186_v13  ;;  %5927 = vmatprep.subr.bf16.mxu1 %v6186_v13  ;;  %v5844_v26 = vld [vmem:[%s6282_s6 + $0xf5] sm:$0xff] }
 0x4cb   : > { %v3498_v35 = vpop.permute.xlu1 %3497  ;;  %v3496_v8 = vpop.permute.xlu0 %3495  ;;  %5893 = vmatpush1.bf16.msra.mxu0 %v5892_v39  ;;  %5940 = vmatpush1.bf16.msra.mxu1 %v5892_v39  ;;  %v5836_v39 = vld [vmem:[%s6282_s6 + $0x95] sm:$0xff] }
 0x4cc   : > { %3532 = vst.msk [vmem:[#allocation2 + $0xd8] sm:$0xff] %vm467_vm3, %v3498_v35  ;;  %3531 = vst.msk [vmem:[#allocation2 + $0xc8] sm:$0xff] %vm467_vm3, %v3496_v8  ;;  %5894 = vmatprep.subr.bf16.mxu0 %v6186_v13  ;;  %5928 = vmatprep.subr.bf16.mxu1 %v6186_v13  ;;  %v4838_v8 = vld [vmem:[%s9645_s1 + $0xa0] sm:$0xff] }
 0x4cd   : > { %4146 = vrot.lane.b32.xlu1 %v5756_v34, %s6164_s29  ;;  %4063 = vrot.lane.b32.xlu0 %v8694_v57, %s6163_s28  ;;  %v4820_v57 = vld [vmem:[%s9645_s1 + $0x10] sm:$0xff]  ;;  %v5919_v34 = vpack.c.bf16 %v4837_v33, %v4836_v47 }
 0x4ce   : > { %v5895_v41 = vpack.c.bf16 %v4821_v40, %v4820_v57  ;;  %v4841_v40 = vld [vmem:[%s9645_s1 + $0xb8] sm:$0xff]  ;;  %v5767_v33 = vld [vmem:[%s6282_s6 + $0x110] sm:$0xff] }
 0x4cf   : > { %v3502_v5 = vpop.permute.xlu1 %3501  ;;  %v3500_v22 = vpop.permute.xlu0 %3499 }
 0x4d0   : > { %3534 = vst.msk [vmem:[#allocation2 + $0xf8] sm:$0xff] %vm467_vm3, %v3502_v5  ;;  %3533 = vst.msk [vmem:[#allocation2 + $0xe8] sm:$0xff] %vm467_vm3, %v3500_v22  ;;  %5896 = vmatpush1.bf16.msra.mxu0 %v5895_v41  ;;  %5941 = vmatpush1.bf16.msra.mxu1 %v5895_v41  ;;  %v5922_v5 = vpack.c.bf16 %v4839_v1, %v4838_v8  ;;  %v9873_v1 = vld [vmem:[#allocation36_spill] sm:$0xff] }
 0x4d1   : > { %3873 = vrot.lane.b32.xlu1 %v8580_v18, %s6161_s25  ;;  %4162 = vrot.lane.b32.xlu0 %v8748_v11, %s6164_s29  ;;  %v4822_v18 = vld [vmem:[%s9645_s1 + $0x20] sm:$0xff]  ;;  %v4823_v11 = vld [vmem:[%s9645_s1 + $0x28] sm:$0xff]  ;;  %vm9876_vm3 = vmmov %vm9875_vm2 }
 0x4d2   : > { %5897 = vmatprep.subr.bf16.mxu0 %v6186_v13  ;;  %5929 = vmatprep.subr.bf16.mxu1 %v6186_v13  ;;  %v5898_v23 = vpack.c.bf16 %v4823_v11, %v4822_v18  ;;  %v6187_v18 = vmov 0.0  }
 0x4d3   : > { %v3570_v59 = vpop.permute.xlu1 %3569  ;;  %v3568_v16 = vpop.permute.xlu0 %3567 }
 0x4d4   : > { %3616 = vst.msk [vmem:[#allocation2 + $0x18] sm:$0xff] %vm564_vm4, %v3570_v59  ;;  %3615 = vst.msk [vmem:[#allocation2 + $0x8] sm:$0xff] %vm564_vm4, %v3568_v16  ;;  %5899 = vmatpush1.bf16.msra.mxu0 %v5898_v23  ;;  %5942 = vmatpush1.bf16.msra.mxu1 %v5898_v23  ;;  %v5789_v16 = vld [vmem:[%s6282_s6 + $0x9a] sm:$0xff] }
 0x4d5   : > { %4258 = vrot.lane.b32.xlu1 %v8802_v9, %s6165_s30  ;;  %4242 = vrot.lane.b32.xlu0 %v5772_v14, %s6165_s30  ;;  %v4824_v9 = vld [vmem:[%s9645_s1 + $0x30] sm:$0xff]  ;;  %v4842_v23 = vld [vmem:[%s9645_s1 + $0xc0] sm:$0xf] }
 0x4d6   : > { %5900 = vmatprep.subr.bf16.mxu0 %v6186_v13  ;;  %5930 = vmatprep.subr.bf16.mxu1 %v6186_v13  ;;  %v5901_v50 = vpack.c.bf16 %v4825_v43, %v4824_v9 }
 0x4d7   : > { %v3574_v42 = vpop.permute.xlu1 %3573  ;;  %v3572_v46 = vpop.permute.xlu0 %3571 }
 0x4d8   : > { %3618 = vst.msk [vmem:[#allocation2 + $0x38] sm:$0xff] %vm564_vm4, %v3574_v42  ;;  %3617 = vst.msk [vmem:[#allocation2 + $0x28] sm:$0xff] %vm564_vm4, %v3572_v46  ;;  %5902 = vmatpush1.bf16.msra.mxu0 %v5901_v50  ;;  %5943 = vmatpush1.bf16.msra.mxu1 %v5901_v50  ;;  %v5860_v42 = vld [vmem:[%s6282_s6 + $0xf6] sm:$0xff] }
 0x4d9   : > { %3969 = vrot.lane.b32.xlu1 %v8628_v31, %s6162_s26  ;;  %3953 = vrot.lane.b32.xlu0 %v8565_v0, %s6162_s26  ;;  %v4826_v0 = vld [vmem:[%s9645_s1 + $0x40] sm:$0xff]  ;;  %v4827_v31 = vld [vmem:[%s9645_s1 + $0x48] sm:$0xff] }
 0x4da   : > { %5903 = vmatprep.subr.bf16.mxu0 %v6186_v13  ;;  %5931 = vmatprep.subr.bf16.mxu1 %v6186_v13  ;;  %v5904_v21 = vpack.c.bf16 %v4827_v31, %v4826_v0  ;;  %v5758_v0 = vld [vmem:[%s6282_s6 + $0xa8] sm:$0xff] }
 0x4db   : > { %v3578_v15 = vpop.permute.xlu1 %3577  ;;  %v3576_v45 = vpop.permute.xlu0 %3575 }
 0x4dc   : > { %3620 = vst.msk [vmem:[#allocation2 + $0x58] sm:$0xff] %vm564_vm4, %v3578_v15  ;;  %3619 = vst.msk [vmem:[#allocation2 + $0x48] sm:$0xff] %vm564_vm4, %v3576_v45  ;;  %5905 = vmatpush1.bf16.msra.mxu0 %v5904_v21  ;;  %5944 = vmatpush1.bf16.msra.mxu1 %v5904_v21  ;;  %v5766_v45 = vld [vmem:[%s6282_s6 + $0x108] sm:$0xff] }
 0x4dd   : > { %4354 = vrot.lane.b32.xlu1 %v8856_v49, %s6166_s3  ;;  %4338 = vrot.lane.b32.xlu0 %v5788_v24, %s6166_s3  ;;  %v4828_v49 = vld [vmem:[%s9645_s1 + $0x50] sm:$0xff] }
 0x4de   : > { %5906 = vmatprep.subr.bf16.mxu0 %v6186_v13  ;;  %5932 = vmatprep.subr.bf16.mxu1 %v6186_v13  ;;  %v5907_v54 = vpack.c.bf16 %v4829_v28, %v4828_v49  ;;  %v5782_v28 = vld [vmem:[%s6282_s6 + $0x109] sm:$0xff] }
 0x4df   : > { %v3582_v12 = vpop.permute.xlu1 %3581  ;;  %v3580_v3 = vpop.permute.xlu0 %3579 }
 0x4e0   : > { %3622 = vst.msk [vmem:[#allocation2 + $0x78] sm:$0xff] %vm564_vm4, %v3582_v12  ;;  %3621 = vst.msk [vmem:[#allocation2 + $0x68] sm:$0xff] %vm564_vm4, %v3580_v3  ;;  %5908 = vmatpush1.bf16.msra.mxu0 %v5907_v54  ;;  %5945 = vmatpush1.bf16.msra.mxu1 %v5907_v54 }
 0x4e1   : > { %4065 = vrot.lane.b32.xlu1 %v8691_v19, %s6163_s28  ;;  %4049 = vrot.lane.b32.xlu0 %v8658_v62, %s6163_s28  ;;  %v4830_v62 = vld [vmem:[%s9645_s1 + $0x60] sm:$0xff] }
 0x4e2   : > { %5909 = vmatprep.subr.bf16.mxu0 %v6186_v13  ;;  %5933 = vmatprep.subr.bf16.mxu1 %v6186_v13  ;;  %v5910_v30 = vpack.c.bf16 %v4831_v60, %v4830_v62  ;;  %v5837_v62 = vld [vmem:[%s6282_s6 + $0x9d] sm:$0xff] }
 0x4e3   : > { %v3586_v55 = vpop.permute.xlu1 %3585  ;;  %v3584_v19 = vpop.permute.xlu0 %3583 }
 0x4e4   : > { %3624 = vst.msk [vmem:[#allocation2 + $0x98] sm:$0xff] %vm564_vm4, %v3586_v55  ;;  %3623 = vst.msk [vmem:[#allocation2 + $0x88] sm:$0xff] %vm564_vm4, %v3584_v19  ;;  %5911 = vmatpush1.bf16.msra.mxu0 %v5910_v30  ;;  %5946 = vmatpush1.bf16.msra.mxu1 %v5910_v30  ;;  %v5845_v19 = vld [vmem:[%s6282_s6 + $0xfd] sm:$0xff] }
 0x4e5   : > { %4450 = vrot.lane.b32.xlu1 %v8910_v51, %s9867_s21  ;;  %4434 = vrot.lane.b32.xlu0 %v5804_v29, %s9867_s21  ;;  %v4832_v51 = vld [vmem:[%s9645_s1 + $0x70] sm:$0xff] }
 0x4e6   : > { %5912 = vmatprep.subr.bf16.mxu0 %v6186_v13  ;;  %5934 = vmatprep.subr.bf16.mxu1 %v6186_v13  ;;  %v5913_v27 = vpack.c.bf16 %v4833_v20, %v4832_v51  ;;  %v5774_v29 = vld [vmem:[%s6282_s6 + $0xa9] sm:$0xff] }
 0x4e7   : > { %v3590_v44 = vpop.permute.xlu1 %3589  ;;  %v3588_v6 = vpop.permute.xlu0 %3587 }
 0x4e8   : > { %3626 = vst.msk [vmem:[#allocation2 + $0xb8] sm:$0xff] %vm564_vm4, %v3590_v44  ;;  %3625 = vst.msk [vmem:[#allocation2 + $0xa8] sm:$0xff] %vm564_vm4, %v3588_v6  ;;  %5914 = vmatpush1.bf16.msra.mxu0 %v5913_v27  ;;  %5947 = vmatpush1.bf16.msra.mxu1 %v5913_v27  ;;  %v5798_v44 = vld [vmem:[%s6282_s6 + $0x10a] sm:$0xff]  ;;  %v5861_v27 = vld [vmem:[%s6282_s6 + $0xfe] sm:$0xff] }
 0x4e9   : > { %4164 = vrot.lane.b32.xlu1 %v8745_v10, %s6164_s29  ;;  %4148 = vrot.lane.b32.xlu0 %v5757_v63, %s6164_s29  ;;  %v9869_v10 = vld [vmem:[#allocation33_spill] sm:$0xff]  ;;  %v5790_v6 = vld [vmem:[%s6282_s6 + $0xaa] sm:$0xff] }
 0x4ea   : > { %5915 = vmatprep.subr.bf16.mxu0 %v6186_v13  ;;  %5935 = vmatprep.subr.bf16.mxu1 %v6186_v13 }
 0x4eb   : > { %v3594_v4 = vpop.permute.xlu1 %3593  ;;  %v3592_v38 = vpop.permute.xlu0 %3591 }
 0x4ec   : > { %3628 = vst.msk [vmem:[#allocation2 + $0xd8] sm:$0xff] %vm564_vm4, %v3594_v4  ;;  %3627 = vst.msk [vmem:[#allocation2 + $0xc8] sm:$0xff] %vm564_vm4, %v3592_v38  ;;  %5917 = vmatpush1.bf16.msra.mxu0 %v5916_v48  ;;  %5948 = vmatpush1.bf16.msra.mxu1 %v5916_v48  ;;  %v5853_v4 = vld [vmem:[%s6282_s6 + $0x9e] sm:$0xff]  ;;  %v5814_v48 = vld [vmem:[%s6282_s6 + $0x10b] sm:$0xff] }
 0x4ed   : > { %4546 = vrot.lane.b32.xlu1 %v8603_v56, %s9868_s4  ;;  %4530 = vrot.lane.b32.xlu0 %v9869_v10, %s9868_s4 }
 0x4ee   : > { %5918 = vmatprep.subr.bf16.mxu0 %v6186_v13  ;;  %5936 = vmatprep.subr.bf16.mxu1 %v6186_v13 }
 0x4ef   : > { %v3598_v52 = vpop.permute.xlu1 %3597  ;;  %v3596_v32 = vpop.permute.xlu0 %3595 }
 0x4f0   : > { %3630 = vst.msk [vmem:[#allocation2 + $0xf8] sm:$0xff] %vm564_vm4, %v3598_v52  ;;  %3629 = vst.msk [vmem:[#allocation2 + $0xe8] sm:$0xff] %vm564_vm4, %v3596_v32  ;;  %5920 = vmatpush1.bf16.msra.mxu0 %v5919_v34  ;;  %5949 = vmatpush1.bf16.msra.mxu1 %v5919_v34  ;;  %v5806_v52 = vld [vmem:[%s6282_s6 + $0xab] sm:$0xff]  ;;  %vm9878_vm4 = vcmask 523744  }
 0x4f1   : > { %3875 = vrot.lane.b32.xlu1 %v8603_v56, %s6161_s25  ;;  %3859 = vrot.lane.b32.xlu0 %v9869_v10, %s6161_s25 }
 0x4f2   : > { %5921 = vmatprep.subr.bf16.mxu0 %v6186_v13  ;;  %5937 = vmatprep.subr.bf16.mxu1 %v6186_v13 }
 0x4f3   : > { %v3666_v56 = vpop.permute.xlu1 %3665  ;;  %v3664_v35 = vpop.permute.xlu0 %3663 }
 0x4f4   : > { %3712 = vst.msk [vmem:[#allocation2 + $0x18] sm:$0xff] %vm661_vm5, %v3666_v56  ;;  %3711 = vst.msk [vmem:[#allocation2 + $0x8] sm:$0xff] %vm661_vm5, %v3664_v35  ;;  %5923 = vmatpush1.bf16.msra.mxu0 %v5922_v5  ;;  %5950 = vmatpush1.bf16.msra.mxu1 %v5922_v5 }
 0x4f5   : > { %4260 = vrot.lane.b32.xlu1 %v8799_v2, %s6165_s30  ;;  %4244 = vrot.lane.b32.xlu0 %v5773_v36, %s6165_s30  ;;  %v4840_v2 = vld [vmem:[%s9645_s1 + $0xb0] sm:$0xff] }
 0x4f6   : > { %5924 = vmatprep.subr.bf16.mxu0 %v6186_v13  ;;  %5938 = vmatprep.subr.bf16.mxu1 %v6186_v13  ;;  %v5925_v14 = vpack.c.bf16 %v4841_v40, %v4840_v2  ;;  %v5759_v36 = vld [vmem:[%s6282_s6 + $0xb0] sm:$0xff] }
 0x4f7   : > { %v3670_v22 = vpop.permute.xlu1 %3669  ;;  %v3668_v57 = vpop.permute.xlu0 %3667 }
 0x4f8   : > { %3714 = vst.msk [vmem:[#allocation2 + $0x38] sm:$0xff] %vm661_vm5, %v3670_v22  ;;  %3713 = vst.msk [vmem:[#allocation2 + $0x28] sm:$0xff] %vm661_vm5, %v3668_v57  ;;  %5926 = vmatpush1.bf16.msra.mxu0 %v5925_v14  ;;  %5951 = vmatpush1.bf16.msra.mxu1 %v5925_v14  ;;  %v5783_v22 = vld [vmem:[%s6282_s6 + $0x111] sm:$0xff] }
 0x4f9   : > { %4642 = vrot.lane.b32.xlu1 %v5844_v26, %s9870_s18  ;;  %4626 = vrot.lane.b32.xlu0 %v5836_v39, %s9870_s18  ;;  %v5775_v57 = vld [vmem:[%s6282_s6 + $0xb1] sm:$0xff] }
 0x4fa   : > { %4944 = vmatprep.subr.mxu0 %v6187_v18  ;;  %5939 = vmatprep.subr.mxu1 %v6187_v18  ;;  %v5846_v14 = vld [vmem:[%s6282_s6 + $0x10d] sm:$0xff] }
 0x4fb   : > { %v3674_v41 = vpop.permute.xlu1 %3673  ;;  %v3672_v59 = vpop.permute.xlu0 %3671 }
 0x4fc   : > { %3716 = vst.msk [vmem:[#allocation2 + $0x58] sm:$0xff] %vm661_vm5, %v3674_v41  ;;  %3715 = vst.msk [vmem:[#allocation2 + $0x48] sm:$0xff] %vm661_vm5, %v3672_v59  ;;  %5868 = vmatpush1.msk.msra.mxu0 %vm4892_vm1, %v4842_v23  ;;  %5952 = vmatpush1.msk.msra.mxu1 %vm4892_vm1, %v4842_v23  ;;  %v5838_v41 = vld [vmem:[%s6282_s6 + $0xad] sm:$0xff] }
 0x4fd   : > { %3971 = vrot.lane.b32.xlu1 %v5844_v26, %s6162_s26  ;;  %3955 = vrot.lane.b32.xlu0 %v5836_v39, %s6162_s26  ;;  %v9874_v26 = vld [vmem:[#allocation34_spill] sm:$0xff]  ;;  %v5791_v23 = vld [vmem:[%s6282_s6 + $0xb2] sm:$0xff]  ;;  %vm9883_vm1 = vmmov %vm9875_vm2 }
 0x4ff   : > { %v3678_v11 = vpop.permute.xlu1 %3677  ;;  %v3676_v13 = vpop.permute.xlu0 %3675 }
 0x500   : > { %3718 = vst.msk [vmem:[#allocation2 + $0x78] sm:$0xff] %vm661_vm5, %v3678_v11  ;;  %3717 = vst.msk [vmem:[#allocation2 + $0x68] sm:$0xff] %vm661_vm5, %v3676_v13  ;;  %v5799_v13 = vld [vmem:[%s6282_s6 + $0x112] sm:$0xff] }
 0x501   : > { %4356 = vrot.lane.b32.xlu1 %v8853_v7, %s6166_s3  ;;  %4340 = vrot.lane.b32.xlu0 %v5789_v16, %s6166_s3  ;;  %v5805_v7 = vld [vmem:[%s6282_s6 + $0x9b] sm:$0xff] }
 0x503   : > { %v3682_v46 = vpop.permute.xlu1 %3681  ;;  %v3680_v9 = vpop.permute.xlu0 %3679 }
 0x504   : > { %3720 = vst.msk [vmem:[#allocation2 + $0x98] sm:$0xff] %vm661_vm5, %v3682_v46  ;;  %3719 = vst.msk [vmem:[#allocation2 + $0x88] sm:$0xff] %vm661_vm5, %v3680_v9  ;;  %v5862_v9 = vld [vmem:[%s6282_s6 + $0x10e] sm:$0xff] }
 0x505   : > { %4738 = vrot.lane.b32.xlu1 %v5860_v42, %s9871_s7  ;;  %4722 = vrot.lane.b32.xlu0 %v8671_v53, %s9871_s7 }
 0x507   : > { %v3686_v43 = vpop.permute.xlu1 %3685  ;;  %v3684_v24 = vpop.permute.xlu0 %3683 }
 0x508   : > { %3722 = vst.msk [vmem:[#allocation2 + $0xb8] sm:$0xff] %vm661_vm5, %v3686_v43  ;;  %3721 = vst.msk [vmem:[#allocation2 + $0xa8] sm:$0xff] %vm661_vm5, %v3684_v24  ;;  %v5854_v43 = vld [vmem:[%s6282_s6 + $0xae] sm:$0xff] }
 0x509   : > { %4067 = vrot.lane.b32.xlu1 %v5860_v42, %s6163_s28  ;;  %4051 = vrot.lane.b32.xlu0 %v8671_v53, %s6163_s28 }
 0x50b   : > { %v3690_v50 = vpop.permute.xlu1 %3689  ;;  %v3688_v15 = vpop.permute.xlu0 %3687 }
 0x50c   : > { %3724 = vst.msk [vmem:[#allocation2 + $0xd8] sm:$0xff] %vm661_vm5, %v3690_v50  ;;  %3723 = vst.msk [vmem:[#allocation2 + $0xc8] sm:$0xff] %vm661_vm5, %v3688_v15 }
 0x50d   : > { %4452 = vrot.lane.b32.xlu1 %v8907_v25, %s9867_s21  ;;  %4436 = vrot.lane.b32.xlu0 %v5805_v7, %s9867_s21  ;;  %v9872_v25 = vld [vmem:[#allocation32_spill] sm:$0xff] }
 0x50f   : > { %v3694_v31 = vpop.permute.xlu1 %3693  ;;  %v3692_v21 = vpop.permute.xlu0 %3691 }
 0x510   : > { %3726 = vst.msk [vmem:[#allocation2 + $0xf8] sm:$0xff] %vm661_vm5, %v3694_v31  ;;  %3725 = vst.msk [vmem:[#allocation2 + $0xe8] sm:$0xff] %vm661_vm5, %v3692_v21 }
 0x511   : > { %4166 = vrot.lane.b32.xlu1 %v5766_v45, %s6164_s29  ;;  %4150 = vrot.lane.b32.xlu0 %v5758_v0, %s6164_s29  ;;  %v5815_v45 = vld [vmem:[%s6282_s6 + $0x113] sm:$0xff]  ;;  %vm9879_vm5 = vmmov %vm9878_vm4 }
 0x512   : > { %v5807_v0 = vld [vmem:[%s6282_s6 + $0xb3] sm:$0xff] }
 0x513   : > { %v3762_v53 = vpop.permute.xlu1 %3761  ;;  %v3760_v12 = vpop.permute.xlu0 %3759 }
 0x514   : > { %3808 = vst.msk [vmem:[#allocation2 + $0x18] sm:$0xff] %vm758_vm6, %v3762_v53  ;;  %3807 = vst.msk [vmem:[#allocation2 + $0x8] sm:$0xff] %vm758_vm6, %v3760_v12  ;;  %v5768_v53 = vld [vmem:[%s6282_s6 + $0x120] sm:$0xff] }
 0x515   : > { %4548 = vrot.lane.b32.xlu1 %v8596_v37, %s9868_s4  ;;  %4532 = vrot.lane.b32.xlu0 %v9872_v25, %s9868_s4  ;;  %v5760_v12 = vld [vmem:[%s6282_s6 + $0xc0] sm:$0xff] }
 0x517   : > { %v3766_v3 = vpop.permute.xlu1 %3765  ;;  %v3764_v49 = vpop.permute.xlu0 %3763 }
 0x518   : > { %3810 = vst.msk [vmem:[#allocation2 + $0x38] sm:$0xff] %vm758_vm6, %v3766_v3  ;;  %3809 = vst.msk [vmem:[#allocation2 + $0x28] sm:$0xff] %vm758_vm6, %v3764_v49  ;;  %v5823_v49 = vld [vmem:[%s6282_s6 + $0xb4] sm:$0xff] }
 0x519   : > { %3877 = vrot.lane.b32.xlu1 %v8596_v37, %s6161_s25  ;;  %3861 = vrot.lane.b32.xlu0 %v9872_v25, %s6161_s25 }
 0x51b   : > { %v3770_v54 = vpop.permute.xlu1 %3769  ;;  %v3768_v55 = vpop.permute.xlu0 %3767 }
 0x51c   : > { %3812 = vst.msk [vmem:[#allocation2 + $0x58] sm:$0xff] %vm758_vm6, %v3770_v54  ;;  %3811 = vst.msk [vmem:[#allocation2 + $0x48] sm:$0xff] %vm758_vm6, %v3768_v55  ;;  %v9877_v54 = vld [vmem:[#allocation35_spill] sm:$0xff] }
 0x51d   : > { %4262 = vrot.lane.b32.xlu1 %v5782_v28, %s6165_s30  ;;  %4246 = vrot.lane.b32.xlu0 %v5774_v29, %s6165_s30 }
 0x51f   : > { %v3774_v37 = vpop.permute.xlu1 %3773  ;;  %v3772_v60 = vpop.permute.xlu0 %3771 }
 0x520   : > { %3814 = vst.msk [vmem:[#allocation2 + $0x78] sm:$0xff] %vm758_vm6, %v3774_v37  ;;  %3813 = vst.msk [vmem:[#allocation2 + $0x68] sm:$0xff] %vm758_vm6, %v3772_v60  ;;  %v5776_v37 = vld [vmem:[%s6282_s6 + $0xc1] sm:$0xff] }
 0x521   : > { %4644 = vrot.lane.b32.xlu1 %v5845_v19, %s9870_s18  ;;  %4628 = vrot.lane.b32.xlu0 %v5837_v62, %s9870_s18 }
 0x523   : > { %v3778_v63 = vpop.permute.xlu1 %3777  ;;  %v3776_v30 = vpop.permute.xlu0 %3775 }
 0x524   : > { %3816 = vst.msk [vmem:[#allocation2 + $0x98] sm:$0xff] %vm758_vm6, %v3778_v63  ;;  %3815 = vst.msk [vmem:[#allocation2 + $0x88] sm:$0xff] %vm758_vm6, %v3776_v30  ;;  %v5847_v30 = vld [vmem:[%s6282_s6 + $0x115] sm:$0xff] }
 0x525   : > { %3973 = vrot.lane.b32.xlu1 %v5845_v19, %s6162_s26  ;;  %3957 = vrot.lane.b32.xlu0 %v5837_v62, %s6162_s26  ;;  %v5784_v62 = vld [vmem:[%s6282_s6 + $0x121] sm:$0xff] }
 0x527   : > { %v3782_v51 = vpop.permute.xlu1 %3781  ;;  %v3780_v20 = vpop.permute.xlu0 %3779 }
 0x528   : > { %3818 = vst.msk [vmem:[#allocation2 + $0xb8] sm:$0xff] %vm758_vm6, %v3782_v51  ;;  %3817 = vst.msk [vmem:[#allocation2 + $0xa8] sm:$0xff] %vm758_vm6, %v3780_v20 }
 0x529   : > { %4358 = vrot.lane.b32.xlu1 %v5798_v44, %s6166_s3  ;;  %4342 = vrot.lane.b32.xlu0 %v5790_v6, %s6166_s3  ;;  %v5839_v44 = vld [vmem:[%s6282_s6 + $0xb5] sm:$0xff] }
 0x52b   : > { %v3786_v38 = vpop.permute.xlu1 %3785  ;;  %v3784_v10 = vpop.permute.xlu0 %3783 }
 0x52c   : > { %3820 = vst.msk [vmem:[#allocation2 + $0xd8] sm:$0xff] %vm758_vm6, %v3786_v38  ;;  %3819 = vst.msk [vmem:[#allocation2 + $0xc8] sm:$0xff] %vm758_vm6, %v3784_v10  ;;  %v5792_v38 = vld [vmem:[%s6282_s6 + $0xc2] sm:$0xff] }
 0x52d   : > { %4740 = vrot.lane.b32.xlu1 %v5861_v27, %s9871_s7  ;;  %4724 = vrot.lane.b32.xlu0 %v5853_v4, %s9871_s7 }
 0x52f   : > { %v3790_v61 = vpop.permute.xlu1 %3789  ;;  %v3788_v17 = vpop.permute.xlu0 %3787 }
 0x530   : > { %3822 = vst.msk [vmem:[#allocation2 + $0xf8] sm:$0xff] %vm758_vm6, %v3790_v61  ;;  %3821 = vst.msk [vmem:[#allocation2 + $0xe8] sm:$0xff] %vm758_vm6, %v3788_v17  ;;  %vm9880_vm6 = vcmask 556544   ;;  %v5863_v17 = vld [vmem:[%s6282_s6 + $0x116] sm:$0xff] }
 0x531   : > { %4069 = vrot.lane.b32.xlu1 %v5861_v27, %s6163_s28  ;;  %4053 = vrot.lane.b32.xlu0 %v5853_v4, %s6163_s28  ;;  %v5800_v4 = vld [vmem:[%s6282_s6 + $0x122] sm:$0xff]  ;;  %vm9881_vm15 = vmmov %vm9880_vm6 }
 0x533   : > { %v3858_v32 = vpop.permute.xlu1 %3857  ;;  %v3856_v47 = vpop.permute.xlu0 %3855 }
 0x534   : > { %3904 = vst.msk [vmem:[#allocation2 + $0x18] sm:$0xff] %vm858_vm7, %v3858_v32  ;;  %3903 = vst.msk [vmem:[#allocation2 + $0x8] sm:$0xff] %vm858_vm7, %v3856_v47 }
 0x535   : > { %4454 = vrot.lane.b32.xlu1 %v5814_v48, %s9867_s21  ;;  %4438 = vrot.lane.b32.xlu0 %v5806_v52, %s9867_s21  ;;  %v5855_v48 = vld [vmem:[%s6282_s6 + $0xb6] sm:$0xff] }
 0x537   : > { %v3952_v34 = vpop.permute.xlu1 %3951  ;;  %v3872_v56 = vpop.permute.xlu0 %3871 }
 0x538   : > { %3999 = vst.msk [vmem:[#allocation2 + $0x8] sm:$0xff] %vm955_vm8, %v3952_v34 }
 0x539   : > { %3911 = vst.msk [vmem:[#allocation2 + $0x88] sm:$0xff] %vm858_vm7, %v3872_v56  ;;  %4168 = vrot.lane.b32.xlu1 %v5767_v33, %s6164_s29  ;;  %4152 = vrot.lane.b32.xlu0 %v5759_v36, %s6164_s29  ;;  %v4786_v56 = vld [vmem:[#allocation2] sm:$0xff] }
 0x53b   : > { %v4048_v35 = vpop.permute.xlu1 %4047  ;;  %v3968_v8 = vpop.permute.xlu0 %3967 }
 0x53c   : > { %4095 = vst.msk [vmem:[#allocation2 + $0x8] sm:$0xff] %vm1052_vm9, %v4048_v35  ;;  %v4802_v35 = vld [vmem:[#allocation2 + $0x80] sm:$0xff] }
 0x53d   : > { %4007 = vst.msk [vmem:[#allocation2 + $0x88] sm:$0xff] %vm955_vm8, %v3968_v8  ;;  %4550 = vrot.lane.b32.xlu1 %v9873_v1, %s9868_s4  ;;  %4534 = vrot.lane.b32.xlu0 %v9874_v26, %s9868_s4  ;;  %v5808_v8 = vld [vmem:[%s6282_s6 + $0xc3] sm:$0xff] }
 0x53f   : > { %v4147_v39 = vpop.permute.xlu1 %4146  ;;  %v4064_v5 = vpop.permute.xlu0 %4063 }
 0x540   : > { %4194 = vst.msk [vmem:[#allocation2 + $0x8] sm:$0xff] %vm1149_vm10, %v4147_v39  ;;  %v5769_v39 = vld [vmem:[%s6282_s6 + $0x128] sm:$0xff] }
 0x541   : > { %4103 = vst.msk [vmem:[#allocation2 + $0x88] sm:$0xff] %vm1052_vm9, %v4064_v5  ;;  %3879 = vrot.lane.b32.xlu1 %v9873_v1, %s6161_s25  ;;  %3863 = vrot.lane.b32.xlu0 %v9874_v26, %s6161_s25  ;;  %v5761_v5 = vld [vmem:[%s6282_s6 + $0xc8] sm:$0xff] }
 0x543   : > { %v3874_v2 = vpop.permute.xlu1 %3873  ;;  %v4163_v40 = vpop.permute.xlu0 %4162 }
 0x544   : > { %3912 = vst.msk [vmem:[#allocation2 + $0x98] sm:$0xff] %vm858_vm7, %v3874_v2  ;;  %v5832_v2 = vld [vmem:[%s6282_s6 + $0x124] sm:$0xff] }
 0x545   : > { %4202 = vst.msk [vmem:[#allocation2 + $0x88] sm:$0xff] %vm1149_vm10, %v4163_v40  ;;  %4264 = vrot.lane.b32.xlu1 %v5783_v22, %s6165_s30  ;;  %4248 = vrot.lane.b32.xlu0 %v5775_v57, %s6165_s30  ;;  %v5824_v40 = vld [vmem:[%s6282_s6 + $0xc4] sm:$0xff] }
 0x547   : > { %v4259_v59 = vpop.permute.xlu1 %4258  ;;  %v4243_v16 = vpop.permute.xlu0 %4242 }
 0x548   : > { %4298 = vst.msk [vmem:[#allocation2 + $0x88] sm:$0xff] %vm1246_vm11, %v4259_v59  ;;  %4290 = vst.msk [vmem:[#allocation2 + $0x8] sm:$0xff] %vm1246_vm11, %v4243_v16  ;;  %v5785_v16 = vld [vmem:[%s6282_s6 + $0x129] sm:$0xff] }
 0x549   : > { %4646 = vrot.lane.b32.xlu1 %v5846_v14, %s9870_s18  ;;  %4630 = vrot.lane.b32.xlu0 %v5838_v41, %s9870_s18 }
 0x54b   : > { %v3970_v18 = vpop.permute.xlu1 %3969  ;;  %v3954_v11 = vpop.permute.xlu0 %3953 }
 0x54c   : > { %4008 = vst.msk [vmem:[#allocation2 + $0x98] sm:$0xff] %vm955_vm8, %v3970_v18  ;;  %4000 = vst.msk [vmem:[#allocation2 + $0x18] sm:$0xff] %vm955_vm8, %v3954_v11  ;;  %v5777_v18 = vld [vmem:[%s6282_s6 + $0xc9] sm:$0xff] }
 0x54d   : > { %3975 = vrot.lane.b32.xlu1 %v5846_v14, %s6162_s26  ;;  %3959 = vrot.lane.b32.xlu0 %v5838_v41, %s6162_s26 }
 0x54f   : > { %v4355_v42 = vpop.permute.xlu1 %4354  ;;  %v4339_v46 = vpop.permute.xlu0 %4338 }
 0x550   : > { %4394 = vst.msk [vmem:[#allocation2 + $0x88] sm:$0xff] %vm1343_vm12, %v4355_v42  ;;  %4386 = vst.msk [vmem:[#allocation2 + $0x8] sm:$0xff] %vm1343_vm12, %v4339_v46  ;;  %v5840_v42 = vld [vmem:[%s6282_s6 + $0xc5] sm:$0xff] }
 0x551   : > { %4360 = vrot.lane.b32.xlu1 %v5799_v13, %s6166_s3  ;;  %4344 = vrot.lane.b32.xlu0 %v5791_v23, %s6166_s3  ;;  %v5848_v23 = vld [vmem:[%s6282_s6 + $0x125] sm:$0xff] }
 0x553   : > { %v4066_v24 = vpop.permute.xlu1 %4065  ;;  %v4050_v7 = vpop.permute.xlu0 %4049 }
 0x554   : > { %4104 = vst.msk [vmem:[#allocation2 + $0x98] sm:$0xff] %vm1052_vm9, %v4066_v24  ;;  %4096 = vst.msk [vmem:[#allocation2 + $0x18] sm:$0xff] %vm1052_vm9, %v4050_v7  ;;  %v5801_v7 = vld [vmem:[%s6282_s6 + $0x12a] sm:$0xff] }
 0x555   : > { %4742 = vrot.lane.b32.xlu1 %v5862_v9, %s9871_s7  ;;  %4726 = vrot.lane.b32.xlu0 %v5854_v43, %s9871_s7 }
 0x557   : > { %v4451_v50 = vpop.permute.xlu1 %4450  ;;  %v4435_v15 = vpop.permute.xlu0 %4434 }
 0x558   : > { %4490 = vst.msk [vmem:[#allocation2 + $0x88] sm:$0xff] %vm1440_vm13, %v4451_v50  ;;  %4482 = vst.msk [vmem:[#allocation2 + $0x8] sm:$0xff] %vm1440_vm13, %v4435_v15  ;;  %v5793_v50 = vld [vmem:[%s6282_s6 + $0xca] sm:$0xff] }
 0x559   : > { %4071 = vrot.lane.b32.xlu1 %v5862_v9, %s6163_s28  ;;  %4055 = vrot.lane.b32.xlu0 %v5854_v43, %s6163_s28 }
 0x55b   : > { %v4165_v31 = vpop.permute.xlu1 %4164  ;;  %v4149_v21 = vpop.permute.xlu0 %4148 }
 0x55c   : > { %4203 = vst.msk [vmem:[#allocation2 + $0x98] sm:$0xff] %vm1149_vm10, %v4165_v31  ;;  %4195 = vst.msk [vmem:[#allocation2 + $0x18] sm:$0xff] %vm1149_vm10, %v4149_v21  ;;  %v5856_v31 = vld [vmem:[%s6282_s6 + $0xc6] sm:$0xff] }
 0x55d   : > { %4456 = vrot.lane.b32.xlu1 %v5815_v45, %s9867_s21  ;;  %4440 = vrot.lane.b32.xlu0 %v5807_v0, %s9867_s21  ;;  %v5864_v0 = vld [vmem:[%s6282_s6 + $0x126] sm:$0xff] }
 0x55f   : > { %v4547_v25 = vpop.permute.xlu1 %4546  ;;  %v4531_v3 = vpop.permute.xlu0 %4530 }
 0x560   : > { %4586 = vst.msk [vmem:[#allocation2 + $0x88] sm:$0xff] %vm9875_vm2, %v4547_v25  ;;  %vm9884_vm2 = vmmov %vm9878_vm4 }
 0x561   : > { %4578 = vst.msk [vmem:[#allocation2 + $0x8] sm:$0xff] %vm9876_vm3, %v4531_v3  ;;  %4170 = vrot.lane.b32.xlu1 %v5768_v53, %s6164_s29  ;;  %4154 = vrot.lane.b32.xlu0 %v5760_v12, %s6164_s29  ;;  %vm9885_vm3 = vmmov %vm9884_vm2 }
 0x563   : > { %v3876_v28 = vpop.permute.xlu1 %3875  ;;  %v3860_v29 = vpop.permute.xlu0 %3859 }
 0x564   : > { %3913 = vst.msk [vmem:[#allocation2 + $0xa8] sm:$0xff] %vm858_vm7, %v3876_v28  ;;  %3905 = vst.msk [vmem:[#allocation2 + $0x28] sm:$0xff] %vm858_vm7, %v3860_v29  ;;  %v4788_v28 = vld [vmem:[#allocation2 + $0x10] sm:$0xff] }
 0x565   : > { %4552 = vrot.lane.b32.xlu1 %v9877_v54, %s9868_s4  ;;  %4536 = vrot.lane.b32.xlu0 %v5823_v49, %s9868_s4  ;;  %v4804_v29 = vld [vmem:[#allocation2 + $0x90] sm:$0xff] }
 0x567   : > { %v4261_v55 = vpop.permute.xlu1 %4260  ;;  %v4245_v19 = vpop.permute.xlu0 %4244 }
 0x568   : > { %4299 = vst.msk [vmem:[#allocation2 + $0x98] sm:$0xff] %vm1246_vm11, %v4261_v55  ;;  %4291 = vst.msk [vmem:[#allocation2 + $0x18] sm:$0xff] %vm1246_vm11, %v4245_v19  ;;  %v5809_v55 = vld [vmem:[%s6282_s6 + $0xcb] sm:$0xff] }
 0x569   : > { %3881 = vrot.lane.b32.xlu1 %v9877_v54, %s6161_s25  ;;  %3865 = vrot.lane.b32.xlu0 %v5823_v49, %s6161_s25  ;;  %v5817_v54 = vld [vmem:[%s6282_s6 + $0x12b] sm:$0xff] }
 0x56b   : > { %v4643_v60 = vpop.permute.xlu1 %4642  ;;  %v4627_v63 = vpop.permute.xlu0 %4626 }
 0x56c   : > { %4682 = vst.msk [vmem:[#allocation2 + $0x88] sm:$0xff] %vm9878_vm4, %v4643_v60  ;;  %vm9886_vm4 = vmmov %vm9880_vm6  ;;  %v5762_v60 = vld [vmem:[%s6282_s6 + $0xd8] sm:$0xff] }
 0x56d   : > { %4674 = vst.msk [vmem:[#allocation2 + $0x8] sm:$0xff] %vm9879_vm5, %v4627_v63  ;;  %4266 = vrot.lane.b32.xlu1 %v5784_v62, %s6165_s30  ;;  %4250 = vrot.lane.b32.xlu0 %v5776_v37, %s6165_s30  ;;  %vm9887_vm5 = vmmov %vm9886_vm4  ;;  %v5770_v37 = vld [vmem:[%s6282_s6 + $0x138] sm:$0xff] }
 0x56f   : > { %v3972_v6 = vpop.permute.xlu1 %3971  ;;  %v3956_v51 = vpop.permute.xlu0 %3955 }
 0x570   : > { %4009 = vst.msk [vmem:[#allocation2 + $0xa8] sm:$0xff] %vm955_vm8, %v3972_v6  ;;  %4001 = vst.msk [vmem:[#allocation2 + $0x28] sm:$0xff] %vm955_vm8, %v3956_v51  ;;  %v5825_v6 = vld [vmem:[%s6282_s6 + $0xcc] sm:$0xff] }
 0x571   : > { %4648 = vrot.lane.b32.xlu1 %v5847_v30, %s9870_s18  ;;  %4632 = vrot.lane.b32.xlu0 %v5839_v44, %s9870_s18 }
 0x573   : > { %v4357_v20 = vpop.permute.xlu1 %4356  ;;  %v4341_v27 = vpop.permute.xlu0 %4340 }
 0x574   : > { %4395 = vst.msk [vmem:[#allocation2 + $0x98] sm:$0xff] %vm1343_vm12, %v4357_v20  ;;  %4387 = vst.msk [vmem:[#allocation2 + $0x18] sm:$0xff] %vm1343_vm12, %v4341_v27 }
 0x575   : > { %3977 = vrot.lane.b32.xlu1 %v5847_v30, %s6162_s26  ;;  %3961 = vrot.lane.b32.xlu0 %v5839_v44, %s6162_s26  ;;  %v5833_v44 = vld [vmem:[%s6282_s6 + $0x12c] sm:$0xff] }
 0x577   : > { %v4739_v10 = vpop.permute.xlu1 %4738  ;;  %v4723_v61 = vpop.permute.xlu0 %4722 }
 0x578   : > { %4778 = vst.msk [vmem:[#allocation2 + $0x88] sm:$0xff] %vm9880_vm6, %v4739_v10  ;;  %vm9888_vm6 = vmmov %vm9883_vm1  ;;  %v5778_v10 = vld [vmem:[%s6282_s6 + $0xd9] sm:$0xff] }
 0x579   : > { %4770 = vst.msk [vmem:[#allocation2 + $0x8] sm:$0xff] %vm9881_vm15, %v4723_v61  ;;  %4362 = vrot.lane.b32.xlu1 %v5800_v4, %s6166_s3  ;;  %4346 = vrot.lane.b32.xlu0 %v5792_v38, %s6166_s3  ;;  %vm9889_vm15 = vmmov %vm9883_vm1  ;;  %v5786_v38 = vld [vmem:[%s6282_s6 + $0x139] sm:$0xff] }
 0x57b   : > { %v4068_v52 = vpop.permute.xlu1 %4067  ;;  %v4052_v32 = vpop.permute.xlu0 %4051 }
 0x57c   : > { %4105 = vst.msk [vmem:[#allocation2 + $0xa8] sm:$0xff] %vm1052_vm9, %v4068_v52  ;;  %4097 = vst.msk [vmem:[#allocation2 + $0x28] sm:$0xff] %vm1052_vm9, %v4052_v32  ;;  %v5841_v52 = vld [vmem:[%s6282_s6 + $0xcd] sm:$0xff] }
 0x57d   : > { %4744 = vrot.lane.b32.xlu1 %v5863_v17, %s9871_s7  ;;  %4728 = vrot.lane.b32.xlu0 %v5855_v48, %s9871_s7 }
 0x57f   : > { %v4453_v47 = vpop.permute.xlu1 %4452  ;;  %v4437_v33 = vpop.permute.xlu0 %4436  ;;  %v4803_v34 = vld [vmem:[#allocation2 + $0x88] sm:$0xff] }
 0x580   : > { %v4787_v36 = vld [vmem:[#allocation2 + $0x8] sm:$0xff]  ;;  %4491 = vst.msk [vmem:[#allocation2 + $0x98] sm:$0xff] %vm1440_vm13, %v4453_v47  ;;  %4483 = vst.msk [vmem:[#allocation2 + $0x18] sm:$0xff] %vm1440_vm13, %v4437_v33  ;;  %5877 = vmatprep.mubr.msk.f32.mxu1 %vm4843_vm0, %v4803_v34  ;;  %v5802_v34 = vld [vmem:[%s6282_s6 + $0x13a] sm:$0xff] }
 0x581   : > { %5869 = vmatprep.mubr.msk.f32.mxu0 %vm4843_vm0, %v4787_v36  ;;  %4073 = vrot.lane.b32.xlu1 %v5863_v17, %s6163_s28 }
 0x582   : > { %4057 = vrot.lane.b32.xlu0 %v5855_v48, %s6163_s28  ;;  %4961 = vmatmul.mubr.f32.vlgmr.msra.gmra.mrb[0].mxu0 %v4786_v56  ;;  %v5849_v48 = vld [vmem:[%s6282_s6 + $0x12d] sm:$0xff]  ;;  %v5794_v56 = vld [vmem:[%s6282_s6 + $0xda] sm:$0xff] }
 0x583   : > { %5001 = vmatmul.mubr.f32.vlgmr.msra.gmra.mrb[0].mxu1 %v4802_v35  ;;  %v4167_v1 = vpop.permute.xlu1 %4166  ;;  %v4151_v26 = vpop.permute.xlu0 %4150 }
 0x584   : > { %4204 = vst.msk [vmem:[#allocation2 + $0xa8] sm:$0xff] %vm1149_vm10, %v4167_v1  ;;  %4196 = vst.msk [vmem:[#allocation2 + $0x28] sm:$0xff] %vm1149_vm10, %v4151_v26  ;;  %v5865_v1 = vld [vmem:[%s6282_s6 + $0x12e] sm:$0xff] }
 0x585   : > { %4458 = vrot.lane.b32.xlu1 %v8926_v58, %s9867_s21  ;;  %v5857_v26 = vld [vmem:[%s6282_s6 + $0xce] sm:$0xff] }
 0x586   : > { %4442 = vrot.lane.b32.xlu0 %v5808_v8, %s9867_s21 }
 0x587   : > { %v4549_v22 = vpop.permute.xlu1 %4548  ;;  %v4533_v57 = vpop.permute.xlu0 %4532 }
 0x588   : > { %4587 = vst.msk [vmem:[#allocation2 + $0x98] sm:$0xff] %vm9882_vm14, %v4549_v22  ;;  %vm9890_vm14 = vmmov %vm9884_vm2 }
 0x589   : > { %4579 = vst.msk [vmem:[#allocation2 + $0x18] sm:$0xff] %vm9883_vm1, %v4533_v57  ;;  %4172 = vrot.lane.b32.xlu1 %v5769_v39, %s6164_s29  ;;  %vm9891_vm1 = vmmov %vm9884_vm2 }
 0x58a   : > { %4156 = vrot.lane.b32.xlu0 %v5761_v5, %s6164_s29 }
 0x58b   : > { %v3878_v14 = vpop.permute.xlu1 %3877  ;;  %v3862_v58 = vpop.permute.xlu0 %3861 }
 0x58c   : > { %3914 = vst.msk [vmem:[#allocation2 + $0xb8] sm:$0xff] %vm858_vm7, %v3878_v14  ;;  %3906 = vst.msk [vmem:[#allocation2 + $0x38] sm:$0xff] %vm858_vm7, %v3862_v58  ;;  %v4790_v14 = vld [vmem:[#allocation2 + $0x20] sm:$0xff] }
 0x58d   : > { %4554 = vrot.lane.b32.xlu1 %v5832_v2, %s9868_s4  ;;  %v4806_v58 = vld [vmem:[#allocation2 + $0xa0] sm:$0xff] }
 0x58e   : > { %4538 = vrot.lane.b32.xlu0 %v5824_v40, %s9868_s4 }
 0x58f   : > { %v4263_v41 = vpop.permute.xlu1 %4262  ;;  %v4247_v59 = vpop.permute.xlu0 %4246 }
 0x590   : > { %4300 = vst.msk [vmem:[#allocation2 + $0xa8] sm:$0xff] %vm1246_vm11, %v4263_v41  ;;  %4292 = vst.msk [vmem:[#allocation2 + $0x28] sm:$0xff] %vm1246_vm11, %v4247_v59  ;;  %v5818_v41 = vld [vmem:[%s6282_s6 + $0x13b] sm:$0xff] }
 0x591   : > { %3883 = vrot.lane.b32.xlu1 %v5832_v2, %s6161_s25  ;;  %v5810_v59 = vld [vmem:[%s6282_s6 + $0xdb] sm:$0xff] }
 0x592   : > { %3867 = vrot.lane.b32.xlu0 %v5824_v40, %s6161_s25 }
 0x593   : > { %v4645_v11 = vpop.permute.xlu1 %4644  ;;  %v4629_v13 = vpop.permute.xlu0 %4628 }
 0x594   : > { %4683 = vst.msk [vmem:[#allocation2 + $0x98] sm:$0xff] %vm9884_vm2, %v4645_v11  ;;  %vm9892_vm2 = vmmov %vm9886_vm4  ;;  %v5771_v11 = vld [vmem:[%s6282_s6 + $0x140] sm:$0xff] }
 0x595   : > { %4675 = vst.msk [vmem:[#allocation2 + $0x18] sm:$0xff] %vm9885_vm3, %v4629_v13  ;;  %4268 = vrot.lane.b32.xlu1 %v5785_v16, %s6165_s30  ;;  %vm9893_vm3 = vmmov %vm9892_vm2  ;;  %v5763_v13 = vld [vmem:[%s6282_s6 + $0xe0] sm:$0xff] }
 0x596   : > { %4252 = vrot.lane.b32.xlu0 %v5777_v18, %s6165_s30 }
 0x597   : > { %v3974_v46 = vpop.permute.xlu1 %3973  ;;  %v3958_v9 = vpop.permute.xlu0 %3957 }
 0x598   : > { %4010 = vst.msk [vmem:[#allocation2 + $0xb8] sm:$0xff] %vm955_vm8, %v3974_v46  ;;  %4002 = vst.msk [vmem:[#allocation2 + $0x38] sm:$0xff] %vm955_vm8, %v3958_v9  ;;  %v5834_v46 = vld [vmem:[%s6282_s6 + $0x13c] sm:$0xff] }
 0x599   : > { %4650 = vrot.lane.b32.xlu1 %v5848_v23, %s9870_s18  ;;  %v5826_v9 = vld [vmem:[%s6282_s6 + $0xdc] sm:$0xff] }
 0x59a   : > { %4634 = vrot.lane.b32.xlu0 %v5840_v42, %s9870_s18 }
 0x59b   : > { %v4359_v43 = vpop.permute.xlu1 %4358  ;;  %v4343_v24 = vpop.permute.xlu0 %4342 }
 0x59c   : > { %4396 = vst.msk [vmem:[#allocation2 + $0xa8] sm:$0xff] %vm1343_vm12, %v4359_v43  ;;  %4388 = vst.msk [vmem:[#allocation2 + $0x28] sm:$0xff] %vm1343_vm12, %v4343_v24 }
 0x59d   : > { %3979 = vrot.lane.b32.xlu1 %v5848_v23, %s6162_s26 }
 0x59e   : > { %3963 = vrot.lane.b32.xlu0 %v5840_v42, %s6162_s26 }
 0x59f   : > { %v4741_v15 = vpop.permute.xlu1 %4740  ;;  %v4725_v45 = vpop.permute.xlu0 %4724 }
 0x5a0   : > { %4779 = vst.msk [vmem:[#allocation2 + $0x98] sm:$0xff] %vm9886_vm4, %v4741_v15  ;;  %vm9894_vm4 = vmmov %vm9888_vm6 }
 0x5a1   : > { %4771 = vst.msk [vmem:[#allocation2 + $0x18] sm:$0xff] %vm9887_vm5, %v4725_v45  ;;  %4364 = vrot.lane.b32.xlu1 %v5801_v7, %s6166_s3  ;;  %vm9895_vm5 = vmmov %vm9894_vm4  ;;  %v5787_v7 = vld [vmem:[%s6282_s6 + $0x141] sm:$0xff] }
 0x5a2   : > { %4348 = vrot.lane.b32.xlu0 %v5793_v50, %s6166_s3  ;;  %v5779_v50 = vld [vmem:[%s6282_s6 + $0xe1] sm:$0xff] }
 0x5a3   : > { %v4070_v21 = vpop.permute.xlu1 %4069  ;;  %v4054_v53 = vpop.permute.xlu0 %4053 }
 0x5a4   : > { %4106 = vst.msk [vmem:[#allocation2 + $0xb8] sm:$0xff] %vm1052_vm9, %v4070_v21  ;;  %4098 = vst.msk [vmem:[#allocation2 + $0x38] sm:$0xff] %vm1052_vm9, %v4054_v53 }
 0x5a5   : > { %4746 = vrot.lane.b32.xlu1 %v5864_v0, %s9871_s7 }
 0x5a6   : > { %4730 = vrot.lane.b32.xlu0 %v5856_v31, %s9871_s7 }
 0x5a7   : > { %v4455_v12 = vpop.permute.xlu1 %4454  ;;  %v4439_v25 = vpop.permute.xlu0 %4438  ;;  %v4805_v49 = vld [vmem:[#allocation2 + $0x98] sm:$0xff] }
 0x5a8   : > { %v4789_v3 = vld [vmem:[#allocation2 + $0x18] sm:$0xff]  ;;  %4492 = vst.msk [vmem:[#allocation2 + $0xa8] sm:$0xff] %vm1440_vm13, %v4455_v12  ;;  %4484 = vst.msk [vmem:[#allocation2 + $0x28] sm:$0xff] %vm1440_vm13, %v4439_v25  ;;  %5878 = vmatprep.mubr.msk.f32.mxu1 %vm4843_vm0, %v4805_v49  ;;  %v5803_v12 = vld [vmem:[%s6282_s6 + $0x142] sm:$0xff] }
 0x5a9   : > { %5870 = vmatprep.mubr.msk.f32.mxu0 %vm4843_vm0, %v4789_v3  ;;  %4075 = vrot.lane.b32.xlu1 %v5864_v0, %s6163_s28  ;;  %v5850_v0 = vld [vmem:[%s6282_s6 + $0x13d] sm:$0xff] }
 0x5aa   : > { %4059 = vrot.lane.b32.xlu0 %v5856_v31, %s6163_s28  ;;  %4966 = vmatmul.mubr.f32.gmra.mrb[2].mxu0 %v4788_v28  ;;  %v5842_v31 = vld [vmem:[%s6282_s6 + $0xdd] sm:$0xff] }
 0x5ab   : > { %5006 = vmatmul.mubr.f32.gmra.mrb[2].mxu1 %v4804_v29  ;;  %v4169_v19 = vpop.permute.xlu1 %4168  ;;  %v4153_v62 = vpop.permute.xlu0 %4152  ;;  %v5795_v25 = vld [vmem:[%s6282_s6 + $0xe2] sm:$0xff] }
 0x5ac   : > { %4205 = vst.msk [vmem:[#allocation2 + $0xb8] sm:$0xff] %vm1149_vm10, %v4169_v19  ;;  %4197 = vst.msk [vmem:[#allocation2 + $0x38] sm:$0xff] %vm1149_vm10, %v4153_v62  ;;  %v5866_v28 = vld [vmem:[%s6282_s6 + $0x13e] sm:$0xff] }
 0x5ad   : > { %4460 = vrot.lane.b32.xlu1 %v5817_v54, %s9867_s21  ;;  %v5858_v29 = vld [vmem:[%s6282_s6 + $0xde] sm:$0xff] }
 0x5ae   : > { %4444 = vrot.lane.b32.xlu0 %v5809_v55, %s9867_s21  ;;  %v5819_v19 = vld [vmem:[%s6282_s6 + $0x143] sm:$0xff] }
 0x5af   : > { %v4551_v63 = vpop.permute.xlu1 %4550  ;;  %v4535_v30 = vpop.permute.xlu0 %4534  ;;  %v5811_v62 = vld [vmem:[%s6282_s6 + $0xe3] sm:$0xff] }
 0x5b0   : > { %4588 = vst.msk [vmem:[#allocation2 + $0xa8] sm:$0xff] %vm9888_vm6, %v4551_v63  ;;  %vm9896_vm6 = vmmov %vm9891_vm1  ;;  %v5835_v63 = vld [vmem:[%s6282_s6 + $0x144] sm:$0xff] }
 0x5b1   : > { %4580 = vst.msk [vmem:[#allocation2 + $0x28] sm:$0xff] %vm9889_vm15, %v4535_v30  ;;  %4174 = vrot.lane.b32.xlu1 %v5770_v37, %s6164_s29  ;;  %vm9897_vm15 = vmmov %vm9891_vm1  ;;  %v5827_v30 = vld [vmem:[%s6282_s6 + $0xe4] sm:$0xff] }
 0x5b2   : > { %4158 = vrot.lane.b32.xlu0 %v5762_v60, %s6164_s29 }
 0x5b3   : > { %v3880_v51 = vpop.permute.xlu1 %3879  ;;  %v3864_v20 = vpop.permute.xlu0 %3863 }
 0x5b4   : > { %3915 = vst.msk [vmem:[#allocation2 + $0xc8] sm:$0xff] %vm858_vm7, %v3880_v51  ;;  %3907 = vst.msk [vmem:[#allocation2 + $0x48] sm:$0xff] %vm858_vm7, %v3864_v20  ;;  %v5851_v51 = vld [vmem:[%s6282_s6 + $0x145] sm:$0xff] }
 0x5b5   : > { %4556 = vrot.lane.b32.xlu1 %v5833_v44, %s9868_s4  ;;  %v5843_v20 = vld [vmem:[%s6282_s6 + $0xe5] sm:$0xff] }
 0x5b6   : > { %4540 = vrot.lane.b32.xlu0 %v5825_v6, %s9868_s4 }
 0x5b7   : > { %v4265_v27 = vpop.permute.xlu1 %4264  ;;  %v4249_v4 = vpop.permute.xlu0 %4248 }
 0x5b8   : > { %4301 = vst.msk [vmem:[#allocation2 + $0xb8] sm:$0xff] %vm1246_vm11, %v4265_v27  ;;  %4293 = vst.msk [vmem:[#allocation2 + $0x38] sm:$0xff] %vm1246_vm11, %v4249_v4 }
 0x5b9   : > { %3885 = vrot.lane.b32.xlu1 %v5833_v44, %s6161_s25 }
 0x5ba   : > { %3869 = vrot.lane.b32.xlu0 %v5825_v6, %s6161_s25 }
 0x5bb   : > { %v4647_v61 = vpop.permute.xlu1 %4646  ;;  %v4631_v17 = vpop.permute.xlu0 %4630 }
 0x5bc   : > { %4684 = vst.msk [vmem:[#allocation2 + $0xa8] sm:$0xff] %vm9890_vm14, %v4647_v61  ;;  %vm9898_vm14 = vmmov %vm9892_vm2  ;;  %v4792_v61 = vld [vmem:[#allocation2 + $0x30] sm:$0xff] }
 0x5bd   : > { %4676 = vst.msk [vmem:[#allocation2 + $0x28] sm:$0xff] %vm9891_vm1, %v4631_v17  ;;  %4270 = vrot.lane.b32.xlu1 %v5786_v38, %s6165_s30  ;;  %vm9899_vm1 = vmmov %vm9892_vm2  ;;  %v4808_v17 = vld [vmem:[#allocation2 + $0xb0] sm:$0xff] }
 0x5be   : > { %4254 = vrot.lane.b32.xlu0 %v5778_v10, %s6165_s30 }
 0x5bf   : > { %v3976_v32 = vpop.permute.xlu1 %3975  ;;  %v3960_v47 = vpop.permute.xlu0 %3959 }
 0x5c0   : > { %4011 = vst.msk [vmem:[#allocation2 + $0xc8] sm:$0xff] %vm955_vm8, %v3976_v32  ;;  %4003 = vst.msk [vmem:[#allocation2 + $0x48] sm:$0xff] %vm955_vm8, %v3960_v47 }
 0x5c1   : > { %4652 = vrot.lane.b32.xlu1 %v5849_v48, %s9870_s18 }
 0x5c2   : > { %4636 = vrot.lane.b32.xlu0 %v5841_v52, %s9870_s18 }
 0x5c3   : > { %v4361_v33 = vpop.permute.xlu1 %4360  ;;  %v4345_v36 = vpop.permute.xlu0 %4344 }
 0x5c4   : > { %4397 = vst.msk [vmem:[#allocation2 + $0xb8] sm:$0xff] %vm1343_vm12, %v4361_v33  ;;  %4389 = vst.msk [vmem:[#allocation2 + $0x38] sm:$0xff] %vm1343_vm12, %v4345_v36 }
 0x5c5   : > { %3981 = vrot.lane.b32.xlu1 %v5849_v48, %s6162_s26  ;;  %v5867_v48 = vld [vmem:[%s6282_s6 + $0x146] sm:$0xff] }
 0x5c6   : > { %3965 = vrot.lane.b32.xlu0 %v5841_v52, %s6162_s26  ;;  %v5859_v52 = vld [vmem:[%s6282_s6 + $0xe6] sm:$0xff]  ;;  %s148_s6 = sand.u32 1, %s6129_s10  }
 0x5c7   : > { %v4743_v35 = vpop.permute.xlu1 %4742  ;;  %v4727_v8 = vpop.permute.xlu0 %4726  ;;  %s5180_s25 = sshll.u32 %s148_s6, 7 }
 0x5c8   : > { %4780 = vst.msk [vmem:[#allocation2 + $0xa8] sm:$0xff] %vm9892_vm2, %v4743_v35  ;;  %vm9900_vm2 = vmmov %vm9894_vm4  ;;  %s9543_s26 = scalar_lea.vmem [#allocation3], %s5180_s25 }
 0x5c9   : > { %4772 = vst.msk [vmem:[#allocation2 + $0x28] sm:$0xff] %vm9893_vm3, %v4727_v8  ;;  %4366 = vrot.lane.b32.xlu1 %v5802_v34, %s6166_s3  ;;  %vm9901_vm3 = vmmov %vm9900_vm2 }
 0x5ca   : > { %4350 = vrot.lane.b32.xlu0 %v5794_v56, %s6166_s3 }
 0x5cb   : > { %v4072_v39 = vpop.permute.xlu1 %4071  ;;  %v4056_v5 = vpop.permute.xlu0 %4055 }
 0x5cc   : > { %4107 = vst.msk [vmem:[#allocation2 + $0xc8] sm:$0xff] %vm1052_vm9, %v4072_v39  ;;  %4099 = vst.msk [vmem:[#allocation2 + $0x48] sm:$0xff] %vm1052_vm9, %v4056_v5 }
 0x5cd   : > { %4748 = vrot.lane.b32.xlu1 %v5865_v1, %s9871_s7 }
 0x5ce   : > { %4732 = vrot.lane.b32.xlu0 %v5857_v26, %s9871_s7 }
 0x5cf   : > { %v4457_v22 = vpop.permute.xlu1 %4456  ;;  %v4441_v57 = vpop.permute.xlu0 %4440  ;;  %v4807_v40 = vld [vmem:[#allocation2 + $0xa8] sm:$0xff] }
 0x5d0   : > { %v4791_v2 = vld [vmem:[#allocation2 + $0x28] sm:$0xff]  ;;  %4493 = vst.msk [vmem:[#allocation2 + $0xb8] sm:$0xff] %vm1440_vm13, %v4457_v22  ;;  %4485 = vst.msk [vmem:[#allocation2 + $0x38] sm:$0xff] %vm1440_vm13, %v4441_v57  ;;  %5879 = vmatprep.mubr.msk.f32.mxu1 %vm4843_vm0, %v4807_v40 }
 0x5d1   : > { %5871 = vmatprep.mubr.msk.f32.mxu0 %vm4843_vm0, %v4791_v2  ;;  %4077 = vrot.lane.b32.xlu1 %v5865_v1, %s6163_s28 }
 0x5d2   : > { %4061 = vrot.lane.b32.xlu0 %v5857_v26, %s6163_s28  ;;  %4971 = vmatmul.mubr.f32.gmra.mrb[4].mxu0 %v4790_v14  ;;  %s5886_s28 = sshll.u32 %s6137_s12, 4  ;;  %s9591_s12 = scalar_lea.sflag [#allocation4], %s148_s6 }
 0x5d3   : > { %5011 = vmatmul.mubr.f32.gmra.mrb[4].mxu1 %v4806_v58  ;;  %v4171_v16 = vpop.permute.xlu1 %4170  ;;  %v4155_v18 = vpop.permute.xlu0 %4154 }
 0x5d4   : > { %4206 = vst.msk [vmem:[#allocation2 + $0xc8] sm:$0xff] %vm1149_vm10, %v4171_v16  ;;  %4198 = vst.msk [vmem:[#allocation2 + $0x48] sm:$0xff] %vm1149_vm10, %v4155_v18 }
 0x5d5   : > { %4462 = vrot.lane.b32.xlu1 %v5818_v41, %s9867_s21 }
 0x5d6   : > { %4446 = vrot.lane.b32.xlu0 %v5810_v59, %s9867_s21 }
 0x5d7   : > { %v4553_v23 = vpop.permute.xlu1 %4552  ;;  %v4537_v42 = vpop.permute.xlu0 %4536 }
 0x5d8   : > { %4589 = vst.msk [vmem:[#allocation2 + $0xb8] sm:$0xff] %vm9894_vm4, %v4553_v23  ;;  %vm9902_vm4 = vmmov %vm9896_vm6 }
 0x5d9   : > { %4581 = vst.msk [vmem:[#allocation2 + $0x38] sm:$0xff] %vm9895_vm5, %v4537_v42  ;;  %4176 = vrot.lane.b32.xlu1 %v5771_v11, %s6164_s29  ;;  %vm9903_vm5 = vmmov %vm9902_vm4  ;;  %v4794_v11 = vld [vmem:[#allocation2 + $0x40] sm:$0xff] }
 0x5da   : > { %4160 = vrot.lane.b32.xlu0 %v5763_v13, %s6164_s29  ;;  %v4810_v13 = vld [vmem:[#allocation2 + $0xc0] sm:$0xff]  ;;  %s5887_s29 = sshll.u32 %s6141_s13, 5 }
 0x5db   : > { %v3882_v43 = vpop.permute.xlu1 %3881  ;;  %v3866_v24 = vpop.permute.xlu0 %3865 }
 0x5dc   : > { %3916 = vst.msk [vmem:[#allocation2 + $0xd8] sm:$0xff] %vm858_vm7, %v3882_v43  ;;  %3908 = vst.msk [vmem:[#allocation2 + $0x58] sm:$0xff] %vm858_vm7, %v3866_v24 }
 0x5dd   : > { %4558 = vrot.lane.b32.xlu1 %v5834_v46, %s9868_s4 }
 0x5de   : > { %4542 = vrot.lane.b32.xlu0 %v5826_v9, %s9868_s4 }
 0x5df   : > { %v4267_v15 = vpop.permute.xlu1 %4266  ;;  %v4251_v45 = vpop.permute.xlu0 %4250 }
 0x5e0   : > { %4302 = vst.msk [vmem:[#allocation2 + $0xc8] sm:$0xff] %vm1246_vm11, %v4267_v15  ;;  %4294 = vst.msk [vmem:[#allocation2 + $0x48] sm:$0xff] %vm1246_vm11, %v4251_v45 }
 0x5e1   : > { %4272 = vrot.lane.b32.xlu1 %v5787_v7, %s6165_s30 }
 0x5e2   : > { %4256 = vrot.lane.b32.xlu0 %v5779_v50, %s6165_s30  ;;  %s5070_s30 = sadd.s32 %s5887_s29, %s5886_s28 }
 0x5e3   : > { %v4649_v21 = vpop.permute.xlu1 %4648  ;;  %v4633_v53 = vpop.permute.xlu0 %4632 }
 0x5e4   : > { %4685 = vst.msk [vmem:[#allocation2 + $0xb8] sm:$0xff] %vm9896_vm6, %v4649_v21  ;;  %vm9904_vm6 = vmmov %vm9899_vm1 }
 0x5e5   : > { %4677 = vst.msk [vmem:[#allocation2 + $0x38] sm:$0xff] %vm9897_vm15, %v4633_v53  ;;  %4654 = vrot.lane.b32.xlu1 %v5850_v0, %s9870_s18  ;;  %vm9905_vm15 = vmmov %vm9899_vm1 }
 0x5e6   : > { %4638 = vrot.lane.b32.xlu0 %v5842_v31, %s9870_s18 }
 0x5e7   : > { %v3978_v3 = vpop.permute.xlu1 %3977  ;;  %v3962_v49 = vpop.permute.xlu0 %3961 }
 0x5e8   : > { %4012 = vst.msk [vmem:[#allocation2 + $0xd8] sm:$0xff] %vm955_vm8, %v3978_v3  ;;  %4004 = vst.msk [vmem:[#allocation2 + $0x58] sm:$0xff] %vm955_vm8, %v3962_v49 }
 0x5e9   : > { %4368 = vrot.lane.b32.xlu1 %v5803_v12, %s6166_s3 }
 0x5ea   : > { %4352 = vrot.lane.b32.xlu0 %v5795_v25, %s6166_s3  ;;  %s5888_s3 = sshll.u32 %s5070_s30, 7 }
 0x5eb   : > { %v4363_v54 = vpop.permute.xlu1 %4362  ;;  %v4347_v55 = vpop.permute.xlu0 %4346  ;;  %s9583_s17 = scalar_lea.hbm %s9646_s2, %s5888_s3 }
 0x5ec   : > { %4398 = vst.msk [vmem:[#allocation2 + $0xc8] sm:$0xff] %vm1343_vm12, %v4363_v54  ;;  %4390 = vst.msk [vmem:[#allocation2 + $0x48] sm:$0xff] %vm1343_vm12, %v4347_v55 }
 0x5ed   : > { %4750 = vrot.lane.b32.xlu1 %v5866_v28, %s9871_s7 }
 0x5ee   : > { %4734 = vrot.lane.b32.xlu0 %v5858_v29, %s9871_s7 }
 0x5ef   : > { %v4745_v37 = vpop.permute.xlu1 %4744  ;;  %v4729_v60 = vpop.permute.xlu0 %4728 }
 0x5f0   : > { %4781 = vst.msk [vmem:[#allocation2 + $0xb8] sm:$0xff] %vm9898_vm14, %v4745_v37  ;;  %vm9906_vm14 = vmmov %vm9900_vm2 }
 0x5f1   : > { %4773 = vst.msk [vmem:[#allocation2 + $0x38] sm:$0xff] %vm9899_vm1, %v4729_v60  ;;  %4464 = vrot.lane.b32.xlu1 %v5819_v19, %s9867_s21  ;;  %vm9907_vm1 = vmmov %vm9900_vm2  ;;  %v4796_v19 = vld [vmem:[#allocation2 + $0x50] sm:$0xff] }
 0x5f2   : > { %4448 = vrot.lane.b32.xlu0 %v5811_v62, %s9867_s21  ;;  %v4812_v62 = vld [vmem:[#allocation2 + $0xd0] sm:$0xff]  ;;  %s5073_s21 = sshll.u32 %s9543_s26, 4  ;;  %s9585_s21 = int_to_ptr.vmem [resolvable:$true] %s5073_s21 }
 0x5f3   : > { %v4074_v44 = vpop.permute.xlu1 %4073  ;;  %s6059_s13 = scalar_lea.vmem %s9585_s21, 2048  ;;  %p6066_p2 = scmp.lt.s32.totalorder %s9585_s21, %s6064_s5 }
 0x5f4   : > { %v4058_v6 = vpop.permute.xlu0 %4057  ;;  %4108 = vst.msk [vmem:[#allocation2 + $0xd8] sm:$0xff] %vm1052_vm9, %v4074_v44  ;;  %p6060_p13 = scmp.ne.s32.totalorder %s9585_s21, %s6059_s13 }
 0x5f5   : > { %4100 = vst.msk [vmem:[#allocation2 + $0x58] sm:$0xff] %vm1052_vm9, %v4058_v6  ;;  %4560 = vrot.lane.b32.xlu1 %v5835_v63, %s9868_s4 }
 0x5f6   : > { %4544 = vrot.lane.b32.xlu0 %v5827_v30, %s9868_s4  ;;  %p6061_p0 = pnand %p6060_p13, %p6256_p3 }
 0x5f7   : > { %v4459_v27 = vpop.permute.xlu1 %4458  ;;  %v4809_v10 = vld [vmem:[#allocation2 + $0xb8] sm:$0xff] }
 0x5f8   : > { %v4443_v4 = vpop.permute.xlu0 %4442  ;;  %v4793_v38 = vld [vmem:[#allocation2 + $0x38] sm:$0xff]  ;;  %4494 = vst.msk [vmem:[#allocation2 + $0xc8] sm:$0xff] %vm1440_vm13, %v4459_v27  ;;  %5880 = vmatprep.mubr.msk.f32.mxu1 %vm4843_vm0, %v4809_v10  ;;  %p6062_p1 = pneg %p6061_p0 }
 0x5f9   : > { %4486 = vst.msk [vmem:[#allocation2 + $0x48] sm:$0xff] %vm1440_vm13, %v4443_v4  ;;  %5872 = vmatprep.mubr.msk.f32.mxu0 %vm4843_vm0, %v4793_v38  ;;  %4656 = vrot.lane.b32.xlu1 %v5851_v51, %s9870_s18 }
 0x5fa   : > { %4640 = vrot.lane.b32.xlu0 %v5843_v20, %s9870_s18  ;;  %4976 = vmatmul.mubr.f32.gmra.mrb[6].mxu0 %v4792_v61 }
 0x5fb   : > { %5016 = vmatmul.mubr.f32.gmra.mrb[6].mxu1 %v4808_v17  ;;  %v4173_v32 = vpop.permute.xlu1 %4172 }
 0x5fc   : > { %v4157_v47 = vpop.permute.xlu0 %4156  ;;  %4207 = vst.msk [vmem:[#allocation2 + $0xd8] sm:$0xff] %vm1149_vm10, %v4173_v32 }
 0x5fd   : > { %4199 = vst.msk [vmem:[#allocation2 + $0x58] sm:$0xff] %vm1149_vm10, %v4157_v47  ;;  %4752 = vrot.lane.b32.xlu1 %v5867_v48, %s9871_s7 }
 0x5fe   : > { %4736 = vrot.lane.b32.xlu0 %v5859_v52, %s9871_s7  ;;  %s6065_s7 = scalar_lea.vmem %s6064_s5, 4096 }
 0x5ff   : > { %v4555_v33 = vpop.permute.xlu1 %4554  ;;  %p6067_p4 = scmp.lt.s32.totalorder %s6065_s7, %s6059_s13 }
 0x600   : > { %v4539_v36 = vpop.permute.xlu0 %4538  ;;  %4590 = vst.msk [vmem:[#allocation2 + $0xc8] sm:$0xff] %vm9900_vm2, %v4555_v33  ;;  %vm9908_vm2 = vmmov %vm9902_vm4 }
 0x601   : > { %4582 = vst.msk [vmem:[#allocation2 + $0x48] sm:$0xff] %vm9901_vm3, %v4539_v36  ;;  %vm9909_vm3 = vmmov %vm9908_vm2  ;;  %p6068_p5 = por %p6067_p4, %p6066_p2 }
 0x603   : > { %v3884_v34 = vpop.permute.xlu1 %3883  ;;  %p6069_p6 = pnand %p6068_p5, %p6062_p1 }
 0x604   : > { %v3868_v56 = vpop.permute.xlu0 %3867  ;;  %3917 = vst.msk [vmem:[#allocation2 + $0xe8] sm:$0xff] %vm858_vm7, %v3884_v34 }
 0x605   : > { %3909 = vst.msk [vmem:[#allocation2 + $0x68] sm:$0xff] %vm858_vm7, %v3868_v56 }
 0x607   : > { %v4269_v35 = vpop.permute.xlu1 %4268 }
 0x608   : > { %v4253_v8 = vpop.permute.xlu0 %4252  ;;  %4303 = vst.msk [vmem:[#allocation2 + $0xd8] sm:$0xff] %vm1246_vm11, %v4269_v35  ;;  %v4798_v35 = vld [vmem:[#allocation2 + $0x60] sm:$0xff] }
 0x609   : > { %4295 = vst.msk [vmem:[#allocation2 + $0x58] sm:$0xff] %vm1246_vm11, %v4253_v8  ;;  %v4814_v8 = vld [vmem:[#allocation2 + $0xe0] sm:$0xff] }
 0x60b   : > { %v4651_v1 = vpop.permute.xlu1 %4650 }
 0x60c   : > { %v4635_v26 = vpop.permute.xlu0 %4634  ;;  %4686 = vst.msk [vmem:[#allocation2 + $0xc8] sm:$0xff] %vm9902_vm4, %v4651_v1  ;;  %vm9911_vm4 = vmmov %vm9904_vm6 }
 0x60d   : > { %4678 = vst.msk [vmem:[#allocation2 + $0x48] sm:$0xff] %vm9903_vm5, %v4635_v26  ;;  %vm9915_vm5 = vmmov %vm9908_vm2 }
 0x60f   : > { %v3980_v39 = vpop.permute.xlu1 %3979 }
 0x610   : > { %v3964_v5 = vpop.permute.xlu0 %3963  ;;  %4013 = vst.msk [vmem:[#allocation2 + $0xe8] sm:$0xff] %vm955_vm8, %v3980_v39 }
 0x611   : > { %4005 = vst.msk [vmem:[#allocation2 + $0x68] sm:$0xff] %vm955_vm8, %v3964_v5 }
 0x613   : > { %v4365_v22 = vpop.permute.xlu1 %4364 }
 0x614   : > { %v4349_v57 = vpop.permute.xlu0 %4348  ;;  %4399 = vst.msk [vmem:[#allocation2 + $0xd8] sm:$0xff] %vm1343_vm12, %v4365_v22 }
 0x615   : > { %4391 = vst.msk [vmem:[#allocation2 + $0x58] sm:$0xff] %vm1343_vm12, %v4349_v57 }
 0x617   : > { %v4747_v2 = vpop.permute.xlu1 %4746 }
 0x618   : > { %v4731_v40 = vpop.permute.xlu0 %4730  ;;  %4782 = vst.msk [vmem:[#allocation2 + $0xc8] sm:$0xff] %vm9904_vm6, %v4747_v2  ;;  %v4800_v2 = vld [vmem:[#allocation2 + $0x70] sm:$0xff] }
 0x619   : > { %4774 = vst.msk [vmem:[#allocation2 + $0x48] sm:$0xff] %vm9905_vm15, %v4731_v40  ;;  %vm9918_vm15 = vmmov %vm9907_vm1  ;;  %v4816_v40 = vld [vmem:[#allocation2 + $0xf0] sm:$0xff] }
 0x61b   : > { %v4076_v14 = vpop.permute.xlu1 %4075 }
 0x61c   : > { %v4060_v58 = vpop.permute.xlu0 %4059  ;;  %4109 = vst.msk [vmem:[#allocation2 + $0xe8] sm:$0xff] %vm1052_vm9, %v4076_v14 }
 0x61d   : > { %4101 = vst.msk [vmem:[#allocation2 + $0x68] sm:$0xff] %vm1052_vm9, %v4060_v58 }
 0x61f   : > { %v4461_v41 = vpop.permute.xlu1 %4460  ;;  %v4811_v18 = vld [vmem:[#allocation2 + $0xc8] sm:$0xff] }
 0x620   : > { %v4445_v59 = vpop.permute.xlu0 %4444  ;;  %v4795_v16 = vld [vmem:[#allocation2 + $0x48] sm:$0xff]  ;;  %4495 = vst.msk [vmem:[#allocation2 + $0xd8] sm:$0xff] %vm1440_vm13, %v4461_v41  ;;  %5881 = vmatprep.mubr.msk.f32.mxu1 %vm4843_vm0, %v4811_v18 }
 0x621   : > { %4487 = vst.msk [vmem:[#allocation2 + $0x58] sm:$0xff] %vm1440_vm13, %v4445_v59  ;;  %5873 = vmatprep.mubr.msk.f32.mxu0 %vm4843_vm0, %v4795_v16  ;;  %5021 = vmatmul.mubr.f32.gmra.mrb[8].mxu1 %v4810_v13 }
 0x622   : > { %4981 = vmatmul.mubr.f32.gmra.mrb[8].mxu0 %v4794_v11 }
 0x623   : > { %v4175_v23 = vpop.permute.xlu1 %4174 }
 0x624   : > { %v4159_v42 = vpop.permute.xlu0 %4158  ;;  %4208 = vst.msk [vmem:[#allocation2 + $0xe8] sm:$0xff] %vm1149_vm10, %v4175_v23 }
 0x625   : > { %4200 = vst.msk [vmem:[#allocation2 + $0x68] sm:$0xff] %vm1149_vm10, %v4159_v42 }
 0x627   : > { %v4557_v46 = vpop.permute.xlu1 %4556 }
 0x628   : > { %v4541_v9 = vpop.permute.xlu0 %4540  ;;  %4591 = vst.msk [vmem:[#allocation2 + $0xd8] sm:$0xff] %vm9906_vm14, %v4557_v46  ;;  %vm9919_vm14 = vmmov %vm9907_vm1 }
 0x629   : > { %4583 = vst.msk [vmem:[#allocation2 + $0x58] sm:$0xff] %vm9907_vm1, %v4541_v9 }
 0x62b   : > { %v3886_v43 = vpop.permute.xlu1 %3885 }
 0x62c   : > { %v3870_v24 = vpop.permute.xlu0 %3869  ;;  %3918 = vst.msk [vmem:[#allocation2 + $0xf8] sm:$0xff] %vm858_vm7, %v3886_v43 }
 0x62d   : > { %3910 = vst.msk [vmem:[#allocation2 + $0x78] sm:$0xff] %vm858_vm7, %v3870_v24  ;;  %vm9910_vm7 = vmmov %vm9904_vm6 }
 0x62e   : > { %vm9917_vm6 = vmmov %vm9911_vm4 }
 0x62f   : > { %v4271_v7 = vpop.permute.xlu1 %4270 }
 0x630   : > { %v4255_v50 = vpop.permute.xlu0 %4254  ;;  %4304 = vst.msk [vmem:[#allocation2 + $0xe8] sm:$0xff] %vm1246_vm11, %v4271_v7 }
 0x631   : > { %4296 = vst.msk [vmem:[#allocation2 + $0x68] sm:$0xff] %vm1246_vm11, %v4255_v50 }
 0x633   : > { %v4653_v15 = vpop.permute.xlu1 %4652 }
 0x634   : > { %v4637_v45 = vpop.permute.xlu0 %4636  ;;  %4687 = vst.msk [vmem:[#allocation2 + $0xd8] sm:$0xff] %vm9908_vm2, %v4653_v15 }
 0x635   : > { %4679 = vst.msk [vmem:[#allocation2 + $0x58] sm:$0xff] %vm9909_vm3, %v4637_v45 }
 0x637   : > { %v3982_v0 = vpop.permute.xlu1 %3981 }
 0x638   : > { %v3966_v31 = vpop.permute.xlu0 %3965  ;;  %4014 = vst.msk [vmem:[#allocation2 + $0xf8] sm:$0xff] %vm955_vm8, %v3982_v0 }
 0x639   : > { %4006 = vst.msk [vmem:[#allocation2 + $0x78] sm:$0xff] %vm955_vm8, %v3966_v31  ;;  %vm9912_vm8 = vmmov %vm9907_vm1 }
 0x63b   : > { %v4367_v21 = vpop.permute.xlu1 %4366 }
 0x63c   : > { %v4351_v53 = vpop.permute.xlu0 %4350  ;;  %4400 = vst.msk [vmem:[#allocation2 + $0xe8] sm:$0xff] %vm1343_vm12, %v4367_v21 }
 0x63d   : > { %4392 = vst.msk [vmem:[#allocation2 + $0x68] sm:$0xff] %vm1343_vm12, %v4351_v53 }
 0x63f   : > { %v4749_v12 = vpop.permute.xlu1 %4748 }
 0x640   : > { %v4733_v25 = vpop.permute.xlu0 %4732  ;;  %4783 = vst.msk [vmem:[#allocation2 + $0xd8] sm:$0xff] %vm9910_vm7, %v4749_v12 }
 0x641   : > { %4775 = vst.msk [vmem:[#allocation2 + $0x58] sm:$0xff] %vm9911_vm4, %v4733_v25 }
 0x643   : > { %v4078_v3 = vpop.permute.xlu1 %4077 }
 0x644   : > { %v4062_v49 = vpop.permute.xlu0 %4061  ;;  %4110 = vst.msk [vmem:[#allocation2 + $0xf8] sm:$0xff] %vm1052_vm9, %v4078_v3 }
 0x645   : > { %4102 = vst.msk [vmem:[#allocation2 + $0x78] sm:$0xff] %vm1052_vm9, %v4062_v49  ;;  %vm9913_vm9 = vmmov %vm9907_vm1 }
 0x646   : > { %vm9922_vm1 = vmmov %vm9911_vm4 }
 0x647   : > { %v4463_v28 = vpop.permute.xlu1 %4462  ;;  %v4813_v55 = vld [vmem:[#allocation2 + $0xd8] sm:$0xff] }
 0x648   : > { %v4447_v29 = vpop.permute.xlu0 %4446  ;;  %v4797_v54 = vld [vmem:[#allocation2 + $0x58] sm:$0xff]  ;;  %4496 = vst.msk [vmem:[#allocation2 + $0xe8] sm:$0xff] %vm1440_vm13, %v4463_v28  ;;  %5882 = vmatprep.mubr.msk.f32.mxu1 %vm4843_vm0, %v4813_v55 }
 0x649   : > { %4488 = vst.msk [vmem:[#allocation2 + $0x68] sm:$0xff] %vm1440_vm13, %v4447_v29  ;;  %5874 = vmatprep.mubr.msk.f32.mxu0 %vm4843_vm0, %v4797_v54  ;;  %5026 = vmatmul.mubr.f32.gmra.mrb[10].mxu1 %v4812_v62 }
 0x64a   : > { %4986 = vmatmul.mubr.f32.gmra.mrb[10].mxu0 %v4796_v19 }
 0x64b   : > { %v4177_v37 = vpop.permute.xlu1 %4176 }
 0x64c   : > { %v4161_v60 = vpop.permute.xlu0 %4160  ;;  %4209 = vst.msk [vmem:[#allocation2 + $0xf8] sm:$0xff] %vm1149_vm10, %v4177_v37 }
 0x64d   : > { %4201 = vst.msk [vmem:[#allocation2 + $0x78] sm:$0xff] %vm1149_vm10, %v4161_v60  ;;  %vm9914_vm10 = vmmov %vm9908_vm2 }
 0x64f   : > { %v4559_v63 = vpop.permute.xlu1 %4558 }
 0x650   : > { %v4543_v30 = vpop.permute.xlu0 %4542  ;;  %4592 = vst.msk [vmem:[#allocation2 + $0xe8] sm:$0xff] %vm9912_vm8, %v4559_v63 }
 0x651   : > { %4584 = vst.msk [vmem:[#allocation2 + $0x68] sm:$0xff] %vm9913_vm9, %v4543_v30 }
 0x653   : > { %v4273_v44 = vpop.permute.xlu1 %4272 }
 0x654   : > { %v4257_v6 = vpop.permute.xlu0 %4256  ;;  %4305 = vst.msk [vmem:[#allocation2 + $0xf8] sm:$0xff] %vm1246_vm11, %v4273_v44 }
 0x655   : > { %4297 = vst.msk [vmem:[#allocation2 + $0x78] sm:$0xff] %vm1246_vm11, %v4257_v6  ;;  %v4962_v51 = vpop.f32.mrb[0].mxu0  ;;  %vm9916_vm11 = vmmov %vm9911_vm4 }
 0x656   : > { %v5002_v20 = vpop.f32.mrb[0].mxu1  ;;  %5041 = vst [vmem:[%s9543_s26] sm:$0xff] %v4962_v51  ;;  %v4964_v27 = vpop.f32.mrb[1].mxu0 }
 0x657   : > { %5049 = vst [vmem:[%s9543_s26 + $0x40] sm:$0xff] %v5002_v20  ;;  %v5004_v4 = vpop.f32.mrb[1].mxu1  ;;  %v4655_v38 = vpop.permute.xlu1 %4654 }
 0x658   : > { %v4639_v10 = vpop.permute.xlu0 %4638  ;;  %4688 = vst.msk [vmem:[#allocation2 + $0xe8] sm:$0xff] %vm9914_vm10, %v4655_v38 }
 0x659   : > { %4680 = vst.msk [vmem:[#allocation2 + $0x68] sm:$0xff] %vm9915_vm5, %v4639_v10 }
 0x65b   : > { %v4369_v61 = vpop.permute.xlu1 %4368 }
 0x65c   : > { %v4353_v17 = vpop.permute.xlu0 %4352  ;;  %4401 = vst.msk [vmem:[#allocation2 + $0xf8] sm:$0xff] %vm1343_vm12, %v4369_v61 }
 0x65d   : > { %4393 = vst.msk [vmem:[#allocation2 + $0x78] sm:$0xff] %vm1343_vm12, %v4353_v17  ;;  %vm9920_vm12 = vmmov %vm9908_vm2 }
 0x65f   : > { %v4751_v48 = vpop.permute.xlu1 %4750 }
 0x660   : > { %v4735_v52 = vpop.permute.xlu0 %4734  ;;  %4784 = vst.msk [vmem:[#allocation2 + $0xe8] sm:$0xff] %vm9916_vm11, %v4751_v48 }
 0x661   : > { %4776 = vst.msk [vmem:[#allocation2 + $0x68] sm:$0xff] %vm9917_vm6, %v4735_v52 }
 0x663   : > { %v4465_v32 = vpop.permute.xlu1 %4464 }
 0x664   : > { %v4449_v47 = vpop.permute.xlu0 %4448  ;;  %4497 = vst.msk [vmem:[#allocation2 + $0xf8] sm:$0xff] %vm1440_vm13, %v4465_v32 }
 0x665   : > { %4489 = vst.msk [vmem:[#allocation2 + $0x78] sm:$0xff] %vm1440_vm13, %v4449_v47  ;;  %vm9921_vm13 = vmmov %vm9908_vm2 }
 0x666   : > { %vm9923_vm2 = vmmov %vm9922_vm1 }
 0x667   : > { %v4561_v33 = vpop.permute.xlu1 %4560  ;;  %v4815_v56 = vld [vmem:[#allocation2 + $0xe8] sm:$0xff] }
 0x668   : > { %v4545_v36 = vpop.permute.xlu0 %4544  ;;  %v4799_v34 = vld [vmem:[#allocation2 + $0x68] sm:$0xff]  ;;  %4593 = vst.msk [vmem:[#allocation2 + $0xf8] sm:$0xff] %vm9918_vm15, %v4561_v33  ;;  %5883 = vmatprep.mubr.msk.f32.mxu1 %vm4843_vm0, %v4815_v56 }
 0x669   : > { %4585 = vst.msk [vmem:[#allocation2 + $0x78] sm:$0xff] %vm9919_vm14, %v4545_v36  ;;  %5875 = vmatprep.mubr.msk.f32.mxu0 %vm4843_vm0, %v4799_v34  ;;  %5031 = vmatmul.mubr.f32.gmra.mrb[12].mxu1 %v4814_v8 }
 0x66a   : > { %4991 = vmatmul.mubr.f32.gmra.mrb[12].mxu0 %v4798_v35 }
 0x66b   : > { %v4657_v1 = vpop.permute.xlu1 %4656 }
 0x66c   : > { %v4641_v26 = vpop.permute.xlu0 %4640  ;;  %4689 = vst.msk [vmem:[#allocation2 + $0xf8] sm:$0xff] %vm9920_vm12, %v4657_v1 }
 0x66d   : > { %4681 = vst.msk [vmem:[#allocation2 + $0x78] sm:$0xff] %vm9921_vm13, %v4641_v26 }
 0x66f   : > { %v4753_v39 = vpop.permute.xlu1 %4752 }
 0x670   : > { %v4737_v5 = vpop.permute.xlu0 %4736  ;;  %4785 = vst.msk [vmem:[#allocation2 + $0xf8] sm:$0xff] %vm9922_vm1, %v4753_v39 }
 0x671   : > { %4777 = vst.msk [vmem:[#allocation2 + $0x78] sm:$0xff] %vm9923_vm2, %v4737_v5 }
 0x677   : > { %v4817_v57 = vld [vmem:[#allocation2 + $0xf8] sm:$0xff] }
 0x678   : > { %v4801_v22 = vld [vmem:[#allocation2 + $0x78] sm:$0xff]  ;;  %5884 = vmatprep.mubr.msk.f32.mxu1 %vm4843_vm0, %v4817_v57 }
 0x679   : > { %5876 = vmatprep.mubr.msk.f32.mxu0 %vm4843_vm0, %v4801_v22  ;;  %5036 = vmatmul.mubr.f32.gmra.mrb[14].mxu1 %v4816_v40 }
 0x67a   : > { %4996 = vmatmul.mubr.f32.gmra.mrb[14].mxu0 %v4800_v2 }
 0x67d   : > { %v4967_v14 = vpop.f32.mrb[2].mxu0 }
 0x67e   : > { %v5007_v58 = vpop.f32.mrb[2].mxu1  ;;  %5042 = vst [vmem:[%s9543_s26 + $0x8] sm:$0xff] %v4967_v14  ;;  %v4969_v41 = vpop.f32.mrb[3].mxu0 }
 0x67f   : > { %5050 = vst [vmem:[%s9543_s26 + $0x48] sm:$0xff] %v5007_v58  ;;  %v5009_v59 = vpop.f32.mrb[3].mxu1 }
 0x6a5   : > { %v4972_v16 = vpop.f32.mrb[4].mxu0 }
 0x6a6   : > { %v5012_v18 = vpop.f32.mrb[4].mxu1  ;;  %5043 = vst [vmem:[%s9543_s26 + $0x10] sm:$0xff] %v4972_v16  ;;  %v4974_v11 = vpop.f32.mrb[5].mxu0 }
 0x6a7   : > { %5051 = vst [vmem:[%s9543_s26 + $0x50] sm:$0xff] %v5012_v18  ;;  %v5014_v13 = vpop.f32.mrb[5].mxu1 }
 0x6cd   : > { %v4977_v23 = vpop.f32.mrb[6].mxu0 }
 0x6ce   : > { %v5017_v42 = vpop.f32.mrb[6].mxu1  ;;  %5044 = vst [vmem:[%s9543_s26 + $0x18] sm:$0xff] %v4977_v23  ;;  %v4979_v46 = vpop.f32.mrb[7].mxu0 }
 0x6cf   : > { %5052 = vst [vmem:[%s9543_s26 + $0x58] sm:$0xff] %v5017_v42  ;;  %v5019_v9 = vpop.f32.mrb[7].mxu1 }
 0x6f4   : > { %v5022_v24 = vpop.f32.mrb[8].mxu1 }
 0x6f5   : > { %v4982_v43 = vpop.f32.mrb[8].mxu0  ;;  %5053 = vst [vmem:[%s9543_s26 + $0x60] sm:$0xff] %v5022_v24  ;;  %v5024_v50 = vpop.f32.mrb[9].mxu1 }
 0x6f6   : > { %5045 = vst [vmem:[%s9543_s26 + $0x20] sm:$0xff] %v4982_v43  ;;  %v4984_v7 = vpop.f32.mrb[9].mxu0 }
 0x71c   : > { %v5027_v45 = vpop.f32.mrb[10].mxu1 }
 0x71d   : > { %v4987_v15 = vpop.f32.mrb[10].mxu0  ;;  %5054 = vst [vmem:[%s9543_s26 + $0x68] sm:$0xff] %v5027_v45  ;;  %v5029_v31 = vpop.f32.mrb[11].mxu1 }
 0x71e   : > { %5046 = vst [vmem:[%s9543_s26 + $0x28] sm:$0xff] %v4987_v15  ;;  %v4989_v0 = vpop.f32.mrb[11].mxu0 }
 0x73c   : > { %v5032_v53 = vpop.f32.mrb[12].mxu1 }
 0x73d   : > { %v4992_v21 = vpop.f32.mrb[12].mxu0  ;;  %5055 = vst [vmem:[%s9543_s26 + $0x70] sm:$0xff] %v5032_v53  ;;  %v5034_v25 = vpop.f32.mrb[13].mxu1 }
 0x73e   : > { %5047 = vst [vmem:[%s9543_s26 + $0x30] sm:$0xff] %v4992_v21  ;;  %v4994_v12 = vpop.f32.mrb[13].mxu0 }
 0x74c   : > { %v5037_v49 = vpop.f32.mrb[14].mxu1 }
 0x74d   : > { %v4997_v3 = vpop.f32.mrb[14].mxu0  ;;  %5056 = vst [vmem:[%s9543_s26 + $0x78] sm:$0xff] %v5037_v49  ;;  %v5039_v29 = vpop.f32.mrb[15].mxu1 }
 0x74e   : > { %5048 = vst [vmem:[%s9543_s26 + $0x38] sm:$0xff] %v4997_v3  ;;  %v4999_v28 = vpop.f32.mrb[15].mxu0 }
 0x74f   : > { %6072 = shalt.err (!%p6069_p6)
}
 0x750   : > { %s6073_s6 = scalar_lea.hbm %s9583_s17, 2048  ;;  %s6077_s28 = scalar_lea.hbm %s9646_s2, 8192 }
 0x751   : > { %p6074_p7 = scmp.ne.s32.totalorder %s9583_s17, %s6073_s6  ;;  %p6078_p11 = scmp.lt.u32.totalorder %s9583_s17, %s9646_s2 }
 0x752   : > { %p6079_p12 = scmp.lt.u32.totalorder %s6077_s28, %s6073_s6  ;;  %p6081_p0 = scmp.lt.u32.totalorder %s6073_s6, %s9583_s17 }
 0x753   : > { %p6075_p9 = pnand %p6074_p7, %p6256_p3 }
 0x754   : > { %p6080_p13 = por %p6079_p12, %p6078_p11 }
 0x755   : > { %p6076_p10 = pneg %p6075_p9 }
 0x756   : > { %p6082_p1 = por %p6081_p0, %p6080_p13 }
 0x758   : > { %p6083_p2 = pnand %p6082_p1, %p6076_p10 }
 0x75a   : > { %6086 = shalt.err (!%p6083_p2)
}
 0x75b   : > { %s6189_s3 = smov 128  }
 0x75c   : > { %5954 = dma.vmem_to_hbm [thread:$0]  (%p6256_p3), %s9585_s21, 2048, %s9583_s17, %s9591_s12, %s6189_s3, %s6189_s3, %s6156_s8  }
 0x75d PF: > { %p5960_p4 = scmp.ge.s32.totalorder %s6153_s16, 2  ;;  %s5088_s4 = sand.u32 1, %s6125_s9  }
 0x75e   : > { %s5089_s18 = scalar_lea.sflag [#allocation4], %s5088_s4 }
 0x75f   : > { %p5957_p5 = pnand %p5960_p4, %p6265_p8 }
 0x761   : > { %6120 = dma.done.wait (!%p5957_p5), %s5089_s18, 2048  }
 0x762   : > { %6122 = vsyncadd (!%p5957_p5), %s5089_s18, 4294965248  ;;  %s15_s16 = sadd.s32 1, %s6153_s16   ;;  %s9924_s9 = smov %s6129_s10 }
 0x763   : > { %p12_p6 = scmp.ge.s32.totalorder %s15_s16, 6   ;;  %s9925_s10 = smov %s6133_s11 }
 0x764   : > { %s9926_s11 = smov %s6274_s27  ;;  %s9927_s12 = smov %s6145_s14 }
 0x765   : > { %s9928_s13 = smov %s6149_s15  ;;  %s9929_s14 = smov %s9932_s19 }
 0x766   : > { %s9930_s15 = smov %s9936_s20  ;;  %14 = sbr.rel (!%p12_p6) target bundleno = 5 (0x5), region = 70 }
 0x76d   :  { %5094 = vsyncpa [#allocation4], 1 }
 0x76e   :  { %5096 = vsyncpa [#allocation4 + $0x1], 1 }

</bundles_post_ra>
